<compile_context>
chip_gen: v7x
topology: tpu7x:2x2x1
jax: 0.10.0
libtpu: 0.0.40
codegen_flags: <defaults>
</compile_context>

<pallas_src>
import math

import jax
import jax.numpy as jnp
from jax import lax
from jax.experimental import pallas as pl
from jax.experimental.pallas import tpu as pltpu


# --------------------------------------------------------------------------
# Pallas kernel: one LSTM layer, BOTH directions fused, sequence in VMEM.
#   x_ref    : (T*B, Din)   time-major, flattened over (T, B)
#   wih_*    : (Din, 4H)    whh_* : (H, 4H)    b_* : (1, 4H)   gates (i,f,g,o)
#   y_ref    : (T, B, 2H)   [:, :, :H] = forward, [:, :, H:] = reverse
#   xw*_scr  : (T*B, 4H)    precomputed input projections (VMEM scratch)
# --------------------------------------------------------------------------
def _bilstm_layer_kernel(x_ref, wih_f_ref, whh_f_ref, b_f_ref,
                         wih_r_ref, whh_r_ref, b_r_ref,
                         y_ref, xwf_scr, xwr_scr):
    T, B, H2 = y_ref.shape
    H = H2 // 2

    # ---- input projection hoisted out of the recurrence (one big MXU matmul
    #      per direction, bias folded in once) --------------------------------
    x2d = x_ref[...]                                         # (T*B, Din)
    xwf_scr[...] = (jnp.dot(x2d, wih_f_ref[...],
                            preferred_element_type=jnp.float32) + b_f_ref[...])
    xwr_scr[...] = (jnp.dot(x2d, wih_r_ref[...],
                            preferred_element_type=jnp.float32) + b_r_ref[...])

    # Hoist recurrent weights out of the loop (stay in vregs).
    whh_f = whh_f_ref[...]
    whh_r = whh_r_ref[...]

    def lstm_cell(gates, c_prev):
        i = jax.nn.sigmoid(gates[:, 0 * H:1 * H])
        f = jax.nn.sigmoid(gates[:, 1 * H:2 * H])
        g = jnp.tanh(gates[:, 2 * H:3 * H])
        o = jax.nn.sigmoid(gates[:, 3 * H:4 * H])
        c = f * c_prev + i * g
        h = o * jnp.tanh(c)
        return h, c

    def step(t, carry):
        h_f, c_f, h_r, c_r = carry
        t_r = T - 1 - t
        # Only work on the serial h->h critical path: the recurrent matmuls.
        gates_f = xwf_scr[pl.ds(t * B, B), :] + jnp.dot(
            h_f, whh_f, preferred_element_type=jnp.float32)
        gates_r = xwr_scr[pl.ds(t_r * B, B), :] + jnp.dot(
            h_r, whh_r, preferred_element_type=jnp.float32)
        h_f, c_f = lstm_cell(gates_f, c_f)
        h_r, c_r = lstm_cell(gates_r, c_r)
        y_ref[t, :, 0:H] = h_f                   # forward half
        y_ref[t_r, :, H:H2] = h_r                # reverse half (reversed time)
        return (h_f, c_f, h_r, c_r)

    z = jnp.zeros((B, H), jnp.float32)
    # T is small & static -> fully unroll so non-recurrent work overlaps the
    # next step's MXU latency.
    lax.fori_loop(0, T, step, (z, z, z, z), unroll=True)


def bilstm_layer_pallas(x_tbd, fwd, rev):
    """x_tbd: (T, B, Din) time-major -> (T, B, 2H)."""
    T, B, _ = x_tbd.shape
    wih_f, whh_f, b_f = fwd
    wih_r, whh_r, b_r = rev
    H = whh_f.shape[0]
    x2d = x_tbd.reshape(T * B, -1)
    return pl.pallas_call(
        _bilstm_layer_kernel,
        out_shape=jax.ShapeDtypeStruct((T, B, 2 * H), jnp.float32),
        in_specs=[pl.BlockSpec(memory_space=pltpu.MemorySpace.VMEM)] * 7,
        out_specs=pl.BlockSpec(memory_space=pltpu.MemorySpace.VMEM),
        scratch_shapes=[pltpu.VMEM((T * B, 4 * H), jnp.float32),
                        pltpu.VMEM((T * B, 4 * H), jnp.float32)],
    )(x2d, wih_f, whh_f, b_f, wih_r, whh_r, b_r)


# --------------------------------------------------------------------------
# Pallas kernel: batched matmul  result[b] = o1[b] @ o2[b].T
# (contraction on the last axes -> no in-kernel transpose)
# --------------------------------------------------------------------------
def _bmm_nt_kernel(a_ref, b_ref, o_ref):
    o_ref[0] = lax.dot_general(
        a_ref[0], b_ref[0],
        dimension_numbers=(((1,), (1,)), ((), ())),
        preferred_element_type=jnp.float32)


def bmm_nt_pallas(a, b):
    """a: (B, Ta, F), b: (B, Tb, F) -> (B, Ta, Tb)."""
    B, Ta, F = a.shape
    _, Tb, _ = b.shape
    return pl.pallas_call(
        _bmm_nt_kernel,
        out_shape=jax.ShapeDtypeStruct((B, Ta, Tb), jnp.float32),
        grid=(B,),
        in_specs=[pl.BlockSpec((1, Ta, F), lambda i: (i, 0, 0)),
                  pl.BlockSpec((1, Tb, F), lambda i: (i, 0, 0))],
        out_specs=pl.BlockSpec((1, Ta, Tb), lambda i: (i, 0, 0)),
        compiler_params=pltpu.CompilerParams(dimension_semantics=("parallel",)),
    )(a, b)


# --------------------------------------------------------------------------
# Glue: multi-layer bidirectional LSTM built from the fused per-layer kernel.
# --------------------------------------------------------------------------
def bilstm_pallas(x_btd, params):
    """x_btd: (B, T, D) batch-first (PyTorch convention) -> (B, T, 2H)."""
    x = jnp.transpose(x_btd, (1, 0, 2))              # time-major (T, B, D)
    for (fwd, rev) in params:
        x = bilstm_layer_pallas(x, fwd, rev)         # (T, B, 2H) - no XLA glue
    return jnp.transpose(x, (1, 0, 2))


def bilstm_merge_forward(params1, params2, x_ag, x_ab):
    out1 = bilstm_pallas(x_ag, params1)              # (B, T_ag, 2H)
    out2 = bilstm_pallas(x_ab, params2)              # (B, T_ab, 2H)
    # dropout: inference mode -> identity
    return bmm_nt_pallas(out1, out2)                 # (B, T_ag, T_ab)


# --------------------------------------------------------------------------
# Parameter init (deterministic; PyTorch-style U(-1/sqrt(H), 1/sqrt(H))).
# Weights stored pre-transposed: w_ih (Din, 4H), w_hh (H, 4H), b (1, 4H).
# --------------------------------------------------------------------------
def init_bilstm_params(key, input_size, hidden_size, num_layers):
    k = 1.0 / math.sqrt(hidden_size)
    params = []
    for layer in range(num_layers):
        din = input_size if layer == 0 else 2 * hidden_size
        dirs = []
        for _ in range(2):  # forward, reverse
            key, k1, k2, k3, k4 = jax.random.split(key, 5)
            w_ih = jax.random.uniform(k1, (4 * hidden_size, din), jnp.float32, -k, k)
            w_hh = jax.random.uniform(k2, (4 * hidden_size, hidden_size), jnp.float32, -k, k)
            b_ih = jax.random.uniform(k3, (4 * hidden_size,), jnp.float32, -k, k)
            b_hh = jax.random.uniform(k4, (4 * hidden_size,), jnp.float32, -k, k)
            dirs.append((w_ih.T, w_hh.T, (b_ih + b_hh)[None, :]))
        params.append(tuple(dirs))
    return params, key


# --------------------------------------------------------------------------
# Pure-JAX reference (for correctness check against the Pallas kernels).
# --------------------------------------------------------------------------
def _lstm_layer_ref(x_tbd, w_ih_t, w_hh_t, b):
    H = w_hh_t.shape[0]
    B = x_tbd.shape[1]

    def step(carry, x_t):
        h, c = carry
        gates = x_t @ w_ih_t + h @ w_hh_t + b
        i = jax.nn.sigmoid(gates[:, :H])
        f = jax.nn.sigmoid(gates[:, H:2 * H])
        g = jnp.tanh(gates[:, 2 * H:3 * H])
        o = jax.nn.sigmoid(gates[:, 3 * H:])
        c = f * c + i * g
        h = o * jnp.tanh(c)
        return (h, c), h

    init = (jnp.zeros((B, H), jnp.float32), jnp.zeros((B, H), jnp.float32))
    _, ys = lax.scan(step, init, x_tbd)
    return ys


def _bilstm_ref(x_btd, params):
    x = jnp.transpose(x_btd, (1, 0, 2))
    for (fwd, rev) in params:
        y_f = _lstm_layer_ref(x, *fwd)
        y_r = _lstm_layer_ref(x[::-1], *rev)[::-1]
        x = jnp.concatenate([y_f, y_r], axis=-1)
    return jnp.transpose(x, (1, 0, 2))


def _forward_ref(params1, params2, x_ag, x_ab):
    o1 = _bilstm_ref(x_ag, params1)
    o2 = _bilstm_ref(x_ab, params2)
    return jnp.einsum("btf,bsf->bts", o1, o2)


# --------------------------------------------------------------------------
if __name__ == "__main__":
    input_size, hidden_size, num_layers = 16, 32, 2
    B, T_ag, T_ab = 2, 8, 12

    key = jax.random.PRNGKey(0)
    params1, key = init_bilstm_params(key, input_size, hidden_size, num_layers)
    params2, key = init_bilstm_params(key, input_size, hidden_size, num_layers)
    key, kx1, kx2 = jax.random.split(key, 3)
    x_ag = jax.random.normal(kx1, (B, T_ag, input_size), jnp.float32)
    x_ab = jax.random.normal(kx2, (B, T_ab, input_size), jnp.float32)

    result = jax.jit(bilstm_merge_forward)(params1, params2, x_ag, x_ab)
    result = jax.block_until_ready(result)

    ref = _forward_ref(params1, params2, x_ag, x_ab)
    assert result.shape == (B, T_ag, T_ab), result.shape
    assert jnp.allclose(result, ref, rtol=1e-4, atol=1e-4), float(
        jnp.max(jnp.abs(result - ref)))

    print("KERNEL_OK")
</pallas_src>

<mosaic_0001>
module attributes {stable_mosaic.version = 11 : i64} {
  func.func @_bilstm_layer_kernel(%arg0: memref<24x64xf32, #tpu.memory_space<vmem>>, %arg1: memref<64x128xf32, #tpu.memory_space<vmem>>, %arg2: memref<32x128xf32, #tpu.memory_space<vmem>>, %arg3: memref<1x128xf32, #tpu.memory_space<vmem>>, %arg4: memref<64x128xf32, #tpu.memory_space<vmem>>, %arg5: memref<32x128xf32, #tpu.memory_space<vmem>>, %arg6: memref<1x128xf32, #tpu.memory_space<vmem>>, %arg7: memref<12x2x64xf32, #tpu.memory_space<vmem>>, %arg8: memref<24x128xf32, #tpu.memory_space<vmem>>, %arg9: memref<24x128xf32, #tpu.memory_space<vmem>>) attributes {dimension_semantics = [], scalar_prefetch = 0 : i64, scratch_operands = 2 : i64, tpu.core_type = #tpu.core_type<tc>} {
    %c0 = arith.constant 0 : index
    %c0_0 = arith.constant 0 : index
    %0 = vector.load %arg0[%c0, %c0_0] : memref<24x64xf32, #tpu.memory_space<vmem>>, vector<24x64xf32>
    %c0_1 = arith.constant 0 : index
    %c0_2 = arith.constant 0 : index
    %1 = vector.load %arg1[%c0_1, %c0_2] : memref<64x128xf32, #tpu.memory_space<vmem>>, vector<64x128xf32>
    %cst = arith.constant dense<0.000000e+00> : vector<24x128xf32>
    %2 = tpu.matmul %0, %1, %cst {dimension_numbers = #tpu.dot_dimension_numbers<[1], [0], [0], [1], [0, 0, 1, 1], [], []>} : vector<24x64xf32>, vector<64x128xf32>, vector<24x128xf32> -> vector<24x128xf32>
    %c0_3 = arith.constant 0 : index
    %c0_4 = arith.constant 0 : index
    %3 = vector.load %arg3[%c0_3, %c0_4] : memref<1x128xf32, #tpu.memory_space<vmem>>, vector<1x128xf32>
    %4 = vector.broadcast %3 : vector<1x128xf32> to vector<24x128xf32>
    %5 = arith.addf %2, %4 : vector<24x128xf32>
    %c0_5 = arith.constant 0 : index
    %c0_6 = arith.constant 0 : index
    %6 = vector.load %arg8[%c0_5, %c0_6] : memref<24x128xf32, #tpu.memory_space<vmem>>, vector<24x128xf32>
    tpu.vector_store %arg8[%c0_5, %c0_6], %5 {strides = array<i32>} : memref<24x128xf32, #tpu.memory_space<vmem>>, vector<24x128xf32>,
    %c0_7 = arith.constant 0 : index
    %c0_8 = arith.constant 0 : index
    %7 = vector.load %arg4[%c0_7, %c0_8] : memref<64x128xf32, #tpu.memory_space<vmem>>, vector<64x128xf32>
    %cst_9 = arith.constant dense<0.000000e+00> : vector<24x128xf32>
    %8 = tpu.matmul %0, %7, %cst_9 {dimension_numbers = #tpu.dot_dimension_numbers<[1], [0], [0], [1], [0, 0, 1, 1], [], []>} : vector<24x64xf32>, vector<64x128xf32>, vector<24x128xf32> -> vector<24x128xf32>
    %c0_10 = arith.constant 0 : index
    %c0_11 = arith.constant 0 : index
    %9 = vector.load %arg6[%c0_10, %c0_11] : memref<1x128xf32, #tpu.memory_space<vmem>>, vector<1x128xf32>
    %10 = vector.broadcast %9 : vector<1x128xf32> to vector<24x128xf32>
    %11 = arith.addf %8, %10 : vector<24x128xf32>
    %c0_12 = arith.constant 0 : index
    %c0_13 = arith.constant 0 : index
    %12 = vector.load %arg9[%c0_12, %c0_13] : memref<24x128xf32, #tpu.memory_space<vmem>>, vector<24x128xf32>
    tpu.vector_store %arg9[%c0_12, %c0_13], %11 {strides = array<i32>} : memref<24x128xf32, #tpu.memory_space<vmem>>, vector<24x128xf32>,
    %c0_14 = arith.constant 0 : index
    %c0_15 = arith.constant 0 : index
    %13 = vector.load %arg2[%c0_14, %c0_15] : memref<32x128xf32, #tpu.memory_space<vmem>>, vector<32x128xf32>
    %c0_16 = arith.constant 0 : index
    %c0_17 = arith.constant 0 : index
    %14 = vector.load %arg5[%c0_16, %c0_17] : memref<32x128xf32, #tpu.memory_space<vmem>>, vector<32x128xf32>
    %cst_18 = arith.constant 0.000000e+00 : f32
    %15 = vector.broadcast %cst_18 : f32 to vector<2x32xf32>
    %c0_i32 = arith.constant 0 : i32
    %c11_i32 = arith.constant 11 : i32
    %16 = arith.subi %c11_i32, %c0_i32 : i32
    %c2_i32 = arith.constant 2 : i32
    %17 = arith.muli %c0_i32, %c2_i32 : i32
    %18 = arith.index_cast %17 : i32 to index
    %c0_19 = arith.constant 0 : index
    %19 = vector.load %arg8[%18, %c0_19] : memref<24x128xf32, #tpu.memory_space<vmem>>, vector<2x128xf32>
    %cst_20 = arith.constant dense<0.000000e+00> : vector<2x128xf32>
    %20 = tpu.matmul %15, %13, %cst_20 {dimension_numbers = #tpu.dot_dimension_numbers<[1], [0], [0], [1], [0, 0, 1, 1], [], []>} : vector<2x32xf32>, vector<32x128xf32>, vector<2x128xf32> -> vector<2x128xf32>
    %21 = arith.addf %19, %20 : vector<2x128xf32>
    %c2_i32_21 = arith.constant 2 : i32
    %22 = arith.muli %16, %c2_i32_21 : i32
    %23 = arith.index_cast %22 : i32 to index
    %c0_22 = arith.constant 0 : index
    %24 = vector.load %arg9[%23, %c0_22] : memref<24x128xf32, #tpu.memory_space<vmem>>, vector<2x128xf32>
    %cst_23 = arith.constant dense<0.000000e+00> : vector<2x128xf32>
    %25 = tpu.matmul %15, %14, %cst_23 {dimension_numbers = #tpu.dot_dimension_numbers<[1], [0], [0], [1], [0, 0, 1, 1], [], []>} : vector<2x32xf32>, vector<32x128xf32>, vector<2x128xf32> -> vector<2x128xf32>
    %26 = arith.addf %24, %25 : vector<2x128xf32>
    %27 = vector.extract_strided_slice %21 {offsets = [0, 0], sizes = [2, 32], strides = [1, 1]} : vector<2x128xf32> to vector<2x32xf32>
    %28 = arith.negf %27 : vector<2x32xf32>
    %29 = math.exp %28 : vector<2x32xf32>
    %cst_24 = arith.constant 1.000000e+00 : f32
    %30 = vector.broadcast %cst_24 : f32 to vector<2x32xf32>
    %31 = arith.addf %30, %29 : vector<2x32xf32>
    %32 = arith.divf %30, %31 : vector<2x32xf32>
    %33 = vector.extract_strided_slice %21 {offsets = [0, 32], sizes = [2, 32], strides = [1, 1]} : vector<2x128xf32> to vector<2x32xf32>
    %34 = arith.negf %33 : vector<2x32xf32>
    %35 = math.exp %34 : vector<2x32xf32>
    %cst_25 = arith.constant 1.000000e+00 : f32
    %36 = vector.broadcast %cst_25 : f32 to vector<2x32xf32>
    %37 = arith.addf %36, %35 : vector<2x32xf32>
    %38 = arith.divf %36, %37 : vector<2x32xf32>
    %39 = vector.extract_strided_slice %21 {offsets = [0, 64], sizes = [2, 32], strides = [1, 1]} : vector<2x128xf32> to vector<2x32xf32>
    %40 = math.tanh %39 : vector<2x32xf32>
    %41 = vector.extract_strided_slice %21 {offsets = [0, 96], sizes = [2, 32], strides = [1, 1]} : vector<2x128xf32> to vector<2x32xf32>
    %42 = arith.negf %41 : vector<2x32xf32>
    %43 = math.exp %42 : vector<2x32xf32>
    %cst_26 = arith.constant 1.000000e+00 : f32
    %44 = vector.broadcast %cst_26 : f32 to vector<2x32xf32>
    %45 = arith.addf %44, %43 : vector<2x32xf32>
    %46 = arith.divf %44, %45 : vector<2x32xf32>
    %47 = arith.mulf %38, %15 : vector<2x32xf32>
    %48 = arith.mulf %32, %40 : vector<2x32xf32>
    %49 = arith.addf %47, %48 : vector<2x32xf32>
    %50 = math.tanh %49 : vector<2x32xf32>
    %51 = arith.mulf %46, %50 : vector<2x32xf32>
    %52 = vector.extract_strided_slice %26 {offsets = [0, 0], sizes = [2, 32], strides = [1, 1]} : vector<2x128xf32> to vector<2x32xf32>
    %53 = arith.negf %52 : vector<2x32xf32>
    %54 = math.exp %53 : vector<2x32xf32>
    %cst_27 = arith.constant 1.000000e+00 : f32
    %55 = vector.broadcast %cst_27 : f32 to vector<2x32xf32>
    %56 = arith.addf %55, %54 : vector<2x32xf32>
    %57 = arith.divf %55, %56 : vector<2x32xf32>
    %58 = vector.extract_strided_slice %26 {offsets = [0, 32], sizes = [2, 32], strides = [1, 1]} : vector<2x128xf32> to vector<2x32xf32>
    %59 = arith.negf %58 : vector<2x32xf32>
    %60 = math.exp %59 : vector<2x32xf32>
    %cst_28 = arith.constant 1.000000e+00 : f32
    %61 = vector.broadcast %cst_28 : f32 to vector<2x32xf32>
    %62 = arith.addf %61, %60 : vector<2x32xf32>
    %63 = arith.divf %61, %62 : vector<2x32xf32>
    %64 = vector.extract_strided_slice %26 {offsets = [0, 64], sizes = [2, 32], strides = [1, 1]} : vector<2x128xf32> to vector<2x32xf32>
    %65 = math.tanh %64 : vector<2x32xf32>
    %66 = vector.extract_strided_slice %26 {offsets = [0, 96], sizes = [2, 32], strides = [1, 1]} : vector<2x128xf32> to vector<2x32xf32>
    %67 = arith.negf %66 : vector<2x32xf32>
    %68 = math.exp %67 : vector<2x32xf32>
    %cst_29 = arith.constant 1.000000e+00 : f32
    %69 = vector.broadcast %cst_29 : f32 to vector<2x32xf32>
    %70 = arith.addf %69, %68 : vector<2x32xf32>
    %71 = arith.divf %69, %70 : vector<2x32xf32>
    %72 = arith.mulf %63, %15 : vector<2x32xf32>
    %73 = arith.mulf %57, %65 : vector<2x32xf32>
    %74 = arith.addf %72, %73 : vector<2x32xf32>
    %75 = math.tanh %74 : vector<2x32xf32>
    %76 = arith.mulf %71, %75 : vector<2x32xf32>
    %77 = arith.index_cast %c0_i32 : i32 to index
    %c0_30 = arith.constant 0 : index
    %c0_31 = arith.constant 0 : index
    %78 = vector.load %arg7[%77, %c0_30, %c0_31] : memref<12x2x64xf32, #tpu.memory_space<vmem>>, vector<1x2x32xf32>
    %79 = vector.shape_cast %78 : vector<1x2x32xf32> to vector<2x32xf32>
    %80 = vector.shape_cast %51 : vector<2x32xf32> to vector<1x2x32xf32>
    tpu.vector_store %arg7[%77, %c0_30, %c0_31], %80 {strides = array<i32>} : memref<12x2x64xf32, #tpu.memory_space<vmem>>, vector<1x2x32xf32>,
    %81 = arith.index_cast %16 : i32 to index
    %c0_32 = arith.constant 0 : index
    %c32 = arith.constant 32 : index
    %82 = vector.load %arg7[%81, %c0_32, %c32] : memref<12x2x64xf32, #tpu.memory_space<vmem>>, vector<1x2x32xf32>
    %83 = vector.shape_cast %82 : vector<1x2x32xf32> to vector<2x32xf32>
    %84 = vector.shape_cast %76 : vector<2x32xf32> to vector<1x2x32xf32>
    tpu.vector_store %arg7[%81, %c0_32, %c32], %84 {strides = array<i32>} : memref<12x2x64xf32, #tpu.memory_space<vmem>>, vector<1x2x32xf32>,
    %c1_i32 = arith.constant 1 : i32
    %c11_i32_33 = arith.constant 11 : i32
    %85 = arith.subi %c11_i32_33, %c1_i32 : i32
    %c2_i32_34 = arith.constant 2 : i32
    %86 = arith.muli %c1_i32, %c2_i32_34 : i32
    %87 = arith.index_cast %86 : i32 to index
    %c0_35 = arith.constant 0 : index
    %88 = vector.load %arg8[%87, %c0_35] : memref<24x128xf32, #tpu.memory_space<vmem>>, vector<2x128xf32>
    %cst_36 = arith.constant dense<0.000000e+00> : vector<2x128xf32>
    %89 = tpu.matmul %51, %13, %cst_36 {dimension_numbers = #tpu.dot_dimension_numbers<[1], [0], [0], [1], [0, 0, 1, 1], [], []>} : vector<2x32xf32>, vector<32x128xf32>, vector<2x128xf32> -> vector<2x128xf32>
    %90 = arith.addf %88, %89 : vector<2x128xf32>
    %c2_i32_37 = arith.constant 2 : i32
    %91 = arith.muli %85, %c2_i32_37 : i32
    %92 = arith.index_cast %91 : i32 to index
    %c0_38 = arith.constant 0 : index
    %93 = vector.load %arg9[%92, %c0_38] : memref<24x128xf32, #tpu.memory_space<vmem>>, vector<2x128xf32>
    %cst_39 = arith.constant dense<0.000000e+00> : vector<2x128xf32>
    %94 = tpu.matmul %76, %14, %cst_39 {dimension_numbers = #tpu.dot_dimension_numbers<[1], [0], [0], [1], [0, 0, 1, 1], [], []>} : vector<2x32xf32>, vector<32x128xf32>, vector<2x128xf32> -> vector<2x128xf32>
    %95 = arith.addf %93, %94 : vector<2x128xf32>
    %96 = vector.extract_strided_slice %90 {offsets = [0, 0], sizes = [2, 32], strides = [1, 1]} : vector<2x128xf32> to vector<2x32xf32>
    %97 = arith.negf %96 : vector<2x32xf32>
    %98 = math.exp %97 : vector<2x32xf32>
    %cst_40 = arith.constant 1.000000e+00 : f32
    %99 = vector.broadcast %cst_40 : f32 to vector<2x32xf32>
    %100 = arith.addf %99, %98 : vector<2x32xf32>
    %101 = arith.divf %99, %100 : vector<2x32xf32>
    %102 = vector.extract_strided_slice %90 {offsets = [0, 32], sizes = [2, 32], strides = [1, 1]} : vector<2x128xf32> to vector<2x32xf32>
    %103 = arith.negf %102 : vector<2x32xf32>
    %104 = math.exp %103 : vector<2x32xf32>
    %cst_41 = arith.constant 1.000000e+00 : f32
    %105 = vector.broadcast %cst_41 : f32 to vector<2x32xf32>
    %106 = arith.addf %105, %104 : vector<2x32xf32>
    %107 = arith.divf %105, %106 : vector<2x32xf32>
    %108 = vector.extract_strided_slice %90 {offsets = [0, 64], sizes = [2, 32], strides = [1, 1]} : vector<2x128xf32> to vector<2x32xf32>
    %109 = math.tanh %108 : vector<2x32xf32>
    %110 = vector.extract_strided_slice %90 {offsets = [0, 96], sizes = [2, 32], strides = [1, 1]} : vector<2x128xf32> to vector<2x32xf32>
    %111 = arith.negf %110 : vector<2x32xf32>
    %112 = math.exp %111 : vector<2x32xf32>
    %cst_42 = arith.constant 1.000000e+00 : f32
    %113 = vector.broadcast %cst_42 : f32 to vector<2x32xf32>
    %114 = arith.addf %113, %112 : vector<2x32xf32>
    %115 = arith.divf %113, %114 : vector<2x32xf32>
    %116 = arith.mulf %107, %49 : vector<2x32xf32>
    %117 = arith.mulf %101, %109 : vector<2x32xf32>
    %118 = arith.addf %116, %117 : vector<2x32xf32>
    %119 = math.tanh %118 : vector<2x32xf32>
    %120 = arith.mulf %115, %119 : vector<2x32xf32>
    %121 = vector.extract_strided_slice %95 {offsets = [0, 0], sizes = [2, 32], strides = [1, 1]} : vector<2x128xf32> to vector<2x32xf32>
    %122 = arith.negf %121 : vector<2x32xf32>
    %123 = math.exp %122 : vector<2x32xf32>
    %cst_43 = arith.constant 1.000000e+00 : f32
    %124 = vector.broadcast %cst_43 : f32 to vector<2x32xf32>
    %125 = arith.addf %124, %123 : vector<2x32xf32>
    %126 = arith.divf %124, %125 : vector<2x32xf32>
    %127 = vector.extract_strided_slice %95 {offsets = [0, 32], sizes = [2, 32], strides = [1, 1]} : vector<2x128xf32> to vector<2x32xf32>
    %128 = arith.negf %127 : vector<2x32xf32>
    %129 = math.exp %128 : vector<2x32xf32>
    %cst_44 = arith.constant 1.000000e+00 : f32
    %130 = vector.broadcast %cst_44 : f32 to vector<2x32xf32>
    %131 = arith.addf %130, %129 : vector<2x32xf32>
    %132 = arith.divf %130, %131 : vector<2x32xf32>
    %133 = vector.extract_strided_slice %95 {offsets = [0, 64], sizes = [2, 32], strides = [1, 1]} : vector<2x128xf32> to vector<2x32xf32>
    %134 = math.tanh %133 : vector<2x32xf32>
    %135 = vector.extract_strided_slice %95 {offsets = [0, 96], sizes = [2, 32], strides = [1, 1]} : vector<2x128xf32> to vector<2x32xf32>
    %136 = arith.negf %135 : vector<2x32xf32>
    %137 = math.exp %136 : vector<2x32xf32>
    %cst_45 = arith.constant 1.000000e+00 : f32
    %138 = vector.broadcast %cst_45 : f32 to vector<2x32xf32>
    %139 = arith.addf %138, %137 : vector<2x32xf32>
    %140 = arith.divf %138, %139 : vector<2x32xf32>
    %141 = arith.mulf %132, %74 : vector<2x32xf32>
    %142 = arith.mulf %126, %134 : vector<2x32xf32>
    %143 = arith.addf %141, %142 : vector<2x32xf32>
    %144 = math.tanh %143 : vector<2x32xf32>
    %145 = arith.mulf %140, %144 : vector<2x32xf32>
    %146 = arith.index_cast %c1_i32 : i32 to index
    %c0_46 = arith.constant 0 : index
    %c0_47 = arith.constant 0 : index
    %147 = vector.load %arg7[%146, %c0_46, %c0_47] : memref<12x2x64xf32, #tpu.memory_space<vmem>>, vector<1x2x32xf32>
    %148 = vector.shape_cast %147 : vector<1x2x32xf32> to vector<2x32xf32>
    %149 = vector.shape_cast %120 : vector<2x32xf32> to vector<1x2x32xf32>
    tpu.vector_store %arg7[%146, %c0_46, %c0_47], %149 {strides = array<i32>} : memref<12x2x64xf32, #tpu.memory_space<vmem>>, vector<1x2x32xf32>,
    %150 = arith.index_cast %85 : i32 to index
    %c0_48 = arith.constant 0 : index
    %c32_49 = arith.constant 32 : index
    %151 = vector.load %arg7[%150, %c0_48, %c32_49] : memref<12x2x64xf32, #tpu.memory_space<vmem>>, vector<1x2x32xf32>
    %152 = vector.shape_cast %151 : vector<1x2x32xf32> to vector<2x32xf32>
    %153 = vector.shape_cast %145 : vector<2x32xf32> to vector<1x2x32xf32>
    tpu.vector_store %arg7[%150, %c0_48, %c32_49], %153 {strides = array<i32>} : memref<12x2x64xf32, #tpu.memory_space<vmem>>, vector<1x2x32xf32>,
    %c2_i32_50 = arith.constant 2 : i32
    %c11_i32_51 = arith.constant 11 : i32
    %154 = arith.subi %c11_i32_51, %c2_i32_50 : i32
    %c2_i32_52 = arith.constant 2 : i32
    %155 = arith.muli %c2_i32_50, %c2_i32_52 : i32
    %156 = arith.index_cast %155 : i32 to index
    %c0_53 = arith.constant 0 : index
    %157 = vector.load %arg8[%156, %c0_53] : memref<24x128xf32, #tpu.memory_space<vmem>>, vector<2x128xf32>
    %cst_54 = arith.constant dense<0.000000e+00> : vector<2x128xf32>
    %158 = tpu.matmul %120, %13, %cst_54 {dimension_numbers = #tpu.dot_dimension_numbers<[1], [0], [0], [1], [0, 0, 1, 1], [], []>} : vector<2x32xf32>, vector<32x128xf32>, vector<2x128xf32> -> vector<2x128xf32>
    %159 = arith.addf %157, %158 : vector<2x128xf32>
    %c2_i32_55 = arith.constant 2 : i32
    %160 = arith.muli %154, %c2_i32_55 : i32
    %161 = arith.index_cast %160 : i32 to index
    %c0_56 = arith.constant 0 : index
    %162 = vector.load %arg9[%161, %c0_56] : memref<24x128xf32, #tpu.memory_space<vmem>>, vector<2x128xf32>
    %cst_57 = arith.constant dense<0.000000e+00> : vector<2x128xf32>
    %163 = tpu.matmul %145, %14, %cst_57 {dimension_numbers = #tpu.dot_dimension_numbers<[1], [0], [0], [1], [0, 0, 1, 1], [], []>} : vector<2x32xf32>, vector<32x128xf32>, vector<2x128xf32> -> vector<2x128xf32>
    %164 = arith.addf %162, %163 : vector<2x128xf32>
    %165 = vector.extract_strided_slice %159 {offsets = [0, 0], sizes = [2, 32], strides = [1, 1]} : vector<2x128xf32> to vector<2x32xf32>
    %166 = arith.negf %165 : vector<2x32xf32>
    %167 = math.exp %166 : vector<2x32xf32>
    %cst_58 = arith.constant 1.000000e+00 : f32
    %168 = vector.broadcast %cst_58 : f32 to vector<2x32xf32>
    %169 = arith.addf %168, %167 : vector<2x32xf32>
    %170 = arith.divf %168, %169 : vector<2x32xf32>
    %171 = vector.extract_strided_slice %159 {offsets = [0, 32], sizes = [2, 32], strides = [1, 1]} : vector<2x128xf32> to vector<2x32xf32>
    %172 = arith.negf %171 : vector<2x32xf32>
    %173 = math.exp %172 : vector<2x32xf32>
    %cst_59 = arith.constant 1.000000e+00 : f32
    %174 = vector.broadcast %cst_59 : f32 to vector<2x32xf32>
    %175 = arith.addf %174, %173 : vector<2x32xf32>
    %176 = arith.divf %174, %175 : vector<2x32xf32>
    %177 = vector.extract_strided_slice %159 {offsets = [0, 64], sizes = [2, 32], strides = [1, 1]} : vector<2x128xf32> to vector<2x32xf32>
    %178 = math.tanh %177 : vector<2x32xf32>
    %179 = vector.extract_strided_slice %159 {offsets = [0, 96], sizes = [2, 32], strides = [1, 1]} : vector<2x128xf32> to vector<2x32xf32>
    %180 = arith.negf %179 : vector<2x32xf32>
    %181 = math.exp %180 : vector<2x32xf32>
    %cst_60 = arith.constant 1.000000e+00 : f32
    %182 = vector.broadcast %cst_60 : f32 to vector<2x32xf32>
    %183 = arith.addf %182, %181 : vector<2x32xf32>
    %184 = arith.divf %182, %183 : vector<2x32xf32>
    %185 = arith.mulf %176, %118 : vector<2x32xf32>
    %186 = arith.mulf %170, %178 : vector<2x32xf32>
    %187 = arith.addf %185, %186 : vector<2x32xf32>
    %188 = math.tanh %187 : vector<2x32xf32>
    %189 = arith.mulf %184, %188 : vector<2x32xf32>
    %190 = vector.extract_strided_slice %164 {offsets = [0, 0], sizes = [2, 32], strides = [1, 1]} : vector<2x128xf32> to vector<2x32xf32>
    %191 = arith.negf %190 : vector<2x32xf32>
    %192 = math.exp %191 : vector<2x32xf32>
    %cst_61 = arith.constant 1.000000e+00 : f32
    %193 = vector.broadcast %cst_61 : f32 to vector<2x32xf32>
    %194 = arith.addf %193, %192 : vector<2x32xf32>
    %195 = arith.divf %193, %194 : vector<2x32xf32>
    %196 = vector.extract_strided_slice %164 {offsets = [0, 32], sizes = [2, 32], strides = [1, 1]} : vector<2x128xf32> to vector<2x32xf32>
    %197 = arith.negf %196 : vector<2x32xf32>
    %198 = math.exp %197 : vector<2x32xf32>
    %cst_62 = arith.constant 1.000000e+00 : f32
    %199 = vector.broadcast %cst_62 : f32 to vector<2x32xf32>
    %200 = arith.addf %199, %198 : vector<2x32xf32>
    %201 = arith.divf %199, %200 : vector<2x32xf32>
    %202 = vector.extract_strided_slice %164 {offsets = [0, 64], sizes = [2, 32], strides = [1, 1]} : vector<2x128xf32> to vector<2x32xf32>
    %203 = math.tanh %202 : vector<2x32xf32>
    %204 = vector.extract_strided_slice %164 {offsets = [0, 96], sizes = [2, 32], strides = [1, 1]} : vector<2x128xf32> to vector<2x32xf32>
    %205 = arith.negf %204 : vector<2x32xf32>
    %206 = math.exp %205 : vector<2x32xf32>
    %cst_63 = arith.constant 1.000000e+00 : f32
    %207 = vector.broadcast %cst_63 : f32 to vector<2x32xf32>
    %208 = arith.addf %207, %206 : vector<2x32xf32>
    %209 = arith.divf %207, %208 : vector<2x32xf32>
    %210 = arith.mulf %201, %143 : vector<2x32xf32>
    %211 = arith.mulf %195, %203 : vector<2x32xf32>
    %212 = arith.addf %210, %211 : vector<2x32xf32>
    %213 = math.tanh %212 : vector<2x32xf32>
    %214 = arith.mulf %209, %213 : vector<2x32xf32>
    %215 = arith.index_cast %c2_i32_50 : i32 to index
    %c0_64 = arith.constant 0 : index
    %c0_65 = arith.constant 0 : index
    %216 = vector.load %arg7[%215, %c0_64, %c0_65] : memref<12x2x64xf32, #tpu.memory_space<vmem>>, vector<1x2x32xf32>
    %217 = vector.shape_cast %216 : vector<1x2x32xf32> to vector<2x32xf32>
    %218 = vector.shape_cast %189 : vector<2x32xf32> to vector<1x2x32xf32>
    tpu.vector_store %arg7[%215, %c0_64, %c0_65], %218 {strides = array<i32>} : memref<12x2x64xf32, #tpu.memory_space<vmem>>, vector<1x2x32xf32>,
    %219 = arith.index_cast %154 : i32 to index
    %c0_66 = arith.constant 0 : index
    %c32_67 = arith.constant 32 : index
    %220 = vector.load %arg7[%219, %c0_66, %c32_67] : memref<12x2x64xf32, #tpu.memory_space<vmem>>, vector<1x2x32xf32>
    %221 = vector.shape_cast %220 : vector<1x2x32xf32> to vector<2x32xf32>
    %222 = vector.shape_cast %214 : vector<2x32xf32> to vector<1x2x32xf32>
    tpu.vector_store %arg7[%219, %c0_66, %c32_67], %222 {strides = array<i32>} : memref<12x2x64xf32, #tpu.memory_space<vmem>>, vector<1x2x32xf32>,
    %c3_i32 = arith.constant 3 : i32
    %c11_i32_68 = arith.constant 11 : i32
    %223 = arith.subi %c11_i32_68, %c3_i32 : i32
    %c2_i32_69 = arith.constant 2 : i32
    %224 = arith.muli %c3_i32, %c2_i32_69 : i32
    %225 = arith.index_cast %224 : i32 to index
    %c0_70 = arith.constant 0 : index
    %226 = vector.load %arg8[%225, %c0_70] : memref<24x128xf32, #tpu.memory_space<vmem>>, vector<2x128xf32>
    %cst_71 = arith.constant dense<0.000000e+00> : vector<2x128xf32>
    %227 = tpu.matmul %189, %13, %cst_71 {dimension_numbers = #tpu.dot_dimension_numbers<[1], [0], [0], [1], [0, 0, 1, 1], [], []>} : vector<2x32xf32>, vector<32x128xf32>, vector<2x128xf32> -> vector<2x128xf32>
    %228 = arith.addf %226, %227 : vector<2x128xf32>
    %c2_i32_72 = arith.constant 2 : i32
    %229 = arith.muli %223, %c2_i32_72 : i32
    %230 = arith.index_cast %229 : i32 to index
    %c0_73 = arith.constant 0 : index
    %231 = vector.load %arg9[%230, %c0_73] : memref<24x128xf32, #tpu.memory_space<vmem>>, vector<2x128xf32>
    %cst_74 = arith.constant dense<0.000000e+00> : vector<2x128xf32>
    %232 = tpu.matmul %214, %14, %cst_74 {dimension_numbers = #tpu.dot_dimension_numbers<[1], [0], [0], [1], [0, 0, 1, 1], [], []>} : vector<2x32xf32>, vector<32x128xf32>, vector<2x128xf32> -> vector<2x128xf32>
    %233 = arith.addf %231, %232 : vector<2x128xf32>
    %234 = vector.extract_strided_slice %228 {offsets = [0, 0], sizes = [2, 32], strides = [1, 1]} : vector<2x128xf32> to vector<2x32xf32>
    %235 = arith.negf %234 : vector<2x32xf32>
    %236 = math.exp %235 : vector<2x32xf32>
    %cst_75 = arith.constant 1.000000e+00 : f32
    %237 = vector.broadcast %cst_75 : f32 to vector<2x32xf32>
    %238 = arith.addf %237, %236 : vector<2x32xf32>
    %239 = arith.divf %237, %238 : vector<2x32xf32>
    %240 = vector.extract_strided_slice %228 {offsets = [0, 32], sizes = [2, 32], strides = [1, 1]} : vector<2x128xf32> to vector<2x32xf32>
    %241 = arith.negf %240 : vector<2x32xf32>
    %242 = math.exp %241 : vector<2x32xf32>
    %cst_76 = arith.constant 1.000000e+00 : f32
    %243 = vector.broadcast %cst_76 : f32 to vector<2x32xf32>
    %244 = arith.addf %243, %242 : vector<2x32xf32>
    %245 = arith.divf %243, %244 : vector<2x32xf32>
    %246 = vector.extract_strided_slice %228 {offsets = [0, 64], sizes = [2, 32], strides = [1, 1]} : vector<2x128xf32> to vector<2x32xf32>
    %247 = math.tanh %246 : vector<2x32xf32>
    %248 = vector.extract_strided_slice %228 {offsets = [0, 96], sizes = [2, 32], strides = [1, 1]} : vector<2x128xf32> to vector<2x32xf32>
    %249 = arith.negf %248 : vector<2x32xf32>
    %250 = math.exp %249 : vector<2x32xf32>
    %cst_77 = arith.constant 1.000000e+00 : f32
    %251 = vector.broadcast %cst_77 : f32 to vector<2x32xf32>
    %252 = arith.addf %251, %250 : vector<2x32xf32>
    %253 = arith.divf %251, %252 : vector<2x32xf32>
    %254 = arith.mulf %245, %187 : vector<2x32xf32>
    %255 = arith.mulf %239, %247 : vector<2x32xf32>
    %256 = arith.addf %254, %255 : vector<2x32xf32>
    %257 = math.tanh %256 : vector<2x32xf32>
    %258 = arith.mulf %253, %257 : vector<2x32xf32>
    %259 = vector.extract_strided_slice %233 {offsets = [0, 0], sizes = [2, 32], strides = [1, 1]} : vector<2x128xf32> to vector<2x32xf32>
    %260 = arith.negf %259 : vector<2x32xf32>
    %261 = math.exp %260 : vector<2x32xf32>
    %cst_78 = arith.constant 1.000000e+00 : f32
    %262 = vector.broadcast %cst_78 : f32 to vector<2x32xf32>
    %263 = arith.addf %262, %261 : vector<2x32xf32>
    %264 = arith.divf %262, %263 : vector<2x32xf32>
    %265 = vector.extract_strided_slice %233 {offsets = [0, 32], sizes = [2, 32], strides = [1, 1]} : vector<2x128xf32> to vector<2x32xf32>
    %266 = arith.negf %265 : vector<2x32xf32>
    %267 = math.exp %266 : vector<2x32xf32>
    %cst_79 = arith.constant 1.000000e+00 : f32
    %268 = vector.broadcast %cst_79 : f32 to vector<2x32xf32>
    %269 = arith.addf %268, %267 : vector<2x32xf32>
    %270 = arith.divf %268, %269 : vector<2x32xf32>
    %271 = vector.extract_strided_slice %233 {offsets = [0, 64], sizes = [2, 32], strides = [1, 1]} : vector<2x128xf32> to vector<2x32xf32>
    %272 = math.tanh %271 : vector<2x32xf32>
    %273 = vector.extract_strided_slice %233 {offsets = [0, 96], sizes = [2, 32], strides = [1, 1]} : vector<2x128xf32> to vector<2x32xf32>
    %274 = arith.negf %273 : vector<2x32xf32>
    %275 = math.exp %274 : vector<2x32xf32>
    %cst_80 = arith.constant 1.000000e+00 : f32
    %276 = vector.broadcast %cst_80 : f32 to vector<2x32xf32>
    %277 = arith.addf %276, %275 : vector<2x32xf32>
    %278 = arith.divf %276, %277 : vector<2x32xf32>
    %279 = arith.mulf %270, %212 : vector<2x32xf32>
    %280 = arith.mulf %264, %272 : vector<2x32xf32>
    %281 = arith.addf %279, %280 : vector<2x32xf32>
    %282 = math.tanh %281 : vector<2x32xf32>
    %283 = arith.mulf %278, %282 : vector<2x32xf32>
    %284 = arith.index_cast %c3_i32 : i32 to index
    %c0_81 = arith.constant 0 : index
    %c0_82 = arith.constant 0 : index
    %285 = vector.load %arg7[%284, %c0_81, %c0_82] : memref<12x2x64xf32, #tpu.memory_space<vmem>>, vector<1x2x32xf32>
    %286 = vector.shape_cast %285 : vector<1x2x32xf32> to vector<2x32xf32>
    %287 = vector.shape_cast %258 : vector<2x32xf32> to vector<1x2x32xf32>
    tpu.vector_store %arg7[%284, %c0_81, %c0_82], %287 {strides = array<i32>} : memref<12x2x64xf32, #tpu.memory_space<vmem>>, vector<1x2x32xf32>,
    %288 = arith.index_cast %223 : i32 to index
    %c0_83 = arith.constant 0 : index
    %c32_84 = arith.constant 32 : index
    %289 = vector.load %arg7[%288, %c0_83, %c32_84] : memref<12x2x64xf32, #tpu.memory_space<vmem>>, vector<1x2x32xf32>
    %290 = vector.shape_cast %289 : vector<1x2x32xf32> to vector<2x32xf32>
    %291 = vector.shape_cast %283 : vector<2x32xf32> to vector<1x2x32xf32>
    tpu.vector_store %arg7[%288, %c0_83, %c32_84], %291 {strides = array<i32>} : memref<12x2x64xf32, #tpu.memory_space<vmem>>, vector<1x2x32xf32>,
    %c4_i32 = arith.constant 4 : i32
    %c11_i32_85 = arith.constant 11 : i32
    %292 = arith.subi %c11_i32_85, %c4_i32 : i32
    %c2_i32_86 = arith.constant 2 : i32
    %293 = arith.muli %c4_i32, %c2_i32_86 : i32
    %294 = arith.index_cast %293 : i32 to index
    %c0_87 = arith.constant 0 : index
    %295 = vector.load %arg8[%294, %c0_87] : memref<24x128xf32, #tpu.memory_space<vmem>>, vector<2x128xf32>
    %cst_88 = arith.constant dense<0.000000e+00> : vector<2x128xf32>
    %296 = tpu.matmul %258, %13, %cst_88 {dimension_numbers = #tpu.dot_dimension_numbers<[1], [0], [0], [1], [0, 0, 1, 1], [], []>} : vector<2x32xf32>, vector<32x128xf32>, vector<2x128xf32> -> vector<2x128xf32>
    %297 = arith.addf %295, %296 : vector<2x128xf32>
    %c2_i32_89 = arith.constant 2 : i32
    %298 = arith.muli %292, %c2_i32_89 : i32
    %299 = arith.index_cast %298 : i32 to index
    %c0_90 = arith.constant 0 : index
    %300 = vector.load %arg9[%299, %c0_90] : memref<24x128xf32, #tpu.memory_space<vmem>>, vector<2x128xf32>
    %cst_91 = arith.constant dense<0.000000e+00> : vector<2x128xf32>
    %301 = tpu.matmul %283, %14, %cst_91 {dimension_numbers = #tpu.dot_dimension_numbers<[1], [0], [0], [1], [0, 0, 1, 1], [], []>} : vector<2x32xf32>, vector<32x128xf32>, vector<2x128xf32> -> vector<2x128xf32>
    %302 = arith.addf %300, %301 : vector<2x128xf32>
    %303 = vector.extract_strided_slice %297 {offsets = [0, 0], sizes = [2, 32], strides = [1, 1]} : vector<2x128xf32> to vector<2x32xf32>
    %304 = arith.negf %303 : vector<2x32xf32>
    %305 = math.exp %304 : vector<2x32xf32>
    %cst_92 = arith.constant 1.000000e+00 : f32
    %306 = vector.broadcast %cst_92 : f32 to vector<2x32xf32>
    %307 = arith.addf %306, %305 : vector<2x32xf32>
    %308 = arith.divf %306, %307 : vector<2x32xf32>
    %309 = vector.extract_strided_slice %297 {offsets = [0, 32], sizes = [2, 32], strides = [1, 1]} : vector<2x128xf32> to vector<2x32xf32>
    %310 = arith.negf %309 : vector<2x32xf32>
    %311 = math.exp %310 : vector<2x32xf32>
    %cst_93 = arith.constant 1.000000e+00 : f32
    %312 = vector.broadcast %cst_93 : f32 to vector<2x32xf32>
    %313 = arith.addf %312, %311 : vector<2x32xf32>
    %314 = arith.divf %312, %313 : vector<2x32xf32>
    %315 = vector.extract_strided_slice %297 {offsets = [0, 64], sizes = [2, 32], strides = [1, 1]} : vector<2x128xf32> to vector<2x32xf32>
    %316 = math.tanh %315 : vector<2x32xf32>
    %317 = vector.extract_strided_slice %297 {offsets = [0, 96], sizes = [2, 32], strides = [1, 1]} : vector<2x128xf32> to vector<2x32xf32>
    %318 = arith.negf %317 : vector<2x32xf32>
    %319 = math.exp %318 : vector<2x32xf32>
    %cst_94 = arith.constant 1.000000e+00 : f32
    %320 = vector.broadcast %cst_94 : f32 to vector<2x32xf32>
    %321 = arith.addf %320, %319 : vector<2x32xf32>
    %322 = arith.divf %320, %321 : vector<2x32xf32>
    %323 = arith.mulf %314, %256 : vector<2x32xf32>
    %324 = arith.mulf %308, %316 : vector<2x32xf32>
    %325 = arith.addf %323, %324 : vector<2x32xf32>
    %326 = math.tanh %325 : vector<2x32xf32>
    %327 = arith.mulf %322, %326 : vector<2x32xf32>
    %328 = vector.extract_strided_slice %302 {offsets = [0, 0], sizes = [2, 32], strides = [1, 1]} : vector<2x128xf32> to vector<2x32xf32>
    %329 = arith.negf %328 : vector<2x32xf32>
    %330 = math.exp %329 : vector<2x32xf32>
    %cst_95 = arith.constant 1.000000e+00 : f32
    %331 = vector.broadcast %cst_95 : f32 to vector<2x32xf32>
    %332 = arith.addf %331, %330 : vector<2x32xf32>
    %333 = arith.divf %331, %332 : vector<2x32xf32>
    %334 = vector.extract_strided_slice %302 {offsets = [0, 32], sizes = [2, 32], strides = [1, 1]} : vector<2x128xf32> to vector<2x32xf32>
    %335 = arith.negf %334 : vector<2x32xf32>
    %336 = math.exp %335 : vector<2x32xf32>
    %cst_96 = arith.constant 1.000000e+00 : f32
    %337 = vector.broadcast %cst_96 : f32 to vector<2x32xf32>
    %338 = arith.addf %337, %336 : vector<2x32xf32>
    %339 = arith.divf %337, %338 : vector<2x32xf32>
    %340 = vector.extract_strided_slice %302 {offsets = [0, 64], sizes = [2, 32], strides = [1, 1]} : vector<2x128xf32> to vector<2x32xf32>
    %341 = math.tanh %340 : vector<2x32xf32>
    %342 = vector.extract_strided_slice %302 {offsets = [0, 96], sizes = [2, 32], strides = [1, 1]} : vector<2x128xf32> to vector<2x32xf32>
    %343 = arith.negf %342 : vector<2x32xf32>
    %344 = math.exp %343 : vector<2x32xf32>
    %cst_97 = arith.constant 1.000000e+00 : f32
    %345 = vector.broadcast %cst_97 : f32 to vector<2x32xf32>
    %346 = arith.addf %345, %344 : vector<2x32xf32>
    %347 = arith.divf %345, %346 : vector<2x32xf32>
    %348 = arith.mulf %339, %281 : vector<2x32xf32>
    %349 = arith.mulf %333, %341 : vector<2x32xf32>
    %350 = arith.addf %348, %349 : vector<2x32xf32>
    %351 = math.tanh %350 : vector<2x32xf32>
    %352 = arith.mulf %347, %351 : vector<2x32xf32>
    %353 = arith.index_cast %c4_i32 : i32 to index
    %c0_98 = arith.constant 0 : index
    %c0_99 = arith.constant 0 : index
    %354 = vector.load %arg7[%353, %c0_98, %c0_99] : memref<12x2x64xf32, #tpu.memory_space<vmem>>, vector<1x2x32xf32>
    %355 = vector.shape_cast %354 : vector<1x2x32xf32> to vector<2x32xf32>
    %356 = vector.shape_cast %327 : vector<2x32xf32> to vector<1x2x32xf32>
    tpu.vector_store %arg7[%353, %c0_98, %c0_99], %356 {strides = array<i32>} : memref<12x2x64xf32, #tpu.memory_space<vmem>>, vector<1x2x32xf32>,
    %357 = arith.index_cast %292 : i32 to index
    %c0_100 = arith.constant 0 : index
    %c32_101 = arith.constant 32 : index
    %358 = vector.load %arg7[%357, %c0_100, %c32_101] : memref<12x2x64xf32, #tpu.memory_space<vmem>>, vector<1x2x32xf32>
    %359 = vector.shape_cast %358 : vector<1x2x32xf32> to vector<2x32xf32>
    %360 = vector.shape_cast %352 : vector<2x32xf32> to vector<1x2x32xf32>
    tpu.vector_store %arg7[%357, %c0_100, %c32_101], %360 {strides = array<i32>} : memref<12x2x64xf32, #tpu.memory_space<vmem>>, vector<1x2x32xf32>,
    %c5_i32 = arith.constant 5 : i32
    %c11_i32_102 = arith.constant 11 : i32
    %361 = arith.subi %c11_i32_102, %c5_i32 : i32
    %c2_i32_103 = arith.constant 2 : i32
    %362 = arith.muli %c5_i32, %c2_i32_103 : i32
    %363 = arith.index_cast %362 : i32 to index
    %c0_104 = arith.constant 0 : index
    %364 = vector.load %arg8[%363, %c0_104] : memref<24x128xf32, #tpu.memory_space<vmem>>, vector<2x128xf32>
    %cst_105 = arith.constant dense<0.000000e+00> : vector<2x128xf32>
    %365 = tpu.matmul %327, %13, %cst_105 {dimension_numbers = #tpu.dot_dimension_numbers<[1], [0], [0], [1], [0, 0, 1, 1], [], []>} : vector<2x32xf32>, vector<32x128xf32>, vector<2x128xf32> -> vector<2x128xf32>
    %366 = arith.addf %364, %365 : vector<2x128xf32>
    %c2_i32_106 = arith.constant 2 : i32
    %367 = arith.muli %361, %c2_i32_106 : i32
    %368 = arith.index_cast %367 : i32 to index
    %c0_107 = arith.constant 0 : index
    %369 = vector.load %arg9[%368, %c0_107] : memref<24x128xf32, #tpu.memory_space<vmem>>, vector<2x128xf32>
    %cst_108 = arith.constant dense<0.000000e+00> : vector<2x128xf32>
    %370 = tpu.matmul %352, %14, %cst_108 {dimension_numbers = #tpu.dot_dimension_numbers<[1], [0], [0], [1], [0, 0, 1, 1], [], []>} : vector<2x32xf32>, vector<32x128xf32>, vector<2x128xf32> -> vector<2x128xf32>
    %371 = arith.addf %369, %370 : vector<2x128xf32>
    %372 = vector.extract_strided_slice %366 {offsets = [0, 0], sizes = [2, 32], strides = [1, 1]} : vector<2x128xf32> to vector<2x32xf32>
    %373 = arith.negf %372 : vector<2x32xf32>
    %374 = math.exp %373 : vector<2x32xf32>
    %cst_109 = arith.constant 1.000000e+00 : f32
    %375 = vector.broadcast %cst_109 : f32 to vector<2x32xf32>
    %376 = arith.addf %375, %374 : vector<2x32xf32>
    %377 = arith.divf %375, %376 : vector<2x32xf32>
    %378 = vector.extract_strided_slice %366 {offsets = [0, 32], sizes = [2, 32], strides = [1, 1]} : vector<2x128xf32> to vector<2x32xf32>
    %379 = arith.negf %378 : vector<2x32xf32>
    %380 = math.exp %379 : vector<2x32xf32>
    %cst_110 = arith.constant 1.000000e+00 : f32
    %381 = vector.broadcast %cst_110 : f32 to vector<2x32xf32>
    %382 = arith.addf %381, %380 : vector<2x32xf32>
    %383 = arith.divf %381, %382 : vector<2x32xf32>
    %384 = vector.extract_strided_slice %366 {offsets = [0, 64], sizes = [2, 32], strides = [1, 1]} : vector<2x128xf32> to vector<2x32xf32>
    %385 = math.tanh %384 : vector<2x32xf32>
    %386 = vector.extract_strided_slice %366 {offsets = [0, 96], sizes = [2, 32], strides = [1, 1]} : vector<2x128xf32> to vector<2x32xf32>
    %387 = arith.negf %386 : vector<2x32xf32>
    %388 = math.exp %387 : vector<2x32xf32>
    %cst_111 = arith.constant 1.000000e+00 : f32
    %389 = vector.broadcast %cst_111 : f32 to vector<2x32xf32>
    %390 = arith.addf %389, %388 : vector<2x32xf32>
    %391 = arith.divf %389, %390 : vector<2x32xf32>
    %392 = arith.mulf %383, %325 : vector<2x32xf32>
    %393 = arith.mulf %377, %385 : vector<2x32xf32>
    %394 = arith.addf %392, %393 : vector<2x32xf32>
    %395 = math.tanh %394 : vector<2x32xf32>
    %396 = arith.mulf %391, %395 : vector<2x32xf32>
    %397 = vector.extract_strided_slice %371 {offsets = [0, 0], sizes = [2, 32], strides = [1, 1]} : vector<2x128xf32> to vector<2x32xf32>
    %398 = arith.negf %397 : vector<2x32xf32>
    %399 = math.exp %398 : vector<2x32xf32>
    %cst_112 = arith.constant 1.000000e+00 : f32
    %400 = vector.broadcast %cst_112 : f32 to vector<2x32xf32>
    %401 = arith.addf %400, %399 : vector<2x32xf32>
    %402 = arith.divf %400, %401 : vector<2x32xf32>
    %403 = vector.extract_strided_slice %371 {offsets = [0, 32], sizes = [2, 32], strides = [1, 1]} : vector<2x128xf32> to vector<2x32xf32>
    %404 = arith.negf %403 : vector<2x32xf32>
    %405 = math.exp %404 : vector<2x32xf32>
    %cst_113 = arith.constant 1.000000e+00 : f32
    %406 = vector.broadcast %cst_113 : f32 to vector<2x32xf32>
    %407 = arith.addf %406, %405 : vector<2x32xf32>
    %408 = arith.divf %406, %407 : vector<2x32xf32>
    %409 = vector.extract_strided_slice %371 {offsets = [0, 64], sizes = [2, 32], strides = [1, 1]} : vector<2x128xf32> to vector<2x32xf32>
    %410 = math.tanh %409 : vector<2x32xf32>
    %411 = vector.extract_strided_slice %371 {offsets = [0, 96], sizes = [2, 32], strides = [1, 1]} : vector<2x128xf32> to vector<2x32xf32>
    %412 = arith.negf %411 : vector<2x32xf32>
    %413 = math.exp %412 : vector<2x32xf32>
    %cst_114 = arith.constant 1.000000e+00 : f32
    %414 = vector.broadcast %cst_114 : f32 to vector<2x32xf32>
    %415 = arith.addf %414, %413 : vector<2x32xf32>
    %416 = arith.divf %414, %415 : vector<2x32xf32>
    %417 = arith.mulf %408, %350 : vector<2x32xf32>
    %418 = arith.mulf %402, %410 : vector<2x32xf32>
    %419 = arith.addf %417, %418 : vector<2x32xf32>
    %420 = math.tanh %419 : vector<2x32xf32>
    %421 = arith.mulf %416, %420 : vector<2x32xf32>
    %422 = arith.index_cast %c5_i32 : i32 to index
    %c0_115 = arith.constant 0 : index
    %c0_116 = arith.constant 0 : index
    %423 = vector.load %arg7[%422, %c0_115, %c0_116] : memref<12x2x64xf32, #tpu.memory_space<vmem>>, vector<1x2x32xf32>
    %424 = vector.shape_cast %423 : vector<1x2x32xf32> to vector<2x32xf32>
    %425 = vector.shape_cast %396 : vector<2x32xf32> to vector<1x2x32xf32>
    tpu.vector_store %arg7[%422, %c0_115, %c0_116], %425 {strides = array<i32>} : memref<12x2x64xf32, #tpu.memory_space<vmem>>, vector<1x2x32xf32>,
    %426 = arith.index_cast %361 : i32 to index
    %c0_117 = arith.constant 0 : index
    %c32_118 = arith.constant 32 : index
    %427 = vector.load %arg7[%426, %c0_117, %c32_118] : memref<12x2x64xf32, #tpu.memory_space<vmem>>, vector<1x2x32xf32>
    %428 = vector.shape_cast %427 : vector<1x2x32xf32> to vector<2x32xf32>
    %429 = vector.shape_cast %421 : vector<2x32xf32> to vector<1x2x32xf32>
    tpu.vector_store %arg7[%426, %c0_117, %c32_118], %429 {strides = array<i32>} : memref<12x2x64xf32, #tpu.memory_space<vmem>>, vector<1x2x32xf32>,
    %c6_i32 = arith.constant 6 : i32
    %c11_i32_119 = arith.constant 11 : i32
    %430 = arith.subi %c11_i32_119, %c6_i32 : i32
    %c2_i32_120 = arith.constant 2 : i32
    %431 = arith.muli %c6_i32, %c2_i32_120 : i32
    %432 = arith.index_cast %431 : i32 to index
    %c0_121 = arith.constant 0 : index
    %433 = vector.load %arg8[%432, %c0_121] : memref<24x128xf32, #tpu.memory_space<vmem>>, vector<2x128xf32>
    %cst_122 = arith.constant dense<0.000000e+00> : vector<2x128xf32>
    %434 = tpu.matmul %396, %13, %cst_122 {dimension_numbers = #tpu.dot_dimension_numbers<[1], [0], [0], [1], [0, 0, 1, 1], [], []>} : vector<2x32xf32>, vector<32x128xf32>, vector<2x128xf32> -> vector<2x128xf32>
    %435 = arith.addf %433, %434 : vector<2x128xf32>
    %c2_i32_123 = arith.constant 2 : i32
    %436 = arith.muli %430, %c2_i32_123 : i32
    %437 = arith.index_cast %436 : i32 to index
    %c0_124 = arith.constant 0 : index
    %438 = vector.load %arg9[%437, %c0_124] : memref<24x128xf32, #tpu.memory_space<vmem>>, vector<2x128xf32>
    %cst_125 = arith.constant dense<0.000000e+00> : vector<2x128xf32>
    %439 = tpu.matmul %421, %14, %cst_125 {dimension_numbers = #tpu.dot_dimension_numbers<[1], [0], [0], [1], [0, 0, 1, 1], [], []>} : vector<2x32xf32>, vector<32x128xf32>, vector<2x128xf32> -> vector<2x128xf32>
    %440 = arith.addf %438, %439 : vector<2x128xf32>
    %441 = vector.extract_strided_slice %435 {offsets = [0, 0], sizes = [2, 32], strides = [1, 1]} : vector<2x128xf32> to vector<2x32xf32>
    %442 = arith.negf %441 : vector<2x32xf32>
    %443 = math.exp %442 : vector<2x32xf32>
    %cst_126 = arith.constant 1.000000e+00 : f32
    %444 = vector.broadcast %cst_126 : f32 to vector<2x32xf32>
    %445 = arith.addf %444, %443 : vector<2x32xf32>
    %446 = arith.divf %444, %445 : vector<2x32xf32>
    %447 = vector.extract_strided_slice %435 {offsets = [0, 32], sizes = [2, 32], strides = [1, 1]} : vector<2x128xf32> to vector<2x32xf32>
    %448 = arith.negf %447 : vector<2x32xf32>
    %449 = math.exp %448 : vector<2x32xf32>
    %cst_127 = arith.constant 1.000000e+00 : f32
    %450 = vector.broadcast %cst_127 : f32 to vector<2x32xf32>
    %451 = arith.addf %450, %449 : vector<2x32xf32>
    %452 = arith.divf %450, %451 : vector<2x32xf32>
    %453 = vector.extract_strided_slice %435 {offsets = [0, 64], sizes = [2, 32], strides = [1, 1]} : vector<2x128xf32> to vector<2x32xf32>
    %454 = math.tanh %453 : vector<2x32xf32>
    %455 = vector.extract_strided_slice %435 {offsets = [0, 96], sizes = [2, 32], strides = [1, 1]} : vector<2x128xf32> to vector<2x32xf32>
    %456 = arith.negf %455 : vector<2x32xf32>
    %457 = math.exp %456 : vector<2x32xf32>
    %cst_128 = arith.constant 1.000000e+00 : f32
    %458 = vector.broadcast %cst_128 : f32 to vector<2x32xf32>
    %459 = arith.addf %458, %457 : vector<2x32xf32>
    %460 = arith.divf %458, %459 : vector<2x32xf32>
    %461 = arith.mulf %452, %394 : vector<2x32xf32>
    %462 = arith.mulf %446, %454 : vector<2x32xf32>
    %463 = arith.addf %461, %462 : vector<2x32xf32>
    %464 = math.tanh %463 : vector<2x32xf32>
    %465 = arith.mulf %460, %464 : vector<2x32xf32>
    %466 = vector.extract_strided_slice %440 {offsets = [0, 0], sizes = [2, 32], strides = [1, 1]} : vector<2x128xf32> to vector<2x32xf32>
    %467 = arith.negf %466 : vector<2x32xf32>
    %468 = math.exp %467 : vector<2x32xf32>
    %cst_129 = arith.constant 1.000000e+00 : f32
    %469 = vector.broadcast %cst_129 : f32 to vector<2x32xf32>
    %470 = arith.addf %469, %468 : vector<2x32xf32>
    %471 = arith.divf %469, %470 : vector<2x32xf32>
    %472 = vector.extract_strided_slice %440 {offsets = [0, 32], sizes = [2, 32], strides = [1, 1]} : vector<2x128xf32> to vector<2x32xf32>
    %473 = arith.negf %472 : vector<2x32xf32>
    %474 = math.exp %473 : vector<2x32xf32>
    %cst_130 = arith.constant 1.000000e+00 : f32
    %475 = vector.broadcast %cst_130 : f32 to vector<2x32xf32>
    %476 = arith.addf %475, %474 : vector<2x32xf32>
    %477 = arith.divf %475, %476 : vector<2x32xf32>
    %478 = vector.extract_strided_slice %440 {offsets = [0, 64], sizes = [2, 32], strides = [1, 1]} : vector<2x128xf32> to vector<2x32xf32>
    %479 = math.tanh %478 : vector<2x32xf32>
    %480 = vector.extract_strided_slice %440 {offsets = [0, 96], sizes = [2, 32], strides = [1, 1]} : vector<2x128xf32> to vector<2x32xf32>
    %481 = arith.negf %480 : vector<2x32xf32>
    %482 = math.exp %481 : vector<2x32xf32>
    %cst_131 = arith.constant 1.000000e+00 : f32
    %483 = vector.broadcast %cst_131 : f32 to vector<2x32xf32>
    %484 = arith.addf %483, %482 : vector<2x32xf32>
    %485 = arith.divf %483, %484 : vector<2x32xf32>
    %486 = arith.mulf %477, %419 : vector<2x32xf32>
    %487 = arith.mulf %471, %479 : vector<2x32xf32>
    %488 = arith.addf %486, %487 : vector<2x32xf32>
    %489 = math.tanh %488 : vector<2x32xf32>
    %490 = arith.mulf %485, %489 : vector<2x32xf32>
    %491 = arith.index_cast %c6_i32 : i32 to index
    %c0_132 = arith.constant 0 : index
    %c0_133 = arith.constant 0 : index
    %492 = vector.load %arg7[%491, %c0_132, %c0_133] : memref<12x2x64xf32, #tpu.memory_space<vmem>>, vector<1x2x32xf32>
    %493 = vector.shape_cast %492 : vector<1x2x32xf32> to vector<2x32xf32>
    %494 = vector.shape_cast %465 : vector<2x32xf32> to vector<1x2x32xf32>
    tpu.vector_store %arg7[%491, %c0_132, %c0_133], %494 {strides = array<i32>} : memref<12x2x64xf32, #tpu.memory_space<vmem>>, vector<1x2x32xf32>,
    %495 = arith.index_cast %430 : i32 to index
    %c0_134 = arith.constant 0 : index
    %c32_135 = arith.constant 32 : index
    %496 = vector.load %arg7[%495, %c0_134, %c32_135] : memref<12x2x64xf32, #tpu.memory_space<vmem>>, vector<1x2x32xf32>
    %497 = vector.shape_cast %496 : vector<1x2x32xf32> to vector<2x32xf32>
    %498 = vector.shape_cast %490 : vector<2x32xf32> to vector<1x2x32xf32>
    tpu.vector_store %arg7[%495, %c0_134, %c32_135], %498 {strides = array<i32>} : memref<12x2x64xf32, #tpu.memory_space<vmem>>, vector<1x2x32xf32>,
    %c7_i32 = arith.constant 7 : i32
    %c11_i32_136 = arith.constant 11 : i32
    %499 = arith.subi %c11_i32_136, %c7_i32 : i32
    %c2_i32_137 = arith.constant 2 : i32
    %500 = arith.muli %c7_i32, %c2_i32_137 : i32
    %501 = arith.index_cast %500 : i32 to index
    %c0_138 = arith.constant 0 : index
    %502 = vector.load %arg8[%501, %c0_138] : memref<24x128xf32, #tpu.memory_space<vmem>>, vector<2x128xf32>
    %cst_139 = arith.constant dense<0.000000e+00> : vector<2x128xf32>
    %503 = tpu.matmul %465, %13, %cst_139 {dimension_numbers = #tpu.dot_dimension_numbers<[1], [0], [0], [1], [0, 0, 1, 1], [], []>} : vector<2x32xf32>, vector<32x128xf32>, vector<2x128xf32> -> vector<2x128xf32>
    %504 = arith.addf %502, %503 : vector<2x128xf32>
    %c2_i32_140 = arith.constant 2 : i32
    %505 = arith.muli %499, %c2_i32_140 : i32
    %506 = arith.index_cast %505 : i32 to index
    %c0_141 = arith.constant 0 : index
    %507 = vector.load %arg9[%506, %c0_141] : memref<24x128xf32, #tpu.memory_space<vmem>>, vector<2x128xf32>
    %cst_142 = arith.constant dense<0.000000e+00> : vector<2x128xf32>
    %508 = tpu.matmul %490, %14, %cst_142 {dimension_numbers = #tpu.dot_dimension_numbers<[1], [0], [0], [1], [0, 0, 1, 1], [], []>} : vector<2x32xf32>, vector<32x128xf32>, vector<2x128xf32> -> vector<2x128xf32>
    %509 = arith.addf %507, %508 : vector<2x128xf32>
    %510 = vector.extract_strided_slice %504 {offsets = [0, 0], sizes = [2, 32], strides = [1, 1]} : vector<2x128xf32> to vector<2x32xf32>
    %511 = arith.negf %510 : vector<2x32xf32>
    %512 = math.exp %511 : vector<2x32xf32>
    %cst_143 = arith.constant 1.000000e+00 : f32
    %513 = vector.broadcast %cst_143 : f32 to vector<2x32xf32>
    %514 = arith.addf %513, %512 : vector<2x32xf32>
    %515 = arith.divf %513, %514 : vector<2x32xf32>
    %516 = vector.extract_strided_slice %504 {offsets = [0, 32], sizes = [2, 32], strides = [1, 1]} : vector<2x128xf32> to vector<2x32xf32>
    %517 = arith.negf %516 : vector<2x32xf32>
    %518 = math.exp %517 : vector<2x32xf32>
    %cst_144 = arith.constant 1.000000e+00 : f32
    %519 = vector.broadcast %cst_144 : f32 to vector<2x32xf32>
    %520 = arith.addf %519, %518 : vector<2x32xf32>
    %521 = arith.divf %519, %520 : vector<2x32xf32>
    %522 = vector.extract_strided_slice %504 {offsets = [0, 64], sizes = [2, 32], strides = [1, 1]} : vector<2x128xf32> to vector<2x32xf32>
    %523 = math.tanh %522 : vector<2x32xf32>
    %524 = vector.extract_strided_slice %504 {offsets = [0, 96], sizes = [2, 32], strides = [1, 1]} : vector<2x128xf32> to vector<2x32xf32>
    %525 = arith.negf %524 : vector<2x32xf32>
    %526 = math.exp %525 : vector<2x32xf32>
    %cst_145 = arith.constant 1.000000e+00 : f32
    %527 = vector.broadcast %cst_145 : f32 to vector<2x32xf32>
    %528 = arith.addf %527, %526 : vector<2x32xf32>
    %529 = arith.divf %527, %528 : vector<2x32xf32>
    %530 = arith.mulf %521, %463 : vector<2x32xf32>
    %531 = arith.mulf %515, %523 : vector<2x32xf32>
    %532 = arith.addf %530, %531 : vector<2x32xf32>
    %533 = math.tanh %532 : vector<2x32xf32>
    %534 = arith.mulf %529, %533 : vector<2x32xf32>
    %535 = vector.extract_strided_slice %509 {offsets = [0, 0], sizes = [2, 32], strides = [1, 1]} : vector<2x128xf32> to vector<2x32xf32>
    %536 = arith.negf %535 : vector<2x32xf32>
    %537 = math.exp %536 : vector<2x32xf32>
    %cst_146 = arith.constant 1.000000e+00 : f32
    %538 = vector.broadcast %cst_146 : f32 to vector<2x32xf32>
    %539 = arith.addf %538, %537 : vector<2x32xf32>
    %540 = arith.divf %538, %539 : vector<2x32xf32>
    %541 = vector.extract_strided_slice %509 {offsets = [0, 32], sizes = [2, 32], strides = [1, 1]} : vector<2x128xf32> to vector<2x32xf32>
    %542 = arith.negf %541 : vector<2x32xf32>
    %543 = math.exp %542 : vector<2x32xf32>
    %cst_147 = arith.constant 1.000000e+00 : f32
    %544 = vector.broadcast %cst_147 : f32 to vector<2x32xf32>
    %545 = arith.addf %544, %543 : vector<2x32xf32>
    %546 = arith.divf %544, %545 : vector<2x32xf32>
    %547 = vector.extract_strided_slice %509 {offsets = [0, 64], sizes = [2, 32], strides = [1, 1]} : vector<2x128xf32> to vector<2x32xf32>
    %548 = math.tanh %547 : vector<2x32xf32>
    %549 = vector.extract_strided_slice %509 {offsets = [0, 96], sizes = [2, 32], strides = [1, 1]} : vector<2x128xf32> to vector<2x32xf32>
    %550 = arith.negf %549 : vector<2x32xf32>
    %551 = math.exp %550 : vector<2x32xf32>
    %cst_148 = arith.constant 1.000000e+00 : f32
    %552 = vector.broadcast %cst_148 : f32 to vector<2x32xf32>
    %553 = arith.addf %552, %551 : vector<2x32xf32>
    %554 = arith.divf %552, %553 : vector<2x32xf32>
    %555 = arith.mulf %546, %488 : vector<2x32xf32>
    %556 = arith.mulf %540, %548 : vector<2x32xf32>
    %557 = arith.addf %555, %556 : vector<2x32xf32>
    %558 = math.tanh %557 : vector<2x32xf32>
    %559 = arith.mulf %554, %558 : vector<2x32xf32>
    %560 = arith.index_cast %c7_i32 : i32 to index
    %c0_149 = arith.constant 0 : index
    %c0_150 = arith.constant 0 : index
    %561 = vector.load %arg7[%560, %c0_149, %c0_150] : memref<12x2x64xf32, #tpu.memory_space<vmem>>, vector<1x2x32xf32>
    %562 = vector.shape_cast %561 : vector<1x2x32xf32> to vector<2x32xf32>
    %563 = vector.shape_cast %534 : vector<2x32xf32> to vector<1x2x32xf32>
    tpu.vector_store %arg7[%560, %c0_149, %c0_150], %563 {strides = array<i32>} : memref<12x2x64xf32, #tpu.memory_space<vmem>>, vector<1x2x32xf32>,
    %564 = arith.index_cast %499 : i32 to index
    %c0_151 = arith.constant 0 : index
    %c32_152 = arith.constant 32 : index
    %565 = vector.load %arg7[%564, %c0_151, %c32_152] : memref<12x2x64xf32, #tpu.memory_space<vmem>>, vector<1x2x32xf32>
    %566 = vector.shape_cast %565 : vector<1x2x32xf32> to vector<2x32xf32>
    %567 = vector.shape_cast %559 : vector<2x32xf32> to vector<1x2x32xf32>
    tpu.vector_store %arg7[%564, %c0_151, %c32_152], %567 {strides = array<i32>} : memref<12x2x64xf32, #tpu.memory_space<vmem>>, vector<1x2x32xf32>,
    %c8_i32 = arith.constant 8 : i32
    %c11_i32_153 = arith.constant 11 : i32
    %568 = arith.subi %c11_i32_153, %c8_i32 : i32
    %c2_i32_154 = arith.constant 2 : i32
    %569 = arith.muli %c8_i32, %c2_i32_154 : i32
    %570 = arith.index_cast %569 : i32 to index
    %c0_155 = arith.constant 0 : index
    %571 = vector.load %arg8[%570, %c0_155] : memref<24x128xf32, #tpu.memory_space<vmem>>, vector<2x128xf32>
    %cst_156 = arith.constant dense<0.000000e+00> : vector<2x128xf32>
    %572 = tpu.matmul %534, %13, %cst_156 {dimension_numbers = #tpu.dot_dimension_numbers<[1], [0], [0], [1], [0, 0, 1, 1], [], []>} : vector<2x32xf32>, vector<32x128xf32>, vector<2x128xf32> -> vector<2x128xf32>
    %573 = arith.addf %571, %572 : vector<2x128xf32>
    %c2_i32_157 = arith.constant 2 : i32
    %574 = arith.muli %568, %c2_i32_157 : i32
    %575 = arith.index_cast %574 : i32 to index
    %c0_158 = arith.constant 0 : index
    %576 = vector.load %arg9[%575, %c0_158] : memref<24x128xf32, #tpu.memory_space<vmem>>, vector<2x128xf32>
    %cst_159 = arith.constant dense<0.000000e+00> : vector<2x128xf32>
    %577 = tpu.matmul %559, %14, %cst_159 {dimension_numbers = #tpu.dot_dimension_numbers<[1], [0], [0], [1], [0, 0, 1, 1], [], []>} : vector<2x32xf32>, vector<32x128xf32>, vector<2x128xf32> -> vector<2x128xf32>
    %578 = arith.addf %576, %577 : vector<2x128xf32>
    %579 = vector.extract_strided_slice %573 {offsets = [0, 0], sizes = [2, 32], strides = [1, 1]} : vector<2x128xf32> to vector<2x32xf32>
    %580 = arith.negf %579 : vector<2x32xf32>
    %581 = math.exp %580 : vector<2x32xf32>
    %cst_160 = arith.constant 1.000000e+00 : f32
    %582 = vector.broadcast %cst_160 : f32 to vector<2x32xf32>
    %583 = arith.addf %582, %581 : vector<2x32xf32>
    %584 = arith.divf %582, %583 : vector<2x32xf32>
    %585 = vector.extract_strided_slice %573 {offsets = [0, 32], sizes = [2, 32], strides = [1, 1]} : vector<2x128xf32> to vector<2x32xf32>
    %586 = arith.negf %585 : vector<2x32xf32>
    %587 = math.exp %586 : vector<2x32xf32>
    %cst_161 = arith.constant 1.000000e+00 : f32
    %588 = vector.broadcast %cst_161 : f32 to vector<2x32xf32>
    %589 = arith.addf %588, %587 : vector<2x32xf32>
    %590 = arith.divf %588, %589 : vector<2x32xf32>
    %591 = vector.extract_strided_slice %573 {offsets = [0, 64], sizes = [2, 32], strides = [1, 1]} : vector<2x128xf32> to vector<2x32xf32>
    %592 = math.tanh %591 : vector<2x32xf32>
    %593 = vector.extract_strided_slice %573 {offsets = [0, 96], sizes = [2, 32], strides = [1, 1]} : vector<2x128xf32> to vector<2x32xf32>
    %594 = arith.negf %593 : vector<2x32xf32>
    %595 = math.exp %594 : vector<2x32xf32>
    %cst_162 = arith.constant 1.000000e+00 : f32
    %596 = vector.broadcast %cst_162 : f32 to vector<2x32xf32>
    %597 = arith.addf %596, %595 : vector<2x32xf32>
    %598 = arith.divf %596, %597 : vector<2x32xf32>
    %599 = arith.mulf %590, %532 : vector<2x32xf32>
    %600 = arith.mulf %584, %592 : vector<2x32xf32>
    %601 = arith.addf %599, %600 : vector<2x32xf32>
    %602 = math.tanh %601 : vector<2x32xf32>
    %603 = arith.mulf %598, %602 : vector<2x32xf32>
    %604 = vector.extract_strided_slice %578 {offsets = [0, 0], sizes = [2, 32], strides = [1, 1]} : vector<2x128xf32> to vector<2x32xf32>
    %605 = arith.negf %604 : vector<2x32xf32>
    %606 = math.exp %605 : vector<2x32xf32>
    %cst_163 = arith.constant 1.000000e+00 : f32
    %607 = vector.broadcast %cst_163 : f32 to vector<2x32xf32>
    %608 = arith.addf %607, %606 : vector<2x32xf32>
    %609 = arith.divf %607, %608 : vector<2x32xf32>
    %610 = vector.extract_strided_slice %578 {offsets = [0, 32], sizes = [2, 32], strides = [1, 1]} : vector<2x128xf32> to vector<2x32xf32>
    %611 = arith.negf %610 : vector<2x32xf32>
    %612 = math.exp %611 : vector<2x32xf32>
    %cst_164 = arith.constant 1.000000e+00 : f32
    %613 = vector.broadcast %cst_164 : f32 to vector<2x32xf32>
    %614 = arith.addf %613, %612 : vector<2x32xf32>
    %615 = arith.divf %613, %614 : vector<2x32xf32>
    %616 = vector.extract_strided_slice %578 {offsets = [0, 64], sizes = [2, 32], strides = [1, 1]} : vector<2x128xf32> to vector<2x32xf32>
    %617 = math.tanh %616 : vector<2x32xf32>
    %618 = vector.extract_strided_slice %578 {offsets = [0, 96], sizes = [2, 32], strides = [1, 1]} : vector<2x128xf32> to vector<2x32xf32>
    %619 = arith.negf %618 : vector<2x32xf32>
    %620 = math.exp %619 : vector<2x32xf32>
    %cst_165 = arith.constant 1.000000e+00 : f32
    %621 = vector.broadcast %cst_165 : f32 to vector<2x32xf32>
    %622 = arith.addf %621, %620 : vector<2x32xf32>
    %623 = arith.divf %621, %622 : vector<2x32xf32>
    %624 = arith.mulf %615, %557 : vector<2x32xf32>
    %625 = arith.mulf %609, %617 : vector<2x32xf32>
    %626 = arith.addf %624, %625 : vector<2x32xf32>
    %627 = math.tanh %626 : vector<2x32xf32>
    %628 = arith.mulf %623, %627 : vector<2x32xf32>
    %629 = arith.index_cast %c8_i32 : i32 to index
    %c0_166 = arith.constant 0 : index
    %c0_167 = arith.constant 0 : index
    %630 = vector.load %arg7[%629, %c0_166, %c0_167] : memref<12x2x64xf32, #tpu.memory_space<vmem>>, vector<1x2x32xf32>
    %631 = vector.shape_cast %630 : vector<1x2x32xf32> to vector<2x32xf32>
    %632 = vector.shape_cast %603 : vector<2x32xf32> to vector<1x2x32xf32>
    tpu.vector_store %arg7[%629, %c0_166, %c0_167], %632 {strides = array<i32>} : memref<12x2x64xf32, #tpu.memory_space<vmem>>, vector<1x2x32xf32>,
    %633 = arith.index_cast %568 : i32 to index
    %c0_168 = arith.constant 0 : index
    %c32_169 = arith.constant 32 : index
    %634 = vector.load %arg7[%633, %c0_168, %c32_169] : memref<12x2x64xf32, #tpu.memory_space<vmem>>, vector<1x2x32xf32>
    %635 = vector.shape_cast %634 : vector<1x2x32xf32> to vector<2x32xf32>
    %636 = vector.shape_cast %628 : vector<2x32xf32> to vector<1x2x32xf32>
    tpu.vector_store %arg7[%633, %c0_168, %c32_169], %636 {strides = array<i32>} : memref<12x2x64xf32, #tpu.memory_space<vmem>>, vector<1x2x32xf32>,
    %c9_i32 = arith.constant 9 : i32
    %c11_i32_170 = arith.constant 11 : i32
    %637 = arith.subi %c11_i32_170, %c9_i32 : i32
    %c2_i32_171 = arith.constant 2 : i32
    %638 = arith.muli %c9_i32, %c2_i32_171 : i32
    %639 = arith.index_cast %638 : i32 to index
    %c0_172 = arith.constant 0 : index
    %640 = vector.load %arg8[%639, %c0_172] : memref<24x128xf32, #tpu.memory_space<vmem>>, vector<2x128xf32>
    %cst_173 = arith.constant dense<0.000000e+00> : vector<2x128xf32>
    %641 = tpu.matmul %603, %13, %cst_173 {dimension_numbers = #tpu.dot_dimension_numbers<[1], [0], [0], [1], [0, 0, 1, 1], [], []>} : vector<2x32xf32>, vector<32x128xf32>, vector<2x128xf32> -> vector<2x128xf32>
    %642 = arith.addf %640, %641 : vector<2x128xf32>
    %c2_i32_174 = arith.constant 2 : i32
    %643 = arith.muli %637, %c2_i32_174 : i32
    %644 = arith.index_cast %643 : i32 to index
    %c0_175 = arith.constant 0 : index
    %645 = vector.load %arg9[%644, %c0_175] : memref<24x128xf32, #tpu.memory_space<vmem>>, vector<2x128xf32>
    %cst_176 = arith.constant dense<0.000000e+00> : vector<2x128xf32>
    %646 = tpu.matmul %628, %14, %cst_176 {dimension_numbers = #tpu.dot_dimension_numbers<[1], [0], [0], [1], [0, 0, 1, 1], [], []>} : vector<2x32xf32>, vector<32x128xf32>, vector<2x128xf32> -> vector<2x128xf32>
    %647 = arith.addf %645, %646 : vector<2x128xf32>
    %648 = vector.extract_strided_slice %642 {offsets = [0, 0], sizes = [2, 32], strides = [1, 1]} : vector<2x128xf32> to vector<2x32xf32>
    %649 = arith.negf %648 : vector<2x32xf32>
    %650 = math.exp %649 : vector<2x32xf32>
    %cst_177 = arith.constant 1.000000e+00 : f32
    %651 = vector.broadcast %cst_177 : f32 to vector<2x32xf32>
    %652 = arith.addf %651, %650 : vector<2x32xf32>
    %653 = arith.divf %651, %652 : vector<2x32xf32>
    %654 = vector.extract_strided_slice %642 {offsets = [0, 32], sizes = [2, 32], strides = [1, 1]} : vector<2x128xf32> to vector<2x32xf32>
    %655 = arith.negf %654 : vector<2x32xf32>
    %656 = math.exp %655 : vector<2x32xf32>
    %cst_178 = arith.constant 1.000000e+00 : f32
    %657 = vector.broadcast %cst_178 : f32 to vector<2x32xf32>
    %658 = arith.addf %657, %656 : vector<2x32xf32>
    %659 = arith.divf %657, %658 : vector<2x32xf32>
    %660 = vector.extract_strided_slice %642 {offsets = [0, 64], sizes = [2, 32], strides = [1, 1]} : vector<2x128xf32> to vector<2x32xf32>
    %661 = math.tanh %660 : vector<2x32xf32>
    %662 = vector.extract_strided_slice %642 {offsets = [0, 96], sizes = [2, 32], strides = [1, 1]} : vector<2x128xf32> to vector<2x32xf32>
    %663 = arith.negf %662 : vector<2x32xf32>
    %664 = math.exp %663 : vector<2x32xf32>
    %cst_179 = arith.constant 1.000000e+00 : f32
    %665 = vector.broadcast %cst_179 : f32 to vector<2x32xf32>
    %666 = arith.addf %665, %664 : vector<2x32xf32>
    %667 = arith.divf %665, %666 : vector<2x32xf32>
    %668 = arith.mulf %659, %601 : vector<2x32xf32>
    %669 = arith.mulf %653, %661 : vector<2x32xf32>
    %670 = arith.addf %668, %669 : vector<2x32xf32>
    %671 = math.tanh %670 : vector<2x32xf32>
    %672 = arith.mulf %667, %671 : vector<2x32xf32>
    %673 = vector.extract_strided_slice %647 {offsets = [0, 0], sizes = [2, 32], strides = [1, 1]} : vector<2x128xf32> to vector<2x32xf32>
    %674 = arith.negf %673 : vector<2x32xf32>
    %675 = math.exp %674 : vector<2x32xf32>
    %cst_180 = arith.constant 1.000000e+00 : f32
    %676 = vector.broadcast %cst_180 : f32 to vector<2x32xf32>
    %677 = arith.addf %676, %675 : vector<2x32xf32>
    %678 = arith.divf %676, %677 : vector<2x32xf32>
    %679 = vector.extract_strided_slice %647 {offsets = [0, 32], sizes = [2, 32], strides = [1, 1]} : vector<2x128xf32> to vector<2x32xf32>
    %680 = arith.negf %679 : vector<2x32xf32>
    %681 = math.exp %680 : vector<2x32xf32>
    %cst_181 = arith.constant 1.000000e+00 : f32
    %682 = vector.broadcast %cst_181 : f32 to vector<2x32xf32>
    %683 = arith.addf %682, %681 : vector<2x32xf32>
    %684 = arith.divf %682, %683 : vector<2x32xf32>
    %685 = vector.extract_strided_slice %647 {offsets = [0, 64], sizes = [2, 32], strides = [1, 1]} : vector<2x128xf32> to vector<2x32xf32>
    %686 = math.tanh %685 : vector<2x32xf32>
    %687 = vector.extract_strided_slice %647 {offsets = [0, 96], sizes = [2, 32], strides = [1, 1]} : vector<2x128xf32> to vector<2x32xf32>
    %688 = arith.negf %687 : vector<2x32xf32>
    %689 = math.exp %688 : vector<2x32xf32>
    %cst_182 = arith.constant 1.000000e+00 : f32
    %690 = vector.broadcast %cst_182 : f32 to vector<2x32xf32>
    %691 = arith.addf %690, %689 : vector<2x32xf32>
    %692 = arith.divf %690, %691 : vector<2x32xf32>
    %693 = arith.mulf %684, %626 : vector<2x32xf32>
    %694 = arith.mulf %678, %686 : vector<2x32xf32>
    %695 = arith.addf %693, %694 : vector<2x32xf32>
    %696 = math.tanh %695 : vector<2x32xf32>
    %697 = arith.mulf %692, %696 : vector<2x32xf32>
    %698 = arith.index_cast %c9_i32 : i32 to index
    %c0_183 = arith.constant 0 : index
    %c0_184 = arith.constant 0 : index
    %699 = vector.load %arg7[%698, %c0_183, %c0_184] : memref<12x2x64xf32, #tpu.memory_space<vmem>>, vector<1x2x32xf32>
    %700 = vector.shape_cast %699 : vector<1x2x32xf32> to vector<2x32xf32>
    %701 = vector.shape_cast %672 : vector<2x32xf32> to vector<1x2x32xf32>
    tpu.vector_store %arg7[%698, %c0_183, %c0_184], %701 {strides = array<i32>} : memref<12x2x64xf32, #tpu.memory_space<vmem>>, vector<1x2x32xf32>,
    %702 = arith.index_cast %637 : i32 to index
    %c0_185 = arith.constant 0 : index
    %c32_186 = arith.constant 32 : index
    %703 = vector.load %arg7[%702, %c0_185, %c32_186] : memref<12x2x64xf32, #tpu.memory_space<vmem>>, vector<1x2x32xf32>
    %704 = vector.shape_cast %703 : vector<1x2x32xf32> to vector<2x32xf32>
    %705 = vector.shape_cast %697 : vector<2x32xf32> to vector<1x2x32xf32>
    tpu.vector_store %arg7[%702, %c0_185, %c32_186], %705 {strides = array<i32>} : memref<12x2x64xf32, #tpu.memory_space<vmem>>, vector<1x2x32xf32>,
    %c10_i32 = arith.constant 10 : i32
    %c11_i32_187 = arith.constant 11 : i32
    %706 = arith.subi %c11_i32_187, %c10_i32 : i32
    %c2_i32_188 = arith.constant 2 : i32
    %707 = arith.muli %c10_i32, %c2_i32_188 : i32
    %708 = arith.index_cast %707 : i32 to index
    %c0_189 = arith.constant 0 : index
    %709 = vector.load %arg8[%708, %c0_189] : memref<24x128xf32, #tpu.memory_space<vmem>>, vector<2x128xf32>
    %cst_190 = arith.constant dense<0.000000e+00> : vector<2x128xf32>
    %710 = tpu.matmul %672, %13, %cst_190 {dimension_numbers = #tpu.dot_dimension_numbers<[1], [0], [0], [1], [0, 0, 1, 1], [], []>} : vector<2x32xf32>, vector<32x128xf32>, vector<2x128xf32> -> vector<2x128xf32>
    %711 = arith.addf %709, %710 : vector<2x128xf32>
    %c2_i32_191 = arith.constant 2 : i32
    %712 = arith.muli %706, %c2_i32_191 : i32
    %713 = arith.index_cast %712 : i32 to index
    %c0_192 = arith.constant 0 : index
    %714 = vector.load %arg9[%713, %c0_192] : memref<24x128xf32, #tpu.memory_space<vmem>>, vector<2x128xf32>
    %cst_193 = arith.constant dense<0.000000e+00> : vector<2x128xf32>
    %715 = tpu.matmul %697, %14, %cst_193 {dimension_numbers = #tpu.dot_dimension_numbers<[1], [0], [0], [1], [0, 0, 1, 1], [], []>} : vector<2x32xf32>, vector<32x128xf32>, vector<2x128xf32> -> vector<2x128xf32>
    %716 = arith.addf %714, %715 : vector<2x128xf32>
    %717 = vector.extract_strided_slice %711 {offsets = [0, 0], sizes = [2, 32], strides = [1, 1]} : vector<2x128xf32> to vector<2x32xf32>
    %718 = arith.negf %717 : vector<2x32xf32>
    %719 = math.exp %718 : vector<2x32xf32>
    %cst_194 = arith.constant 1.000000e+00 : f32
    %720 = vector.broadcast %cst_194 : f32 to vector<2x32xf32>
    %721 = arith.addf %720, %719 : vector<2x32xf32>
    %722 = arith.divf %720, %721 : vector<2x32xf32>
    %723 = vector.extract_strided_slice %711 {offsets = [0, 32], sizes = [2, 32], strides = [1, 1]} : vector<2x128xf32> to vector<2x32xf32>
    %724 = arith.negf %723 : vector<2x32xf32>
    %725 = math.exp %724 : vector<2x32xf32>
    %cst_195 = arith.constant 1.000000e+00 : f32
    %726 = vector.broadcast %cst_195 : f32 to vector<2x32xf32>
    %727 = arith.addf %726, %725 : vector<2x32xf32>
    %728 = arith.divf %726, %727 : vector<2x32xf32>
    %729 = vector.extract_strided_slice %711 {offsets = [0, 64], sizes = [2, 32], strides = [1, 1]} : vector<2x128xf32> to vector<2x32xf32>
    %730 = math.tanh %729 : vector<2x32xf32>
    %731 = vector.extract_strided_slice %711 {offsets = [0, 96], sizes = [2, 32], strides = [1, 1]} : vector<2x128xf32> to vector<2x32xf32>
    %732 = arith.negf %731 : vector<2x32xf32>
    %733 = math.exp %732 : vector<2x32xf32>
    %cst_196 = arith.constant 1.000000e+00 : f32
    %734 = vector.broadcast %cst_196 : f32 to vector<2x32xf32>
    %735 = arith.addf %734, %733 : vector<2x32xf32>
    %736 = arith.divf %734, %735 : vector<2x32xf32>
    %737 = arith.mulf %728, %670 : vector<2x32xf32>
    %738 = arith.mulf %722, %730 : vector<2x32xf32>
    %739 = arith.addf %737, %738 : vector<2x32xf32>
    %740 = math.tanh %739 : vector<2x32xf32>
    %741 = arith.mulf %736, %740 : vector<2x32xf32>
    %742 = vector.extract_strided_slice %716 {offsets = [0, 0], sizes = [2, 32], strides = [1, 1]} : vector<2x128xf32> to vector<2x32xf32>
    %743 = arith.negf %742 : vector<2x32xf32>
    %744 = math.exp %743 : vector<2x32xf32>
    %cst_197 = arith.constant 1.000000e+00 : f32
    %745 = vector.broadcast %cst_197 : f32 to vector<2x32xf32>
    %746 = arith.addf %745, %744 : vector<2x32xf32>
    %747 = arith.divf %745, %746 : vector<2x32xf32>
    %748 = vector.extract_strided_slice %716 {offsets = [0, 32], sizes = [2, 32], strides = [1, 1]} : vector<2x128xf32> to vector<2x32xf32>
    %749 = arith.negf %748 : vector<2x32xf32>
    %750 = math.exp %749 : vector<2x32xf32>
    %cst_198 = arith.constant 1.000000e+00 : f32
    %751 = vector.broadcast %cst_198 : f32 to vector<2x32xf32>
    %752 = arith.addf %751, %750 : vector<2x32xf32>
    %753 = arith.divf %751, %752 : vector<2x32xf32>
    %754 = vector.extract_strided_slice %716 {offsets = [0, 64], sizes = [2, 32], strides = [1, 1]} : vector<2x128xf32> to vector<2x32xf32>
    %755 = math.tanh %754 : vector<2x32xf32>
    %756 = vector.extract_strided_slice %716 {offsets = [0, 96], sizes = [2, 32], strides = [1, 1]} : vector<2x128xf32> to vector<2x32xf32>
    %757 = arith.negf %756 : vector<2x32xf32>
    %758 = math.exp %757 : vector<2x32xf32>
    %cst_199 = arith.constant 1.000000e+00 : f32
    %759 = vector.broadcast %cst_199 : f32 to vector<2x32xf32>
    %760 = arith.addf %759, %758 : vector<2x32xf32>
    %761 = arith.divf %759, %760 : vector<2x32xf32>
    %762 = arith.mulf %753, %695 : vector<2x32xf32>
    %763 = arith.mulf %747, %755 : vector<2x32xf32>
    %764 = arith.addf %762, %763 : vector<2x32xf32>
    %765 = math.tanh %764 : vector<2x32xf32>
    %766 = arith.mulf %761, %765 : vector<2x32xf32>
    %767 = arith.index_cast %c10_i32 : i32 to index
    %c0_200 = arith.constant 0 : index
    %c0_201 = arith.constant 0 : index
    %768 = vector.load %arg7[%767, %c0_200, %c0_201] : memref<12x2x64xf32, #tpu.memory_space<vmem>>, vector<1x2x32xf32>
    %769 = vector.shape_cast %768 : vector<1x2x32xf32> to vector<2x32xf32>
    %770 = vector.shape_cast %741 : vector<2x32xf32> to vector<1x2x32xf32>
    tpu.vector_store %arg7[%767, %c0_200, %c0_201], %770 {strides = array<i32>} : memref<12x2x64xf32, #tpu.memory_space<vmem>>, vector<1x2x32xf32>,
    %771 = arith.index_cast %706 : i32 to index
    %c0_202 = arith.constant 0 : index
    %c32_203 = arith.constant 32 : index
    %772 = vector.load %arg7[%771, %c0_202, %c32_203] : memref<12x2x64xf32, #tpu.memory_space<vmem>>, vector<1x2x32xf32>
    %773 = vector.shape_cast %772 : vector<1x2x32xf32> to vector<2x32xf32>
    %774 = vector.shape_cast %766 : vector<2x32xf32> to vector<1x2x32xf32>
    tpu.vector_store %arg7[%771, %c0_202, %c32_203], %774 {strides = array<i32>} : memref<12x2x64xf32, #tpu.memory_space<vmem>>, vector<1x2x32xf32>,
    %c11_i32_204 = arith.constant 11 : i32
    %c11_i32_205 = arith.constant 11 : i32
    %775 = arith.subi %c11_i32_205, %c11_i32_204 : i32
    %c2_i32_206 = arith.constant 2 : i32
    %776 = arith.muli %c11_i32_204, %c2_i32_206 : i32
    %777 = arith.index_cast %776 : i32 to index
    %c0_207 = arith.constant 0 : index
    %778 = vector.load %arg8[%777, %c0_207] : memref<24x128xf32, #tpu.memory_space<vmem>>, vector<2x128xf32>
    %cst_208 = arith.constant dense<0.000000e+00> : vector<2x128xf32>
    %779 = tpu.matmul %741, %13, %cst_208 {dimension_numbers = #tpu.dot_dimension_numbers<[1], [0], [0], [1], [0, 0, 1, 1], [], []>} : vector<2x32xf32>, vector<32x128xf32>, vector<2x128xf32> -> vector<2x128xf32>
    %780 = arith.addf %778, %779 : vector<2x128xf32>
    %c2_i32_209 = arith.constant 2 : i32
    %781 = arith.muli %775, %c2_i32_209 : i32
    %782 = arith.index_cast %781 : i32 to index
    %c0_210 = arith.constant 0 : index
    %783 = vector.load %arg9[%782, %c0_210] : memref<24x128xf32, #tpu.memory_space<vmem>>, vector<2x128xf32>
    %cst_211 = arith.constant dense<0.000000e+00> : vector<2x128xf32>
    %784 = tpu.matmul %766, %14, %cst_211 {dimension_numbers = #tpu.dot_dimension_numbers<[1], [0], [0], [1], [0, 0, 1, 1], [], []>} : vector<2x32xf32>, vector<32x128xf32>, vector<2x128xf32> -> vector<2x128xf32>
    %785 = arith.addf %783, %784 : vector<2x128xf32>
    %786 = vector.extract_strided_slice %780 {offsets = [0, 0], sizes = [2, 32], strides = [1, 1]} : vector<2x128xf32> to vector<2x32xf32>
    %787 = arith.negf %786 : vector<2x32xf32>
    %788 = math.exp %787 : vector<2x32xf32>
    %cst_212 = arith.constant 1.000000e+00 : f32
    %789 = vector.broadcast %cst_212 : f32 to vector<2x32xf32>
    %790 = arith.addf %789, %788 : vector<2x32xf32>
    %791 = arith.divf %789, %790 : vector<2x32xf32>
    %792 = vector.extract_strided_slice %780 {offsets = [0, 32], sizes = [2, 32], strides = [1, 1]} : vector<2x128xf32> to vector<2x32xf32>
    %793 = arith.negf %792 : vector<2x32xf32>
    %794 = math.exp %793 : vector<2x32xf32>
    %cst_213 = arith.constant 1.000000e+00 : f32
    %795 = vector.broadcast %cst_213 : f32 to vector<2x32xf32>
    %796 = arith.addf %795, %794 : vector<2x32xf32>
    %797 = arith.divf %795, %796 : vector<2x32xf32>
    %798 = vector.extract_strided_slice %780 {offsets = [0, 64], sizes = [2, 32], strides = [1, 1]} : vector<2x128xf32> to vector<2x32xf32>
    %799 = math.tanh %798 : vector<2x32xf32>
    %800 = vector.extract_strided_slice %780 {offsets = [0, 96], sizes = [2, 32], strides = [1, 1]} : vector<2x128xf32> to vector<2x32xf32>
    %801 = arith.negf %800 : vector<2x32xf32>
    %802 = math.exp %801 : vector<2x32xf32>
    %cst_214 = arith.constant 1.000000e+00 : f32
    %803 = vector.broadcast %cst_214 : f32 to vector<2x32xf32>
    %804 = arith.addf %803, %802 : vector<2x32xf32>
    %805 = arith.divf %803, %804 : vector<2x32xf32>
    %806 = arith.mulf %797, %739 : vector<2x32xf32>
    %807 = arith.mulf %791, %799 : vector<2x32xf32>
    %808 = arith.addf %806, %807 : vector<2x32xf32>
    %809 = math.tanh %808 : vector<2x32xf32>
    %810 = arith.mulf %805, %809 : vector<2x32xf32>
    %811 = vector.extract_strided_slice %785 {offsets = [0, 0], sizes = [2, 32], strides = [1, 1]} : vector<2x128xf32> to vector<2x32xf32>
    %812 = arith.negf %811 : vector<2x32xf32>
    %813 = math.exp %812 : vector<2x32xf32>
    %cst_215 = arith.constant 1.000000e+00 : f32
    %814 = vector.broadcast %cst_215 : f32 to vector<2x32xf32>
    %815 = arith.addf %814, %813 : vector<2x32xf32>
    %816 = arith.divf %814, %815 : vector<2x32xf32>
    %817 = vector.extract_strided_slice %785 {offsets = [0, 32], sizes = [2, 32], strides = [1, 1]} : vector<2x128xf32> to vector<2x32xf32>
    %818 = arith.negf %817 : vector<2x32xf32>
    %819 = math.exp %818 : vector<2x32xf32>
    %cst_216 = arith.constant 1.000000e+00 : f32
    %820 = vector.broadcast %cst_216 : f32 to vector<2x32xf32>
    %821 = arith.addf %820, %819 : vector<2x32xf32>
    %822 = arith.divf %820, %821 : vector<2x32xf32>
    %823 = vector.extract_strided_slice %785 {offsets = [0, 64], sizes = [2, 32], strides = [1, 1]} : vector<2x128xf32> to vector<2x32xf32>
    %824 = math.tanh %823 : vector<2x32xf32>
    %825 = vector.extract_strided_slice %785 {offsets = [0, 96], sizes = [2, 32], strides = [1, 1]} : vector<2x128xf32> to vector<2x32xf32>
    %826 = arith.negf %825 : vector<2x32xf32>
    %827 = math.exp %826 : vector<2x32xf32>
    %cst_217 = arith.constant 1.000000e+00 : f32
    %828 = vector.broadcast %cst_217 : f32 to vector<2x32xf32>
    %829 = arith.addf %828, %827 : vector<2x32xf32>
    %830 = arith.divf %828, %829 : vector<2x32xf32>
    %831 = arith.mulf %822, %764 : vector<2x32xf32>
    %832 = arith.mulf %816, %824 : vector<2x32xf32>
    %833 = arith.addf %831, %832 : vector<2x32xf32>
    %834 = math.tanh %833 : vector<2x32xf32>
    %835 = arith.mulf %830, %834 : vector<2x32xf32>
    %836 = arith.index_cast %c11_i32_204 : i32 to index
    %c0_218 = arith.constant 0 : index
    %c0_219 = arith.constant 0 : index
    %837 = vector.load %arg7[%836, %c0_218, %c0_219] : memref<12x2x64xf32, #tpu.memory_space<vmem>>, vector<1x2x32xf32>
    %838 = vector.shape_cast %837 : vector<1x2x32xf32> to vector<2x32xf32>
    %839 = vector.shape_cast %810 : vector<2x32xf32> to vector<1x2x32xf32>
    tpu.vector_store %arg7[%836, %c0_218, %c0_219], %839 {strides = array<i32>} : memref<12x2x64xf32, #tpu.memory_space<vmem>>, vector<1x2x32xf32>,
    %840 = arith.index_cast %775 : i32 to index
    %c0_220 = arith.constant 0 : index
    %c32_221 = arith.constant 32 : index
    %841 = vector.load %arg7[%840, %c0_220, %c32_221] : memref<12x2x64xf32, #tpu.memory_space<vmem>>, vector<1x2x32xf32>
    %842 = vector.shape_cast %841 : vector<1x2x32xf32> to vector<2x32xf32>
    %843 = vector.shape_cast %835 : vector<2x32xf32> to vector<1x2x32xf32>
    tpu.vector_store %arg7[%840, %c0_220, %c32_221], %843 {strides = array<i32>} : memref<12x2x64xf32, #tpu.memory_space<vmem>>, vector<1x2x32xf32>,
    %c12_i32 = arith.constant 12 : i32
    return
  }
}

module attributes {stable_mosaic.version = 11 : i64} {
  func.func @_bilstm_layer_kernel(%arg0: memref<24x16xf32, #tpu.memory_space<vmem>>, %arg1: memref<16x128xf32, #tpu.memory_space<vmem>>, %arg2: memref<32x128xf32, #tpu.memory_space<vmem>>, %arg3: memref<1x128xf32, #tpu.memory_space<vmem>>, %arg4: memref<16x128xf32, #tpu.memory_space<vmem>>, %arg5: memref<32x128xf32, #tpu.memory_space<vmem>>, %arg6: memref<1x128xf32, #tpu.memory_space<vmem>>, %arg7: memref<12x2x64xf32, #tpu.memory_space<vmem>>, %arg8: memref<24x128xf32, #tpu.memory_space<vmem>>, %arg9: memref<24x128xf32, #tpu.memory_space<vmem>>) attributes {dimension_semantics = [], scalar_prefetch = 0 : i64, scratch_operands = 2 : i64, tpu.core_type = #tpu.core_type<tc>} {
    %c0 = arith.constant 0 : index
    %c0_0 = arith.constant 0 : index
    %0 = vector.load %arg0[%c0, %c0_0] : memref<24x16xf32, #tpu.memory_space<vmem>>, vector<24x16xf32>
    %c0_1 = arith.constant 0 : index
    %c0_2 = arith.constant 0 : index
    %1 = vector.load %arg1[%c0_1, %c0_2] : memref<16x128xf32, #tpu.memory_space<vmem>>, vector<16x128xf32>
    %cst = arith.constant dense<0.000000e+00> : vector<24x128xf32>
    %2 = tpu.matmul %0, %1, %cst {dimension_numbers = #tpu.dot_dimension_numbers<[1], [0], [0], [1], [0, 0, 1, 1], [], []>} : vector<24x16xf32>, vector<16x128xf32>, vector<24x128xf32> -> vector<24x128xf32>
    %c0_3 = arith.constant 0 : index
    %c0_4 = arith.constant 0 : index
    %3 = vector.load %arg3[%c0_3, %c0_4] : memref<1x128xf32, #tpu.memory_space<vmem>>, vector<1x128xf32>
    %4 = vector.broadcast %3 : vector<1x128xf32> to vector<24x128xf32>
    %5 = arith.addf %2, %4 : vector<24x128xf32>
    %c0_5 = arith.constant 0 : index
    %c0_6 = arith.constant 0 : index
    %6 = vector.load %arg8[%c0_5, %c0_6] : memref<24x128xf32, #tpu.memory_space<vmem>>, vector<24x128xf32>
    tpu.vector_store %arg8[%c0_5, %c0_6], %5 {strides = array<i32>} : memref<24x128xf32, #tpu.memory_space<vmem>>, vector<24x128xf32>,
    %c0_7 = arith.constant 0 : index
    %c0_8 = arith.constant 0 : index
    %7 = vector.load %arg4[%c0_7, %c0_8] : memref<16x128xf32, #tpu.memory_space<vmem>>, vector<16x128xf32>
    %cst_9 = arith.constant dense<0.000000e+00> : vector<24x128xf32>
    %8 = tpu.matmul %0, %7, %cst_9 {dimension_numbers = #tpu.dot_dimension_numbers<[1], [0], [0], [1], [0, 0, 1, 1], [], []>} : vector<24x16xf32>, vector<16x128xf32>, vector<24x128xf32> -> vector<24x128xf32>
    %c0_10 = arith.constant 0 : index
    %c0_11 = arith.constant 0 : index
    %9 = vector.load %arg6[%c0_10, %c0_11] : memref<1x128xf32, #tpu.memory_space<vmem>>, vector<1x128xf32>
    %10 = vector.broadcast %9 : vector<1x128xf32> to vector<24x128xf32>
    %11 = arith.addf %8, %10 : vector<24x128xf32>
    %c0_12 = arith.constant 0 : index
    %c0_13 = arith.constant 0 : index
    %12 = vector.load %arg9[%c0_12, %c0_13] : memref<24x128xf32, #tpu.memory_space<vmem>>, vector<24x128xf32>
    tpu.vector_store %arg9[%c0_12, %c0_13], %11 {strides = array<i32>} : memref<24x128xf32, #tpu.memory_space<vmem>>, vector<24x128xf32>,
    %c0_14 = arith.constant 0 : index
    %c0_15 = arith.constant 0 : index
    %13 = vector.load %arg2[%c0_14, %c0_15] : memref<32x128xf32, #tpu.memory_space<vmem>>, vector<32x128xf32>
    %c0_16 = arith.constant 0 : index
    %c0_17 = arith.constant 0 : index
    %14 = vector.load %arg5[%c0_16, %c0_17] : memref<32x128xf32, #tpu.memory_space<vmem>>, vector<32x128xf32>
    %cst_18 = arith.constant 0.000000e+00 : f32
    %15 = vector.broadcast %cst_18 : f32 to vector<2x32xf32>
    %c0_i32 = arith.constant 0 : i32
    %c11_i32 = arith.constant 11 : i32
    %16 = arith.subi %c11_i32, %c0_i32 : i32
    %c2_i32 = arith.constant 2 : i32
    %17 = arith.muli %c0_i32, %c2_i32 : i32
    %18 = arith.index_cast %17 : i32 to index
    %c0_19 = arith.constant 0 : index
    %19 = vector.load %arg8[%18, %c0_19] : memref<24x128xf32, #tpu.memory_space<vmem>>, vector<2x128xf32>
    %cst_20 = arith.constant dense<0.000000e+00> : vector<2x128xf32>
    %20 = tpu.matmul %15, %13, %cst_20 {dimension_numbers = #tpu.dot_dimension_numbers<[1], [0], [0], [1], [0, 0, 1, 1], [], []>} : vector<2x32xf32>, vector<32x128xf32>, vector<2x128xf32> -> vector<2x128xf32>
    %21 = arith.addf %19, %20 : vector<2x128xf32>
    %c2_i32_21 = arith.constant 2 : i32
    %22 = arith.muli %16, %c2_i32_21 : i32
    %23 = arith.index_cast %22 : i32 to index
    %c0_22 = arith.constant 0 : index
    %24 = vector.load %arg9[%23, %c0_22] : memref<24x128xf32, #tpu.memory_space<vmem>>, vector<2x128xf32>
    %cst_23 = arith.constant dense<0.000000e+00> : vector<2x128xf32>
    %25 = tpu.matmul %15, %14, %cst_23 {dimension_numbers = #tpu.dot_dimension_numbers<[1], [0], [0], [1], [0, 0, 1, 1], [], []>} : vector<2x32xf32>, vector<32x128xf32>, vector<2x128xf32> -> vector<2x128xf32>
    %26 = arith.addf %24, %25 : vector<2x128xf32>
    %27 = vector.extract_strided_slice %21 {offsets = [0, 0], sizes = [2, 32], strides = [1, 1]} : vector<2x128xf32> to vector<2x32xf32>
    %28 = arith.negf %27 : vector<2x32xf32>
    %29 = math.exp %28 : vector<2x32xf32>
    %cst_24 = arith.constant 1.000000e+00 : f32
    %30 = vector.broadcast %cst_24 : f32 to vector<2x32xf32>
    %31 = arith.addf %30, %29 : vector<2x32xf32>
    %32 = arith.divf %30, %31 : vector<2x32xf32>
    %33 = vector.extract_strided_slice %21 {offsets = [0, 32], sizes = [2, 32], strides = [1, 1]} : vector<2x128xf32> to vector<2x32xf32>
    %34 = arith.negf %33 : vector<2x32xf32>
    %35 = math.exp %34 : vector<2x32xf32>
    %cst_25 = arith.constant 1.000000e+00 : f32
    %36 = vector.broadcast %cst_25 : f32 to vector<2x32xf32>
    %37 = arith.addf %36, %35 : vector<2x32xf32>
    %38 = arith.divf %36, %37 : vector<2x32xf32>
    %39 = vector.extract_strided_slice %21 {offsets = [0, 64], sizes = [2, 32], strides = [1, 1]} : vector<2x128xf32> to vector<2x32xf32>
    %40 = math.tanh %39 : vector<2x32xf32>
    %41 = vector.extract_strided_slice %21 {offsets = [0, 96], sizes = [2, 32], strides = [1, 1]} : vector<2x128xf32> to vector<2x32xf32>
    %42 = arith.negf %41 : vector<2x32xf32>
    %43 = math.exp %42 : vector<2x32xf32>
    %cst_26 = arith.constant 1.000000e+00 : f32
    %44 = vector.broadcast %cst_26 : f32 to vector<2x32xf32>
    %45 = arith.addf %44, %43 : vector<2x32xf32>
    %46 = arith.divf %44, %45 : vector<2x32xf32>
    %47 = arith.mulf %38, %15 : vector<2x32xf32>
    %48 = arith.mulf %32, %40 : vector<2x32xf32>
    %49 = arith.addf %47, %48 : vector<2x32xf32>
    %50 = math.tanh %49 : vector<2x32xf32>
    %51 = arith.mulf %46, %50 : vector<2x32xf32>
    %52 = vector.extract_strided_slice %26 {offsets = [0, 0], sizes = [2, 32], strides = [1, 1]} : vector<2x128xf32> to vector<2x32xf32>
    %53 = arith.negf %52 : vector<2x32xf32>
    %54 = math.exp %53 : vector<2x32xf32>
    %cst_27 = arith.constant 1.000000e+00 : f32
    %55 = vector.broadcast %cst_27 : f32 to vector<2x32xf32>
    %56 = arith.addf %55, %54 : vector<2x32xf32>
    %57 = arith.divf %55, %56 : vector<2x32xf32>
    %58 = vector.extract_strided_slice %26 {offsets = [0, 32], sizes = [2, 32], strides = [1, 1]} : vector<2x128xf32> to vector<2x32xf32>
    %59 = arith.negf %58 : vector<2x32xf32>
    %60 = math.exp %59 : vector<2x32xf32>
    %cst_28 = arith.constant 1.000000e+00 : f32
    %61 = vector.broadcast %cst_28 : f32 to vector<2x32xf32>
    %62 = arith.addf %61, %60 : vector<2x32xf32>
    %63 = arith.divf %61, %62 : vector<2x32xf32>
    %64 = vector.extract_strided_slice %26 {offsets = [0, 64], sizes = [2, 32], strides = [1, 1]} : vector<2x128xf32> to vector<2x32xf32>
    %65 = math.tanh %64 : vector<2x32xf32>
    %66 = vector.extract_strided_slice %26 {offsets = [0, 96], sizes = [2, 32], strides = [1, 1]} : vector<2x128xf32> to vector<2x32xf32>
    %67 = arith.negf %66 : vector<2x32xf32>
    %68 = math.exp %67 : vector<2x32xf32>
    %cst_29 = arith.constant 1.000000e+00 : f32
    %69 = vector.broadcast %cst_29 : f32 to vector<2x32xf32>
    %70 = arith.addf %69, %68 : vector<2x32xf32>
    %71 = arith.divf %69, %70 : vector<2x32xf32>
    %72 = arith.mulf %63, %15 : vector<2x32xf32>
    %73 = arith.mulf %57, %65 : vector<2x32xf32>
    %74 = arith.addf %72, %73 : vector<2x32xf32>
    %75 = math.tanh %74 : vector<2x32xf32>
    %76 = arith.mulf %71, %75 : vector<2x32xf32>
    %77 = arith.index_cast %c0_i32 : i32 to index
    %c0_30 = arith.constant 0 : index
    %c0_31 = arith.constant 0 : index
    %78 = vector.load %arg7[%77, %c0_30, %c0_31] : memref<12x2x64xf32, #tpu.memory_space<vmem>>, vector<1x2x32xf32>
    %79 = vector.shape_cast %78 : vector<1x2x32xf32> to vector<2x32xf32>
    %80 = vector.shape_cast %51 : vector<2x32xf32> to vector<1x2x32xf32>
    tpu.vector_store %arg7[%77, %c0_30, %c0_31], %80 {strides = array<i32>} : memref<12x2x64xf32, #tpu.memory_space<vmem>>, vector<1x2x32xf32>,
    %81 = arith.index_cast %16 : i32 to index
    %c0_32 = arith.constant 0 : index
    %c32 = arith.constant 32 : index
    %82 = vector.load %arg7[%81, %c0_32, %c32] : memref<12x2x64xf32, #tpu.memory_space<vmem>>, vector<1x2x32xf32>
    %83 = vector.shape_cast %82 : vector<1x2x32xf32> to vector<2x32xf32>
    %84 = vector.shape_cast %76 : vector<2x32xf32> to vector<1x2x32xf32>
    tpu.vector_store %arg7[%81, %c0_32, %c32], %84 {strides = array<i32>} : memref<12x2x64xf32, #tpu.memory_space<vmem>>, vector<1x2x32xf32>,
    %c1_i32 = arith.constant 1 : i32
    %c11_i32_33 = arith.constant 11 : i32
    %85 = arith.subi %c11_i32_33, %c1_i32 : i32
    %c2_i32_34 = arith.constant 2 : i32
    %86 = arith.muli %c1_i32, %c2_i32_34 : i32
    %87 = arith.index_cast %86 : i32 to index
    %c0_35 = arith.constant 0 : index
    %88 = vector.load %arg8[%87, %c0_35] : memref<24x128xf32, #tpu.memory_space<vmem>>, vector<2x128xf32>
    %cst_36 = arith.constant dense<0.000000e+00> : vector<2x128xf32>
    %89 = tpu.matmul %51, %13, %cst_36 {dimension_numbers = #tpu.dot_dimension_numbers<[1], [0], [0], [1], [0, 0, 1, 1], [], []>} : vector<2x32xf32>, vector<32x128xf32>, vector<2x128xf32> -> vector<2x128xf32>
    %90 = arith.addf %88, %89 : vector<2x128xf32>
    %c2_i32_37 = arith.constant 2 : i32
    %91 = arith.muli %85, %c2_i32_37 : i32
    %92 = arith.index_cast %91 : i32 to index
    %c0_38 = arith.constant 0 : index
    %93 = vector.load %arg9[%92, %c0_38] : memref<24x128xf32, #tpu.memory_space<vmem>>, vector<2x128xf32>
    %cst_39 = arith.constant dense<0.000000e+00> : vector<2x128xf32>
    %94 = tpu.matmul %76, %14, %cst_39 {dimension_numbers = #tpu.dot_dimension_numbers<[1], [0], [0], [1], [0, 0, 1, 1], [], []>} : vector<2x32xf32>, vector<32x128xf32>, vector<2x128xf32> -> vector<2x128xf32>
    %95 = arith.addf %93, %94 : vector<2x128xf32>
    %96 = vector.extract_strided_slice %90 {offsets = [0, 0], sizes = [2, 32], strides = [1, 1]} : vector<2x128xf32> to vector<2x32xf32>
    %97 = arith.negf %96 : vector<2x32xf32>
    %98 = math.exp %97 : vector<2x32xf32>
    %cst_40 = arith.constant 1.000000e+00 : f32
    %99 = vector.broadcast %cst_40 : f32 to vector<2x32xf32>
    %100 = arith.addf %99, %98 : vector<2x32xf32>
    %101 = arith.divf %99, %100 : vector<2x32xf32>
    %102 = vector.extract_strided_slice %90 {offsets = [0, 32], sizes = [2, 32], strides = [1, 1]} : vector<2x128xf32> to vector<2x32xf32>
    %103 = arith.negf %102 : vector<2x32xf32>
    %104 = math.exp %103 : vector<2x32xf32>
    %cst_41 = arith.constant 1.000000e+00 : f32
    %105 = vector.broadcast %cst_41 : f32 to vector<2x32xf32>
    %106 = arith.addf %105, %104 : vector<2x32xf32>
    %107 = arith.divf %105, %106 : vector<2x32xf32>
    %108 = vector.extract_strided_slice %90 {offsets = [0, 64], sizes = [2, 32], strides = [1, 1]} : vector<2x128xf32> to vector<2x32xf32>
    %109 = math.tanh %108 : vector<2x32xf32>
    %110 = vector.extract_strided_slice %90 {offsets = [0, 96], sizes = [2, 32], strides = [1, 1]} : vector<2x128xf32> to vector<2x32xf32>
    %111 = arith.negf %110 : vector<2x32xf32>
    %112 = math.exp %111 : vector<2x32xf32>
    %cst_42 = arith.constant 1.000000e+00 : f32
    %113 = vector.broadcast %cst_42 : f32 to vector<2x32xf32>
    %114 = arith.addf %113, %112 : vector<2x32xf32>
    %115 = arith.divf %113, %114 : vector<2x32xf32>
    %116 = arith.mulf %107, %49 : vector<2x32xf32>
    %117 = arith.mulf %101, %109 : vector<2x32xf32>
    %118 = arith.addf %116, %117 : vector<2x32xf32>
    %119 = math.tanh %118 : vector<2x32xf32>
    %120 = arith.mulf %115, %119 : vector<2x32xf32>
    %121 = vector.extract_strided_slice %95 {offsets = [0, 0], sizes = [2, 32], strides = [1, 1]} : vector<2x128xf32> to vector<2x32xf32>
    %122 = arith.negf %121 : vector<2x32xf32>
    %123 = math.exp %122 : vector<2x32xf32>
    %cst_43 = arith.constant 1.000000e+00 : f32
    %124 = vector.broadcast %cst_43 : f32 to vector<2x32xf32>
    %125 = arith.addf %124, %123 : vector<2x32xf32>
    %126 = arith.divf %124, %125 : vector<2x32xf32>
    %127 = vector.extract_strided_slice %95 {offsets = [0, 32], sizes = [2, 32], strides = [1, 1]} : vector<2x128xf32> to vector<2x32xf32>
    %128 = arith.negf %127 : vector<2x32xf32>
    %129 = math.exp %128 : vector<2x32xf32>
    %cst_44 = arith.constant 1.000000e+00 : f32
    %130 = vector.broadcast %cst_44 : f32 to vector<2x32xf32>
    %131 = arith.addf %130, %129 : vector<2x32xf32>
    %132 = arith.divf %130, %131 : vector<2x32xf32>
    %133 = vector.extract_strided_slice %95 {offsets = [0, 64], sizes = [2, 32], strides = [1, 1]} : vector<2x128xf32> to vector<2x32xf32>
    %134 = math.tanh %133 : vector<2x32xf32>
    %135 = vector.extract_strided_slice %95 {offsets = [0, 96], sizes = [2, 32], strides = [1, 1]} : vector<2x128xf32> to vector<2x32xf32>
    %136 = arith.negf %135 : vector<2x32xf32>
    %137 = math.exp %136 : vector<2x32xf32>
    %cst_45 = arith.constant 1.000000e+00 : f32
    %138 = vector.broadcast %cst_45 : f32 to vector<2x32xf32>
    %139 = arith.addf %138, %137 : vector<2x32xf32>
    %140 = arith.divf %138, %139 : vector<2x32xf32>
    %141 = arith.mulf %132, %74 : vector<2x32xf32>
    %142 = arith.mulf %126, %134 : vector<2x32xf32>
    %143 = arith.addf %141, %142 : vector<2x32xf32>
    %144 = math.tanh %143 : vector<2x32xf32>
    %145 = arith.mulf %140, %144 : vector<2x32xf32>
    %146 = arith.index_cast %c1_i32 : i32 to index
    %c0_46 = arith.constant 0 : index
    %c0_47 = arith.constant 0 : index
    %147 = vector.load %arg7[%146, %c0_46, %c0_47] : memref<12x2x64xf32, #tpu.memory_space<vmem>>, vector<1x2x32xf32>
    %148 = vector.shape_cast %147 : vector<1x2x32xf32> to vector<2x32xf32>
    %149 = vector.shape_cast %120 : vector<2x32xf32> to vector<1x2x32xf32>
    tpu.vector_store %arg7[%146, %c0_46, %c0_47], %149 {strides = array<i32>} : memref<12x2x64xf32, #tpu.memory_space<vmem>>, vector<1x2x32xf32>,
    %150 = arith.index_cast %85 : i32 to index
    %c0_48 = arith.constant 0 : index
    %c32_49 = arith.constant 32 : index
    %151 = vector.load %arg7[%150, %c0_48, %c32_49] : memref<12x2x64xf32, #tpu.memory_space<vmem>>, vector<1x2x32xf32>
    %152 = vector.shape_cast %151 : vector<1x2x32xf32> to vector<2x32xf32>
    %153 = vector.shape_cast %145 : vector<2x32xf32> to vector<1x2x32xf32>
    tpu.vector_store %arg7[%150, %c0_48, %c32_49], %153 {strides = array<i32>} : memref<12x2x64xf32, #tpu.memory_space<vmem>>, vector<1x2x32xf32>,
    %c2_i32_50 = arith.constant 2 : i32
    %c11_i32_51 = arith.constant 11 : i32
    %154 = arith.subi %c11_i32_51, %c2_i32_50 : i32
    %c2_i32_52 = arith.constant 2 : i32
    %155 = arith.muli %c2_i32_50, %c2_i32_52 : i32
    %156 = arith.index_cast %155 : i32 to index
    %c0_53 = arith.constant 0 : index
    %157 = vector.load %arg8[%156, %c0_53] : memref<24x128xf32, #tpu.memory_space<vmem>>, vector<2x128xf32>
    %cst_54 = arith.constant dense<0.000000e+00> : vector<2x128xf32>
    %158 = tpu.matmul %120, %13, %cst_54 {dimension_numbers = #tpu.dot_dimension_numbers<[1], [0], [0], [1], [0, 0, 1, 1], [], []>} : vector<2x32xf32>, vector<32x128xf32>, vector<2x128xf32> -> vector<2x128xf32>
    %159 = arith.addf %157, %158 : vector<2x128xf32>
    %c2_i32_55 = arith.constant 2 : i32
    %160 = arith.muli %154, %c2_i32_55 : i32
    %161 = arith.index_cast %160 : i32 to index
    %c0_56 = arith.constant 0 : index
    %162 = vector.load %arg9[%161, %c0_56] : memref<24x128xf32, #tpu.memory_space<vmem>>, vector<2x128xf32>
    %cst_57 = arith.constant dense<0.000000e+00> : vector<2x128xf32>
    %163 = tpu.matmul %145, %14, %cst_57 {dimension_numbers = #tpu.dot_dimension_numbers<[1], [0], [0], [1], [0, 0, 1, 1], [], []>} : vector<2x32xf32>, vector<32x128xf32>, vector<2x128xf32> -> vector<2x128xf32>
    %164 = arith.addf %162, %163 : vector<2x128xf32>
    %165 = vector.extract_strided_slice %159 {offsets = [0, 0], sizes = [2, 32], strides = [1, 1]} : vector<2x128xf32> to vector<2x32xf32>
    %166 = arith.negf %165 : vector<2x32xf32>
    %167 = math.exp %166 : vector<2x32xf32>
    %cst_58 = arith.constant 1.000000e+00 : f32
    %168 = vector.broadcast %cst_58 : f32 to vector<2x32xf32>
    %169 = arith.addf %168, %167 : vector<2x32xf32>
    %170 = arith.divf %168, %169 : vector<2x32xf32>
    %171 = vector.extract_strided_slice %159 {offsets = [0, 32], sizes = [2, 32], strides = [1, 1]} : vector<2x128xf32> to vector<2x32xf32>
    %172 = arith.negf %171 : vector<2x32xf32>
    %173 = math.exp %172 : vector<2x32xf32>
    %cst_59 = arith.constant 1.000000e+00 : f32
    %174 = vector.broadcast %cst_59 : f32 to vector<2x32xf32>
    %175 = arith.addf %174, %173 : vector<2x32xf32>
    %176 = arith.divf %174, %175 : vector<2x32xf32>
    %177 = vector.extract_strided_slice %159 {offsets = [0, 64], sizes = [2, 32], strides = [1, 1]} : vector<2x128xf32> to vector<2x32xf32>
    %178 = math.tanh %177 : vector<2x32xf32>
    %179 = vector.extract_strided_slice %159 {offsets = [0, 96], sizes = [2, 32], strides = [1, 1]} : vector<2x128xf32> to vector<2x32xf32>
    %180 = arith.negf %179 : vector<2x32xf32>
    %181 = math.exp %180 : vector<2x32xf32>
    %cst_60 = arith.constant 1.000000e+00 : f32
    %182 = vector.broadcast %cst_60 : f32 to vector<2x32xf32>
    %183 = arith.addf %182, %181 : vector<2x32xf32>
    %184 = arith.divf %182, %183 : vector<2x32xf32>
    %185 = arith.mulf %176, %118 : vector<2x32xf32>
    %186 = arith.mulf %170, %178 : vector<2x32xf32>
    %187 = arith.addf %185, %186 : vector<2x32xf32>
    %188 = math.tanh %187 : vector<2x32xf32>
    %189 = arith.mulf %184, %188 : vector<2x32xf32>
    %190 = vector.extract_strided_slice %164 {offsets = [0, 0], sizes = [2, 32], strides = [1, 1]} : vector<2x128xf32> to vector<2x32xf32>
    %191 = arith.negf %190 : vector<2x32xf32>
    %192 = math.exp %191 : vector<2x32xf32>
    %cst_61 = arith.constant 1.000000e+00 : f32
    %193 = vector.broadcast %cst_61 : f32 to vector<2x32xf32>
    %194 = arith.addf %193, %192 : vector<2x32xf32>
    %195 = arith.divf %193, %194 : vector<2x32xf32>
    %196 = vector.extract_strided_slice %164 {offsets = [0, 32], sizes = [2, 32], strides = [1, 1]} : vector<2x128xf32> to vector<2x32xf32>
    %197 = arith.negf %196 : vector<2x32xf32>
    %198 = math.exp %197 : vector<2x32xf32>
    %cst_62 = arith.constant 1.000000e+00 : f32
    %199 = vector.broadcast %cst_62 : f32 to vector<2x32xf32>
    %200 = arith.addf %199, %198 : vector<2x32xf32>
    %201 = arith.divf %199, %200 : vector<2x32xf32>
    %202 = vector.extract_strided_slice %164 {offsets = [0, 64], sizes = [2, 32], strides = [1, 1]} : vector<2x128xf32> to vector<2x32xf32>
    %203 = math.tanh %202 : vector<2x32xf32>
    %204 = vector.extract_strided_slice %164 {offsets = [0, 96], sizes = [2, 32], strides = [1, 1]} : vector<2x128xf32> to vector<2x32xf32>
    %205 = arith.negf %204 : vector<2x32xf32>
    %206 = math.exp %205 : vector<2x32xf32>
    %cst_63 = arith.constant 1.000000e+00 : f32
    %207 = vector.broadcast %cst_63 : f32 to vector<2x32xf32>
    %208 = arith.addf %207, %206 : vector<2x32xf32>
    %209 = arith.divf %207, %208 : vector<2x32xf32>
    %210 = arith.mulf %201, %143 : vector<2x32xf32>
    %211 = arith.mulf %195, %203 : vector<2x32xf32>
    %212 = arith.addf %210, %211 : vector<2x32xf32>
    %213 = math.tanh %212 : vector<2x32xf32>
    %214 = arith.mulf %209, %213 : vector<2x32xf32>
    %215 = arith.index_cast %c2_i32_50 : i32 to index
    %c0_64 = arith.constant 0 : index
    %c0_65 = arith.constant 0 : index
    %216 = vector.load %arg7[%215, %c0_64, %c0_65] : memref<12x2x64xf32, #tpu.memory_space<vmem>>, vector<1x2x32xf32>
    %217 = vector.shape_cast %216 : vector<1x2x32xf32> to vector<2x32xf32>
    %218 = vector.shape_cast %189 : vector<2x32xf32> to vector<1x2x32xf32>
    tpu.vector_store %arg7[%215, %c0_64, %c0_65], %218 {strides = array<i32>} : memref<12x2x64xf32, #tpu.memory_space<vmem>>, vector<1x2x32xf32>,
    %219 = arith.index_cast %154 : i32 to index
    %c0_66 = arith.constant 0 : index
    %c32_67 = arith.constant 32 : index
    %220 = vector.load %arg7[%219, %c0_66, %c32_67] : memref<12x2x64xf32, #tpu.memory_space<vmem>>, vector<1x2x32xf32>
    %221 = vector.shape_cast %220 : vector<1x2x32xf32> to vector<2x32xf32>
    %222 = vector.shape_cast %214 : vector<2x32xf32> to vector<1x2x32xf32>
    tpu.vector_store %arg7[%219, %c0_66, %c32_67], %222 {strides = array<i32>} : memref<12x2x64xf32, #tpu.memory_space<vmem>>, vector<1x2x32xf32>,
    %c3_i32 = arith.constant 3 : i32
    %c11_i32_68 = arith.constant 11 : i32
    %223 = arith.subi %c11_i32_68, %c3_i32 : i32
    %c2_i32_69 = arith.constant 2 : i32
    %224 = arith.muli %c3_i32, %c2_i32_69 : i32
    %225 = arith.index_cast %224 : i32 to index
    %c0_70 = arith.constant 0 : index
    %226 = vector.load %arg8[%225, %c0_70] : memref<24x128xf32, #tpu.memory_space<vmem>>, vector<2x128xf32>
    %cst_71 = arith.constant dense<0.000000e+00> : vector<2x128xf32>
    %227 = tpu.matmul %189, %13, %cst_71 {dimension_numbers = #tpu.dot_dimension_numbers<[1], [0], [0], [1], [0, 0, 1, 1], [], []>} : vector<2x32xf32>, vector<32x128xf32>, vector<2x128xf32> -> vector<2x128xf32>
    %228 = arith.addf %226, %227 : vector<2x128xf32>
    %c2_i32_72 = arith.constant 2 : i32
    %229 = arith.muli %223, %c2_i32_72 : i32
    %230 = arith.index_cast %229 : i32 to index
    %c0_73 = arith.constant 0 : index
    %231 = vector.load %arg9[%230, %c0_73] : memref<24x128xf32, #tpu.memory_space<vmem>>, vector<2x128xf32>
    %cst_74 = arith.constant dense<0.000000e+00> : vector<2x128xf32>
    %232 = tpu.matmul %214, %14, %cst_74 {dimension_numbers = #tpu.dot_dimension_numbers<[1], [0], [0], [1], [0, 0, 1, 1], [], []>} : vector<2x32xf32>, vector<32x128xf32>, vector<2x128xf32> -> vector<2x128xf32>
    %233 = arith.addf %231, %232 : vector<2x128xf32>
    %234 = vector.extract_strided_slice %228 {offsets = [0, 0], sizes = [2, 32], strides = [1, 1]} : vector<2x128xf32> to vector<2x32xf32>
    %235 = arith.negf %234 : vector<2x32xf32>
    %236 = math.exp %235 : vector<2x32xf32>
    %cst_75 = arith.constant 1.000000e+00 : f32
    %237 = vector.broadcast %cst_75 : f32 to vector<2x32xf32>
    %238 = arith.addf %237, %236 : vector<2x32xf32>
    %239 = arith.divf %237, %238 : vector<2x32xf32>
    %240 = vector.extract_strided_slice %228 {offsets = [0, 32], sizes = [2, 32], strides = [1, 1]} : vector<2x128xf32> to vector<2x32xf32>
    %241 = arith.negf %240 : vector<2x32xf32>
    %242 = math.exp %241 : vector<2x32xf32>
    %cst_76 = arith.constant 1.000000e+00 : f32
    %243 = vector.broadcast %cst_76 : f32 to vector<2x32xf32>
    %244 = arith.addf %243, %242 : vector<2x32xf32>
    %245 = arith.divf %243, %244 : vector<2x32xf32>
    %246 = vector.extract_strided_slice %228 {offsets = [0, 64], sizes = [2, 32], strides = [1, 1]} : vector<2x128xf32> to vector<2x32xf32>
    %247 = math.tanh %246 : vector<2x32xf32>
    %248 = vector.extract_strided_slice %228 {offsets = [0, 96], sizes = [2, 32], strides = [1, 1]} : vector<2x128xf32> to vector<2x32xf32>
    %249 = arith.negf %248 : vector<2x32xf32>
    %250 = math.exp %249 : vector<2x32xf32>
    %cst_77 = arith.constant 1.000000e+00 : f32
    %251 = vector.broadcast %cst_77 : f32 to vector<2x32xf32>
    %252 = arith.addf %251, %250 : vector<2x32xf32>
    %253 = arith.divf %251, %252 : vector<2x32xf32>
    %254 = arith.mulf %245, %187 : vector<2x32xf32>
    %255 = arith.mulf %239, %247 : vector<2x32xf32>
    %256 = arith.addf %254, %255 : vector<2x32xf32>
    %257 = math.tanh %256 : vector<2x32xf32>
    %258 = arith.mulf %253, %257 : vector<2x32xf32>
    %259 = vector.extract_strided_slice %233 {offsets = [0, 0], sizes = [2, 32], strides = [1, 1]} : vector<2x128xf32> to vector<2x32xf32>
    %260 = arith.negf %259 : vector<2x32xf32>
    %261 = math.exp %260 : vector<2x32xf32>
    %cst_78 = arith.constant 1.000000e+00 : f32
    %262 = vector.broadcast %cst_78 : f32 to vector<2x32xf32>
    %263 = arith.addf %262, %261 : vector<2x32xf32>
    %264 = arith.divf %262, %263 : vector<2x32xf32>
    %265 = vector.extract_strided_slice %233 {offsets = [0, 32], sizes = [2, 32], strides = [1, 1]} : vector<2x128xf32> to vector<2x32xf32>
    %266 = arith.negf %265 : vector<2x32xf32>
    %267 = math.exp %266 : vector<2x32xf32>
    %cst_79 = arith.constant 1.000000e+00 : f32
    %268 = vector.broadcast %cst_79 : f32 to vector<2x32xf32>
    %269 = arith.addf %268, %267 : vector<2x32xf32>
    %270 = arith.divf %268, %269 : vector<2x32xf32>
    %271 = vector.extract_strided_slice %233 {offsets = [0, 64], sizes = [2, 32], strides = [1, 1]} : vector<2x128xf32> to vector<2x32xf32>
    %272 = math.tanh %271 : vector<2x32xf32>
    %273 = vector.extract_strided_slice %233 {offsets = [0, 96], sizes = [2, 32], strides = [1, 1]} : vector<2x128xf32> to vector<2x32xf32>
    %274 = arith.negf %273 : vector<2x32xf32>
    %275 = math.exp %274 : vector<2x32xf32>
    %cst_80 = arith.constant 1.000000e+00 : f32
    %276 = vector.broadcast %cst_80 : f32 to vector<2x32xf32>
    %277 = arith.addf %276, %275 : vector<2x32xf32>
    %278 = arith.divf %276, %277 : vector<2x32xf32>
    %279 = arith.mulf %270, %212 : vector<2x32xf32>
    %280 = arith.mulf %264, %272 : vector<2x32xf32>
    %281 = arith.addf %279, %280 : vector<2x32xf32>
    %282 = math.tanh %281 : vector<2x32xf32>
    %283 = arith.mulf %278, %282 : vector<2x32xf32>
    %284 = arith.index_cast %c3_i32 : i32 to index
    %c0_81 = arith.constant 0 : index
    %c0_82 = arith.constant 0 : index
    %285 = vector.load %arg7[%284, %c0_81, %c0_82] : memref<12x2x64xf32, #tpu.memory_space<vmem>>, vector<1x2x32xf32>
    %286 = vector.shape_cast %285 : vector<1x2x32xf32> to vector<2x32xf32>
    %287 = vector.shape_cast %258 : vector<2x32xf32> to vector<1x2x32xf32>
    tpu.vector_store %arg7[%284, %c0_81, %c0_82], %287 {strides = array<i32>} : memref<12x2x64xf32, #tpu.memory_space<vmem>>, vector<1x2x32xf32>,
    %288 = arith.index_cast %223 : i32 to index
    %c0_83 = arith.constant 0 : index
    %c32_84 = arith.constant 32 : index
    %289 = vector.load %arg7[%288, %c0_83, %c32_84] : memref<12x2x64xf32, #tpu.memory_space<vmem>>, vector<1x2x32xf32>
    %290 = vector.shape_cast %289 : vector<1x2x32xf32> to vector<2x32xf32>
    %291 = vector.shape_cast %283 : vector<2x32xf32> to vector<1x2x32xf32>
    tpu.vector_store %arg7[%288, %c0_83, %c32_84], %291 {strides = array<i32>} : memref<12x2x64xf32, #tpu.memory_space<vmem>>, vector<1x2x32xf32>,
    %c4_i32 = arith.constant 4 : i32
    %c11_i32_85 = arith.constant 11 : i32
    %292 = arith.subi %c11_i32_85, %c4_i32 : i32
    %c2_i32_86 = arith.constant 2 : i32
    %293 = arith.muli %c4_i32, %c2_i32_86 : i32
    %294 = arith.index_cast %293 : i32 to index
    %c0_87 = arith.constant 0 : index
    %295 = vector.load %arg8[%294, %c0_87] : memref<24x128xf32, #tpu.memory_space<vmem>>, vector<2x128xf32>
    %cst_88 = arith.constant dense<0.000000e+00> : vector<2x128xf32>
    %296 = tpu.matmul %258, %13, %cst_88 {dimension_numbers = #tpu.dot_dimension_numbers<[1], [0], [0], [1], [0, 0, 1, 1], [], []>} : vector<2x32xf32>, vector<32x128xf32>, vector<2x128xf32> -> vector<2x128xf32>
    %297 = arith.addf %295, %296 : vector<2x128xf32>
    %c2_i32_89 = arith.constant 2 : i32
    %298 = arith.muli %292, %c2_i32_89 : i32
    %299 = arith.index_cast %298 : i32 to index
    %c0_90 = arith.constant 0 : index
    %300 = vector.load %arg9[%299, %c0_90] : memref<24x128xf32, #tpu.memory_space<vmem>>, vector<2x128xf32>
    %cst_91 = arith.constant dense<0.000000e+00> : vector<2x128xf32>
    %301 = tpu.matmul %283, %14, %cst_91 {dimension_numbers = #tpu.dot_dimension_numbers<[1], [0], [0], [1], [0, 0, 1, 1], [], []>} : vector<2x32xf32>, vector<32x128xf32>, vector<2x128xf32> -> vector<2x128xf32>
    %302 = arith.addf %300, %301 : vector<2x128xf32>
    %303 = vector.extract_strided_slice %297 {offsets = [0, 0], sizes = [2, 32], strides = [1, 1]} : vector<2x128xf32> to vector<2x32xf32>
    %304 = arith.negf %303 : vector<2x32xf32>
    %305 = math.exp %304 : vector<2x32xf32>
    %cst_92 = arith.constant 1.000000e+00 : f32
    %306 = vector.broadcast %cst_92 : f32 to vector<2x32xf32>
    %307 = arith.addf %306, %305 : vector<2x32xf32>
    %308 = arith.divf %306, %307 : vector<2x32xf32>
    %309 = vector.extract_strided_slice %297 {offsets = [0, 32], sizes = [2, 32], strides = [1, 1]} : vector<2x128xf32> to vector<2x32xf32>
    %310 = arith.negf %309 : vector<2x32xf32>
    %311 = math.exp %310 : vector<2x32xf32>
    %cst_93 = arith.constant 1.000000e+00 : f32
    %312 = vector.broadcast %cst_93 : f32 to vector<2x32xf32>
    %313 = arith.addf %312, %311 : vector<2x32xf32>
    %314 = arith.divf %312, %313 : vector<2x32xf32>
    %315 = vector.extract_strided_slice %297 {offsets = [0, 64], sizes = [2, 32], strides = [1, 1]} : vector<2x128xf32> to vector<2x32xf32>
    %316 = math.tanh %315 : vector<2x32xf32>
    %317 = vector.extract_strided_slice %297 {offsets = [0, 96], sizes = [2, 32], strides = [1, 1]} : vector<2x128xf32> to vector<2x32xf32>
    %318 = arith.negf %317 : vector<2x32xf32>
    %319 = math.exp %318 : vector<2x32xf32>
    %cst_94 = arith.constant 1.000000e+00 : f32
    %320 = vector.broadcast %cst_94 : f32 to vector<2x32xf32>
    %321 = arith.addf %320, %319 : vector<2x32xf32>
    %322 = arith.divf %320, %321 : vector<2x32xf32>
    %323 = arith.mulf %314, %256 : vector<2x32xf32>
    %324 = arith.mulf %308, %316 : vector<2x32xf32>
    %325 = arith.addf %323, %324 : vector<2x32xf32>
    %326 = math.tanh %325 : vector<2x32xf32>
    %327 = arith.mulf %322, %326 : vector<2x32xf32>
    %328 = vector.extract_strided_slice %302 {offsets = [0, 0], sizes = [2, 32], strides = [1, 1]} : vector<2x128xf32> to vector<2x32xf32>
    %329 = arith.negf %328 : vector<2x32xf32>
    %330 = math.exp %329 : vector<2x32xf32>
    %cst_95 = arith.constant 1.000000e+00 : f32
    %331 = vector.broadcast %cst_95 : f32 to vector<2x32xf32>
    %332 = arith.addf %331, %330 : vector<2x32xf32>
    %333 = arith.divf %331, %332 : vector<2x32xf32>
    %334 = vector.extract_strided_slice %302 {offsets = [0, 32], sizes = [2, 32], strides = [1, 1]} : vector<2x128xf32> to vector<2x32xf32>
    %335 = arith.negf %334 : vector<2x32xf32>
    %336 = math.exp %335 : vector<2x32xf32>
    %cst_96 = arith.constant 1.000000e+00 : f32
    %337 = vector.broadcast %cst_96 : f32 to vector<2x32xf32>
    %338 = arith.addf %337, %336 : vector<2x32xf32>
    %339 = arith.divf %337, %338 : vector<2x32xf32>
    %340 = vector.extract_strided_slice %302 {offsets = [0, 64], sizes = [2, 32], strides = [1, 1]} : vector<2x128xf32> to vector<2x32xf32>
    %341 = math.tanh %340 : vector<2x32xf32>
    %342 = vector.extract_strided_slice %302 {offsets = [0, 96], sizes = [2, 32], strides = [1, 1]} : vector<2x128xf32> to vector<2x32xf32>
    %343 = arith.negf %342 : vector<2x32xf32>
    %344 = math.exp %343 : vector<2x32xf32>
    %cst_97 = arith.constant 1.000000e+00 : f32
    %345 = vector.broadcast %cst_97 : f32 to vector<2x32xf32>
    %346 = arith.addf %345, %344 : vector<2x32xf32>
    %347 = arith.divf %345, %346 : vector<2x32xf32>
    %348 = arith.mulf %339, %281 : vector<2x32xf32>
    %349 = arith.mulf %333, %341 : vector<2x32xf32>
    %350 = arith.addf %348, %349 : vector<2x32xf32>
    %351 = math.tanh %350 : vector<2x32xf32>
    %352 = arith.mulf %347, %351 : vector<2x32xf32>
    %353 = arith.index_cast %c4_i32 : i32 to index
    %c0_98 = arith.constant 0 : index
    %c0_99 = arith.constant 0 : index
    %354 = vector.load %arg7[%353, %c0_98, %c0_99] : memref<12x2x64xf32, #tpu.memory_space<vmem>>, vector<1x2x32xf32>
    %355 = vector.shape_cast %354 : vector<1x2x32xf32> to vector<2x32xf32>
    %356 = vector.shape_cast %327 : vector<2x32xf32> to vector<1x2x32xf32>
    tpu.vector_store %arg7[%353, %c0_98, %c0_99], %356 {strides = array<i32>} : memref<12x2x64xf32, #tpu.memory_space<vmem>>, vector<1x2x32xf32>,
    %357 = arith.index_cast %292 : i32 to index
    %c0_100 = arith.constant 0 : index
    %c32_101 = arith.constant 32 : index
    %358 = vector.load %arg7[%357, %c0_100, %c32_101] : memref<12x2x64xf32, #tpu.memory_space<vmem>>, vector<1x2x32xf32>
    %359 = vector.shape_cast %358 : vector<1x2x32xf32> to vector<2x32xf32>
    %360 = vector.shape_cast %352 : vector<2x32xf32> to vector<1x2x32xf32>
    tpu.vector_store %arg7[%357, %c0_100, %c32_101], %360 {strides = array<i32>} : memref<12x2x64xf32, #tpu.memory_space<vmem>>, vector<1x2x32xf32>,
    %c5_i32 = arith.constant 5 : i32
    %c11_i32_102 = arith.constant 11 : i32
    %361 = arith.subi %c11_i32_102, %c5_i32 : i32
    %c2_i32_103 = arith.constant 2 : i32
    %362 = arith.muli %c5_i32, %c2_i32_103 : i32
    %363 = arith.index_cast %362 : i32 to index
    %c0_104 = arith.constant 0 : index
    %364 = vector.load %arg8[%363, %c0_104] : memref<24x128xf32, #tpu.memory_space<vmem>>, vector<2x128xf32>
    %cst_105 = arith.constant dense<0.000000e+00> : vector<2x128xf32>
    %365 = tpu.matmul %327, %13, %cst_105 {dimension_numbers = #tpu.dot_dimension_numbers<[1], [0], [0], [1], [0, 0, 1, 1], [], []>} : vector<2x32xf32>, vector<32x128xf32>, vector<2x128xf32> -> vector<2x128xf32>
    %366 = arith.addf %364, %365 : vector<2x128xf32>
    %c2_i32_106 = arith.constant 2 : i32
    %367 = arith.muli %361, %c2_i32_106 : i32
    %368 = arith.index_cast %367 : i32 to index
    %c0_107 = arith.constant 0 : index
    %369 = vector.load %arg9[%368, %c0_107] : memref<24x128xf32, #tpu.memory_space<vmem>>, vector<2x128xf32>
    %cst_108 = arith.constant dense<0.000000e+00> : vector<2x128xf32>
    %370 = tpu.matmul %352, %14, %cst_108 {dimension_numbers = #tpu.dot_dimension_numbers<[1], [0], [0], [1], [0, 0, 1, 1], [], []>} : vector<2x32xf32>, vector<32x128xf32>, vector<2x128xf32> -> vector<2x128xf32>
    %371 = arith.addf %369, %370 : vector<2x128xf32>
    %372 = vector.extract_strided_slice %366 {offsets = [0, 0], sizes = [2, 32], strides = [1, 1]} : vector<2x128xf32> to vector<2x32xf32>
    %373 = arith.negf %372 : vector<2x32xf32>
    %374 = math.exp %373 : vector<2x32xf32>
    %cst_109 = arith.constant 1.000000e+00 : f32
    %375 = vector.broadcast %cst_109 : f32 to vector<2x32xf32>
    %376 = arith.addf %375, %374 : vector<2x32xf32>
    %377 = arith.divf %375, %376 : vector<2x32xf32>
    %378 = vector.extract_strided_slice %366 {offsets = [0, 32], sizes = [2, 32], strides = [1, 1]} : vector<2x128xf32> to vector<2x32xf32>
    %379 = arith.negf %378 : vector<2x32xf32>
    %380 = math.exp %379 : vector<2x32xf32>
    %cst_110 = arith.constant 1.000000e+00 : f32
    %381 = vector.broadcast %cst_110 : f32 to vector<2x32xf32>
    %382 = arith.addf %381, %380 : vector<2x32xf32>
    %383 = arith.divf %381, %382 : vector<2x32xf32>
    %384 = vector.extract_strided_slice %366 {offsets = [0, 64], sizes = [2, 32], strides = [1, 1]} : vector<2x128xf32> to vector<2x32xf32>
    %385 = math.tanh %384 : vector<2x32xf32>
    %386 = vector.extract_strided_slice %366 {offsets = [0, 96], sizes = [2, 32], strides = [1, 1]} : vector<2x128xf32> to vector<2x32xf32>
    %387 = arith.negf %386 : vector<2x32xf32>
    %388 = math.exp %387 : vector<2x32xf32>
    %cst_111 = arith.constant 1.000000e+00 : f32
    %389 = vector.broadcast %cst_111 : f32 to vector<2x32xf32>
    %390 = arith.addf %389, %388 : vector<2x32xf32>
    %391 = arith.divf %389, %390 : vector<2x32xf32>
    %392 = arith.mulf %383, %325 : vector<2x32xf32>
    %393 = arith.mulf %377, %385 : vector<2x32xf32>
    %394 = arith.addf %392, %393 : vector<2x32xf32>
    %395 = math.tanh %394 : vector<2x32xf32>
    %396 = arith.mulf %391, %395 : vector<2x32xf32>
    %397 = vector.extract_strided_slice %371 {offsets = [0, 0], sizes = [2, 32], strides = [1, 1]} : vector<2x128xf32> to vector<2x32xf32>
    %398 = arith.negf %397 : vector<2x32xf32>
    %399 = math.exp %398 : vector<2x32xf32>
    %cst_112 = arith.constant 1.000000e+00 : f32
    %400 = vector.broadcast %cst_112 : f32 to vector<2x32xf32>
    %401 = arith.addf %400, %399 : vector<2x32xf32>
    %402 = arith.divf %400, %401 : vector<2x32xf32>
    %403 = vector.extract_strided_slice %371 {offsets = [0, 32], sizes = [2, 32], strides = [1, 1]} : vector<2x128xf32> to vector<2x32xf32>
    %404 = arith.negf %403 : vector<2x32xf32>
    %405 = math.exp %404 : vector<2x32xf32>
    %cst_113 = arith.constant 1.000000e+00 : f32
    %406 = vector.broadcast %cst_113 : f32 to vector<2x32xf32>
    %407 = arith.addf %406, %405 : vector<2x32xf32>
    %408 = arith.divf %406, %407 : vector<2x32xf32>
    %409 = vector.extract_strided_slice %371 {offsets = [0, 64], sizes = [2, 32], strides = [1, 1]} : vector<2x128xf32> to vector<2x32xf32>
    %410 = math.tanh %409 : vector<2x32xf32>
    %411 = vector.extract_strided_slice %371 {offsets = [0, 96], sizes = [2, 32], strides = [1, 1]} : vector<2x128xf32> to vector<2x32xf32>
    %412 = arith.negf %411 : vector<2x32xf32>
    %413 = math.exp %412 : vector<2x32xf32>
    %cst_114 = arith.constant 1.000000e+00 : f32
    %414 = vector.broadcast %cst_114 : f32 to vector<2x32xf32>
    %415 = arith.addf %414, %413 : vector<2x32xf32>
    %416 = arith.divf %414, %415 : vector<2x32xf32>
    %417 = arith.mulf %408, %350 : vector<2x32xf32>
    %418 = arith.mulf %402, %410 : vector<2x32xf32>
    %419 = arith.addf %417, %418 : vector<2x32xf32>
    %420 = math.tanh %419 : vector<2x32xf32>
    %421 = arith.mulf %416, %420 : vector<2x32xf32>
    %422 = arith.index_cast %c5_i32 : i32 to index
    %c0_115 = arith.constant 0 : index
    %c0_116 = arith.constant 0 : index
    %423 = vector.load %arg7[%422, %c0_115, %c0_116] : memref<12x2x64xf32, #tpu.memory_space<vmem>>, vector<1x2x32xf32>
    %424 = vector.shape_cast %423 : vector<1x2x32xf32> to vector<2x32xf32>
    %425 = vector.shape_cast %396 : vector<2x32xf32> to vector<1x2x32xf32>
    tpu.vector_store %arg7[%422, %c0_115, %c0_116], %425 {strides = array<i32>} : memref<12x2x64xf32, #tpu.memory_space<vmem>>, vector<1x2x32xf32>,
    %426 = arith.index_cast %361 : i32 to index
    %c0_117 = arith.constant 0 : index
    %c32_118 = arith.constant 32 : index
    %427 = vector.load %arg7[%426, %c0_117, %c32_118] : memref<12x2x64xf32, #tpu.memory_space<vmem>>, vector<1x2x32xf32>
    %428 = vector.shape_cast %427 : vector<1x2x32xf32> to vector<2x32xf32>
    %429 = vector.shape_cast %421 : vector<2x32xf32> to vector<1x2x32xf32>
    tpu.vector_store %arg7[%426, %c0_117, %c32_118], %429 {strides = array<i32>} : memref<12x2x64xf32, #tpu.memory_space<vmem>>, vector<1x2x32xf32>,
    %c6_i32 = arith.constant 6 : i32
    %c11_i32_119 = arith.constant 11 : i32
    %430 = arith.subi %c11_i32_119, %c6_i32 : i32
    %c2_i32_120 = arith.constant 2 : i32
    %431 = arith.muli %c6_i32, %c2_i32_120 : i32
    %432 = arith.index_cast %431 : i32 to index
    %c0_121 = arith.constant 0 : index
    %433 = vector.load %arg8[%432, %c0_121] : memref<24x128xf32, #tpu.memory_space<vmem>>, vector<2x128xf32>
    %cst_122 = arith.constant dense<0.000000e+00> : vector<2x128xf32>
    %434 = tpu.matmul %396, %13, %cst_122 {dimension_numbers = #tpu.dot_dimension_numbers<[1], [0], [0], [1], [0, 0, 1, 1], [], []>} : vector<2x32xf32>, vector<32x128xf32>, vector<2x128xf32> -> vector<2x128xf32>
    %435 = arith.addf %433, %434 : vector<2x128xf32>
    %c2_i32_123 = arith.constant 2 : i32
    %436 = arith.muli %430, %c2_i32_123 : i32
    %437 = arith.index_cast %436 : i32 to index
    %c0_124 = arith.constant 0 : index
    %438 = vector.load %arg9[%437, %c0_124] : memref<24x128xf32, #tpu.memory_space<vmem>>, vector<2x128xf32>
    %cst_125 = arith.constant dense<0.000000e+00> : vector<2x128xf32>
    %439 = tpu.matmul %421, %14, %cst_125 {dimension_numbers = #tpu.dot_dimension_numbers<[1], [0], [0], [1], [0, 0, 1, 1], [], []>} : vector<2x32xf32>, vector<32x128xf32>, vector<2x128xf32> -> vector<2x128xf32>
    %440 = arith.addf %438, %439 : vector<2x128xf32>
    %441 = vector.extract_strided_slice %435 {offsets = [0, 0], sizes = [2, 32], strides = [1, 1]} : vector<2x128xf32> to vector<2x32xf32>
    %442 = arith.negf %441 : vector<2x32xf32>
    %443 = math.exp %442 : vector<2x32xf32>
    %cst_126 = arith.constant 1.000000e+00 : f32
    %444 = vector.broadcast %cst_126 : f32 to vector<2x32xf32>
    %445 = arith.addf %444, %443 : vector<2x32xf32>
    %446 = arith.divf %444, %445 : vector<2x32xf32>
    %447 = vector.extract_strided_slice %435 {offsets = [0, 32], sizes = [2, 32], strides = [1, 1]} : vector<2x128xf32> to vector<2x32xf32>
    %448 = arith.negf %447 : vector<2x32xf32>
    %449 = math.exp %448 : vector<2x32xf32>
    %cst_127 = arith.constant 1.000000e+00 : f32
    %450 = vector.broadcast %cst_127 : f32 to vector<2x32xf32>
    %451 = arith.addf %450, %449 : vector<2x32xf32>
    %452 = arith.divf %450, %451 : vector<2x32xf32>
    %453 = vector.extract_strided_slice %435 {offsets = [0, 64], sizes = [2, 32], strides = [1, 1]} : vector<2x128xf32> to vector<2x32xf32>
    %454 = math.tanh %453 : vector<2x32xf32>
    %455 = vector.extract_strided_slice %435 {offsets = [0, 96], sizes = [2, 32], strides = [1, 1]} : vector<2x128xf32> to vector<2x32xf32>
    %456 = arith.negf %455 : vector<2x32xf32>
    %457 = math.exp %456 : vector<2x32xf32>
    %cst_128 = arith.constant 1.000000e+00 : f32
    %458 = vector.broadcast %cst_128 : f32 to vector<2x32xf32>
    %459 = arith.addf %458, %457 : vector<2x32xf32>
    %460 = arith.divf %458, %459 : vector<2x32xf32>
    %461 = arith.mulf %452, %394 : vector<2x32xf32>
    %462 = arith.mulf %446, %454 : vector<2x32xf32>
    %463 = arith.addf %461, %462 : vector<2x32xf32>
    %464 = math.tanh %463 : vector<2x32xf32>
    %465 = arith.mulf %460, %464 : vector<2x32xf32>
    %466 = vector.extract_strided_slice %440 {offsets = [0, 0], sizes = [2, 32], strides = [1, 1]} : vector<2x128xf32> to vector<2x32xf32>
    %467 = arith.negf %466 : vector<2x32xf32>
    %468 = math.exp %467 : vector<2x32xf32>
    %cst_129 = arith.constant 1.000000e+00 : f32
    %469 = vector.broadcast %cst_129 : f32 to vector<2x32xf32>
    %470 = arith.addf %469, %468 : vector<2x32xf32>
    %471 = arith.divf %469, %470 : vector<2x32xf32>
    %472 = vector.extract_strided_slice %440 {offsets = [0, 32], sizes = [2, 32], strides = [1, 1]} : vector<2x128xf32> to vector<2x32xf32>
    %473 = arith.negf %472 : vector<2x32xf32>
    %474 = math.exp %473 : vector<2x32xf32>
    %cst_130 = arith.constant 1.000000e+00 : f32
    %475 = vector.broadcast %cst_130 : f32 to vector<2x32xf32>
    %476 = arith.addf %475, %474 : vector<2x32xf32>
    %477 = arith.divf %475, %476 : vector<2x32xf32>
    %478 = vector.extract_strided_slice %440 {offsets = [0, 64], sizes = [2, 32], strides = [1, 1]} : vector<2x128xf32> to vector<2x32xf32>
    %479 = math.tanh %478 : vector<2x32xf32>
    %480 = vector.extract_strided_slice %440 {offsets = [0, 96], sizes = [2, 32], strides = [1, 1]} : vector<2x128xf32> to vector<2x32xf32>
    %481 = arith.negf %480 : vector<2x32xf32>
    %482 = math.exp %481 : vector<2x32xf32>
    %cst_131 = arith.constant 1.000000e+00 : f32
    %483 = vector.broadcast %cst_131 : f32 to vector<2x32xf32>
    %484 = arith.addf %483, %482 : vector<2x32xf32>
    %485 = arith.divf %483, %484 : vector<2x32xf32>
    %486 = arith.mulf %477, %419 : vector<2x32xf32>
    %487 = arith.mulf %471, %479 : vector<2x32xf32>
    %488 = arith.addf %486, %487 : vector<2x32xf32>
    %489 = math.tanh %488 : vector<2x32xf32>
    %490 = arith.mulf %485, %489 : vector<2x32xf32>
    %491 = arith.index_cast %c6_i32 : i32 to index
    %c0_132 = arith.constant 0 : index
    %c0_133 = arith.constant 0 : index
    %492 = vector.load %arg7[%491, %c0_132, %c0_133] : memref<12x2x64xf32, #tpu.memory_space<vmem>>, vector<1x2x32xf32>
    %493 = vector.shape_cast %492 : vector<1x2x32xf32> to vector<2x32xf32>
    %494 = vector.shape_cast %465 : vector<2x32xf32> to vector<1x2x32xf32>
    tpu.vector_store %arg7[%491, %c0_132, %c0_133], %494 {strides = array<i32>} : memref<12x2x64xf32, #tpu.memory_space<vmem>>, vector<1x2x32xf32>,
    %495 = arith.index_cast %430 : i32 to index
    %c0_134 = arith.constant 0 : index
    %c32_135 = arith.constant 32 : index
    %496 = vector.load %arg7[%495, %c0_134, %c32_135] : memref<12x2x64xf32, #tpu.memory_space<vmem>>, vector<1x2x32xf32>
    %497 = vector.shape_cast %496 : vector<1x2x32xf32> to vector<2x32xf32>
    %498 = vector.shape_cast %490 : vector<2x32xf32> to vector<1x2x32xf32>
    tpu.vector_store %arg7[%495, %c0_134, %c32_135], %498 {strides = array<i32>} : memref<12x2x64xf32, #tpu.memory_space<vmem>>, vector<1x2x32xf32>,
    %c7_i32 = arith.constant 7 : i32
    %c11_i32_136 = arith.constant 11 : i32
    %499 = arith.subi %c11_i32_136, %c7_i32 : i32
    %c2_i32_137 = arith.constant 2 : i32
    %500 = arith.muli %c7_i32, %c2_i32_137 : i32
    %501 = arith.index_cast %500 : i32 to index
    %c0_138 = arith.constant 0 : index
    %502 = vector.load %arg8[%501, %c0_138] : memref<24x128xf32, #tpu.memory_space<vmem>>, vector<2x128xf32>
    %cst_139 = arith.constant dense<0.000000e+00> : vector<2x128xf32>
    %503 = tpu.matmul %465, %13, %cst_139 {dimension_numbers = #tpu.dot_dimension_numbers<[1], [0], [0], [1], [0, 0, 1, 1], [], []>} : vector<2x32xf32>, vector<32x128xf32>, vector<2x128xf32> -> vector<2x128xf32>
    %504 = arith.addf %502, %503 : vector<2x128xf32>
    %c2_i32_140 = arith.constant 2 : i32
    %505 = arith.muli %499, %c2_i32_140 : i32
    %506 = arith.index_cast %505 : i32 to index
    %c0_141 = arith.constant 0 : index
    %507 = vector.load %arg9[%506, %c0_141] : memref<24x128xf32, #tpu.memory_space<vmem>>, vector<2x128xf32>
    %cst_142 = arith.constant dense<0.000000e+00> : vector<2x128xf32>
    %508 = tpu.matmul %490, %14, %cst_142 {dimension_numbers = #tpu.dot_dimension_numbers<[1], [0], [0], [1], [0, 0, 1, 1], [], []>} : vector<2x32xf32>, vector<32x128xf32>, vector<2x128xf32> -> vector<2x128xf32>
    %509 = arith.addf %507, %508 : vector<2x128xf32>
    %510 = vector.extract_strided_slice %504 {offsets = [0, 0], sizes = [2, 32], strides = [1, 1]} : vector<2x128xf32> to vector<2x32xf32>
    %511 = arith.negf %510 : vector<2x32xf32>
    %512 = math.exp %511 : vector<2x32xf32>
    %cst_143 = arith.constant 1.000000e+00 : f32
    %513 = vector.broadcast %cst_143 : f32 to vector<2x32xf32>
    %514 = arith.addf %513, %512 : vector<2x32xf32>
    %515 = arith.divf %513, %514 : vector<2x32xf32>
    %516 = vector.extract_strided_slice %504 {offsets = [0, 32], sizes = [2, 32], strides = [1, 1]} : vector<2x128xf32> to vector<2x32xf32>
    %517 = arith.negf %516 : vector<2x32xf32>
    %518 = math.exp %517 : vector<2x32xf32>
    %cst_144 = arith.constant 1.000000e+00 : f32
    %519 = vector.broadcast %cst_144 : f32 to vector<2x32xf32>
    %520 = arith.addf %519, %518 : vector<2x32xf32>
    %521 = arith.divf %519, %520 : vector<2x32xf32>
    %522 = vector.extract_strided_slice %504 {offsets = [0, 64], sizes = [2, 32], strides = [1, 1]} : vector<2x128xf32> to vector<2x32xf32>
    %523 = math.tanh %522 : vector<2x32xf32>
    %524 = vector.extract_strided_slice %504 {offsets = [0, 96], sizes = [2, 32], strides = [1, 1]} : vector<2x128xf32> to vector<2x32xf32>
    %525 = arith.negf %524 : vector<2x32xf32>
    %526 = math.exp %525 : vector<2x32xf32>
    %cst_145 = arith.constant 1.000000e+00 : f32
    %527 = vector.broadcast %cst_145 : f32 to vector<2x32xf32>
    %528 = arith.addf %527, %526 : vector<2x32xf32>
    %529 = arith.divf %527, %528 : vector<2x32xf32>
    %530 = arith.mulf %521, %463 : vector<2x32xf32>
    %531 = arith.mulf %515, %523 : vector<2x32xf32>
    %532 = arith.addf %530, %531 : vector<2x32xf32>
    %533 = math.tanh %532 : vector<2x32xf32>
    %534 = arith.mulf %529, %533 : vector<2x32xf32>
    %535 = vector.extract_strided_slice %509 {offsets = [0, 0], sizes = [2, 32], strides = [1, 1]} : vector<2x128xf32> to vector<2x32xf32>
    %536 = arith.negf %535 : vector<2x32xf32>
    %537 = math.exp %536 : vector<2x32xf32>
    %cst_146 = arith.constant 1.000000e+00 : f32
    %538 = vector.broadcast %cst_146 : f32 to vector<2x32xf32>
    %539 = arith.addf %538, %537 : vector<2x32xf32>
    %540 = arith.divf %538, %539 : vector<2x32xf32>
    %541 = vector.extract_strided_slice %509 {offsets = [0, 32], sizes = [2, 32], strides = [1, 1]} : vector<2x128xf32> to vector<2x32xf32>
    %542 = arith.negf %541 : vector<2x32xf32>
    %543 = math.exp %542 : vector<2x32xf32>
    %cst_147 = arith.constant 1.000000e+00 : f32
    %544 = vector.broadcast %cst_147 : f32 to vector<2x32xf32>
    %545 = arith.addf %544, %543 : vector<2x32xf32>
    %546 = arith.divf %544, %545 : vector<2x32xf32>
    %547 = vector.extract_strided_slice %509 {offsets = [0, 64], sizes = [2, 32], strides = [1, 1]} : vector<2x128xf32> to vector<2x32xf32>
    %548 = math.tanh %547 : vector<2x32xf32>
    %549 = vector.extract_strided_slice %509 {offsets = [0, 96], sizes = [2, 32], strides = [1, 1]} : vector<2x128xf32> to vector<2x32xf32>
    %550 = arith.negf %549 : vector<2x32xf32>
    %551 = math.exp %550 : vector<2x32xf32>
    %cst_148 = arith.constant 1.000000e+00 : f32
    %552 = vector.broadcast %cst_148 : f32 to vector<2x32xf32>
    %553 = arith.addf %552, %551 : vector<2x32xf32>
    %554 = arith.divf %552, %553 : vector<2x32xf32>
    %555 = arith.mulf %546, %488 : vector<2x32xf32>
    %556 = arith.mulf %540, %548 : vector<2x32xf32>
    %557 = arith.addf %555, %556 : vector<2x32xf32>
    %558 = math.tanh %557 : vector<2x32xf32>
    %559 = arith.mulf %554, %558 : vector<2x32xf32>
    %560 = arith.index_cast %c7_i32 : i32 to index
    %c0_149 = arith.constant 0 : index
    %c0_150 = arith.constant 0 : index
    %561 = vector.load %arg7[%560, %c0_149, %c0_150] : memref<12x2x64xf32, #tpu.memory_space<vmem>>, vector<1x2x32xf32>
    %562 = vector.shape_cast %561 : vector<1x2x32xf32> to vector<2x32xf32>
    %563 = vector.shape_cast %534 : vector<2x32xf32> to vector<1x2x32xf32>
    tpu.vector_store %arg7[%560, %c0_149, %c0_150], %563 {strides = array<i32>} : memref<12x2x64xf32, #tpu.memory_space<vmem>>, vector<1x2x32xf32>,
    %564 = arith.index_cast %499 : i32 to index
    %c0_151 = arith.constant 0 : index
    %c32_152 = arith.constant 32 : index
    %565 = vector.load %arg7[%564, %c0_151, %c32_152] : memref<12x2x64xf32, #tpu.memory_space<vmem>>, vector<1x2x32xf32>
    %566 = vector.shape_cast %565 : vector<1x2x32xf32> to vector<2x32xf32>
    %567 = vector.shape_cast %559 : vector<2x32xf32> to vector<1x2x32xf32>
    tpu.vector_store %arg7[%564, %c0_151, %c32_152], %567 {strides = array<i32>} : memref<12x2x64xf32, #tpu.memory_space<vmem>>, vector<1x2x32xf32>,
    %c8_i32 = arith.constant 8 : i32
    %c11_i32_153 = arith.constant 11 : i32
    %568 = arith.subi %c11_i32_153, %c8_i32 : i32
    %c2_i32_154 = arith.constant 2 : i32
    %569 = arith.muli %c8_i32, %c2_i32_154 : i32
    %570 = arith.index_cast %569 : i32 to index
    %c0_155 = arith.constant 0 : index
    %571 = vector.load %arg8[%570, %c0_155] : memref<24x128xf32, #tpu.memory_space<vmem>>, vector<2x128xf32>
    %cst_156 = arith.constant dense<0.000000e+00> : vector<2x128xf32>
    %572 = tpu.matmul %534, %13, %cst_156 {dimension_numbers = #tpu.dot_dimension_numbers<[1], [0], [0], [1], [0, 0, 1, 1], [], []>} : vector<2x32xf32>, vector<32x128xf32>, vector<2x128xf32> -> vector<2x128xf32>
    %573 = arith.addf %571, %572 : vector<2x128xf32>
    %c2_i32_157 = arith.constant 2 : i32
    %574 = arith.muli %568, %c2_i32_157 : i32
    %575 = arith.index_cast %574 : i32 to index
    %c0_158 = arith.constant 0 : index
    %576 = vector.load %arg9[%575, %c0_158] : memref<24x128xf32, #tpu.memory_space<vmem>>, vector<2x128xf32>
    %cst_159 = arith.constant dense<0.000000e+00> : vector<2x128xf32>
    %577 = tpu.matmul %559, %14, %cst_159 {dimension_numbers = #tpu.dot_dimension_numbers<[1], [0], [0], [1], [0, 0, 1, 1], [], []>} : vector<2x32xf32>, vector<32x128xf32>, vector<2x128xf32> -> vector<2x128xf32>
    %578 = arith.addf %576, %577 : vector<2x128xf32>
    %579 = vector.extract_strided_slice %573 {offsets = [0, 0], sizes = [2, 32], strides = [1, 1]} : vector<2x128xf32> to vector<2x32xf32>
    %580 = arith.negf %579 : vector<2x32xf32>
    %581 = math.exp %580 : vector<2x32xf32>
    %cst_160 = arith.constant 1.000000e+00 : f32
    %582 = vector.broadcast %cst_160 : f32 to vector<2x32xf32>
    %583 = arith.addf %582, %581 : vector<2x32xf32>
    %584 = arith.divf %582, %583 : vector<2x32xf32>
    %585 = vector.extract_strided_slice %573 {offsets = [0, 32], sizes = [2, 32], strides = [1, 1]} : vector<2x128xf32> to vector<2x32xf32>
    %586 = arith.negf %585 : vector<2x32xf32>
    %587 = math.exp %586 : vector<2x32xf32>
    %cst_161 = arith.constant 1.000000e+00 : f32
    %588 = vector.broadcast %cst_161 : f32 to vector<2x32xf32>
    %589 = arith.addf %588, %587 : vector<2x32xf32>
    %590 = arith.divf %588, %589 : vector<2x32xf32>
    %591 = vector.extract_strided_slice %573 {offsets = [0, 64], sizes = [2, 32], strides = [1, 1]} : vector<2x128xf32> to vector<2x32xf32>
    %592 = math.tanh %591 : vector<2x32xf32>
    %593 = vector.extract_strided_slice %573 {offsets = [0, 96], sizes = [2, 32], strides = [1, 1]} : vector<2x128xf32> to vector<2x32xf32>
    %594 = arith.negf %593 : vector<2x32xf32>
    %595 = math.exp %594 : vector<2x32xf32>
    %cst_162 = arith.constant 1.000000e+00 : f32
    %596 = vector.broadcast %cst_162 : f32 to vector<2x32xf32>
    %597 = arith.addf %596, %595 : vector<2x32xf32>
    %598 = arith.divf %596, %597 : vector<2x32xf32>
    %599 = arith.mulf %590, %532 : vector<2x32xf32>
    %600 = arith.mulf %584, %592 : vector<2x32xf32>
    %601 = arith.addf %599, %600 : vector<2x32xf32>
    %602 = math.tanh %601 : vector<2x32xf32>
    %603 = arith.mulf %598, %602 : vector<2x32xf32>
    %604 = vector.extract_strided_slice %578 {offsets = [0, 0], sizes = [2, 32], strides = [1, 1]} : vector<2x128xf32> to vector<2x32xf32>
    %605 = arith.negf %604 : vector<2x32xf32>
    %606 = math.exp %605 : vector<2x32xf32>
    %cst_163 = arith.constant 1.000000e+00 : f32
    %607 = vector.broadcast %cst_163 : f32 to vector<2x32xf32>
    %608 = arith.addf %607, %606 : vector<2x32xf32>
    %609 = arith.divf %607, %608 : vector<2x32xf32>
    %610 = vector.extract_strided_slice %578 {offsets = [0, 32], sizes = [2, 32], strides = [1, 1]} : vector<2x128xf32> to vector<2x32xf32>
    %611 = arith.negf %610 : vector<2x32xf32>
    %612 = math.exp %611 : vector<2x32xf32>
    %cst_164 = arith.constant 1.000000e+00 : f32
    %613 = vector.broadcast %cst_164 : f32 to vector<2x32xf32>
    %614 = arith.addf %613, %612 : vector<2x32xf32>
    %615 = arith.divf %613, %614 : vector<2x32xf32>
    %616 = vector.extract_strided_slice %578 {offsets = [0, 64], sizes = [2, 32], strides = [1, 1]} : vector<2x128xf32> to vector<2x32xf32>
    %617 = math.tanh %616 : vector<2x32xf32>
    %618 = vector.extract_strided_slice %578 {offsets = [0, 96], sizes = [2, 32], strides = [1, 1]} : vector<2x128xf32> to vector<2x32xf32>
    %619 = arith.negf %618 : vector<2x32xf32>
    %620 = math.exp %619 : vector<2x32xf32>
    %cst_165 = arith.constant 1.000000e+00 : f32
    %621 = vector.broadcast %cst_165 : f32 to vector<2x32xf32>
    %622 = arith.addf %621, %620 : vector<2x32xf32>
    %623 = arith.divf %621, %622 : vector<2x32xf32>
    %624 = arith.mulf %615, %557 : vector<2x32xf32>
    %625 = arith.mulf %609, %617 : vector<2x32xf32>
    %626 = arith.addf %624, %625 : vector<2x32xf32>
    %627 = math.tanh %626 : vector<2x32xf32>
    %628 = arith.mulf %623, %627 : vector<2x32xf32>
    %629 = arith.index_cast %c8_i32 : i32 to index
    %c0_166 = arith.constant 0 : index
    %c0_167 = arith.constant 0 : index
    %630 = vector.load %arg7[%629, %c0_166, %c0_167] : memref<12x2x64xf32, #tpu.memory_space<vmem>>, vector<1x2x32xf32>
    %631 = vector.shape_cast %630 : vector<1x2x32xf32> to vector<2x32xf32>
    %632 = vector.shape_cast %603 : vector<2x32xf32> to vector<1x2x32xf32>
    tpu.vector_store %arg7[%629, %c0_166, %c0_167], %632 {strides = array<i32>} : memref<12x2x64xf32, #tpu.memory_space<vmem>>, vector<1x2x32xf32>,
    %633 = arith.index_cast %568 : i32 to index
    %c0_168 = arith.constant 0 : index
    %c32_169 = arith.constant 32 : index
    %634 = vector.load %arg7[%633, %c0_168, %c32_169] : memref<12x2x64xf32, #tpu.memory_space<vmem>>, vector<1x2x32xf32>
    %635 = vector.shape_cast %634 : vector<1x2x32xf32> to vector<2x32xf32>
    %636 = vector.shape_cast %628 : vector<2x32xf32> to vector<1x2x32xf32>
    tpu.vector_store %arg7[%633, %c0_168, %c32_169], %636 {strides = array<i32>} : memref<12x2x64xf32, #tpu.memory_space<vmem>>, vector<1x2x32xf32>,
    %c9_i32 = arith.constant 9 : i32
    %c11_i32_170 = arith.constant 11 : i32
    %637 = arith.subi %c11_i32_170, %c9_i32 : i32
    %c2_i32_171 = arith.constant 2 : i32
    %638 = arith.muli %c9_i32, %c2_i32_171 : i32
    %639 = arith.index_cast %638 : i32 to index
    %c0_172 = arith.constant 0 : index
    %640 = vector.load %arg8[%639, %c0_172] : memref<24x128xf32, #tpu.memory_space<vmem>>, vector<2x128xf32>
    %cst_173 = arith.constant dense<0.000000e+00> : vector<2x128xf32>
    %641 = tpu.matmul %603, %13, %cst_173 {dimension_numbers = #tpu.dot_dimension_numbers<[1], [0], [0], [1], [0, 0, 1, 1], [], []>} : vector<2x32xf32>, vector<32x128xf32>, vector<2x128xf32> -> vector<2x128xf32>
    %642 = arith.addf %640, %641 : vector<2x128xf32>
    %c2_i32_174 = arith.constant 2 : i32
    %643 = arith.muli %637, %c2_i32_174 : i32
    %644 = arith.index_cast %643 : i32 to index
    %c0_175 = arith.constant 0 : index
    %645 = vector.load %arg9[%644, %c0_175] : memref<24x128xf32, #tpu.memory_space<vmem>>, vector<2x128xf32>
    %cst_176 = arith.constant dense<0.000000e+00> : vector<2x128xf32>
    %646 = tpu.matmul %628, %14, %cst_176 {dimension_numbers = #tpu.dot_dimension_numbers<[1], [0], [0], [1], [0, 0, 1, 1], [], []>} : vector<2x32xf32>, vector<32x128xf32>, vector<2x128xf32> -> vector<2x128xf32>
    %647 = arith.addf %645, %646 : vector<2x128xf32>
    %648 = vector.extract_strided_slice %642 {offsets = [0, 0], sizes = [2, 32], strides = [1, 1]} : vector<2x128xf32> to vector<2x32xf32>
    %649 = arith.negf %648 : vector<2x32xf32>
    %650 = math.exp %649 : vector<2x32xf32>
    %cst_177 = arith.constant 1.000000e+00 : f32
    %651 = vector.broadcast %cst_177 : f32 to vector<2x32xf32>
    %652 = arith.addf %651, %650 : vector<2x32xf32>
    %653 = arith.divf %651, %652 : vector<2x32xf32>
    %654 = vector.extract_strided_slice %642 {offsets = [0, 32], sizes = [2, 32], strides = [1, 1]} : vector<2x128xf32> to vector<2x32xf32>
    %655 = arith.negf %654 : vector<2x32xf32>
    %656 = math.exp %655 : vector<2x32xf32>
    %cst_178 = arith.constant 1.000000e+00 : f32
    %657 = vector.broadcast %cst_178 : f32 to vector<2x32xf32>
    %658 = arith.addf %657, %656 : vector<2x32xf32>
    %659 = arith.divf %657, %658 : vector<2x32xf32>
    %660 = vector.extract_strided_slice %642 {offsets = [0, 64], sizes = [2, 32], strides = [1, 1]} : vector<2x128xf32> to vector<2x32xf32>
    %661 = math.tanh %660 : vector<2x32xf32>
    %662 = vector.extract_strided_slice %642 {offsets = [0, 96], sizes = [2, 32], strides = [1, 1]} : vector<2x128xf32> to vector<2x32xf32>
    %663 = arith.negf %662 : vector<2x32xf32>
    %664 = math.exp %663 : vector<2x32xf32>
    %cst_179 = arith.constant 1.000000e+00 : f32
    %665 = vector.broadcast %cst_179 : f32 to vector<2x32xf32>
    %666 = arith.addf %665, %664 : vector<2x32xf32>
    %667 = arith.divf %665, %666 : vector<2x32xf32>
    %668 = arith.mulf %659, %601 : vector<2x32xf32>
    %669 = arith.mulf %653, %661 : vector<2x32xf32>
    %670 = arith.addf %668, %669 : vector<2x32xf32>
    %671 = math.tanh %670 : vector<2x32xf32>
    %672 = arith.mulf %667, %671 : vector<2x32xf32>
    %673 = vector.extract_strided_slice %647 {offsets = [0, 0], sizes = [2, 32], strides = [1, 1]} : vector<2x128xf32> to vector<2x32xf32>
    %674 = arith.negf %673 : vector<2x32xf32>
    %675 = math.exp %674 : vector<2x32xf32>
    %cst_180 = arith.constant 1.000000e+00 : f32
    %676 = vector.broadcast %cst_180 : f32 to vector<2x32xf32>
    %677 = arith.addf %676, %675 : vector<2x32xf32>
    %678 = arith.divf %676, %677 : vector<2x32xf32>
    %679 = vector.extract_strided_slice %647 {offsets = [0, 32], sizes = [2, 32], strides = [1, 1]} : vector<2x128xf32> to vector<2x32xf32>
    %680 = arith.negf %679 : vector<2x32xf32>
    %681 = math.exp %680 : vector<2x32xf32>
    %cst_181 = arith.constant 1.000000e+00 : f32
    %682 = vector.broadcast %cst_181 : f32 to vector<2x32xf32>
    %683 = arith.addf %682, %681 : vector<2x32xf32>
    %684 = arith.divf %682, %683 : vector<2x32xf32>
    %685 = vector.extract_strided_slice %647 {offsets = [0, 64], sizes = [2, 32], strides = [1, 1]} : vector<2x128xf32> to vector<2x32xf32>
    %686 = math.tanh %685 : vector<2x32xf32>
    %687 = vector.extract_strided_slice %647 {offsets = [0, 96], sizes = [2, 32], strides = [1, 1]} : vector<2x128xf32> to vector<2x32xf32>
    %688 = arith.negf %687 : vector<2x32xf32>
    %689 = math.exp %688 : vector<2x32xf32>
    %cst_182 = arith.constant 1.000000e+00 : f32
    %690 = vector.broadcast %cst_182 : f32 to vector<2x32xf32>
    %691 = arith.addf %690, %689 : vector<2x32xf32>
    %692 = arith.divf %690, %691 : vector<2x32xf32>
    %693 = arith.mulf %684, %626 : vector<2x32xf32>
    %694 = arith.mulf %678, %686 : vector<2x32xf32>
    %695 = arith.addf %693, %694 : vector<2x32xf32>
    %696 = math.tanh %695 : vector<2x32xf32>
    %697 = arith.mulf %692, %696 : vector<2x32xf32>
    %698 = arith.index_cast %c9_i32 : i32 to index
    %c0_183 = arith.constant 0 : index
    %c0_184 = arith.constant 0 : index
    %699 = vector.load %arg7[%698, %c0_183, %c0_184] : memref<12x2x64xf32, #tpu.memory_space<vmem>>, vector<1x2x32xf32>
    %700 = vector.shape_cast %699 : vector<1x2x32xf32> to vector<2x32xf32>
    %701 = vector.shape_cast %672 : vector<2x32xf32> to vector<1x2x32xf32>
    tpu.vector_store %arg7[%698, %c0_183, %c0_184], %701 {strides = array<i32>} : memref<12x2x64xf32, #tpu.memory_space<vmem>>, vector<1x2x32xf32>,
    %702 = arith.index_cast %637 : i32 to index
    %c0_185 = arith.constant 0 : index
    %c32_186 = arith.constant 32 : index
    %703 = vector.load %arg7[%702, %c0_185, %c32_186] : memref<12x2x64xf32, #tpu.memory_space<vmem>>, vector<1x2x32xf32>
    %704 = vector.shape_cast %703 : vector<1x2x32xf32> to vector<2x32xf32>
    %705 = vector.shape_cast %697 : vector<2x32xf32> to vector<1x2x32xf32>
    tpu.vector_store %arg7[%702, %c0_185, %c32_186], %705 {strides = array<i32>} : memref<12x2x64xf32, #tpu.memory_space<vmem>>, vector<1x2x32xf32>,
    %c10_i32 = arith.constant 10 : i32
    %c11_i32_187 = arith.constant 11 : i32
    %706 = arith.subi %c11_i32_187, %c10_i32 : i32
    %c2_i32_188 = arith.constant 2 : i32
    %707 = arith.muli %c10_i32, %c2_i32_188 : i32
    %708 = arith.index_cast %707 : i32 to index
    %c0_189 = arith.constant 0 : index
    %709 = vector.load %arg8[%708, %c0_189] : memref<24x128xf32, #tpu.memory_space<vmem>>, vector<2x128xf32>
    %cst_190 = arith.constant dense<0.000000e+00> : vector<2x128xf32>
    %710 = tpu.matmul %672, %13, %cst_190 {dimension_numbers = #tpu.dot_dimension_numbers<[1], [0], [0], [1], [0, 0, 1, 1], [], []>} : vector<2x32xf32>, vector<32x128xf32>, vector<2x128xf32> -> vector<2x128xf32>
    %711 = arith.addf %709, %710 : vector<2x128xf32>
    %c2_i32_191 = arith.constant 2 : i32
    %712 = arith.muli %706, %c2_i32_191 : i32
    %713 = arith.index_cast %712 : i32 to index
    %c0_192 = arith.constant 0 : index
    %714 = vector.load %arg9[%713, %c0_192] : memref<24x128xf32, #tpu.memory_space<vmem>>, vector<2x128xf32>
    %cst_193 = arith.constant dense<0.000000e+00> : vector<2x128xf32>
    %715 = tpu.matmul %697, %14, %cst_193 {dimension_numbers = #tpu.dot_dimension_numbers<[1], [0], [0], [1], [0, 0, 1, 1], [], []>} : vector<2x32xf32>, vector<32x128xf32>, vector<2x128xf32> -> vector<2x128xf32>
    %716 = arith.addf %714, %715 : vector<2x128xf32>
    %717 = vector.extract_strided_slice %711 {offsets = [0, 0], sizes = [2, 32], strides = [1, 1]} : vector<2x128xf32> to vector<2x32xf32>
    %718 = arith.negf %717 : vector<2x32xf32>
    %719 = math.exp %718 : vector<2x32xf32>
    %cst_194 = arith.constant 1.000000e+00 : f32
    %720 = vector.broadcast %cst_194 : f32 to vector<2x32xf32>
    %721 = arith.addf %720, %719 : vector<2x32xf32>
    %722 = arith.divf %720, %721 : vector<2x32xf32>
    %723 = vector.extract_strided_slice %711 {offsets = [0, 32], sizes = [2, 32], strides = [1, 1]} : vector<2x128xf32> to vector<2x32xf32>
    %724 = arith.negf %723 : vector<2x32xf32>
    %725 = math.exp %724 : vector<2x32xf32>
    %cst_195 = arith.constant 1.000000e+00 : f32
    %726 = vector.broadcast %cst_195 : f32 to vector<2x32xf32>
    %727 = arith.addf %726, %725 : vector<2x32xf32>
    %728 = arith.divf %726, %727 : vector<2x32xf32>
    %729 = vector.extract_strided_slice %711 {offsets = [0, 64], sizes = [2, 32], strides = [1, 1]} : vector<2x128xf32> to vector<2x32xf32>
    %730 = math.tanh %729 : vector<2x32xf32>
    %731 = vector.extract_strided_slice %711 {offsets = [0, 96], sizes = [2, 32], strides = [1, 1]} : vector<2x128xf32> to vector<2x32xf32>
    %732 = arith.negf %731 : vector<2x32xf32>
    %733 = math.exp %732 : vector<2x32xf32>
    %cst_196 = arith.constant 1.000000e+00 : f32
    %734 = vector.broadcast %cst_196 : f32 to vector<2x32xf32>
    %735 = arith.addf %734, %733 : vector<2x32xf32>
    %736 = arith.divf %734, %735 : vector<2x32xf32>
    %737 = arith.mulf %728, %670 : vector<2x32xf32>
    %738 = arith.mulf %722, %730 : vector<2x32xf32>
    %739 = arith.addf %737, %738 : vector<2x32xf32>
    %740 = math.tanh %739 : vector<2x32xf32>
    %741 = arith.mulf %736, %740 : vector<2x32xf32>
    %742 = vector.extract_strided_slice %716 {offsets = [0, 0], sizes = [2, 32], strides = [1, 1]} : vector<2x128xf32> to vector<2x32xf32>
    %743 = arith.negf %742 : vector<2x32xf32>
    %744 = math.exp %743 : vector<2x32xf32>
    %cst_197 = arith.constant 1.000000e+00 : f32
    %745 = vector.broadcast %cst_197 : f32 to vector<2x32xf32>
    %746 = arith.addf %745, %744 : vector<2x32xf32>
    %747 = arith.divf %745, %746 : vector<2x32xf32>
    %748 = vector.extract_strided_slice %716 {offsets = [0, 32], sizes = [2, 32], strides = [1, 1]} : vector<2x128xf32> to vector<2x32xf32>
    %749 = arith.negf %748 : vector<2x32xf32>
    %750 = math.exp %749 : vector<2x32xf32>
    %cst_198 = arith.constant 1.000000e+00 : f32
    %751 = vector.broadcast %cst_198 : f32 to vector<2x32xf32>
    %752 = arith.addf %751, %750 : vector<2x32xf32>
    %753 = arith.divf %751, %752 : vector<2x32xf32>
    %754 = vector.extract_strided_slice %716 {offsets = [0, 64], sizes = [2, 32], strides = [1, 1]} : vector<2x128xf32> to vector<2x32xf32>
    %755 = math.tanh %754 : vector<2x32xf32>
    %756 = vector.extract_strided_slice %716 {offsets = [0, 96], sizes = [2, 32], strides = [1, 1]} : vector<2x128xf32> to vector<2x32xf32>
    %757 = arith.negf %756 : vector<2x32xf32>
    %758 = math.exp %757 : vector<2x32xf32>
    %cst_199 = arith.constant 1.000000e+00 : f32
    %759 = vector.broadcast %cst_199 : f32 to vector<2x32xf32>
    %760 = arith.addf %759, %758 : vector<2x32xf32>
    %761 = arith.divf %759, %760 : vector<2x32xf32>
    %762 = arith.mulf %753, %695 : vector<2x32xf32>
    %763 = arith.mulf %747, %755 : vector<2x32xf32>
    %764 = arith.addf %762, %763 : vector<2x32xf32>
    %765 = math.tanh %764 : vector<2x32xf32>
    %766 = arith.mulf %761, %765 : vector<2x32xf32>
    %767 = arith.index_cast %c10_i32 : i32 to index
    %c0_200 = arith.constant 0 : index
    %c0_201 = arith.constant 0 : index
    %768 = vector.load %arg7[%767, %c0_200, %c0_201] : memref<12x2x64xf32, #tpu.memory_space<vmem>>, vector<1x2x32xf32>
    %769 = vector.shape_cast %768 : vector<1x2x32xf32> to vector<2x32xf32>
    %770 = vector.shape_cast %741 : vector<2x32xf32> to vector<1x2x32xf32>
    tpu.vector_store %arg7[%767, %c0_200, %c0_201], %770 {strides = array<i32>} : memref<12x2x64xf32, #tpu.memory_space<vmem>>, vector<1x2x32xf32>,
    %771 = arith.index_cast %706 : i32 to index
    %c0_202 = arith.constant 0 : index
    %c32_203 = arith.constant 32 : index
    %772 = vector.load %arg7[%771, %c0_202, %c32_203] : memref<12x2x64xf32, #tpu.memory_space<vmem>>, vector<1x2x32xf32>
    %773 = vector.shape_cast %772 : vector<1x2x32xf32> to vector<2x32xf32>
    %774 = vector.shape_cast %766 : vector<2x32xf32> to vector<1x2x32xf32>
    tpu.vector_store %arg7[%771, %c0_202, %c32_203], %774 {strides = array<i32>} : memref<12x2x64xf32, #tpu.memory_space<vmem>>, vector<1x2x32xf32>,
    %c11_i32_204 = arith.constant 11 : i32
    %c11_i32_205 = arith.constant 11 : i32
    %775 = arith.subi %c11_i32_205, %c11_i32_204 : i32
    %c2_i32_206 = arith.constant 2 : i32
    %776 = arith.muli %c11_i32_204, %c2_i32_206 : i32
    %777 = arith.index_cast %776 : i32 to index
    %c0_207 = arith.constant 0 : index
    %778 = vector.load %arg8[%777, %c0_207] : memref<24x128xf32, #tpu.memory_space<vmem>>, vector<2x128xf32>
    %cst_208 = arith.constant dense<0.000000e+00> : vector<2x128xf32>
    %779 = tpu.matmul %741, %13, %cst_208 {dimension_numbers = #tpu.dot_dimension_numbers<[1], [0], [0], [1], [0, 0, 1, 1], [], []>} : vector<2x32xf32>, vector<32x128xf32>, vector<2x128xf32> -> vector<2x128xf32>
    %780 = arith.addf %778, %779 : vector<2x128xf32>
    %c2_i32_209 = arith.constant 2 : i32
    %781 = arith.muli %775, %c2_i32_209 : i32
    %782 = arith.index_cast %781 : i32 to index
    %c0_210 = arith.constant 0 : index
    %783 = vector.load %arg9[%782, %c0_210] : memref<24x128xf32, #tpu.memory_space<vmem>>, vector<2x128xf32>
    %cst_211 = arith.constant dense<0.000000e+00> : vector<2x128xf32>
    %784 = tpu.matmul %766, %14, %cst_211 {dimension_numbers = #tpu.dot_dimension_numbers<[1], [0], [0], [1], [0, 0, 1, 1], [], []>} : vector<2x32xf32>, vector<32x128xf32>, vector<2x128xf32> -> vector<2x128xf32>
    %785 = arith.addf %783, %784 : vector<2x128xf32>
    %786 = vector.extract_strided_slice %780 {offsets = [0, 0], sizes = [2, 32], strides = [1, 1]} : vector<2x128xf32> to vector<2x32xf32>
    %787 = arith.negf %786 : vector<2x32xf32>
    %788 = math.exp %787 : vector<2x32xf32>
    %cst_212 = arith.constant 1.000000e+00 : f32
    %789 = vector.broadcast %cst_212 : f32 to vector<2x32xf32>
    %790 = arith.addf %789, %788 : vector<2x32xf32>
    %791 = arith.divf %789, %790 : vector<2x32xf32>
    %792 = vector.extract_strided_slice %780 {offsets = [0, 32], sizes = [2, 32], strides = [1, 1]} : vector<2x128xf32> to vector<2x32xf32>
    %793 = arith.negf %792 : vector<2x32xf32>
    %794 = math.exp %793 : vector<2x32xf32>
    %cst_213 = arith.constant 1.000000e+00 : f32
    %795 = vector.broadcast %cst_213 : f32 to vector<2x32xf32>
    %796 = arith.addf %795, %794 : vector<2x32xf32>
    %797 = arith.divf %795, %796 : vector<2x32xf32>
    %798 = vector.extract_strided_slice %780 {offsets = [0, 64], sizes = [2, 32], strides = [1, 1]} : vector<2x128xf32> to vector<2x32xf32>
    %799 = math.tanh %798 : vector<2x32xf32>
    %800 = vector.extract_strided_slice %780 {offsets = [0, 96], sizes = [2, 32], strides = [1, 1]} : vector<2x128xf32> to vector<2x32xf32>
    %801 = arith.negf %800 : vector<2x32xf32>
    %802 = math.exp %801 : vector<2x32xf32>
    %cst_214 = arith.constant 1.000000e+00 : f32
    %803 = vector.broadcast %cst_214 : f32 to vector<2x32xf32>
    %804 = arith.addf %803, %802 : vector<2x32xf32>
    %805 = arith.divf %803, %804 : vector<2x32xf32>
    %806 = arith.mulf %797, %739 : vector<2x32xf32>
    %807 = arith.mulf %791, %799 : vector<2x32xf32>
    %808 = arith.addf %806, %807 : vector<2x32xf32>
    %809 = math.tanh %808 : vector<2x32xf32>
    %810 = arith.mulf %805, %809 : vector<2x32xf32>
    %811 = vector.extract_strided_slice %785 {offsets = [0, 0], sizes = [2, 32], strides = [1, 1]} : vector<2x128xf32> to vector<2x32xf32>
    %812 = arith.negf %811 : vector<2x32xf32>
    %813 = math.exp %812 : vector<2x32xf32>
    %cst_215 = arith.constant 1.000000e+00 : f32
    %814 = vector.broadcast %cst_215 : f32 to vector<2x32xf32>
    %815 = arith.addf %814, %813 : vector<2x32xf32>
    %816 = arith.divf %814, %815 : vector<2x32xf32>
    %817 = vector.extract_strided_slice %785 {offsets = [0, 32], sizes = [2, 32], strides = [1, 1]} : vector<2x128xf32> to vector<2x32xf32>
    %818 = arith.negf %817 : vector<2x32xf32>
    %819 = math.exp %818 : vector<2x32xf32>
    %cst_216 = arith.constant 1.000000e+00 : f32
    %820 = vector.broadcast %cst_216 : f32 to vector<2x32xf32>
    %821 = arith.addf %820, %819 : vector<2x32xf32>
    %822 = arith.divf %820, %821 : vector<2x32xf32>
    %823 = vector.extract_strided_slice %785 {offsets = [0, 64], sizes = [2, 32], strides = [1, 1]} : vector<2x128xf32> to vector<2x32xf32>
    %824 = math.tanh %823 : vector<2x32xf32>
    %825 = vector.extract_strided_slice %785 {offsets = [0, 96], sizes = [2, 32], strides = [1, 1]} : vector<2x128xf32> to vector<2x32xf32>
    %826 = arith.negf %825 : vector<2x32xf32>
    %827 = math.exp %826 : vector<2x32xf32>
    %cst_217 = arith.constant 1.000000e+00 : f32
    %828 = vector.broadcast %cst_217 : f32 to vector<2x32xf32>
    %829 = arith.addf %828, %827 : vector<2x32xf32>
    %830 = arith.divf %828, %829 : vector<2x32xf32>
    %831 = arith.mulf %822, %764 : vector<2x32xf32>
    %832 = arith.mulf %816, %824 : vector<2x32xf32>
    %833 = arith.addf %831, %832 : vector<2x32xf32>
    %834 = math.tanh %833 : vector<2x32xf32>
    %835 = arith.mulf %830, %834 : vector<2x32xf32>
    %836 = arith.index_cast %c11_i32_204 : i32 to index
    %c0_218 = arith.constant 0 : index
    %c0_219 = arith.constant 0 : index
    %837 = vector.load %arg7[%836, %c0_218, %c0_219] : memref<12x2x64xf32, #tpu.memory_space<vmem>>, vector<1x2x32xf32>
    %838 = vector.shape_cast %837 : vector<1x2x32xf32> to vector<2x32xf32>
    %839 = vector.shape_cast %810 : vector<2x32xf32> to vector<1x2x32xf32>
    tpu.vector_store %arg7[%836, %c0_218, %c0_219], %839 {strides = array<i32>} : memref<12x2x64xf32, #tpu.memory_space<vmem>>, vector<1x2x32xf32>,
    %840 = arith.index_cast %775 : i32 to index
    %c0_220 = arith.constant 0 : index
    %c32_221 = arith.constant 32 : index
    %841 = vector.load %arg7[%840, %c0_220, %c32_221] : memref<12x2x64xf32, #tpu.memory_space<vmem>>, vector<1x2x32xf32>
    %842 = vector.shape_cast %841 : vector<1x2x32xf32> to vector<2x32xf32>
    %843 = vector.shape_cast %835 : vector<2x32xf32> to vector<1x2x32xf32>
    tpu.vector_store %arg7[%840, %c0_220, %c32_221], %843 {strides = array<i32>} : memref<12x2x64xf32, #tpu.memory_space<vmem>>, vector<1x2x32xf32>,
    %c12_i32 = arith.constant 12 : i32
    return
  }
}

module attributes {stable_mosaic.version = 11 : i64} {
  func.func @_bilstm_layer_kernel(%arg0: memref<16x16xf32, #tpu.memory_space<vmem>>, %arg1: memref<16x128xf32, #tpu.memory_space<vmem>>, %arg2: memref<32x128xf32, #tpu.memory_space<vmem>>, %arg3: memref<1x128xf32, #tpu.memory_space<vmem>>, %arg4: memref<16x128xf32, #tpu.memory_space<vmem>>, %arg5: memref<32x128xf32, #tpu.memory_space<vmem>>, %arg6: memref<1x128xf32, #tpu.memory_space<vmem>>, %arg7: memref<8x2x64xf32, #tpu.memory_space<vmem>>, %arg8: memref<16x128xf32, #tpu.memory_space<vmem>>, %arg9: memref<16x128xf32, #tpu.memory_space<vmem>>) attributes {dimension_semantics = [], scalar_prefetch = 0 : i64, scratch_operands = 2 : i64, tpu.core_type = #tpu.core_type<tc>} {
    %c0 = arith.constant 0 : index
    %c0_0 = arith.constant 0 : index
    %0 = vector.load %arg0[%c0, %c0_0] : memref<16x16xf32, #tpu.memory_space<vmem>>, vector<16x16xf32>
    %c0_1 = arith.constant 0 : index
    %c0_2 = arith.constant 0 : index
    %1 = vector.load %arg1[%c0_1, %c0_2] : memref<16x128xf32, #tpu.memory_space<vmem>>, vector<16x128xf32>
    %cst = arith.constant dense<0.000000e+00> : vector<16x128xf32>
    %2 = tpu.matmul %0, %1, %cst {dimension_numbers = #tpu.dot_dimension_numbers<[1], [0], [0], [1], [0, 0, 1, 1], [], []>} : vector<16x16xf32>, vector<16x128xf32>, vector<16x128xf32> -> vector<16x128xf32>
    %c0_3 = arith.constant 0 : index
    %c0_4 = arith.constant 0 : index
    %3 = vector.load %arg3[%c0_3, %c0_4] : memref<1x128xf32, #tpu.memory_space<vmem>>, vector<1x128xf32>
    %4 = vector.broadcast %3 : vector<1x128xf32> to vector<16x128xf32>
    %5 = arith.addf %2, %4 : vector<16x128xf32>
    %c0_5 = arith.constant 0 : index
    %c0_6 = arith.constant 0 : index
    %6 = vector.load %arg8[%c0_5, %c0_6] : memref<16x128xf32, #tpu.memory_space<vmem>>, vector<16x128xf32>
    tpu.vector_store %arg8[%c0_5, %c0_6], %5 {strides = array<i32>} : memref<16x128xf32, #tpu.memory_space<vmem>>, vector<16x128xf32>,
    %c0_7 = arith.constant 0 : index
    %c0_8 = arith.constant 0 : index
    %7 = vector.load %arg4[%c0_7, %c0_8] : memref<16x128xf32, #tpu.memory_space<vmem>>, vector<16x128xf32>
    %cst_9 = arith.constant dense<0.000000e+00> : vector<16x128xf32>
    %8 = tpu.matmul %0, %7, %cst_9 {dimension_numbers = #tpu.dot_dimension_numbers<[1], [0], [0], [1], [0, 0, 1, 1], [], []>} : vector<16x16xf32>, vector<16x128xf32>, vector<16x128xf32> -> vector<16x128xf32>
    %c0_10 = arith.constant 0 : index
    %c0_11 = arith.constant 0 : index
    %9 = vector.load %arg6[%c0_10, %c0_11] : memref<1x128xf32, #tpu.memory_space<vmem>>, vector<1x128xf32>
    %10 = vector.broadcast %9 : vector<1x128xf32> to vector<16x128xf32>
    %11 = arith.addf %8, %10 : vector<16x128xf32>
    %c0_12 = arith.constant 0 : index
    %c0_13 = arith.constant 0 : index
    %12 = vector.load %arg9[%c0_12, %c0_13] : memref<16x128xf32, #tpu.memory_space<vmem>>, vector<16x128xf32>
    tpu.vector_store %arg9[%c0_12, %c0_13], %11 {strides = array<i32>} : memref<16x128xf32, #tpu.memory_space<vmem>>, vector<16x128xf32>,
    %c0_14 = arith.constant 0 : index
    %c0_15 = arith.constant 0 : index
    %13 = vector.load %arg2[%c0_14, %c0_15] : memref<32x128xf32, #tpu.memory_space<vmem>>, vector<32x128xf32>
    %c0_16 = arith.constant 0 : index
    %c0_17 = arith.constant 0 : index
    %14 = vector.load %arg5[%c0_16, %c0_17] : memref<32x128xf32, #tpu.memory_space<vmem>>, vector<32x128xf32>
    %cst_18 = arith.constant 0.000000e+00 : f32
    %15 = vector.broadcast %cst_18 : f32 to vector<2x32xf32>
    %c0_i32 = arith.constant 0 : i32
    %c7_i32 = arith.constant 7 : i32
    %16 = arith.subi %c7_i32, %c0_i32 : i32
    %c2_i32 = arith.constant 2 : i32
    %17 = arith.muli %c0_i32, %c2_i32 : i32
    %18 = arith.index_cast %17 : i32 to index
    %c0_19 = arith.constant 0 : index
    %19 = vector.load %arg8[%18, %c0_19] : memref<16x128xf32, #tpu.memory_space<vmem>>, vector<2x128xf32>
    %cst_20 = arith.constant dense<0.000000e+00> : vector<2x128xf32>
    %20 = tpu.matmul %15, %13, %cst_20 {dimension_numbers = #tpu.dot_dimension_numbers<[1], [0], [0], [1], [0, 0, 1, 1], [], []>} : vector<2x32xf32>, vector<32x128xf32>, vector<2x128xf32> -> vector<2x128xf32>
    %21 = arith.addf %19, %20 : vector<2x128xf32>
    %c2_i32_21 = arith.constant 2 : i32
    %22 = arith.muli %16, %c2_i32_21 : i32
    %23 = arith.index_cast %22 : i32 to index
    %c0_22 = arith.constant 0 : index
    %24 = vector.load %arg9[%23, %c0_22] : memref<16x128xf32, #tpu.memory_space<vmem>>, vector<2x128xf32>
    %cst_23 = arith.constant dense<0.000000e+00> : vector<2x128xf32>
    %25 = tpu.matmul %15, %14, %cst_23 {dimension_numbers = #tpu.dot_dimension_numbers<[1], [0], [0], [1], [0, 0, 1, 1], [], []>} : vector<2x32xf32>, vector<32x128xf32>, vector<2x128xf32> -> vector<2x128xf32>
    %26 = arith.addf %24, %25 : vector<2x128xf32>
    %27 = vector.extract_strided_slice %21 {offsets = [0, 0], sizes = [2, 32], strides = [1, 1]} : vector<2x128xf32> to vector<2x32xf32>
    %28 = arith.negf %27 : vector<2x32xf32>
    %29 = math.exp %28 : vector<2x32xf32>
    %cst_24 = arith.constant 1.000000e+00 : f32
    %30 = vector.broadcast %cst_24 : f32 to vector<2x32xf32>
    %31 = arith.addf %30, %29 : vector<2x32xf32>
    %32 = arith.divf %30, %31 : vector<2x32xf32>
    %33 = vector.extract_strided_slice %21 {offsets = [0, 32], sizes = [2, 32], strides = [1, 1]} : vector<2x128xf32> to vector<2x32xf32>
    %34 = arith.negf %33 : vector<2x32xf32>
    %35 = math.exp %34 : vector<2x32xf32>
    %cst_25 = arith.constant 1.000000e+00 : f32
    %36 = vector.broadcast %cst_25 : f32 to vector<2x32xf32>
    %37 = arith.addf %36, %35 : vector<2x32xf32>
    %38 = arith.divf %36, %37 : vector<2x32xf32>
    %39 = vector.extract_strided_slice %21 {offsets = [0, 64], sizes = [2, 32], strides = [1, 1]} : vector<2x128xf32> to vector<2x32xf32>
    %40 = math.tanh %39 : vector<2x32xf32>
    %41 = vector.extract_strided_slice %21 {offsets = [0, 96], sizes = [2, 32], strides = [1, 1]} : vector<2x128xf32> to vector<2x32xf32>
    %42 = arith.negf %41 : vector<2x32xf32>
    %43 = math.exp %42 : vector<2x32xf32>
    %cst_26 = arith.constant 1.000000e+00 : f32
    %44 = vector.broadcast %cst_26 : f32 to vector<2x32xf32>
    %45 = arith.addf %44, %43 : vector<2x32xf32>
    %46 = arith.divf %44, %45 : vector<2x32xf32>
    %47 = arith.mulf %38, %15 : vector<2x32xf32>
    %48 = arith.mulf %32, %40 : vector<2x32xf32>
    %49 = arith.addf %47, %48 : vector<2x32xf32>
    %50 = math.tanh %49 : vector<2x32xf32>
    %51 = arith.mulf %46, %50 : vector<2x32xf32>
    %52 = vector.extract_strided_slice %26 {offsets = [0, 0], sizes = [2, 32], strides = [1, 1]} : vector<2x128xf32> to vector<2x32xf32>
    %53 = arith.negf %52 : vector<2x32xf32>
    %54 = math.exp %53 : vector<2x32xf32>
    %cst_27 = arith.constant 1.000000e+00 : f32
    %55 = vector.broadcast %cst_27 : f32 to vector<2x32xf32>
    %56 = arith.addf %55, %54 : vector<2x32xf32>
    %57 = arith.divf %55, %56 : vector<2x32xf32>
    %58 = vector.extract_strided_slice %26 {offsets = [0, 32], sizes = [2, 32], strides = [1, 1]} : vector<2x128xf32> to vector<2x32xf32>
    %59 = arith.negf %58 : vector<2x32xf32>
    %60 = math.exp %59 : vector<2x32xf32>
    %cst_28 = arith.constant 1.000000e+00 : f32
    %61 = vector.broadcast %cst_28 : f32 to vector<2x32xf32>
    %62 = arith.addf %61, %60 : vector<2x32xf32>
    %63 = arith.divf %61, %62 : vector<2x32xf32>
    %64 = vector.extract_strided_slice %26 {offsets = [0, 64], sizes = [2, 32], strides = [1, 1]} : vector<2x128xf32> to vector<2x32xf32>
    %65 = math.tanh %64 : vector<2x32xf32>
    %66 = vector.extract_strided_slice %26 {offsets = [0, 96], sizes = [2, 32], strides = [1, 1]} : vector<2x128xf32> to vector<2x32xf32>
    %67 = arith.negf %66 : vector<2x32xf32>
    %68 = math.exp %67 : vector<2x32xf32>
    %cst_29 = arith.constant 1.000000e+00 : f32
    %69 = vector.broadcast %cst_29 : f32 to vector<2x32xf32>
    %70 = arith.addf %69, %68 : vector<2x32xf32>
    %71 = arith.divf %69, %70 : vector<2x32xf32>
    %72 = arith.mulf %63, %15 : vector<2x32xf32>
    %73 = arith.mulf %57, %65 : vector<2x32xf32>
    %74 = arith.addf %72, %73 : vector<2x32xf32>
    %75 = math.tanh %74 : vector<2x32xf32>
    %76 = arith.mulf %71, %75 : vector<2x32xf32>
    %77 = arith.index_cast %c0_i32 : i32 to index
    %c0_30 = arith.constant 0 : index
    %c0_31 = arith.constant 0 : index
    %78 = vector.load %arg7[%77, %c0_30, %c0_31] : memref<8x2x64xf32, #tpu.memory_space<vmem>>, vector<1x2x32xf32>
    %79 = vector.shape_cast %78 : vector<1x2x32xf32> to vector<2x32xf32>
    %80 = vector.shape_cast %51 : vector<2x32xf32> to vector<1x2x32xf32>
    tpu.vector_store %arg7[%77, %c0_30, %c0_31], %80 {strides = array<i32>} : memref<8x2x64xf32, #tpu.memory_space<vmem>>, vector<1x2x32xf32>,
    %81 = arith.index_cast %16 : i32 to index
    %c0_32 = arith.constant 0 : index
    %c32 = arith.constant 32 : index
    %82 = vector.load %arg7[%81, %c0_32, %c32] : memref<8x2x64xf32, #tpu.memory_space<vmem>>, vector<1x2x32xf32>
    %83 = vector.shape_cast %82 : vector<1x2x32xf32> to vector<2x32xf32>
    %84 = vector.shape_cast %76 : vector<2x32xf32> to vector<1x2x32xf32>
    tpu.vector_store %arg7[%81, %c0_32, %c32], %84 {strides = array<i32>} : memref<8x2x64xf32, #tpu.memory_space<vmem>>, vector<1x2x32xf32>,
    %c1_i32 = arith.constant 1 : i32
    %c7_i32_33 = arith.constant 7 : i32
    %85 = arith.subi %c7_i32_33, %c1_i32 : i32
    %c2_i32_34 = arith.constant 2 : i32
    %86 = arith.muli %c1_i32, %c2_i32_34 : i32
    %87 = arith.index_cast %86 : i32 to index
    %c0_35 = arith.constant 0 : index
    %88 = vector.load %arg8[%87, %c0_35] : memref<16x128xf32, #tpu.memory_space<vmem>>, vector<2x128xf32>
    %cst_36 = arith.constant dense<0.000000e+00> : vector<2x128xf32>
    %89 = tpu.matmul %51, %13, %cst_36 {dimension_numbers = #tpu.dot_dimension_numbers<[1], [0], [0], [1], [0, 0, 1, 1], [], []>} : vector<2x32xf32>, vector<32x128xf32>, vector<2x128xf32> -> vector<2x128xf32>
    %90 = arith.addf %88, %89 : vector<2x128xf32>
    %c2_i32_37 = arith.constant 2 : i32
    %91 = arith.muli %85, %c2_i32_37 : i32
    %92 = arith.index_cast %91 : i32 to index
    %c0_38 = arith.constant 0 : index
    %93 = vector.load %arg9[%92, %c0_38] : memref<16x128xf32, #tpu.memory_space<vmem>>, vector<2x128xf32>
    %cst_39 = arith.constant dense<0.000000e+00> : vector<2x128xf32>
    %94 = tpu.matmul %76, %14, %cst_39 {dimension_numbers = #tpu.dot_dimension_numbers<[1], [0], [0], [1], [0, 0, 1, 1], [], []>} : vector<2x32xf32>, vector<32x128xf32>, vector<2x128xf32> -> vector<2x128xf32>
    %95 = arith.addf %93, %94 : vector<2x128xf32>
    %96 = vector.extract_strided_slice %90 {offsets = [0, 0], sizes = [2, 32], strides = [1, 1]} : vector<2x128xf32> to vector<2x32xf32>
    %97 = arith.negf %96 : vector<2x32xf32>
    %98 = math.exp %97 : vector<2x32xf32>
    %cst_40 = arith.constant 1.000000e+00 : f32
    %99 = vector.broadcast %cst_40 : f32 to vector<2x32xf32>
    %100 = arith.addf %99, %98 : vector<2x32xf32>
    %101 = arith.divf %99, %100 : vector<2x32xf32>
    %102 = vector.extract_strided_slice %90 {offsets = [0, 32], sizes = [2, 32], strides = [1, 1]} : vector<2x128xf32> to vector<2x32xf32>
    %103 = arith.negf %102 : vector<2x32xf32>
    %104 = math.exp %103 : vector<2x32xf32>
    %cst_41 = arith.constant 1.000000e+00 : f32
    %105 = vector.broadcast %cst_41 : f32 to vector<2x32xf32>
    %106 = arith.addf %105, %104 : vector<2x32xf32>
    %107 = arith.divf %105, %106 : vector<2x32xf32>
    %108 = vector.extract_strided_slice %90 {offsets = [0, 64], sizes = [2, 32], strides = [1, 1]} : vector<2x128xf32> to vector<2x32xf32>
    %109 = math.tanh %108 : vector<2x32xf32>
    %110 = vector.extract_strided_slice %90 {offsets = [0, 96], sizes = [2, 32], strides = [1, 1]} : vector<2x128xf32> to vector<2x32xf32>
    %111 = arith.negf %110 : vector<2x32xf32>
    %112 = math.exp %111 : vector<2x32xf32>
    %cst_42 = arith.constant 1.000000e+00 : f32
    %113 = vector.broadcast %cst_42 : f32 to vector<2x32xf32>
    %114 = arith.addf %113, %112 : vector<2x32xf32>
    %115 = arith.divf %113, %114 : vector<2x32xf32>
    %116 = arith.mulf %107, %49 : vector<2x32xf32>
    %117 = arith.mulf %101, %109 : vector<2x32xf32>
    %118 = arith.addf %116, %117 : vector<2x32xf32>
    %119 = math.tanh %118 : vector<2x32xf32>
    %120 = arith.mulf %115, %119 : vector<2x32xf32>
    %121 = vector.extract_strided_slice %95 {offsets = [0, 0], sizes = [2, 32], strides = [1, 1]} : vector<2x128xf32> to vector<2x32xf32>
    %122 = arith.negf %121 : vector<2x32xf32>
    %123 = math.exp %122 : vector<2x32xf32>
    %cst_43 = arith.constant 1.000000e+00 : f32
    %124 = vector.broadcast %cst_43 : f32 to vector<2x32xf32>
    %125 = arith.addf %124, %123 : vector<2x32xf32>
    %126 = arith.divf %124, %125 : vector<2x32xf32>
    %127 = vector.extract_strided_slice %95 {offsets = [0, 32], sizes = [2, 32], strides = [1, 1]} : vector<2x128xf32> to vector<2x32xf32>
    %128 = arith.negf %127 : vector<2x32xf32>
    %129 = math.exp %128 : vector<2x32xf32>
    %cst_44 = arith.constant 1.000000e+00 : f32
    %130 = vector.broadcast %cst_44 : f32 to vector<2x32xf32>
    %131 = arith.addf %130, %129 : vector<2x32xf32>
    %132 = arith.divf %130, %131 : vector<2x32xf32>
    %133 = vector.extract_strided_slice %95 {offsets = [0, 64], sizes = [2, 32], strides = [1, 1]} : vector<2x128xf32> to vector<2x32xf32>
    %134 = math.tanh %133 : vector<2x32xf32>
    %135 = vector.extract_strided_slice %95 {offsets = [0, 96], sizes = [2, 32], strides = [1, 1]} : vector<2x128xf32> to vector<2x32xf32>
    %136 = arith.negf %135 : vector<2x32xf32>
    %137 = math.exp %136 : vector<2x32xf32>
    %cst_45 = arith.constant 1.000000e+00 : f32
    %138 = vector.broadcast %cst_45 : f32 to vector<2x32xf32>
    %139 = arith.addf %138, %137 : vector<2x32xf32>
    %140 = arith.divf %138, %139 : vector<2x32xf32>
    %141 = arith.mulf %132, %74 : vector<2x32xf32>
    %142 = arith.mulf %126, %134 : vector<2x32xf32>
    %143 = arith.addf %141, %142 : vector<2x32xf32>
    %144 = math.tanh %143 : vector<2x32xf32>
    %145 = arith.mulf %140, %144 : vector<2x32xf32>
    %146 = arith.index_cast %c1_i32 : i32 to index
    %c0_46 = arith.constant 0 : index
    %c0_47 = arith.constant 0 : index
    %147 = vector.load %arg7[%146, %c0_46, %c0_47] : memref<8x2x64xf32, #tpu.memory_space<vmem>>, vector<1x2x32xf32>
    %148 = vector.shape_cast %147 : vector<1x2x32xf32> to vector<2x32xf32>
    %149 = vector.shape_cast %120 : vector<2x32xf32> to vector<1x2x32xf32>
    tpu.vector_store %arg7[%146, %c0_46, %c0_47], %149 {strides = array<i32>} : memref<8x2x64xf32, #tpu.memory_space<vmem>>, vector<1x2x32xf32>,
    %150 = arith.index_cast %85 : i32 to index
    %c0_48 = arith.constant 0 : index
    %c32_49 = arith.constant 32 : index
    %151 = vector.load %arg7[%150, %c0_48, %c32_49] : memref<8x2x64xf32, #tpu.memory_space<vmem>>, vector<1x2x32xf32>
    %152 = vector.shape_cast %151 : vector<1x2x32xf32> to vector<2x32xf32>
    %153 = vector.shape_cast %145 : vector<2x32xf32> to vector<1x2x32xf32>
    tpu.vector_store %arg7[%150, %c0_48, %c32_49], %153 {strides = array<i32>} : memref<8x2x64xf32, #tpu.memory_space<vmem>>, vector<1x2x32xf32>,
    %c2_i32_50 = arith.constant 2 : i32
    %c7_i32_51 = arith.constant 7 : i32
    %154 = arith.subi %c7_i32_51, %c2_i32_50 : i32
    %c2_i32_52 = arith.constant 2 : i32
    %155 = arith.muli %c2_i32_50, %c2_i32_52 : i32
    %156 = arith.index_cast %155 : i32 to index
    %c0_53 = arith.constant 0 : index
    %157 = vector.load %arg8[%156, %c0_53] : memref<16x128xf32, #tpu.memory_space<vmem>>, vector<2x128xf32>
    %cst_54 = arith.constant dense<0.000000e+00> : vector<2x128xf32>
    %158 = tpu.matmul %120, %13, %cst_54 {dimension_numbers = #tpu.dot_dimension_numbers<[1], [0], [0], [1], [0, 0, 1, 1], [], []>} : vector<2x32xf32>, vector<32x128xf32>, vector<2x128xf32> -> vector<2x128xf32>
    %159 = arith.addf %157, %158 : vector<2x128xf32>
    %c2_i32_55 = arith.constant 2 : i32
    %160 = arith.muli %154, %c2_i32_55 : i32
    %161 = arith.index_cast %160 : i32 to index
    %c0_56 = arith.constant 0 : index
    %162 = vector.load %arg9[%161, %c0_56] : memref<16x128xf32, #tpu.memory_space<vmem>>, vector<2x128xf32>
    %cst_57 = arith.constant dense<0.000000e+00> : vector<2x128xf32>
    %163 = tpu.matmul %145, %14, %cst_57 {dimension_numbers = #tpu.dot_dimension_numbers<[1], [0], [0], [1], [0, 0, 1, 1], [], []>} : vector<2x32xf32>, vector<32x128xf32>, vector<2x128xf32> -> vector<2x128xf32>
    %164 = arith.addf %162, %163 : vector<2x128xf32>
    %165 = vector.extract_strided_slice %159 {offsets = [0, 0], sizes = [2, 32], strides = [1, 1]} : vector<2x128xf32> to vector<2x32xf32>
    %166 = arith.negf %165 : vector<2x32xf32>
    %167 = math.exp %166 : vector<2x32xf32>
    %cst_58 = arith.constant 1.000000e+00 : f32
    %168 = vector.broadcast %cst_58 : f32 to vector<2x32xf32>
    %169 = arith.addf %168, %167 : vector<2x32xf32>
    %170 = arith.divf %168, %169 : vector<2x32xf32>
    %171 = vector.extract_strided_slice %159 {offsets = [0, 32], sizes = [2, 32], strides = [1, 1]} : vector<2x128xf32> to vector<2x32xf32>
    %172 = arith.negf %171 : vector<2x32xf32>
    %173 = math.exp %172 : vector<2x32xf32>
    %cst_59 = arith.constant 1.000000e+00 : f32
    %174 = vector.broadcast %cst_59 : f32 to vector<2x32xf32>
    %175 = arith.addf %174, %173 : vector<2x32xf32>
    %176 = arith.divf %174, %175 : vector<2x32xf32>
    %177 = vector.extract_strided_slice %159 {offsets = [0, 64], sizes = [2, 32], strides = [1, 1]} : vector<2x128xf32> to vector<2x32xf32>
    %178 = math.tanh %177 : vector<2x32xf32>
    %179 = vector.extract_strided_slice %159 {offsets = [0, 96], sizes = [2, 32], strides = [1, 1]} : vector<2x128xf32> to vector<2x32xf32>
    %180 = arith.negf %179 : vector<2x32xf32>
    %181 = math.exp %180 : vector<2x32xf32>
    %cst_60 = arith.constant 1.000000e+00 : f32
    %182 = vector.broadcast %cst_60 : f32 to vector<2x32xf32>
    %183 = arith.addf %182, %181 : vector<2x32xf32>
    %184 = arith.divf %182, %183 : vector<2x32xf32>
    %185 = arith.mulf %176, %118 : vector<2x32xf32>
    %186 = arith.mulf %170, %178 : vector<2x32xf32>
    %187 = arith.addf %185, %186 : vector<2x32xf32>
    %188 = math.tanh %187 : vector<2x32xf32>
    %189 = arith.mulf %184, %188 : vector<2x32xf32>
    %190 = vector.extract_strided_slice %164 {offsets = [0, 0], sizes = [2, 32], strides = [1, 1]} : vector<2x128xf32> to vector<2x32xf32>
    %191 = arith.negf %190 : vector<2x32xf32>
    %192 = math.exp %191 : vector<2x32xf32>
    %cst_61 = arith.constant 1.000000e+00 : f32
    %193 = vector.broadcast %cst_61 : f32 to vector<2x32xf32>
    %194 = arith.addf %193, %192 : vector<2x32xf32>
    %195 = arith.divf %193, %194 : vector<2x32xf32>
    %196 = vector.extract_strided_slice %164 {offsets = [0, 32], sizes = [2, 32], strides = [1, 1]} : vector<2x128xf32> to vector<2x32xf32>
    %197 = arith.negf %196 : vector<2x32xf32>
    %198 = math.exp %197 : vector<2x32xf32>
    %cst_62 = arith.constant 1.000000e+00 : f32
    %199 = vector.broadcast %cst_62 : f32 to vector<2x32xf32>
    %200 = arith.addf %199, %198 : vector<2x32xf32>
    %201 = arith.divf %199, %200 : vector<2x32xf32>
    %202 = vector.extract_strided_slice %164 {offsets = [0, 64], sizes = [2, 32], strides = [1, 1]} : vector<2x128xf32> to vector<2x32xf32>
    %203 = math.tanh %202 : vector<2x32xf32>
    %204 = vector.extract_strided_slice %164 {offsets = [0, 96], sizes = [2, 32], strides = [1, 1]} : vector<2x128xf32> to vector<2x32xf32>
    %205 = arith.negf %204 : vector<2x32xf32>
    %206 = math.exp %205 : vector<2x32xf32>
    %cst_63 = arith.constant 1.000000e+00 : f32
    %207 = vector.broadcast %cst_63 : f32 to vector<2x32xf32>
    %208 = arith.addf %207, %206 : vector<2x32xf32>
    %209 = arith.divf %207, %208 : vector<2x32xf32>
    %210 = arith.mulf %201, %143 : vector<2x32xf32>
    %211 = arith.mulf %195, %203 : vector<2x32xf32>
    %212 = arith.addf %210, %211 : vector<2x32xf32>
    %213 = math.tanh %212 : vector<2x32xf32>
    %214 = arith.mulf %209, %213 : vector<2x32xf32>
    %215 = arith.index_cast %c2_i32_50 : i32 to index
    %c0_64 = arith.constant 0 : index
    %c0_65 = arith.constant 0 : index
    %216 = vector.load %arg7[%215, %c0_64, %c0_65] : memref<8x2x64xf32, #tpu.memory_space<vmem>>, vector<1x2x32xf32>
    %217 = vector.shape_cast %216 : vector<1x2x32xf32> to vector<2x32xf32>
    %218 = vector.shape_cast %189 : vector<2x32xf32> to vector<1x2x32xf32>
    tpu.vector_store %arg7[%215, %c0_64, %c0_65], %218 {strides = array<i32>} : memref<8x2x64xf32, #tpu.memory_space<vmem>>, vector<1x2x32xf32>,
    %219 = arith.index_cast %154 : i32 to index
    %c0_66 = arith.constant 0 : index
    %c32_67 = arith.constant 32 : index
    %220 = vector.load %arg7[%219, %c0_66, %c32_67] : memref<8x2x64xf32, #tpu.memory_space<vmem>>, vector<1x2x32xf32>
    %221 = vector.shape_cast %220 : vector<1x2x32xf32> to vector<2x32xf32>
    %222 = vector.shape_cast %214 : vector<2x32xf32> to vector<1x2x32xf32>
    tpu.vector_store %arg7[%219, %c0_66, %c32_67], %222 {strides = array<i32>} : memref<8x2x64xf32, #tpu.memory_space<vmem>>, vector<1x2x32xf32>,
    %c3_i32 = arith.constant 3 : i32
    %c7_i32_68 = arith.constant 7 : i32
    %223 = arith.subi %c7_i32_68, %c3_i32 : i32
    %c2_i32_69 = arith.constant 2 : i32
    %224 = arith.muli %c3_i32, %c2_i32_69 : i32
    %225 = arith.index_cast %224 : i32 to index
    %c0_70 = arith.constant 0 : index
    %226 = vector.load %arg8[%225, %c0_70] : memref<16x128xf32, #tpu.memory_space<vmem>>, vector<2x128xf32>
    %cst_71 = arith.constant dense<0.000000e+00> : vector<2x128xf32>
    %227 = tpu.matmul %189, %13, %cst_71 {dimension_numbers = #tpu.dot_dimension_numbers<[1], [0], [0], [1], [0, 0, 1, 1], [], []>} : vector<2x32xf32>, vector<32x128xf32>, vector<2x128xf32> -> vector<2x128xf32>
    %228 = arith.addf %226, %227 : vector<2x128xf32>
    %c2_i32_72 = arith.constant 2 : i32
    %229 = arith.muli %223, %c2_i32_72 : i32
    %230 = arith.index_cast %229 : i32 to index
    %c0_73 = arith.constant 0 : index
    %231 = vector.load %arg9[%230, %c0_73] : memref<16x128xf32, #tpu.memory_space<vmem>>, vector<2x128xf32>
    %cst_74 = arith.constant dense<0.000000e+00> : vector<2x128xf32>
    %232 = tpu.matmul %214, %14, %cst_74 {dimension_numbers = #tpu.dot_dimension_numbers<[1], [0], [0], [1], [0, 0, 1, 1], [], []>} : vector<2x32xf32>, vector<32x128xf32>, vector<2x128xf32> -> vector<2x128xf32>
    %233 = arith.addf %231, %232 : vector<2x128xf32>
    %234 = vector.extract_strided_slice %228 {offsets = [0, 0], sizes = [2, 32], strides = [1, 1]} : vector<2x128xf32> to vector<2x32xf32>
    %235 = arith.negf %234 : vector<2x32xf32>
    %236 = math.exp %235 : vector<2x32xf32>
    %cst_75 = arith.constant 1.000000e+00 : f32
    %237 = vector.broadcast %cst_75 : f32 to vector<2x32xf32>
    %238 = arith.addf %237, %236 : vector<2x32xf32>
    %239 = arith.divf %237, %238 : vector<2x32xf32>
    %240 = vector.extract_strided_slice %228 {offsets = [0, 32], sizes = [2, 32], strides = [1, 1]} : vector<2x128xf32> to vector<2x32xf32>
    %241 = arith.negf %240 : vector<2x32xf32>
    %242 = math.exp %241 : vector<2x32xf32>
    %cst_76 = arith.constant 1.000000e+00 : f32
    %243 = vector.broadcast %cst_76 : f32 to vector<2x32xf32>
    %244 = arith.addf %243, %242 : vector<2x32xf32>
    %245 = arith.divf %243, %244 : vector<2x32xf32>
    %246 = vector.extract_strided_slice %228 {offsets = [0, 64], sizes = [2, 32], strides = [1, 1]} : vector<2x128xf32> to vector<2x32xf32>
    %247 = math.tanh %246 : vector<2x32xf32>
    %248 = vector.extract_strided_slice %228 {offsets = [0, 96], sizes = [2, 32], strides = [1, 1]} : vector<2x128xf32> to vector<2x32xf32>
    %249 = arith.negf %248 : vector<2x32xf32>
    %250 = math.exp %249 : vector<2x32xf32>
    %cst_77 = arith.constant 1.000000e+00 : f32
    %251 = vector.broadcast %cst_77 : f32 to vector<2x32xf32>
    %252 = arith.addf %251, %250 : vector<2x32xf32>
    %253 = arith.divf %251, %252 : vector<2x32xf32>
    %254 = arith.mulf %245, %187 : vector<2x32xf32>
    %255 = arith.mulf %239, %247 : vector<2x32xf32>
    %256 = arith.addf %254, %255 : vector<2x32xf32>
    %257 = math.tanh %256 : vector<2x32xf32>
    %258 = arith.mulf %253, %257 : vector<2x32xf32>
    %259 = vector.extract_strided_slice %233 {offsets = [0, 0], sizes = [2, 32], strides = [1, 1]} : vector<2x128xf32> to vector<2x32xf32>
    %260 = arith.negf %259 : vector<2x32xf32>
    %261 = math.exp %260 : vector<2x32xf32>
    %cst_78 = arith.constant 1.000000e+00 : f32
    %262 = vector.broadcast %cst_78 : f32 to vector<2x32xf32>
    %263 = arith.addf %262, %261 : vector<2x32xf32>
    %264 = arith.divf %262, %263 : vector<2x32xf32>
    %265 = vector.extract_strided_slice %233 {offsets = [0, 32], sizes = [2, 32], strides = [1, 1]} : vector<2x128xf32> to vector<2x32xf32>
    %266 = arith.negf %265 : vector<2x32xf32>
    %267 = math.exp %266 : vector<2x32xf32>
    %cst_79 = arith.constant 1.000000e+00 : f32
    %268 = vector.broadcast %cst_79 : f32 to vector<2x32xf32>
    %269 = arith.addf %268, %267 : vector<2x32xf32>
    %270 = arith.divf %268, %269 : vector<2x32xf32>
    %271 = vector.extract_strided_slice %233 {offsets = [0, 64], sizes = [2, 32], strides = [1, 1]} : vector<2x128xf32> to vector<2x32xf32>
    %272 = math.tanh %271 : vector<2x32xf32>
    %273 = vector.extract_strided_slice %233 {offsets = [0, 96], sizes = [2, 32], strides = [1, 1]} : vector<2x128xf32> to vector<2x32xf32>
    %274 = arith.negf %273 : vector<2x32xf32>
    %275 = math.exp %274 : vector<2x32xf32>
    %cst_80 = arith.constant 1.000000e+00 : f32
    %276 = vector.broadcast %cst_80 : f32 to vector<2x32xf32>
    %277 = arith.addf %276, %275 : vector<2x32xf32>
    %278 = arith.divf %276, %277 : vector<2x32xf32>
    %279 = arith.mulf %270, %212 : vector<2x32xf32>
    %280 = arith.mulf %264, %272 : vector<2x32xf32>
    %281 = arith.addf %279, %280 : vector<2x32xf32>
    %282 = math.tanh %281 : vector<2x32xf32>
    %283 = arith.mulf %278, %282 : vector<2x32xf32>
    %284 = arith.index_cast %c3_i32 : i32 to index
    %c0_81 = arith.constant 0 : index
    %c0_82 = arith.constant 0 : index
    %285 = vector.load %arg7[%284, %c0_81, %c0_82] : memref<8x2x64xf32, #tpu.memory_space<vmem>>, vector<1x2x32xf32>
    %286 = vector.shape_cast %285 : vector<1x2x32xf32> to vector<2x32xf32>
    %287 = vector.shape_cast %258 : vector<2x32xf32> to vector<1x2x32xf32>
    tpu.vector_store %arg7[%284, %c0_81, %c0_82], %287 {strides = array<i32>} : memref<8x2x64xf32, #tpu.memory_space<vmem>>, vector<1x2x32xf32>,
    %288 = arith.index_cast %223 : i32 to index
    %c0_83 = arith.constant 0 : index
    %c32_84 = arith.constant 32 : index
    %289 = vector.load %arg7[%288, %c0_83, %c32_84] : memref<8x2x64xf32, #tpu.memory_space<vmem>>, vector<1x2x32xf32>
    %290 = vector.shape_cast %289 : vector<1x2x32xf32> to vector<2x32xf32>
    %291 = vector.shape_cast %283 : vector<2x32xf32> to vector<1x2x32xf32>
    tpu.vector_store %arg7[%288, %c0_83, %c32_84], %291 {strides = array<i32>} : memref<8x2x64xf32, #tpu.memory_space<vmem>>, vector<1x2x32xf32>,
    %c4_i32 = arith.constant 4 : i32
    %c7_i32_85 = arith.constant 7 : i32
    %292 = arith.subi %c7_i32_85, %c4_i32 : i32
    %c2_i32_86 = arith.constant 2 : i32
    %293 = arith.muli %c4_i32, %c2_i32_86 : i32
    %294 = arith.index_cast %293 : i32 to index
    %c0_87 = arith.constant 0 : index
    %295 = vector.load %arg8[%294, %c0_87] : memref<16x128xf32, #tpu.memory_space<vmem>>, vector<2x128xf32>
    %cst_88 = arith.constant dense<0.000000e+00> : vector<2x128xf32>
    %296 = tpu.matmul %258, %13, %cst_88 {dimension_numbers = #tpu.dot_dimension_numbers<[1], [0], [0], [1], [0, 0, 1, 1], [], []>} : vector<2x32xf32>, vector<32x128xf32>, vector<2x128xf32> -> vector<2x128xf32>
    %297 = arith.addf %295, %296 : vector<2x128xf32>
    %c2_i32_89 = arith.constant 2 : i32
    %298 = arith.muli %292, %c2_i32_89 : i32
    %299 = arith.index_cast %298 : i32 to index
    %c0_90 = arith.constant 0 : index
    %300 = vector.load %arg9[%299, %c0_90] : memref<16x128xf32, #tpu.memory_space<vmem>>, vector<2x128xf32>
    %cst_91 = arith.constant dense<0.000000e+00> : vector<2x128xf32>
    %301 = tpu.matmul %283, %14, %cst_91 {dimension_numbers = #tpu.dot_dimension_numbers<[1], [0], [0], [1], [0, 0, 1, 1], [], []>} : vector<2x32xf32>, vector<32x128xf32>, vector<2x128xf32> -> vector<2x128xf32>
    %302 = arith.addf %300, %301 : vector<2x128xf32>
    %303 = vector.extract_strided_slice %297 {offsets = [0, 0], sizes = [2, 32], strides = [1, 1]} : vector<2x128xf32> to vector<2x32xf32>
    %304 = arith.negf %303 : vector<2x32xf32>
    %305 = math.exp %304 : vector<2x32xf32>
    %cst_92 = arith.constant 1.000000e+00 : f32
    %306 = vector.broadcast %cst_92 : f32 to vector<2x32xf32>
    %307 = arith.addf %306, %305 : vector<2x32xf32>
    %308 = arith.divf %306, %307 : vector<2x32xf32>
    %309 = vector.extract_strided_slice %297 {offsets = [0, 32], sizes = [2, 32], strides = [1, 1]} : vector<2x128xf32> to vector<2x32xf32>
    %310 = arith.negf %309 : vector<2x32xf32>
    %311 = math.exp %310 : vector<2x32xf32>
    %cst_93 = arith.constant 1.000000e+00 : f32
    %312 = vector.broadcast %cst_93 : f32 to vector<2x32xf32>
    %313 = arith.addf %312, %311 : vector<2x32xf32>
    %314 = arith.divf %312, %313 : vector<2x32xf32>
    %315 = vector.extract_strided_slice %297 {offsets = [0, 64], sizes = [2, 32], strides = [1, 1]} : vector<2x128xf32> to vector<2x32xf32>
    %316 = math.tanh %315 : vector<2x32xf32>
    %317 = vector.extract_strided_slice %297 {offsets = [0, 96], sizes = [2, 32], strides = [1, 1]} : vector<2x128xf32> to vector<2x32xf32>
    %318 = arith.negf %317 : vector<2x32xf32>
    %319 = math.exp %318 : vector<2x32xf32>
    %cst_94 = arith.constant 1.000000e+00 : f32
    %320 = vector.broadcast %cst_94 : f32 to vector<2x32xf32>
    %321 = arith.addf %320, %319 : vector<2x32xf32>
    %322 = arith.divf %320, %321 : vector<2x32xf32>
    %323 = arith.mulf %314, %256 : vector<2x32xf32>
    %324 = arith.mulf %308, %316 : vector<2x32xf32>
    %325 = arith.addf %323, %324 : vector<2x32xf32>
    %326 = math.tanh %325 : vector<2x32xf32>
    %327 = arith.mulf %322, %326 : vector<2x32xf32>
    %328 = vector.extract_strided_slice %302 {offsets = [0, 0], sizes = [2, 32], strides = [1, 1]} : vector<2x128xf32> to vector<2x32xf32>
    %329 = arith.negf %328 : vector<2x32xf32>
    %330 = math.exp %329 : vector<2x32xf32>
    %cst_95 = arith.constant 1.000000e+00 : f32
    %331 = vector.broadcast %cst_95 : f32 to vector<2x32xf32>
    %332 = arith.addf %331, %330 : vector<2x32xf32>
    %333 = arith.divf %331, %332 : vector<2x32xf32>
    %334 = vector.extract_strided_slice %302 {offsets = [0, 32], sizes = [2, 32], strides = [1, 1]} : vector<2x128xf32> to vector<2x32xf32>
    %335 = arith.negf %334 : vector<2x32xf32>
    %336 = math.exp %335 : vector<2x32xf32>
    %cst_96 = arith.constant 1.000000e+00 : f32
    %337 = vector.broadcast %cst_96 : f32 to vector<2x32xf32>
    %338 = arith.addf %337, %336 : vector<2x32xf32>
    %339 = arith.divf %337, %338 : vector<2x32xf32>
    %340 = vector.extract_strided_slice %302 {offsets = [0, 64], sizes = [2, 32], strides = [1, 1]} : vector<2x128xf32> to vector<2x32xf32>
    %341 = math.tanh %340 : vector<2x32xf32>
    %342 = vector.extract_strided_slice %302 {offsets = [0, 96], sizes = [2, 32], strides = [1, 1]} : vector<2x128xf32> to vector<2x32xf32>
    %343 = arith.negf %342 : vector<2x32xf32>
    %344 = math.exp %343 : vector<2x32xf32>
    %cst_97 = arith.constant 1.000000e+00 : f32
    %345 = vector.broadcast %cst_97 : f32 to vector<2x32xf32>
    %346 = arith.addf %345, %344 : vector<2x32xf32>
    %347 = arith.divf %345, %346 : vector<2x32xf32>
    %348 = arith.mulf %339, %281 : vector<2x32xf32>
    %349 = arith.mulf %333, %341 : vector<2x32xf32>
    %350 = arith.addf %348, %349 : vector<2x32xf32>
    %351 = math.tanh %350 : vector<2x32xf32>
    %352 = arith.mulf %347, %351 : vector<2x32xf32>
    %353 = arith.index_cast %c4_i32 : i32 to index
    %c0_98 = arith.constant 0 : index
    %c0_99 = arith.constant 0 : index
    %354 = vector.load %arg7[%353, %c0_98, %c0_99] : memref<8x2x64xf32, #tpu.memory_space<vmem>>, vector<1x2x32xf32>
    %355 = vector.shape_cast %354 : vector<1x2x32xf32> to vector<2x32xf32>
    %356 = vector.shape_cast %327 : vector<2x32xf32> to vector<1x2x32xf32>
    tpu.vector_store %arg7[%353, %c0_98, %c0_99], %356 {strides = array<i32>} : memref<8x2x64xf32, #tpu.memory_space<vmem>>, vector<1x2x32xf32>,
    %357 = arith.index_cast %292 : i32 to index
    %c0_100 = arith.constant 0 : index
    %c32_101 = arith.constant 32 : index
    %358 = vector.load %arg7[%357, %c0_100, %c32_101] : memref<8x2x64xf32, #tpu.memory_space<vmem>>, vector<1x2x32xf32>
    %359 = vector.shape_cast %358 : vector<1x2x32xf32> to vector<2x32xf32>
    %360 = vector.shape_cast %352 : vector<2x32xf32> to vector<1x2x32xf32>
    tpu.vector_store %arg7[%357, %c0_100, %c32_101], %360 {strides = array<i32>} : memref<8x2x64xf32, #tpu.memory_space<vmem>>, vector<1x2x32xf32>,
    %c5_i32 = arith.constant 5 : i32
    %c7_i32_102 = arith.constant 7 : i32
    %361 = arith.subi %c7_i32_102, %c5_i32 : i32
    %c2_i32_103 = arith.constant 2 : i32
    %362 = arith.muli %c5_i32, %c2_i32_103 : i32
    %363 = arith.index_cast %362 : i32 to index
    %c0_104 = arith.constant 0 : index
    %364 = vector.load %arg8[%363, %c0_104] : memref<16x128xf32, #tpu.memory_space<vmem>>, vector<2x128xf32>
    %cst_105 = arith.constant dense<0.000000e+00> : vector<2x128xf32>
    %365 = tpu.matmul %327, %13, %cst_105 {dimension_numbers = #tpu.dot_dimension_numbers<[1], [0], [0], [1], [0, 0, 1, 1], [], []>} : vector<2x32xf32>, vector<32x128xf32>, vector<2x128xf32> -> vector<2x128xf32>
    %366 = arith.addf %364, %365 : vector<2x128xf32>
    %c2_i32_106 = arith.constant 2 : i32
    %367 = arith.muli %361, %c2_i32_106 : i32
    %368 = arith.index_cast %367 : i32 to index
    %c0_107 = arith.constant 0 : index
    %369 = vector.load %arg9[%368, %c0_107] : memref<16x128xf32, #tpu.memory_space<vmem>>, vector<2x128xf32>
    %cst_108 = arith.constant dense<0.000000e+00> : vector<2x128xf32>
    %370 = tpu.matmul %352, %14, %cst_108 {dimension_numbers = #tpu.dot_dimension_numbers<[1], [0], [0], [1], [0, 0, 1, 1], [], []>} : vector<2x32xf32>, vector<32x128xf32>, vector<2x128xf32> -> vector<2x128xf32>
    %371 = arith.addf %369, %370 : vector<2x128xf32>
    %372 = vector.extract_strided_slice %366 {offsets = [0, 0], sizes = [2, 32], strides = [1, 1]} : vector<2x128xf32> to vector<2x32xf32>
    %373 = arith.negf %372 : vector<2x32xf32>
    %374 = math.exp %373 : vector<2x32xf32>
    %cst_109 = arith.constant 1.000000e+00 : f32
    %375 = vector.broadcast %cst_109 : f32 to vector<2x32xf32>
    %376 = arith.addf %375, %374 : vector<2x32xf32>
    %377 = arith.divf %375, %376 : vector<2x32xf32>
    %378 = vector.extract_strided_slice %366 {offsets = [0, 32], sizes = [2, 32], strides = [1, 1]} : vector<2x128xf32> to vector<2x32xf32>
    %379 = arith.negf %378 : vector<2x32xf32>
    %380 = math.exp %379 : vector<2x32xf32>
    %cst_110 = arith.constant 1.000000e+00 : f32
    %381 = vector.broadcast %cst_110 : f32 to vector<2x32xf32>
    %382 = arith.addf %381, %380 : vector<2x32xf32>
    %383 = arith.divf %381, %382 : vector<2x32xf32>
    %384 = vector.extract_strided_slice %366 {offsets = [0, 64], sizes = [2, 32], strides = [1, 1]} : vector<2x128xf32> to vector<2x32xf32>
    %385 = math.tanh %384 : vector<2x32xf32>
    %386 = vector.extract_strided_slice %366 {offsets = [0, 96], sizes = [2, 32], strides = [1, 1]} : vector<2x128xf32> to vector<2x32xf32>
    %387 = arith.negf %386 : vector<2x32xf32>
    %388 = math.exp %387 : vector<2x32xf32>
    %cst_111 = arith.constant 1.000000e+00 : f32
    %389 = vector.broadcast %cst_111 : f32 to vector<2x32xf32>
    %390 = arith.addf %389, %388 : vector<2x32xf32>
    %391 = arith.divf %389, %390 : vector<2x32xf32>
    %392 = arith.mulf %383, %325 : vector<2x32xf32>
    %393 = arith.mulf %377, %385 : vector<2x32xf32>
    %394 = arith.addf %392, %393 : vector<2x32xf32>
    %395 = math.tanh %394 : vector<2x32xf32>
    %396 = arith.mulf %391, %395 : vector<2x32xf32>
    %397 = vector.extract_strided_slice %371 {offsets = [0, 0], sizes = [2, 32], strides = [1, 1]} : vector<2x128xf32> to vector<2x32xf32>
    %398 = arith.negf %397 : vector<2x32xf32>
    %399 = math.exp %398 : vector<2x32xf32>
    %cst_112 = arith.constant 1.000000e+00 : f32
    %400 = vector.broadcast %cst_112 : f32 to vector<2x32xf32>
    %401 = arith.addf %400, %399 : vector<2x32xf32>
    %402 = arith.divf %400, %401 : vector<2x32xf32>
    %403 = vector.extract_strided_slice %371 {offsets = [0, 32], sizes = [2, 32], strides = [1, 1]} : vector<2x128xf32> to vector<2x32xf32>
    %404 = arith.negf %403 : vector<2x32xf32>
    %405 = math.exp %404 : vector<2x32xf32>
    %cst_113 = arith.constant 1.000000e+00 : f32
    %406 = vector.broadcast %cst_113 : f32 to vector<2x32xf32>
    %407 = arith.addf %406, %405 : vector<2x32xf32>
    %408 = arith.divf %406, %407 : vector<2x32xf32>
    %409 = vector.extract_strided_slice %371 {offsets = [0, 64], sizes = [2, 32], strides = [1, 1]} : vector<2x128xf32> to vector<2x32xf32>
    %410 = math.tanh %409 : vector<2x32xf32>
    %411 = vector.extract_strided_slice %371 {offsets = [0, 96], sizes = [2, 32], strides = [1, 1]} : vector<2x128xf32> to vector<2x32xf32>
    %412 = arith.negf %411 : vector<2x32xf32>
    %413 = math.exp %412 : vector<2x32xf32>
    %cst_114 = arith.constant 1.000000e+00 : f32
    %414 = vector.broadcast %cst_114 : f32 to vector<2x32xf32>
    %415 = arith.addf %414, %413 : vector<2x32xf32>
    %416 = arith.divf %414, %415 : vector<2x32xf32>
    %417 = arith.mulf %408, %350 : vector<2x32xf32>
    %418 = arith.mulf %402, %410 : vector<2x32xf32>
    %419 = arith.addf %417, %418 : vector<2x32xf32>
    %420 = math.tanh %419 : vector<2x32xf32>
    %421 = arith.mulf %416, %420 : vector<2x32xf32>
    %422 = arith.index_cast %c5_i32 : i32 to index
    %c0_115 = arith.constant 0 : index
    %c0_116 = arith.constant 0 : index
    %423 = vector.load %arg7[%422, %c0_115, %c0_116] : memref<8x2x64xf32, #tpu.memory_space<vmem>>, vector<1x2x32xf32>
    %424 = vector.shape_cast %423 : vector<1x2x32xf32> to vector<2x32xf32>
    %425 = vector.shape_cast %396 : vector<2x32xf32> to vector<1x2x32xf32>
    tpu.vector_store %arg7[%422, %c0_115, %c0_116], %425 {strides = array<i32>} : memref<8x2x64xf32, #tpu.memory_space<vmem>>, vector<1x2x32xf32>,
    %426 = arith.index_cast %361 : i32 to index
    %c0_117 = arith.constant 0 : index
    %c32_118 = arith.constant 32 : index
    %427 = vector.load %arg7[%426, %c0_117, %c32_118] : memref<8x2x64xf32, #tpu.memory_space<vmem>>, vector<1x2x32xf32>
    %428 = vector.shape_cast %427 : vector<1x2x32xf32> to vector<2x32xf32>
    %429 = vector.shape_cast %421 : vector<2x32xf32> to vector<1x2x32xf32>
    tpu.vector_store %arg7[%426, %c0_117, %c32_118], %429 {strides = array<i32>} : memref<8x2x64xf32, #tpu.memory_space<vmem>>, vector<1x2x32xf32>,
    %c6_i32 = arith.constant 6 : i32
    %c7_i32_119 = arith.constant 7 : i32
    %430 = arith.subi %c7_i32_119, %c6_i32 : i32
    %c2_i32_120 = arith.constant 2 : i32
    %431 = arith.muli %c6_i32, %c2_i32_120 : i32
    %432 = arith.index_cast %431 : i32 to index
    %c0_121 = arith.constant 0 : index
    %433 = vector.load %arg8[%432, %c0_121] : memref<16x128xf32, #tpu.memory_space<vmem>>, vector<2x128xf32>
    %cst_122 = arith.constant dense<0.000000e+00> : vector<2x128xf32>
    %434 = tpu.matmul %396, %13, %cst_122 {dimension_numbers = #tpu.dot_dimension_numbers<[1], [0], [0], [1], [0, 0, 1, 1], [], []>} : vector<2x32xf32>, vector<32x128xf32>, vector<2x128xf32> -> vector<2x128xf32>
    %435 = arith.addf %433, %434 : vector<2x128xf32>
    %c2_i32_123 = arith.constant 2 : i32
    %436 = arith.muli %430, %c2_i32_123 : i32
    %437 = arith.index_cast %436 : i32 to index
    %c0_124 = arith.constant 0 : index
    %438 = vector.load %arg9[%437, %c0_124] : memref<16x128xf32, #tpu.memory_space<vmem>>, vector<2x128xf32>
    %cst_125 = arith.constant dense<0.000000e+00> : vector<2x128xf32>
    %439 = tpu.matmul %421, %14, %cst_125 {dimension_numbers = #tpu.dot_dimension_numbers<[1], [0], [0], [1], [0, 0, 1, 1], [], []>} : vector<2x32xf32>, vector<32x128xf32>, vector<2x128xf32> -> vector<2x128xf32>
    %440 = arith.addf %438, %439 : vector<2x128xf32>
    %441 = vector.extract_strided_slice %435 {offsets = [0, 0], sizes = [2, 32], strides = [1, 1]} : vector<2x128xf32> to vector<2x32xf32>
    %442 = arith.negf %441 : vector<2x32xf32>
    %443 = math.exp %442 : vector<2x32xf32>
    %cst_126 = arith.constant 1.000000e+00 : f32
    %444 = vector.broadcast %cst_126 : f32 to vector<2x32xf32>
    %445 = arith.addf %444, %443 : vector<2x32xf32>
    %446 = arith.divf %444, %445 : vector<2x32xf32>
    %447 = vector.extract_strided_slice %435 {offsets = [0, 32], sizes = [2, 32], strides = [1, 1]} : vector<2x128xf32> to vector<2x32xf32>
    %448 = arith.negf %447 : vector<2x32xf32>
    %449 = math.exp %448 : vector<2x32xf32>
    %cst_127 = arith.constant 1.000000e+00 : f32
    %450 = vector.broadcast %cst_127 : f32 to vector<2x32xf32>
    %451 = arith.addf %450, %449 : vector<2x32xf32>
    %452 = arith.divf %450, %451 : vector<2x32xf32>
    %453 = vector.extract_strided_slice %435 {offsets = [0, 64], sizes = [2, 32], strides = [1, 1]} : vector<2x128xf32> to vector<2x32xf32>
    %454 = math.tanh %453 : vector<2x32xf32>
    %455 = vector.extract_strided_slice %435 {offsets = [0, 96], sizes = [2, 32], strides = [1, 1]} : vector<2x128xf32> to vector<2x32xf32>
    %456 = arith.negf %455 : vector<2x32xf32>
    %457 = math.exp %456 : vector<2x32xf32>
    %cst_128 = arith.constant 1.000000e+00 : f32
    %458 = vector.broadcast %cst_128 : f32 to vector<2x32xf32>
    %459 = arith.addf %458, %457 : vector<2x32xf32>
    %460 = arith.divf %458, %459 : vector<2x32xf32>
    %461 = arith.mulf %452, %394 : vector<2x32xf32>
    %462 = arith.mulf %446, %454 : vector<2x32xf32>
    %463 = arith.addf %461, %462 : vector<2x32xf32>
    %464 = math.tanh %463 : vector<2x32xf32>
    %465 = arith.mulf %460, %464 : vector<2x32xf32>
    %466 = vector.extract_strided_slice %440 {offsets = [0, 0], sizes = [2, 32], strides = [1, 1]} : vector<2x128xf32> to vector<2x32xf32>
    %467 = arith.negf %466 : vector<2x32xf32>
    %468 = math.exp %467 : vector<2x32xf32>
    %cst_129 = arith.constant 1.000000e+00 : f32
    %469 = vector.broadcast %cst_129 : f32 to vector<2x32xf32>
    %470 = arith.addf %469, %468 : vector<2x32xf32>
    %471 = arith.divf %469, %470 : vector<2x32xf32>
    %472 = vector.extract_strided_slice %440 {offsets = [0, 32], sizes = [2, 32], strides = [1, 1]} : vector<2x128xf32> to vector<2x32xf32>
    %473 = arith.negf %472 : vector<2x32xf32>
    %474 = math.exp %473 : vector<2x32xf32>
    %cst_130 = arith.constant 1.000000e+00 : f32
    %475 = vector.broadcast %cst_130 : f32 to vector<2x32xf32>
    %476 = arith.addf %475, %474 : vector<2x32xf32>
    %477 = arith.divf %475, %476 : vector<2x32xf32>
    %478 = vector.extract_strided_slice %440 {offsets = [0, 64], sizes = [2, 32], strides = [1, 1]} : vector<2x128xf32> to vector<2x32xf32>
    %479 = math.tanh %478 : vector<2x32xf32>
    %480 = vector.extract_strided_slice %440 {offsets = [0, 96], sizes = [2, 32], strides = [1, 1]} : vector<2x128xf32> to vector<2x32xf32>
    %481 = arith.negf %480 : vector<2x32xf32>
    %482 = math.exp %481 : vector<2x32xf32>
    %cst_131 = arith.constant 1.000000e+00 : f32
    %483 = vector.broadcast %cst_131 : f32 to vector<2x32xf32>
    %484 = arith.addf %483, %482 : vector<2x32xf32>
    %485 = arith.divf %483, %484 : vector<2x32xf32>
    %486 = arith.mulf %477, %419 : vector<2x32xf32>
    %487 = arith.mulf %471, %479 : vector<2x32xf32>
    %488 = arith.addf %486, %487 : vector<2x32xf32>
    %489 = math.tanh %488 : vector<2x32xf32>
    %490 = arith.mulf %485, %489 : vector<2x32xf32>
    %491 = arith.index_cast %c6_i32 : i32 to index
    %c0_132 = arith.constant 0 : index
    %c0_133 = arith.constant 0 : index
    %492 = vector.load %arg7[%491, %c0_132, %c0_133] : memref<8x2x64xf32, #tpu.memory_space<vmem>>, vector<1x2x32xf32>
    %493 = vector.shape_cast %492 : vector<1x2x32xf32> to vector<2x32xf32>
    %494 = vector.shape_cast %465 : vector<2x32xf32> to vector<1x2x32xf32>
    tpu.vector_store %arg7[%491, %c0_132, %c0_133], %494 {strides = array<i32>} : memref<8x2x64xf32, #tpu.memory_space<vmem>>, vector<1x2x32xf32>,
    %495 = arith.index_cast %430 : i32 to index
    %c0_134 = arith.constant 0 : index
    %c32_135 = arith.constant 32 : index
    %496 = vector.load %arg7[%495, %c0_134, %c32_135] : memref<8x2x64xf32, #tpu.memory_space<vmem>>, vector<1x2x32xf32>
    %497 = vector.shape_cast %496 : vector<1x2x32xf32> to vector<2x32xf32>
    %498 = vector.shape_cast %490 : vector<2x32xf32> to vector<1x2x32xf32>
    tpu.vector_store %arg7[%495, %c0_134, %c32_135], %498 {strides = array<i32>} : memref<8x2x64xf32, #tpu.memory_space<vmem>>, vector<1x2x32xf32>,
    %c7_i32_136 = arith.constant 7 : i32
    %c7_i32_137 = arith.constant 7 : i32
    %499 = arith.subi %c7_i32_137, %c7_i32_136 : i32
    %c2_i32_138 = arith.constant 2 : i32
    %500 = arith.muli %c7_i32_136, %c2_i32_138 : i32
    %501 = arith.index_cast %500 : i32 to index
    %c0_139 = arith.constant 0 : index
    %502 = vector.load %arg8[%501, %c0_139] : memref<16x128xf32, #tpu.memory_space<vmem>>, vector<2x128xf32>
    %cst_140 = arith.constant dense<0.000000e+00> : vector<2x128xf32>
    %503 = tpu.matmul %465, %13, %cst_140 {dimension_numbers = #tpu.dot_dimension_numbers<[1], [0], [0], [1], [0, 0, 1, 1], [], []>} : vector<2x32xf32>, vector<32x128xf32>, vector<2x128xf32> -> vector<2x128xf32>
    %504 = arith.addf %502, %503 : vector<2x128xf32>
    %c2_i32_141 = arith.constant 2 : i32
    %505 = arith.muli %499, %c2_i32_141 : i32
    %506 = arith.index_cast %505 : i32 to index
    %c0_142 = arith.constant 0 : index
    %507 = vector.load %arg9[%506, %c0_142] : memref<16x128xf32, #tpu.memory_space<vmem>>, vector<2x128xf32>
    %cst_143 = arith.constant dense<0.000000e+00> : vector<2x128xf32>
    %508 = tpu.matmul %490, %14, %cst_143 {dimension_numbers = #tpu.dot_dimension_numbers<[1], [0], [0], [1], [0, 0, 1, 1], [], []>} : vector<2x32xf32>, vector<32x128xf32>, vector<2x128xf32> -> vector<2x128xf32>
    %509 = arith.addf %507, %508 : vector<2x128xf32>
    %510 = vector.extract_strided_slice %504 {offsets = [0, 0], sizes = [2, 32], strides = [1, 1]} : vector<2x128xf32> to vector<2x32xf32>
    %511 = arith.negf %510 : vector<2x32xf32>
    %512 = math.exp %511 : vector<2x32xf32>
    %cst_144 = arith.constant 1.000000e+00 : f32
    %513 = vector.broadcast %cst_144 : f32 to vector<2x32xf32>
    %514 = arith.addf %513, %512 : vector<2x32xf32>
    %515 = arith.divf %513, %514 : vector<2x32xf32>
    %516 = vector.extract_strided_slice %504 {offsets = [0, 32], sizes = [2, 32], strides = [1, 1]} : vector<2x128xf32> to vector<2x32xf32>
    %517 = arith.negf %516 : vector<2x32xf32>
    %518 = math.exp %517 : vector<2x32xf32>
    %cst_145 = arith.constant 1.000000e+00 : f32
    %519 = vector.broadcast %cst_145 : f32 to vector<2x32xf32>
    %520 = arith.addf %519, %518 : vector<2x32xf32>
    %521 = arith.divf %519, %520 : vector<2x32xf32>
    %522 = vector.extract_strided_slice %504 {offsets = [0, 64], sizes = [2, 32], strides = [1, 1]} : vector<2x128xf32> to vector<2x32xf32>
    %523 = math.tanh %522 : vector<2x32xf32>
    %524 = vector.extract_strided_slice %504 {offsets = [0, 96], sizes = [2, 32], strides = [1, 1]} : vector<2x128xf32> to vector<2x32xf32>
    %525 = arith.negf %524 : vector<2x32xf32>
    %526 = math.exp %525 : vector<2x32xf32>
    %cst_146 = arith.constant 1.000000e+00 : f32
    %527 = vector.broadcast %cst_146 : f32 to vector<2x32xf32>
    %528 = arith.addf %527, %526 : vector<2x32xf32>
    %529 = arith.divf %527, %528 : vector<2x32xf32>
    %530 = arith.mulf %521, %463 : vector<2x32xf32>
    %531 = arith.mulf %515, %523 : vector<2x32xf32>
    %532 = arith.addf %530, %531 : vector<2x32xf32>
    %533 = math.tanh %532 : vector<2x32xf32>
    %534 = arith.mulf %529, %533 : vector<2x32xf32>
    %535 = vector.extract_strided_slice %509 {offsets = [0, 0], sizes = [2, 32], strides = [1, 1]} : vector<2x128xf32> to vector<2x32xf32>
    %536 = arith.negf %535 : vector<2x32xf32>
    %537 = math.exp %536 : vector<2x32xf32>
    %cst_147 = arith.constant 1.000000e+00 : f32
    %538 = vector.broadcast %cst_147 : f32 to vector<2x32xf32>
    %539 = arith.addf %538, %537 : vector<2x32xf32>
    %540 = arith.divf %538, %539 : vector<2x32xf32>
    %541 = vector.extract_strided_slice %509 {offsets = [0, 32], sizes = [2, 32], strides = [1, 1]} : vector<2x128xf32> to vector<2x32xf32>
    %542 = arith.negf %541 : vector<2x32xf32>
    %543 = math.exp %542 : vector<2x32xf32>
    %cst_148 = arith.constant 1.000000e+00 : f32
    %544 = vector.broadcast %cst_148 : f32 to vector<2x32xf32>
    %545 = arith.addf %544, %543 : vector<2x32xf32>
    %546 = arith.divf %544, %545 : vector<2x32xf32>
    %547 = vector.extract_strided_slice %509 {offsets = [0, 64], sizes = [2, 32], strides = [1, 1]} : vector<2x128xf32> to vector<2x32xf32>
    %548 = math.tanh %547 : vector<2x32xf32>
    %549 = vector.extract_strided_slice %509 {offsets = [0, 96], sizes = [2, 32], strides = [1, 1]} : vector<2x128xf32> to vector<2x32xf32>
    %550 = arith.negf %549 : vector<2x32xf32>
    %551 = math.exp %550 : vector<2x32xf32>
    %cst_149 = arith.constant 1.000000e+00 : f32
    %552 = vector.broadcast %cst_149 : f32 to vector<2x32xf32>
    %553 = arith.addf %552, %551 : vector<2x32xf32>
    %554 = arith.divf %552, %553 : vector<2x32xf32>
    %555 = arith.mulf %546, %488 : vector<2x32xf32>
    %556 = arith.mulf %540, %548 : vector<2x32xf32>
    %557 = arith.addf %555, %556 : vector<2x32xf32>
    %558 = math.tanh %557 : vector<2x32xf32>
    %559 = arith.mulf %554, %558 : vector<2x32xf32>
    %560 = arith.index_cast %c7_i32_136 : i32 to index
    %c0_150 = arith.constant 0 : index
    %c0_151 = arith.constant 0 : index
    %561 = vector.load %arg7[%560, %c0_150, %c0_151] : memref<8x2x64xf32, #tpu.memory_space<vmem>>, vector<1x2x32xf32>
    %562 = vector.shape_cast %561 : vector<1x2x32xf32> to vector<2x32xf32>
    %563 = vector.shape_cast %534 : vector<2x32xf32> to vector<1x2x32xf32>
    tpu.vector_store %arg7[%560, %c0_150, %c0_151], %563 {strides = array<i32>} : memref<8x2x64xf32, #tpu.memory_space<vmem>>, vector<1x2x32xf32>,
    %564 = arith.index_cast %499 : i32 to index
    %c0_152 = arith.constant 0 : index
    %c32_153 = arith.constant 32 : index
    %565 = vector.load %arg7[%564, %c0_152, %c32_153] : memref<8x2x64xf32, #tpu.memory_space<vmem>>, vector<1x2x32xf32>
    %566 = vector.shape_cast %565 : vector<1x2x32xf32> to vector<2x32xf32>
    %567 = vector.shape_cast %559 : vector<2x32xf32> to vector<1x2x32xf32>
    tpu.vector_store %arg7[%564, %c0_152, %c32_153], %567 {strides = array<i32>} : memref<8x2x64xf32, #tpu.memory_space<vmem>>, vector<1x2x32xf32>,
    %c8_i32 = arith.constant 8 : i32
    return
  }
}

module attributes {stable_mosaic.version = 11 : i64} {
  func.func @_bilstm_layer_kernel(%arg0: memref<16x64xf32, #tpu.memory_space<vmem>>, %arg1: memref<64x128xf32, #tpu.memory_space<vmem>>, %arg2: memref<32x128xf32, #tpu.memory_space<vmem>>, %arg3: memref<1x128xf32, #tpu.memory_space<vmem>>, %arg4: memref<64x128xf32, #tpu.memory_space<vmem>>, %arg5: memref<32x128xf32, #tpu.memory_space<vmem>>, %arg6: memref<1x128xf32, #tpu.memory_space<vmem>>, %arg7: memref<8x2x64xf32, #tpu.memory_space<vmem>>, %arg8: memref<16x128xf32, #tpu.memory_space<vmem>>, %arg9: memref<16x128xf32, #tpu.memory_space<vmem>>) attributes {dimension_semantics = [], scalar_prefetch = 0 : i64, scratch_operands = 2 : i64, tpu.core_type = #tpu.core_type<tc>} {
    %c0 = arith.constant 0 : index
    %c0_0 = arith.constant 0 : index
    %0 = vector.load %arg0[%c0, %c0_0] : memref<16x64xf32, #tpu.memory_space<vmem>>, vector<16x64xf32>
    %c0_1 = arith.constant 0 : index
    %c0_2 = arith.constant 0 : index
    %1 = vector.load %arg1[%c0_1, %c0_2] : memref<64x128xf32, #tpu.memory_space<vmem>>, vector<64x128xf32>
    %cst = arith.constant dense<0.000000e+00> : vector<16x128xf32>
    %2 = tpu.matmul %0, %1, %cst {dimension_numbers = #tpu.dot_dimension_numbers<[1], [0], [0], [1], [0, 0, 1, 1], [], []>} : vector<16x64xf32>, vector<64x128xf32>, vector<16x128xf32> -> vector<16x128xf32>
    %c0_3 = arith.constant 0 : index
    %c0_4 = arith.constant 0 : index
    %3 = vector.load %arg3[%c0_3, %c0_4] : memref<1x128xf32, #tpu.memory_space<vmem>>, vector<1x128xf32>
    %4 = vector.broadcast %3 : vector<1x128xf32> to vector<16x128xf32>
    %5 = arith.addf %2, %4 : vector<16x128xf32>
    %c0_5 = arith.constant 0 : index
    %c0_6 = arith.constant 0 : index
    %6 = vector.load %arg8[%c0_5, %c0_6] : memref<16x128xf32, #tpu.memory_space<vmem>>, vector<16x128xf32>
    tpu.vector_store %arg8[%c0_5, %c0_6], %5 {strides = array<i32>} : memref<16x128xf32, #tpu.memory_space<vmem>>, vector<16x128xf32>,
    %c0_7 = arith.constant 0 : index
    %c0_8 = arith.constant 0 : index
    %7 = vector.load %arg4[%c0_7, %c0_8] : memref<64x128xf32, #tpu.memory_space<vmem>>, vector<64x128xf32>
    %cst_9 = arith.constant dense<0.000000e+00> : vector<16x128xf32>
    %8 = tpu.matmul %0, %7, %cst_9 {dimension_numbers = #tpu.dot_dimension_numbers<[1], [0], [0], [1], [0, 0, 1, 1], [], []>} : vector<16x64xf32>, vector<64x128xf32>, vector<16x128xf32> -> vector<16x128xf32>
    %c0_10 = arith.constant 0 : index
    %c0_11 = arith.constant 0 : index
    %9 = vector.load %arg6[%c0_10, %c0_11] : memref<1x128xf32, #tpu.memory_space<vmem>>, vector<1x128xf32>
    %10 = vector.broadcast %9 : vector<1x128xf32> to vector<16x128xf32>
    %11 = arith.addf %8, %10 : vector<16x128xf32>
    %c0_12 = arith.constant 0 : index
    %c0_13 = arith.constant 0 : index
    %12 = vector.load %arg9[%c0_12, %c0_13] : memref<16x128xf32, #tpu.memory_space<vmem>>, vector<16x128xf32>
    tpu.vector_store %arg9[%c0_12, %c0_13], %11 {strides = array<i32>} : memref<16x128xf32, #tpu.memory_space<vmem>>, vector<16x128xf32>,
    %c0_14 = arith.constant 0 : index
    %c0_15 = arith.constant 0 : index
    %13 = vector.load %arg2[%c0_14, %c0_15] : memref<32x128xf32, #tpu.memory_space<vmem>>, vector<32x128xf32>
    %c0_16 = arith.constant 0 : index
    %c0_17 = arith.constant 0 : index
    %14 = vector.load %arg5[%c0_16, %c0_17] : memref<32x128xf32, #tpu.memory_space<vmem>>, vector<32x128xf32>
    %cst_18 = arith.constant 0.000000e+00 : f32
    %15 = vector.broadcast %cst_18 : f32 to vector<2x32xf32>
    %c0_i32 = arith.constant 0 : i32
    %c7_i32 = arith.constant 7 : i32
    %16 = arith.subi %c7_i32, %c0_i32 : i32
    %c2_i32 = arith.constant 2 : i32
    %17 = arith.muli %c0_i32, %c2_i32 : i32
    %18 = arith.index_cast %17 : i32 to index
    %c0_19 = arith.constant 0 : index
    %19 = vector.load %arg8[%18, %c0_19] : memref<16x128xf32, #tpu.memory_space<vmem>>, vector<2x128xf32>
    %cst_20 = arith.constant dense<0.000000e+00> : vector<2x128xf32>
    %20 = tpu.matmul %15, %13, %cst_20 {dimension_numbers = #tpu.dot_dimension_numbers<[1], [0], [0], [1], [0, 0, 1, 1], [], []>} : vector<2x32xf32>, vector<32x128xf32>, vector<2x128xf32> -> vector<2x128xf32>
    %21 = arith.addf %19, %20 : vector<2x128xf32>
    %c2_i32_21 = arith.constant 2 : i32
    %22 = arith.muli %16, %c2_i32_21 : i32
    %23 = arith.index_cast %22 : i32 to index
    %c0_22 = arith.constant 0 : index
    %24 = vector.load %arg9[%23, %c0_22] : memref<16x128xf32, #tpu.memory_space<vmem>>, vector<2x128xf32>
    %cst_23 = arith.constant dense<0.000000e+00> : vector<2x128xf32>
    %25 = tpu.matmul %15, %14, %cst_23 {dimension_numbers = #tpu.dot_dimension_numbers<[1], [0], [0], [1], [0, 0, 1, 1], [], []>} : vector<2x32xf32>, vector<32x128xf32>, vector<2x128xf32> -> vector<2x128xf32>
    %26 = arith.addf %24, %25 : vector<2x128xf32>
    %27 = vector.extract_strided_slice %21 {offsets = [0, 0], sizes = [2, 32], strides = [1, 1]} : vector<2x128xf32> to vector<2x32xf32>
    %28 = arith.negf %27 : vector<2x32xf32>
    %29 = math.exp %28 : vector<2x32xf32>
    %cst_24 = arith.constant 1.000000e+00 : f32
    %30 = vector.broadcast %cst_24 : f32 to vector<2x32xf32>
    %31 = arith.addf %30, %29 : vector<2x32xf32>
    %32 = arith.divf %30, %31 : vector<2x32xf32>
    %33 = vector.extract_strided_slice %21 {offsets = [0, 32], sizes = [2, 32], strides = [1, 1]} : vector<2x128xf32> to vector<2x32xf32>
    %34 = arith.negf %33 : vector<2x32xf32>
    %35 = math.exp %34 : vector<2x32xf32>
    %cst_25 = arith.constant 1.000000e+00 : f32
    %36 = vector.broadcast %cst_25 : f32 to vector<2x32xf32>
    %37 = arith.addf %36, %35 : vector<2x32xf32>
    %38 = arith.divf %36, %37 : vector<2x32xf32>
    %39 = vector.extract_strided_slice %21 {offsets = [0, 64], sizes = [2, 32], strides = [1, 1]} : vector<2x128xf32> to vector<2x32xf32>
    %40 = math.tanh %39 : vector<2x32xf32>
    %41 = vector.extract_strided_slice %21 {offsets = [0, 96], sizes = [2, 32], strides = [1, 1]} : vector<2x128xf32> to vector<2x32xf32>
    %42 = arith.negf %41 : vector<2x32xf32>
    %43 = math.exp %42 : vector<2x32xf32>
    %cst_26 = arith.constant 1.000000e+00 : f32
    %44 = vector.broadcast %cst_26 : f32 to vector<2x32xf32>
    %45 = arith.addf %44, %43 : vector<2x32xf32>
    %46 = arith.divf %44, %45 : vector<2x32xf32>
    %47 = arith.mulf %38, %15 : vector<2x32xf32>
    %48 = arith.mulf %32, %40 : vector<2x32xf32>
    %49 = arith.addf %47, %48 : vector<2x32xf32>
    %50 = math.tanh %49 : vector<2x32xf32>
    %51 = arith.mulf %46, %50 : vector<2x32xf32>
    %52 = vector.extract_strided_slice %26 {offsets = [0, 0], sizes = [2, 32], strides = [1, 1]} : vector<2x128xf32> to vector<2x32xf32>
    %53 = arith.negf %52 : vector<2x32xf32>
    %54 = math.exp %53 : vector<2x32xf32>
    %cst_27 = arith.constant 1.000000e+00 : f32
    %55 = vector.broadcast %cst_27 : f32 to vector<2x32xf32>
    %56 = arith.addf %55, %54 : vector<2x32xf32>
    %57 = arith.divf %55, %56 : vector<2x32xf32>
    %58 = vector.extract_strided_slice %26 {offsets = [0, 32], sizes = [2, 32], strides = [1, 1]} : vector<2x128xf32> to vector<2x32xf32>
    %59 = arith.negf %58 : vector<2x32xf32>
    %60 = math.exp %59 : vector<2x32xf32>
    %cst_28 = arith.constant 1.000000e+00 : f32
    %61 = vector.broadcast %cst_28 : f32 to vector<2x32xf32>
    %62 = arith.addf %61, %60 : vector<2x32xf32>
    %63 = arith.divf %61, %62 : vector<2x32xf32>
    %64 = vector.extract_strided_slice %26 {offsets = [0, 64], sizes = [2, 32], strides = [1, 1]} : vector<2x128xf32> to vector<2x32xf32>
    %65 = math.tanh %64 : vector<2x32xf32>
    %66 = vector.extract_strided_slice %26 {offsets = [0, 96], sizes = [2, 32], strides = [1, 1]} : vector<2x128xf32> to vector<2x32xf32>
    %67 = arith.negf %66 : vector<2x32xf32>
    %68 = math.exp %67 : vector<2x32xf32>
    %cst_29 = arith.constant 1.000000e+00 : f32
    %69 = vector.broadcast %cst_29 : f32 to vector<2x32xf32>
    %70 = arith.addf %69, %68 : vector<2x32xf32>
    %71 = arith.divf %69, %70 : vector<2x32xf32>
    %72 = arith.mulf %63, %15 : vector<2x32xf32>
    %73 = arith.mulf %57, %65 : vector<2x32xf32>
    %74 = arith.addf %72, %73 : vector<2x32xf32>
    %75 = math.tanh %74 : vector<2x32xf32>
    %76 = arith.mulf %71, %75 : vector<2x32xf32>
    %77 = arith.index_cast %c0_i32 : i32 to index
    %c0_30 = arith.constant 0 : index
    %c0_31 = arith.constant 0 : index
    %78 = vector.load %arg7[%77, %c0_30, %c0_31] : memref<8x2x64xf32, #tpu.memory_space<vmem>>, vector<1x2x32xf32>
    %79 = vector.shape_cast %78 : vector<1x2x32xf32> to vector<2x32xf32>
    %80 = vector.shape_cast %51 : vector<2x32xf32> to vector<1x2x32xf32>
    tpu.vector_store %arg7[%77, %c0_30, %c0_31], %80 {strides = array<i32>} : memref<8x2x64xf32, #tpu.memory_space<vmem>>, vector<1x2x32xf32>,
    %81 = arith.index_cast %16 : i32 to index
    %c0_32 = arith.constant 0 : index
    %c32 = arith.constant 32 : index
    %82 = vector.load %arg7[%81, %c0_32, %c32] : memref<8x2x64xf32, #tpu.memory_space<vmem>>, vector<1x2x32xf32>
    %83 = vector.shape_cast %82 : vector<1x2x32xf32> to vector<2x32xf32>
    %84 = vector.shape_cast %76 : vector<2x32xf32> to vector<1x2x32xf32>
    tpu.vector_store %arg7[%81, %c0_32, %c32], %84 {strides = array<i32>} : memref<8x2x64xf32, #tpu.memory_space<vmem>>, vector<1x2x32xf32>,
    %c1_i32 = arith.constant 1 : i32
    %c7_i32_33 = arith.constant 7 : i32
    %85 = arith.subi %c7_i32_33, %c1_i32 : i32
    %c2_i32_34 = arith.constant 2 : i32
    %86 = arith.muli %c1_i32, %c2_i32_34 : i32
    %87 = arith.index_cast %86 : i32 to index
    %c0_35 = arith.constant 0 : index
    %88 = vector.load %arg8[%87, %c0_35] : memref<16x128xf32, #tpu.memory_space<vmem>>, vector<2x128xf32>
    %cst_36 = arith.constant dense<0.000000e+00> : vector<2x128xf32>
    %89 = tpu.matmul %51, %13, %cst_36 {dimension_numbers = #tpu.dot_dimension_numbers<[1], [0], [0], [1], [0, 0, 1, 1], [], []>} : vector<2x32xf32>, vector<32x128xf32>, vector<2x128xf32> -> vector<2x128xf32>
    %90 = arith.addf %88, %89 : vector<2x128xf32>
    %c2_i32_37 = arith.constant 2 : i32
    %91 = arith.muli %85, %c2_i32_37 : i32
    %92 = arith.index_cast %91 : i32 to index
    %c0_38 = arith.constant 0 : index
    %93 = vector.load %arg9[%92, %c0_38] : memref<16x128xf32, #tpu.memory_space<vmem>>, vector<2x128xf32>
    %cst_39 = arith.constant dense<0.000000e+00> : vector<2x128xf32>
    %94 = tpu.matmul %76, %14, %cst_39 {dimension_numbers = #tpu.dot_dimension_numbers<[1], [0], [0], [1], [0, 0, 1, 1], [], []>} : vector<2x32xf32>, vector<32x128xf32>, vector<2x128xf32> -> vector<2x128xf32>
    %95 = arith.addf %93, %94 : vector<2x128xf32>
    %96 = vector.extract_strided_slice %90 {offsets = [0, 0], sizes = [2, 32], strides = [1, 1]} : vector<2x128xf32> to vector<2x32xf32>
    %97 = arith.negf %96 : vector<2x32xf32>
    %98 = math.exp %97 : vector<2x32xf32>
    %cst_40 = arith.constant 1.000000e+00 : f32
    %99 = vector.broadcast %cst_40 : f32 to vector<2x32xf32>
    %100 = arith.addf %99, %98 : vector<2x32xf32>
    %101 = arith.divf %99, %100 : vector<2x32xf32>
    %102 = vector.extract_strided_slice %90 {offsets = [0, 32], sizes = [2, 32], strides = [1, 1]} : vector<2x128xf32> to vector<2x32xf32>
    %103 = arith.negf %102 : vector<2x32xf32>
    %104 = math.exp %103 : vector<2x32xf32>
    %cst_41 = arith.constant 1.000000e+00 : f32
    %105 = vector.broadcast %cst_41 : f32 to vector<2x32xf32>
    %106 = arith.addf %105, %104 : vector<2x32xf32>
    %107 = arith.divf %105, %106 : vector<2x32xf32>
    %108 = vector.extract_strided_slice %90 {offsets = [0, 64], sizes = [2, 32], strides = [1, 1]} : vector<2x128xf32> to vector<2x32xf32>
    %109 = math.tanh %108 : vector<2x32xf32>
    %110 = vector.extract_strided_slice %90 {offsets = [0, 96], sizes = [2, 32], strides = [1, 1]} : vector<2x128xf32> to vector<2x32xf32>
    %111 = arith.negf %110 : vector<2x32xf32>
    %112 = math.exp %111 : vector<2x32xf32>
    %cst_42 = arith.constant 1.000000e+00 : f32
    %113 = vector.broadcast %cst_42 : f32 to vector<2x32xf32>
    %114 = arith.addf %113, %112 : vector<2x32xf32>
    %115 = arith.divf %113, %114 : vector<2x32xf32>
    %116 = arith.mulf %107, %49 : vector<2x32xf32>
    %117 = arith.mulf %101, %109 : vector<2x32xf32>
    %118 = arith.addf %116, %117 : vector<2x32xf32>
    %119 = math.tanh %118 : vector<2x32xf32>
    %120 = arith.mulf %115, %119 : vector<2x32xf32>
    %121 = vector.extract_strided_slice %95 {offsets = [0, 0], sizes = [2, 32], strides = [1, 1]} : vector<2x128xf32> to vector<2x32xf32>
    %122 = arith.negf %121 : vector<2x32xf32>
    %123 = math.exp %122 : vector<2x32xf32>
    %cst_43 = arith.constant 1.000000e+00 : f32
    %124 = vector.broadcast %cst_43 : f32 to vector<2x32xf32>
    %125 = arith.addf %124, %123 : vector<2x32xf32>
    %126 = arith.divf %124, %125 : vector<2x32xf32>
    %127 = vector.extract_strided_slice %95 {offsets = [0, 32], sizes = [2, 32], strides = [1, 1]} : vector<2x128xf32> to vector<2x32xf32>
    %128 = arith.negf %127 : vector<2x32xf32>
    %129 = math.exp %128 : vector<2x32xf32>
    %cst_44 = arith.constant 1.000000e+00 : f32
    %130 = vector.broadcast %cst_44 : f32 to vector<2x32xf32>
    %131 = arith.addf %130, %129 : vector<2x32xf32>
    %132 = arith.divf %130, %131 : vector<2x32xf32>
    %133 = vector.extract_strided_slice %95 {offsets = [0, 64], sizes = [2, 32], strides = [1, 1]} : vector<2x128xf32> to vector<2x32xf32>
    %134 = math.tanh %133 : vector<2x32xf32>
    %135 = vector.extract_strided_slice %95 {offsets = [0, 96], sizes = [2, 32], strides = [1, 1]} : vector<2x128xf32> to vector<2x32xf32>
    %136 = arith.negf %135 : vector<2x32xf32>
    %137 = math.exp %136 : vector<2x32xf32>
    %cst_45 = arith.constant 1.000000e+00 : f32
    %138 = vector.broadcast %cst_45 : f32 to vector<2x32xf32>
    %139 = arith.addf %138, %137 : vector<2x32xf32>
    %140 = arith.divf %138, %139 : vector<2x32xf32>
    %141 = arith.mulf %132, %74 : vector<2x32xf32>
    %142 = arith.mulf %126, %134 : vector<2x32xf32>
    %143 = arith.addf %141, %142 : vector<2x32xf32>
    %144 = math.tanh %143 : vector<2x32xf32>
    %145 = arith.mulf %140, %144 : vector<2x32xf32>
    %146 = arith.index_cast %c1_i32 : i32 to index
    %c0_46 = arith.constant 0 : index
    %c0_47 = arith.constant 0 : index
    %147 = vector.load %arg7[%146, %c0_46, %c0_47] : memref<8x2x64xf32, #tpu.memory_space<vmem>>, vector<1x2x32xf32>
    %148 = vector.shape_cast %147 : vector<1x2x32xf32> to vector<2x32xf32>
    %149 = vector.shape_cast %120 : vector<2x32xf32> to vector<1x2x32xf32>
    tpu.vector_store %arg7[%146, %c0_46, %c0_47], %149 {strides = array<i32>} : memref<8x2x64xf32, #tpu.memory_space<vmem>>, vector<1x2x32xf32>,
    %150 = arith.index_cast %85 : i32 to index
    %c0_48 = arith.constant 0 : index
    %c32_49 = arith.constant 32 : index
    %151 = vector.load %arg7[%150, %c0_48, %c32_49] : memref<8x2x64xf32, #tpu.memory_space<vmem>>, vector<1x2x32xf32>
    %152 = vector.shape_cast %151 : vector<1x2x32xf32> to vector<2x32xf32>
    %153 = vector.shape_cast %145 : vector<2x32xf32> to vector<1x2x32xf32>
    tpu.vector_store %arg7[%150, %c0_48, %c32_49], %153 {strides = array<i32>} : memref<8x2x64xf32, #tpu.memory_space<vmem>>, vector<1x2x32xf32>,
    %c2_i32_50 = arith.constant 2 : i32
    %c7_i32_51 = arith.constant 7 : i32
    %154 = arith.subi %c7_i32_51, %c2_i32_50 : i32
    %c2_i32_52 = arith.constant 2 : i32
    %155 = arith.muli %c2_i32_50, %c2_i32_52 : i32
    %156 = arith.index_cast %155 : i32 to index
    %c0_53 = arith.constant 0 : index
    %157 = vector.load %arg8[%156, %c0_53] : memref<16x128xf32, #tpu.memory_space<vmem>>, vector<2x128xf32>
    %cst_54 = arith.constant dense<0.000000e+00> : vector<2x128xf32>
    %158 = tpu.matmul %120, %13, %cst_54 {dimension_numbers = #tpu.dot_dimension_numbers<[1], [0], [0], [1], [0, 0, 1, 1], [], []>} : vector<2x32xf32>, vector<32x128xf32>, vector<2x128xf32> -> vector<2x128xf32>
    %159 = arith.addf %157, %158 : vector<2x128xf32>
    %c2_i32_55 = arith.constant 2 : i32
    %160 = arith.muli %154, %c2_i32_55 : i32
    %161 = arith.index_cast %160 : i32 to index
    %c0_56 = arith.constant 0 : index
    %162 = vector.load %arg9[%161, %c0_56] : memref<16x128xf32, #tpu.memory_space<vmem>>, vector<2x128xf32>
    %cst_57 = arith.constant dense<0.000000e+00> : vector<2x128xf32>
    %163 = tpu.matmul %145, %14, %cst_57 {dimension_numbers = #tpu.dot_dimension_numbers<[1], [0], [0], [1], [0, 0, 1, 1], [], []>} : vector<2x32xf32>, vector<32x128xf32>, vector<2x128xf32> -> vector<2x128xf32>
    %164 = arith.addf %162, %163 : vector<2x128xf32>
    %165 = vector.extract_strided_slice %159 {offsets = [0, 0], sizes = [2, 32], strides = [1, 1]} : vector<2x128xf32> to vector<2x32xf32>
    %166 = arith.negf %165 : vector<2x32xf32>
    %167 = math.exp %166 : vector<2x32xf32>
    %cst_58 = arith.constant 1.000000e+00 : f32
    %168 = vector.broadcast %cst_58 : f32 to vector<2x32xf32>
    %169 = arith.addf %168, %167 : vector<2x32xf32>
    %170 = arith.divf %168, %169 : vector<2x32xf32>
    %171 = vector.extract_strided_slice %159 {offsets = [0, 32], sizes = [2, 32], strides = [1, 1]} : vector<2x128xf32> to vector<2x32xf32>
    %172 = arith.negf %171 : vector<2x32xf32>
    %173 = math.exp %172 : vector<2x32xf32>
    %cst_59 = arith.constant 1.000000e+00 : f32
    %174 = vector.broadcast %cst_59 : f32 to vector<2x32xf32>
    %175 = arith.addf %174, %173 : vector<2x32xf32>
    %176 = arith.divf %174, %175 : vector<2x32xf32>
    %177 = vector.extract_strided_slice %159 {offsets = [0, 64], sizes = [2, 32], strides = [1, 1]} : vector<2x128xf32> to vector<2x32xf32>
    %178 = math.tanh %177 : vector<2x32xf32>
    %179 = vector.extract_strided_slice %159 {offsets = [0, 96], sizes = [2, 32], strides = [1, 1]} : vector<2x128xf32> to vector<2x32xf32>
    %180 = arith.negf %179 : vector<2x32xf32>
    %181 = math.exp %180 : vector<2x32xf32>
    %cst_60 = arith.constant 1.000000e+00 : f32
    %182 = vector.broadcast %cst_60 : f32 to vector<2x32xf32>
    %183 = arith.addf %182, %181 : vector<2x32xf32>
    %184 = arith.divf %182, %183 : vector<2x32xf32>
    %185 = arith.mulf %176, %118 : vector<2x32xf32>
    %186 = arith.mulf %170, %178 : vector<2x32xf32>
    %187 = arith.addf %185, %186 : vector<2x32xf32>
    %188 = math.tanh %187 : vector<2x32xf32>
    %189 = arith.mulf %184, %188 : vector<2x32xf32>
    %190 = vector.extract_strided_slice %164 {offsets = [0, 0], sizes = [2, 32], strides = [1, 1]} : vector<2x128xf32> to vector<2x32xf32>
    %191 = arith.negf %190 : vector<2x32xf32>
    %192 = math.exp %191 : vector<2x32xf32>
    %cst_61 = arith.constant 1.000000e+00 : f32
    %193 = vector.broadcast %cst_61 : f32 to vector<2x32xf32>
    %194 = arith.addf %193, %192 : vector<2x32xf32>
    %195 = arith.divf %193, %194 : vector<2x32xf32>
    %196 = vector.extract_strided_slice %164 {offsets = [0, 32], sizes = [2, 32], strides = [1, 1]} : vector<2x128xf32> to vector<2x32xf32>
    %197 = arith.negf %196 : vector<2x32xf32>
    %198 = math.exp %197 : vector<2x32xf32>
    %cst_62 = arith.constant 1.000000e+00 : f32
    %199 = vector.broadcast %cst_62 : f32 to vector<2x32xf32>
    %200 = arith.addf %199, %198 : vector<2x32xf32>
    %201 = arith.divf %199, %200 : vector<2x32xf32>
    %202 = vector.extract_strided_slice %164 {offsets = [0, 64], sizes = [2, 32], strides = [1, 1]} : vector<2x128xf32> to vector<2x32xf32>
    %203 = math.tanh %202 : vector<2x32xf32>
    %204 = vector.extract_strided_slice %164 {offsets = [0, 96], sizes = [2, 32], strides = [1, 1]} : vector<2x128xf32> to vector<2x32xf32>
    %205 = arith.negf %204 : vector<2x32xf32>
    %206 = math.exp %205 : vector<2x32xf32>
    %cst_63 = arith.constant 1.000000e+00 : f32
    %207 = vector.broadcast %cst_63 : f32 to vector<2x32xf32>
    %208 = arith.addf %207, %206 : vector<2x32xf32>
    %209 = arith.divf %207, %208 : vector<2x32xf32>
    %210 = arith.mulf %201, %143 : vector<2x32xf32>
    %211 = arith.mulf %195, %203 : vector<2x32xf32>
    %212 = arith.addf %210, %211 : vector<2x32xf32>
    %213 = math.tanh %212 : vector<2x32xf32>
    %214 = arith.mulf %209, %213 : vector<2x32xf32>
    %215 = arith.index_cast %c2_i32_50 : i32 to index
    %c0_64 = arith.constant 0 : index
    %c0_65 = arith.constant 0 : index
    %216 = vector.load %arg7[%215, %c0_64, %c0_65] : memref<8x2x64xf32, #tpu.memory_space<vmem>>, vector<1x2x32xf32>
    %217 = vector.shape_cast %216 : vector<1x2x32xf32> to vector<2x32xf32>
    %218 = vector.shape_cast %189 : vector<2x32xf32> to vector<1x2x32xf32>
    tpu.vector_store %arg7[%215, %c0_64, %c0_65], %218 {strides = array<i32>} : memref<8x2x64xf32, #tpu.memory_space<vmem>>, vector<1x2x32xf32>,
    %219 = arith.index_cast %154 : i32 to index
    %c0_66 = arith.constant 0 : index
    %c32_67 = arith.constant 32 : index
    %220 = vector.load %arg7[%219, %c0_66, %c32_67] : memref<8x2x64xf32, #tpu.memory_space<vmem>>, vector<1x2x32xf32>
    %221 = vector.shape_cast %220 : vector<1x2x32xf32> to vector<2x32xf32>
    %222 = vector.shape_cast %214 : vector<2x32xf32> to vector<1x2x32xf32>
    tpu.vector_store %arg7[%219, %c0_66, %c32_67], %222 {strides = array<i32>} : memref<8x2x64xf32, #tpu.memory_space<vmem>>, vector<1x2x32xf32>,
    %c3_i32 = arith.constant 3 : i32
    %c7_i32_68 = arith.constant 7 : i32
    %223 = arith.subi %c7_i32_68, %c3_i32 : i32
    %c2_i32_69 = arith.constant 2 : i32
    %224 = arith.muli %c3_i32, %c2_i32_69 : i32
    %225 = arith.index_cast %224 : i32 to index
    %c0_70 = arith.constant 0 : index
    %226 = vector.load %arg8[%225, %c0_70] : memref<16x128xf32, #tpu.memory_space<vmem>>, vector<2x128xf32>
    %cst_71 = arith.constant dense<0.000000e+00> : vector<2x128xf32>
    %227 = tpu.matmul %189, %13, %cst_71 {dimension_numbers = #tpu.dot_dimension_numbers<[1], [0], [0], [1], [0, 0, 1, 1], [], []>} : vector<2x32xf32>, vector<32x128xf32>, vector<2x128xf32> -> vector<2x128xf32>
    %228 = arith.addf %226, %227 : vector<2x128xf32>
    %c2_i32_72 = arith.constant 2 : i32
    %229 = arith.muli %223, %c2_i32_72 : i32
    %230 = arith.index_cast %229 : i32 to index
    %c0_73 = arith.constant 0 : index
    %231 = vector.load %arg9[%230, %c0_73] : memref<16x128xf32, #tpu.memory_space<vmem>>, vector<2x128xf32>
    %cst_74 = arith.constant dense<0.000000e+00> : vector<2x128xf32>
    %232 = tpu.matmul %214, %14, %cst_74 {dimension_numbers = #tpu.dot_dimension_numbers<[1], [0], [0], [1], [0, 0, 1, 1], [], []>} : vector<2x32xf32>, vector<32x128xf32>, vector<2x128xf32> -> vector<2x128xf32>
    %233 = arith.addf %231, %232 : vector<2x128xf32>
    %234 = vector.extract_strided_slice %228 {offsets = [0, 0], sizes = [2, 32], strides = [1, 1]} : vector<2x128xf32> to vector<2x32xf32>
    %235 = arith.negf %234 : vector<2x32xf32>
    %236 = math.exp %235 : vector<2x32xf32>
    %cst_75 = arith.constant 1.000000e+00 : f32
    %237 = vector.broadcast %cst_75 : f32 to vector<2x32xf32>
    %238 = arith.addf %237, %236 : vector<2x32xf32>
    %239 = arith.divf %237, %238 : vector<2x32xf32>
    %240 = vector.extract_strided_slice %228 {offsets = [0, 32], sizes = [2, 32], strides = [1, 1]} : vector<2x128xf32> to vector<2x32xf32>
    %241 = arith.negf %240 : vector<2x32xf32>
    %242 = math.exp %241 : vector<2x32xf32>
    %cst_76 = arith.constant 1.000000e+00 : f32
    %243 = vector.broadcast %cst_76 : f32 to vector<2x32xf32>
    %244 = arith.addf %243, %242 : vector<2x32xf32>
    %245 = arith.divf %243, %244 : vector<2x32xf32>
    %246 = vector.extract_strided_slice %228 {offsets = [0, 64], sizes = [2, 32], strides = [1, 1]} : vector<2x128xf32> to vector<2x32xf32>
    %247 = math.tanh %246 : vector<2x32xf32>
    %248 = vector.extract_strided_slice %228 {offsets = [0, 96], sizes = [2, 32], strides = [1, 1]} : vector<2x128xf32> to vector<2x32xf32>
    %249 = arith.negf %248 : vector<2x32xf32>
    %250 = math.exp %249 : vector<2x32xf32>
    %cst_77 = arith.constant 1.000000e+00 : f32
    %251 = vector.broadcast %cst_77 : f32 to vector<2x32xf32>
    %252 = arith.addf %251, %250 : vector<2x32xf32>
    %253 = arith.divf %251, %252 : vector<2x32xf32>
    %254 = arith.mulf %245, %187 : vector<2x32xf32>
    %255 = arith.mulf %239, %247 : vector<2x32xf32>
    %256 = arith.addf %254, %255 : vector<2x32xf32>
    %257 = math.tanh %256 : vector<2x32xf32>
    %258 = arith.mulf %253, %257 : vector<2x32xf32>
    %259 = vector.extract_strided_slice %233 {offsets = [0, 0], sizes = [2, 32], strides = [1, 1]} : vector<2x128xf32> to vector<2x32xf32>
    %260 = arith.negf %259 : vector<2x32xf32>
    %261 = math.exp %260 : vector<2x32xf32>
    %cst_78 = arith.constant 1.000000e+00 : f32
    %262 = vector.broadcast %cst_78 : f32 to vector<2x32xf32>
    %263 = arith.addf %262, %261 : vector<2x32xf32>
    %264 = arith.divf %262, %263 : vector<2x32xf32>
    %265 = vector.extract_strided_slice %233 {offsets = [0, 32], sizes = [2, 32], strides = [1, 1]} : vector<2x128xf32> to vector<2x32xf32>
    %266 = arith.negf %265 : vector<2x32xf32>
    %267 = math.exp %266 : vector<2x32xf32>
    %cst_79 = arith.constant 1.000000e+00 : f32
    %268 = vector.broadcast %cst_79 : f32 to vector<2x32xf32>
    %269 = arith.addf %268, %267 : vector<2x32xf32>
    %270 = arith.divf %268, %269 : vector<2x32xf32>
    %271 = vector.extract_strided_slice %233 {offsets = [0, 64], sizes = [2, 32], strides = [1, 1]} : vector<2x128xf32> to vector<2x32xf32>
    %272 = math.tanh %271 : vector<2x32xf32>
    %273 = vector.extract_strided_slice %233 {offsets = [0, 96], sizes = [2, 32], strides = [1, 1]} : vector<2x128xf32> to vector<2x32xf32>
    %274 = arith.negf %273 : vector<2x32xf32>
    %275 = math.exp %274 : vector<2x32xf32>
    %cst_80 = arith.constant 1.000000e+00 : f32
    %276 = vector.broadcast %cst_80 : f32 to vector<2x32xf32>
    %277 = arith.addf %276, %275 : vector<2x32xf32>
    %278 = arith.divf %276, %277 : vector<2x32xf32>
    %279 = arith.mulf %270, %212 : vector<2x32xf32>
    %280 = arith.mulf %264, %272 : vector<2x32xf32>
    %281 = arith.addf %279, %280 : vector<2x32xf32>
    %282 = math.tanh %281 : vector<2x32xf32>
    %283 = arith.mulf %278, %282 : vector<2x32xf32>
    %284 = arith.index_cast %c3_i32 : i32 to index
    %c0_81 = arith.constant 0 : index
    %c0_82 = arith.constant 0 : index
    %285 = vector.load %arg7[%284, %c0_81, %c0_82] : memref<8x2x64xf32, #tpu.memory_space<vmem>>, vector<1x2x32xf32>
    %286 = vector.shape_cast %285 : vector<1x2x32xf32> to vector<2x32xf32>
    %287 = vector.shape_cast %258 : vector<2x32xf32> to vector<1x2x32xf32>
    tpu.vector_store %arg7[%284, %c0_81, %c0_82], %287 {strides = array<i32>} : memref<8x2x64xf32, #tpu.memory_space<vmem>>, vector<1x2x32xf32>,
    %288 = arith.index_cast %223 : i32 to index
    %c0_83 = arith.constant 0 : index
    %c32_84 = arith.constant 32 : index
    %289 = vector.load %arg7[%288, %c0_83, %c32_84] : memref<8x2x64xf32, #tpu.memory_space<vmem>>, vector<1x2x32xf32>
    %290 = vector.shape_cast %289 : vector<1x2x32xf32> to vector<2x32xf32>
    %291 = vector.shape_cast %283 : vector<2x32xf32> to vector<1x2x32xf32>
    tpu.vector_store %arg7[%288, %c0_83, %c32_84], %291 {strides = array<i32>} : memref<8x2x64xf32, #tpu.memory_space<vmem>>, vector<1x2x32xf32>,
    %c4_i32 = arith.constant 4 : i32
    %c7_i32_85 = arith.constant 7 : i32
    %292 = arith.subi %c7_i32_85, %c4_i32 : i32
    %c2_i32_86 = arith.constant 2 : i32
    %293 = arith.muli %c4_i32, %c2_i32_86 : i32
    %294 = arith.index_cast %293 : i32 to index
    %c0_87 = arith.constant 0 : index
    %295 = vector.load %arg8[%294, %c0_87] : memref<16x128xf32, #tpu.memory_space<vmem>>, vector<2x128xf32>
    %cst_88 = arith.constant dense<0.000000e+00> : vector<2x128xf32>
    %296 = tpu.matmul %258, %13, %cst_88 {dimension_numbers = #tpu.dot_dimension_numbers<[1], [0], [0], [1], [0, 0, 1, 1], [], []>} : vector<2x32xf32>, vector<32x128xf32>, vector<2x128xf32> -> vector<2x128xf32>
    %297 = arith.addf %295, %296 : vector<2x128xf32>
    %c2_i32_89 = arith.constant 2 : i32
    %298 = arith.muli %292, %c2_i32_89 : i32
    %299 = arith.index_cast %298 : i32 to index
    %c0_90 = arith.constant 0 : index
    %300 = vector.load %arg9[%299, %c0_90] : memref<16x128xf32, #tpu.memory_space<vmem>>, vector<2x128xf32>
    %cst_91 = arith.constant dense<0.000000e+00> : vector<2x128xf32>
    %301 = tpu.matmul %283, %14, %cst_91 {dimension_numbers = #tpu.dot_dimension_numbers<[1], [0], [0], [1], [0, 0, 1, 1], [], []>} : vector<2x32xf32>, vector<32x128xf32>, vector<2x128xf32> -> vector<2x128xf32>
    %302 = arith.addf %300, %301 : vector<2x128xf32>
    %303 = vector.extract_strided_slice %297 {offsets = [0, 0], sizes = [2, 32], strides = [1, 1]} : vector<2x128xf32> to vector<2x32xf32>
    %304 = arith.negf %303 : vector<2x32xf32>
    %305 = math.exp %304 : vector<2x32xf32>
    %cst_92 = arith.constant 1.000000e+00 : f32
    %306 = vector.broadcast %cst_92 : f32 to vector<2x32xf32>
    %307 = arith.addf %306, %305 : vector<2x32xf32>
    %308 = arith.divf %306, %307 : vector<2x32xf32>
    %309 = vector.extract_strided_slice %297 {offsets = [0, 32], sizes = [2, 32], strides = [1, 1]} : vector<2x128xf32> to vector<2x32xf32>
    %310 = arith.negf %309 : vector<2x32xf32>
    %311 = math.exp %310 : vector<2x32xf32>
    %cst_93 = arith.constant 1.000000e+00 : f32
    %312 = vector.broadcast %cst_93 : f32 to vector<2x32xf32>
    %313 = arith.addf %312, %311 : vector<2x32xf32>
    %314 = arith.divf %312, %313 : vector<2x32xf32>
    %315 = vector.extract_strided_slice %297 {offsets = [0, 64], sizes = [2, 32], strides = [1, 1]} : vector<2x128xf32> to vector<2x32xf32>
    %316 = math.tanh %315 : vector<2x32xf32>
    %317 = vector.extract_strided_slice %297 {offsets = [0, 96], sizes = [2, 32], strides = [1, 1]} : vector<2x128xf32> to vector<2x32xf32>
    %318 = arith.negf %317 : vector<2x32xf32>
    %319 = math.exp %318 : vector<2x32xf32>
    %cst_94 = arith.constant 1.000000e+00 : f32
    %320 = vector.broadcast %cst_94 : f32 to vector<2x32xf32>
    %321 = arith.addf %320, %319 : vector<2x32xf32>
    %322 = arith.divf %320, %321 : vector<2x32xf32>
    %323 = arith.mulf %314, %256 : vector<2x32xf32>
    %324 = arith.mulf %308, %316 : vector<2x32xf32>
    %325 = arith.addf %323, %324 : vector<2x32xf32>
    %326 = math.tanh %325 : vector<2x32xf32>
    %327 = arith.mulf %322, %326 : vector<2x32xf32>
    %328 = vector.extract_strided_slice %302 {offsets = [0, 0], sizes = [2, 32], strides = [1, 1]} : vector<2x128xf32> to vector<2x32xf32>
    %329 = arith.negf %328 : vector<2x32xf32>
    %330 = math.exp %329 : vector<2x32xf32>
    %cst_95 = arith.constant 1.000000e+00 : f32
    %331 = vector.broadcast %cst_95 : f32 to vector<2x32xf32>
    %332 = arith.addf %331, %330 : vector<2x32xf32>
    %333 = arith.divf %331, %332 : vector<2x32xf32>
    %334 = vector.extract_strided_slice %302 {offsets = [0, 32], sizes = [2, 32], strides = [1, 1]} : vector<2x128xf32> to vector<2x32xf32>
    %335 = arith.negf %334 : vector<2x32xf32>
    %336 = math.exp %335 : vector<2x32xf32>
    %cst_96 = arith.constant 1.000000e+00 : f32
    %337 = vector.broadcast %cst_96 : f32 to vector<2x32xf32>
    %338 = arith.addf %337, %336 : vector<2x32xf32>
    %339 = arith.divf %337, %338 : vector<2x32xf32>
    %340 = vector.extract_strided_slice %302 {offsets = [0, 64], sizes = [2, 32], strides = [1, 1]} : vector<2x128xf32> to vector<2x32xf32>
    %341 = math.tanh %340 : vector<2x32xf32>
    %342 = vector.extract_strided_slice %302 {offsets = [0, 96], sizes = [2, 32], strides = [1, 1]} : vector<2x128xf32> to vector<2x32xf32>
    %343 = arith.negf %342 : vector<2x32xf32>
    %344 = math.exp %343 : vector<2x32xf32>
    %cst_97 = arith.constant 1.000000e+00 : f32
    %345 = vector.broadcast %cst_97 : f32 to vector<2x32xf32>
    %346 = arith.addf %345, %344 : vector<2x32xf32>
    %347 = arith.divf %345, %346 : vector<2x32xf32>
    %348 = arith.mulf %339, %281 : vector<2x32xf32>
    %349 = arith.mulf %333, %341 : vector<2x32xf32>
    %350 = arith.addf %348, %349 : vector<2x32xf32>
    %351 = math.tanh %350 : vector<2x32xf32>
    %352 = arith.mulf %347, %351 : vector<2x32xf32>
    %353 = arith.index_cast %c4_i32 : i32 to index
    %c0_98 = arith.constant 0 : index
    %c0_99 = arith.constant 0 : index
    %354 = vector.load %arg7[%353, %c0_98, %c0_99] : memref<8x2x64xf32, #tpu.memory_space<vmem>>, vector<1x2x32xf32>
    %355 = vector.shape_cast %354 : vector<1x2x32xf32> to vector<2x32xf32>
    %356 = vector.shape_cast %327 : vector<2x32xf32> to vector<1x2x32xf32>
    tpu.vector_store %arg7[%353, %c0_98, %c0_99], %356 {strides = array<i32>} : memref<8x2x64xf32, #tpu.memory_space<vmem>>, vector<1x2x32xf32>,
    %357 = arith.index_cast %292 : i32 to index
    %c0_100 = arith.constant 0 : index
    %c32_101 = arith.constant 32 : index
    %358 = vector.load %arg7[%357, %c0_100, %c32_101] : memref<8x2x64xf32, #tpu.memory_space<vmem>>, vector<1x2x32xf32>
    %359 = vector.shape_cast %358 : vector<1x2x32xf32> to vector<2x32xf32>
    %360 = vector.shape_cast %352 : vector<2x32xf32> to vector<1x2x32xf32>
    tpu.vector_store %arg7[%357, %c0_100, %c32_101], %360 {strides = array<i32>} : memref<8x2x64xf32, #tpu.memory_space<vmem>>, vector<1x2x32xf32>,
    %c5_i32 = arith.constant 5 : i32
    %c7_i32_102 = arith.constant 7 : i32
    %361 = arith.subi %c7_i32_102, %c5_i32 : i32
    %c2_i32_103 = arith.constant 2 : i32
    %362 = arith.muli %c5_i32, %c2_i32_103 : i32
    %363 = arith.index_cast %362 : i32 to index
    %c0_104 = arith.constant 0 : index
    %364 = vector.load %arg8[%363, %c0_104] : memref<16x128xf32, #tpu.memory_space<vmem>>, vector<2x128xf32>
    %cst_105 = arith.constant dense<0.000000e+00> : vector<2x128xf32>
    %365 = tpu.matmul %327, %13, %cst_105 {dimension_numbers = #tpu.dot_dimension_numbers<[1], [0], [0], [1], [0, 0, 1, 1], [], []>} : vector<2x32xf32>, vector<32x128xf32>, vector<2x128xf32> -> vector<2x128xf32>
    %366 = arith.addf %364, %365 : vector<2x128xf32>
    %c2_i32_106 = arith.constant 2 : i32
    %367 = arith.muli %361, %c2_i32_106 : i32
    %368 = arith.index_cast %367 : i32 to index
    %c0_107 = arith.constant 0 : index
    %369 = vector.load %arg9[%368, %c0_107] : memref<16x128xf32, #tpu.memory_space<vmem>>, vector<2x128xf32>
    %cst_108 = arith.constant dense<0.000000e+00> : vector<2x128xf32>
    %370 = tpu.matmul %352, %14, %cst_108 {dimension_numbers = #tpu.dot_dimension_numbers<[1], [0], [0], [1], [0, 0, 1, 1], [], []>} : vector<2x32xf32>, vector<32x128xf32>, vector<2x128xf32> -> vector<2x128xf32>
    %371 = arith.addf %369, %370 : vector<2x128xf32>
    %372 = vector.extract_strided_slice %366 {offsets = [0, 0], sizes = [2, 32], strides = [1, 1]} : vector<2x128xf32> to vector<2x32xf32>
    %373 = arith.negf %372 : vector<2x32xf32>
    %374 = math.exp %373 : vector<2x32xf32>
    %cst_109 = arith.constant 1.000000e+00 : f32
    %375 = vector.broadcast %cst_109 : f32 to vector<2x32xf32>
    %376 = arith.addf %375, %374 : vector<2x32xf32>
    %377 = arith.divf %375, %376 : vector<2x32xf32>
    %378 = vector.extract_strided_slice %366 {offsets = [0, 32], sizes = [2, 32], strides = [1, 1]} : vector<2x128xf32> to vector<2x32xf32>
    %379 = arith.negf %378 : vector<2x32xf32>
    %380 = math.exp %379 : vector<2x32xf32>
    %cst_110 = arith.constant 1.000000e+00 : f32
    %381 = vector.broadcast %cst_110 : f32 to vector<2x32xf32>
    %382 = arith.addf %381, %380 : vector<2x32xf32>
    %383 = arith.divf %381, %382 : vector<2x32xf32>
    %384 = vector.extract_strided_slice %366 {offsets = [0, 64], sizes = [2, 32], strides = [1, 1]} : vector<2x128xf32> to vector<2x32xf32>
    %385 = math.tanh %384 : vector<2x32xf32>
    %386 = vector.extract_strided_slice %366 {offsets = [0, 96], sizes = [2, 32], strides = [1, 1]} : vector<2x128xf32> to vector<2x32xf32>
    %387 = arith.negf %386 : vector<2x32xf32>
    %388 = math.exp %387 : vector<2x32xf32>
    %cst_111 = arith.constant 1.000000e+00 : f32
    %389 = vector.broadcast %cst_111 : f32 to vector<2x32xf32>
    %390 = arith.addf %389, %388 : vector<2x32xf32>
    %391 = arith.divf %389, %390 : vector<2x32xf32>
    %392 = arith.mulf %383, %325 : vector<2x32xf32>
    %393 = arith.mulf %377, %385 : vector<2x32xf32>
    %394 = arith.addf %392, %393 : vector<2x32xf32>
    %395 = math.tanh %394 : vector<2x32xf32>
    %396 = arith.mulf %391, %395 : vector<2x32xf32>
    %397 = vector.extract_strided_slice %371 {offsets = [0, 0], sizes = [2, 32], strides = [1, 1]} : vector<2x128xf32> to vector<2x32xf32>
    %398 = arith.negf %397 : vector<2x32xf32>
    %399 = math.exp %398 : vector<2x32xf32>
    %cst_112 = arith.constant 1.000000e+00 : f32
    %400 = vector.broadcast %cst_112 : f32 to vector<2x32xf32>
    %401 = arith.addf %400, %399 : vector<2x32xf32>
    %402 = arith.divf %400, %401 : vector<2x32xf32>
    %403 = vector.extract_strided_slice %371 {offsets = [0, 32], sizes = [2, 32], strides = [1, 1]} : vector<2x128xf32> to vector<2x32xf32>
    %404 = arith.negf %403 : vector<2x32xf32>
    %405 = math.exp %404 : vector<2x32xf32>
    %cst_113 = arith.constant 1.000000e+00 : f32
    %406 = vector.broadcast %cst_113 : f32 to vector<2x32xf32>
    %407 = arith.addf %406, %405 : vector<2x32xf32>
    %408 = arith.divf %406, %407 : vector<2x32xf32>
    %409 = vector.extract_strided_slice %371 {offsets = [0, 64], sizes = [2, 32], strides = [1, 1]} : vector<2x128xf32> to vector<2x32xf32>
    %410 = math.tanh %409 : vector<2x32xf32>
    %411 = vector.extract_strided_slice %371 {offsets = [0, 96], sizes = [2, 32], strides = [1, 1]} : vector<2x128xf32> to vector<2x32xf32>
    %412 = arith.negf %411 : vector<2x32xf32>
    %413 = math.exp %412 : vector<2x32xf32>
    %cst_114 = arith.constant 1.000000e+00 : f32
    %414 = vector.broadcast %cst_114 : f32 to vector<2x32xf32>
    %415 = arith.addf %414, %413 : vector<2x32xf32>
    %416 = arith.divf %414, %415 : vector<2x32xf32>
    %417 = arith.mulf %408, %350 : vector<2x32xf32>
    %418 = arith.mulf %402, %410 : vector<2x32xf32>
    %419 = arith.addf %417, %418 : vector<2x32xf32>
    %420 = math.tanh %419 : vector<2x32xf32>
    %421 = arith.mulf %416, %420 : vector<2x32xf32>
    %422 = arith.index_cast %c5_i32 : i32 to index
    %c0_115 = arith.constant 0 : index
    %c0_116 = arith.constant 0 : index
    %423 = vector.load %arg7[%422, %c0_115, %c0_116] : memref<8x2x64xf32, #tpu.memory_space<vmem>>, vector<1x2x32xf32>
    %424 = vector.shape_cast %423 : vector<1x2x32xf32> to vector<2x32xf32>
    %425 = vector.shape_cast %396 : vector<2x32xf32> to vector<1x2x32xf32>
    tpu.vector_store %arg7[%422, %c0_115, %c0_116], %425 {strides = array<i32>} : memref<8x2x64xf32, #tpu.memory_space<vmem>>, vector<1x2x32xf32>,
    %426 = arith.index_cast %361 : i32 to index
    %c0_117 = arith.constant 0 : index
    %c32_118 = arith.constant 32 : index
    %427 = vector.load %arg7[%426, %c0_117, %c32_118] : memref<8x2x64xf32, #tpu.memory_space<vmem>>, vector<1x2x32xf32>
    %428 = vector.shape_cast %427 : vector<1x2x32xf32> to vector<2x32xf32>
    %429 = vector.shape_cast %421 : vector<2x32xf32> to vector<1x2x32xf32>
    tpu.vector_store %arg7[%426, %c0_117, %c32_118], %429 {strides = array<i32>} : memref<8x2x64xf32, #tpu.memory_space<vmem>>, vector<1x2x32xf32>,
    %c6_i32 = arith.constant 6 : i32
    %c7_i32_119 = arith.constant 7 : i32
    %430 = arith.subi %c7_i32_119, %c6_i32 : i32
    %c2_i32_120 = arith.constant 2 : i32
    %431 = arith.muli %c6_i32, %c2_i32_120 : i32
    %432 = arith.index_cast %431 : i32 to index
    %c0_121 = arith.constant 0 : index
    %433 = vector.load %arg8[%432, %c0_121] : memref<16x128xf32, #tpu.memory_space<vmem>>, vector<2x128xf32>
    %cst_122 = arith.constant dense<0.000000e+00> : vector<2x128xf32>
    %434 = tpu.matmul %396, %13, %cst_122 {dimension_numbers = #tpu.dot_dimension_numbers<[1], [0], [0], [1], [0, 0, 1, 1], [], []>} : vector<2x32xf32>, vector<32x128xf32>, vector<2x128xf32> -> vector<2x128xf32>
    %435 = arith.addf %433, %434 : vector<2x128xf32>
    %c2_i32_123 = arith.constant 2 : i32
    %436 = arith.muli %430, %c2_i32_123 : i32
    %437 = arith.index_cast %436 : i32 to index
    %c0_124 = arith.constant 0 : index
    %438 = vector.load %arg9[%437, %c0_124] : memref<16x128xf32, #tpu.memory_space<vmem>>, vector<2x128xf32>
    %cst_125 = arith.constant dense<0.000000e+00> : vector<2x128xf32>
    %439 = tpu.matmul %421, %14, %cst_125 {dimension_numbers = #tpu.dot_dimension_numbers<[1], [0], [0], [1], [0, 0, 1, 1], [], []>} : vector<2x32xf32>, vector<32x128xf32>, vector<2x128xf32> -> vector<2x128xf32>
    %440 = arith.addf %438, %439 : vector<2x128xf32>
    %441 = vector.extract_strided_slice %435 {offsets = [0, 0], sizes = [2, 32], strides = [1, 1]} : vector<2x128xf32> to vector<2x32xf32>
    %442 = arith.negf %441 : vector<2x32xf32>
    %443 = math.exp %442 : vector<2x32xf32>
    %cst_126 = arith.constant 1.000000e+00 : f32
    %444 = vector.broadcast %cst_126 : f32 to vector<2x32xf32>
    %445 = arith.addf %444, %443 : vector<2x32xf32>
    %446 = arith.divf %444, %445 : vector<2x32xf32>
    %447 = vector.extract_strided_slice %435 {offsets = [0, 32], sizes = [2, 32], strides = [1, 1]} : vector<2x128xf32> to vector<2x32xf32>
    %448 = arith.negf %447 : vector<2x32xf32>
    %449 = math.exp %448 : vector<2x32xf32>
    %cst_127 = arith.constant 1.000000e+00 : f32
    %450 = vector.broadcast %cst_127 : f32 to vector<2x32xf32>
    %451 = arith.addf %450, %449 : vector<2x32xf32>
    %452 = arith.divf %450, %451 : vector<2x32xf32>
    %453 = vector.extract_strided_slice %435 {offsets = [0, 64], sizes = [2, 32], strides = [1, 1]} : vector<2x128xf32> to vector<2x32xf32>
    %454 = math.tanh %453 : vector<2x32xf32>
    %455 = vector.extract_strided_slice %435 {offsets = [0, 96], sizes = [2, 32], strides = [1, 1]} : vector<2x128xf32> to vector<2x32xf32>
    %456 = arith.negf %455 : vector<2x32xf32>
    %457 = math.exp %456 : vector<2x32xf32>
    %cst_128 = arith.constant 1.000000e+00 : f32
    %458 = vector.broadcast %cst_128 : f32 to vector<2x32xf32>
    %459 = arith.addf %458, %457 : vector<2x32xf32>
    %460 = arith.divf %458, %459 : vector<2x32xf32>
    %461 = arith.mulf %452, %394 : vector<2x32xf32>
    %462 = arith.mulf %446, %454 : vector<2x32xf32>
    %463 = arith.addf %461, %462 : vector<2x32xf32>
    %464 = math.tanh %463 : vector<2x32xf32>
    %465 = arith.mulf %460, %464 : vector<2x32xf32>
    %466 = vector.extract_strided_slice %440 {offsets = [0, 0], sizes = [2, 32], strides = [1, 1]} : vector<2x128xf32> to vector<2x32xf32>
    %467 = arith.negf %466 : vector<2x32xf32>
    %468 = math.exp %467 : vector<2x32xf32>
    %cst_129 = arith.constant 1.000000e+00 : f32
    %469 = vector.broadcast %cst_129 : f32 to vector<2x32xf32>
    %470 = arith.addf %469, %468 : vector<2x32xf32>
    %471 = arith.divf %469, %470 : vector<2x32xf32>
    %472 = vector.extract_strided_slice %440 {offsets = [0, 32], sizes = [2, 32], strides = [1, 1]} : vector<2x128xf32> to vector<2x32xf32>
    %473 = arith.negf %472 : vector<2x32xf32>
    %474 = math.exp %473 : vector<2x32xf32>
    %cst_130 = arith.constant 1.000000e+00 : f32
    %475 = vector.broadcast %cst_130 : f32 to vector<2x32xf32>
    %476 = arith.addf %475, %474 : vector<2x32xf32>
    %477 = arith.divf %475, %476 : vector<2x32xf32>
    %478 = vector.extract_strided_slice %440 {offsets = [0, 64], sizes = [2, 32], strides = [1, 1]} : vector<2x128xf32> to vector<2x32xf32>
    %479 = math.tanh %478 : vector<2x32xf32>
    %480 = vector.extract_strided_slice %440 {offsets = [0, 96], sizes = [2, 32], strides = [1, 1]} : vector<2x128xf32> to vector<2x32xf32>
    %481 = arith.negf %480 : vector<2x32xf32>
    %482 = math.exp %481 : vector<2x32xf32>
    %cst_131 = arith.constant 1.000000e+00 : f32
    %483 = vector.broadcast %cst_131 : f32 to vector<2x32xf32>
    %484 = arith.addf %483, %482 : vector<2x32xf32>
    %485 = arith.divf %483, %484 : vector<2x32xf32>
    %486 = arith.mulf %477, %419 : vector<2x32xf32>
    %487 = arith.mulf %471, %479 : vector<2x32xf32>
    %488 = arith.addf %486, %487 : vector<2x32xf32>
    %489 = math.tanh %488 : vector<2x32xf32>
    %490 = arith.mulf %485, %489 : vector<2x32xf32>
    %491 = arith.index_cast %c6_i32 : i32 to index
    %c0_132 = arith.constant 0 : index
    %c0_133 = arith.constant 0 : index
    %492 = vector.load %arg7[%491, %c0_132, %c0_133] : memref<8x2x64xf32, #tpu.memory_space<vmem>>, vector<1x2x32xf32>
    %493 = vector.shape_cast %492 : vector<1x2x32xf32> to vector<2x32xf32>
    %494 = vector.shape_cast %465 : vector<2x32xf32> to vector<1x2x32xf32>
    tpu.vector_store %arg7[%491, %c0_132, %c0_133], %494 {strides = array<i32>} : memref<8x2x64xf32, #tpu.memory_space<vmem>>, vector<1x2x32xf32>,
    %495 = arith.index_cast %430 : i32 to index
    %c0_134 = arith.constant 0 : index
    %c32_135 = arith.constant 32 : index
    %496 = vector.load %arg7[%495, %c0_134, %c32_135] : memref<8x2x64xf32, #tpu.memory_space<vmem>>, vector<1x2x32xf32>
    %497 = vector.shape_cast %496 : vector<1x2x32xf32> to vector<2x32xf32>
    %498 = vector.shape_cast %490 : vector<2x32xf32> to vector<1x2x32xf32>
    tpu.vector_store %arg7[%495, %c0_134, %c32_135], %498 {strides = array<i32>} : memref<8x2x64xf32, #tpu.memory_space<vmem>>, vector<1x2x32xf32>,
    %c7_i32_136 = arith.constant 7 : i32
    %c7_i32_137 = arith.constant 7 : i32
    %499 = arith.subi %c7_i32_137, %c7_i32_136 : i32
    %c2_i32_138 = arith.constant 2 : i32
    %500 = arith.muli %c7_i32_136, %c2_i32_138 : i32
    %501 = arith.index_cast %500 : i32 to index
    %c0_139 = arith.constant 0 : index
    %502 = vector.load %arg8[%501, %c0_139] : memref<16x128xf32, #tpu.memory_space<vmem>>, vector<2x128xf32>
    %cst_140 = arith.constant dense<0.000000e+00> : vector<2x128xf32>
    %503 = tpu.matmul %465, %13, %cst_140 {dimension_numbers = #tpu.dot_dimension_numbers<[1], [0], [0], [1], [0, 0, 1, 1], [], []>} : vector<2x32xf32>, vector<32x128xf32>, vector<2x128xf32> -> vector<2x128xf32>
    %504 = arith.addf %502, %503 : vector<2x128xf32>
    %c2_i32_141 = arith.constant 2 : i32
    %505 = arith.muli %499, %c2_i32_141 : i32
    %506 = arith.index_cast %505 : i32 to index
    %c0_142 = arith.constant 0 : index
    %507 = vector.load %arg9[%506, %c0_142] : memref<16x128xf32, #tpu.memory_space<vmem>>, vector<2x128xf32>
    %cst_143 = arith.constant dense<0.000000e+00> : vector<2x128xf32>
    %508 = tpu.matmul %490, %14, %cst_143 {dimension_numbers = #tpu.dot_dimension_numbers<[1], [0], [0], [1], [0, 0, 1, 1], [], []>} : vector<2x32xf32>, vector<32x128xf32>, vector<2x128xf32> -> vector<2x128xf32>
    %509 = arith.addf %507, %508 : vector<2x128xf32>
    %510 = vector.extract_strided_slice %504 {offsets = [0, 0], sizes = [2, 32], strides = [1, 1]} : vector<2x128xf32> to vector<2x32xf32>
    %511 = arith.negf %510 : vector<2x32xf32>
    %512 = math.exp %511 : vector<2x32xf32>
    %cst_144 = arith.constant 1.000000e+00 : f32
    %513 = vector.broadcast %cst_144 : f32 to vector<2x32xf32>
    %514 = arith.addf %513, %512 : vector<2x32xf32>
    %515 = arith.divf %513, %514 : vector<2x32xf32>
    %516 = vector.extract_strided_slice %504 {offsets = [0, 32], sizes = [2, 32], strides = [1, 1]} : vector<2x128xf32> to vector<2x32xf32>
    %517 = arith.negf %516 : vector<2x32xf32>
    %518 = math.exp %517 : vector<2x32xf32>
    %cst_145 = arith.constant 1.000000e+00 : f32
    %519 = vector.broadcast %cst_145 : f32 to vector<2x32xf32>
    %520 = arith.addf %519, %518 : vector<2x32xf32>
    %521 = arith.divf %519, %520 : vector<2x32xf32>
    %522 = vector.extract_strided_slice %504 {offsets = [0, 64], sizes = [2, 32], strides = [1, 1]} : vector<2x128xf32> to vector<2x32xf32>
    %523 = math.tanh %522 : vector<2x32xf32>
    %524 = vector.extract_strided_slice %504 {offsets = [0, 96], sizes = [2, 32], strides = [1, 1]} : vector<2x128xf32> to vector<2x32xf32>
    %525 = arith.negf %524 : vector<2x32xf32>
    %526 = math.exp %525 : vector<2x32xf32>
    %cst_146 = arith.constant 1.000000e+00 : f32
    %527 = vector.broadcast %cst_146 : f32 to vector<2x32xf32>
    %528 = arith.addf %527, %526 : vector<2x32xf32>
    %529 = arith.divf %527, %528 : vector<2x32xf32>
    %530 = arith.mulf %521, %463 : vector<2x32xf32>
    %531 = arith.mulf %515, %523 : vector<2x32xf32>
    %532 = arith.addf %530, %531 : vector<2x32xf32>
    %533 = math.tanh %532 : vector<2x32xf32>
    %534 = arith.mulf %529, %533 : vector<2x32xf32>
    %535 = vector.extract_strided_slice %509 {offsets = [0, 0], sizes = [2, 32], strides = [1, 1]} : vector<2x128xf32> to vector<2x32xf32>
    %536 = arith.negf %535 : vector<2x32xf32>
    %537 = math.exp %536 : vector<2x32xf32>
    %cst_147 = arith.constant 1.000000e+00 : f32
    %538 = vector.broadcast %cst_147 : f32 to vector<2x32xf32>
    %539 = arith.addf %538, %537 : vector<2x32xf32>
    %540 = arith.divf %538, %539 : vector<2x32xf32>
    %541 = vector.extract_strided_slice %509 {offsets = [0, 32], sizes = [2, 32], strides = [1, 1]} : vector<2x128xf32> to vector<2x32xf32>
    %542 = arith.negf %541 : vector<2x32xf32>
    %543 = math.exp %542 : vector<2x32xf32>
    %cst_148 = arith.constant 1.000000e+00 : f32
    %544 = vector.broadcast %cst_148 : f32 to vector<2x32xf32>
    %545 = arith.addf %544, %543 : vector<2x32xf32>
    %546 = arith.divf %544, %545 : vector<2x32xf32>
    %547 = vector.extract_strided_slice %509 {offsets = [0, 64], sizes = [2, 32], strides = [1, 1]} : vector<2x128xf32> to vector<2x32xf32>
    %548 = math.tanh %547 : vector<2x32xf32>
    %549 = vector.extract_strided_slice %509 {offsets = [0, 96], sizes = [2, 32], strides = [1, 1]} : vector<2x128xf32> to vector<2x32xf32>
    %550 = arith.negf %549 : vector<2x32xf32>
    %551 = math.exp %550 : vector<2x32xf32>
    %cst_149 = arith.constant 1.000000e+00 : f32
    %552 = vector.broadcast %cst_149 : f32 to vector<2x32xf32>
    %553 = arith.addf %552, %551 : vector<2x32xf32>
    %554 = arith.divf %552, %553 : vector<2x32xf32>
    %555 = arith.mulf %546, %488 : vector<2x32xf32>
    %556 = arith.mulf %540, %548 : vector<2x32xf32>
    %557 = arith.addf %555, %556 : vector<2x32xf32>
    %558 = math.tanh %557 : vector<2x32xf32>
    %559 = arith.mulf %554, %558 : vector<2x32xf32>
    %560 = arith.index_cast %c7_i32_136 : i32 to index
    %c0_150 = arith.constant 0 : index
    %c0_151 = arith.constant 0 : index
    %561 = vector.load %arg7[%560, %c0_150, %c0_151] : memref<8x2x64xf32, #tpu.memory_space<vmem>>, vector<1x2x32xf32>
    %562 = vector.shape_cast %561 : vector<1x2x32xf32> to vector<2x32xf32>
    %563 = vector.shape_cast %534 : vector<2x32xf32> to vector<1x2x32xf32>
    tpu.vector_store %arg7[%560, %c0_150, %c0_151], %563 {strides = array<i32>} : memref<8x2x64xf32, #tpu.memory_space<vmem>>, vector<1x2x32xf32>,
    %564 = arith.index_cast %499 : i32 to index
    %c0_152 = arith.constant 0 : index
    %c32_153 = arith.constant 32 : index
    %565 = vector.load %arg7[%564, %c0_152, %c32_153] : memref<8x2x64xf32, #tpu.memory_space<vmem>>, vector<1x2x32xf32>
    %566 = vector.shape_cast %565 : vector<1x2x32xf32> to vector<2x32xf32>
    %567 = vector.shape_cast %559 : vector<2x32xf32> to vector<1x2x32xf32>
    tpu.vector_store %arg7[%564, %c0_152, %c32_153], %567 {strides = array<i32>} : memref<8x2x64xf32, #tpu.memory_space<vmem>>, vector<1x2x32xf32>,
    %c8_i32 = arith.constant 8 : i32
    return
  }
}

module attributes {stable_mosaic.version = 11 : i64} {
  func.func @_bmm_nt_kernel(%arg0: i32, %arg1: memref<1x8x64xf32, #tpu.memory_space<vmem>>, %arg2: memref<1x12x64xf32, #tpu.memory_space<vmem>>, %arg3: memref<1x8x12xf32, #tpu.memory_space<vmem>>) attributes {dimension_semantics = [#tpu.dimension_semantics<parallel>], iteration_bounds = array<i64: 2>, scalar_prefetch = 0 : i64, scratch_operands = 0 : i64, tpu.core_type = #tpu.core_type<tc>, window_params = [{transform_indices = @transform_0, window_bounds = array<i64: 1, 8, 64>}, {transform_indices = @transform_1, window_bounds = array<i64: 1, 12, 64>}, {transform_indices = @transform_2, window_bounds = array<i64: 1, 8, 12>}]} {
    %c0 = arith.constant 0 : index
    %c0_0 = arith.constant 0 : index
    %c0_1 = arith.constant 0 : index
    %0 = vector.load %arg1[%c0, %c0_0, %c0_1] : memref<1x8x64xf32, #tpu.memory_space<vmem>>, vector<1x8x64xf32>
    %1 = vector.shape_cast %0 : vector<1x8x64xf32> to vector<8x64xf32>
    %c0_2 = arith.constant 0 : index
    %c0_3 = arith.constant 0 : index
    %c0_4 = arith.constant 0 : index
    %2 = vector.load %arg2[%c0_2, %c0_3, %c0_4] : memref<1x12x64xf32, #tpu.memory_space<vmem>>, vector<1x12x64xf32>
    %3 = vector.shape_cast %2 : vector<1x12x64xf32> to vector<12x64xf32>
    %cst = arith.constant dense<0.000000e+00> : vector<8x12xf32>
    %4 = tpu.matmul %1, %3, %cst {dimension_numbers = #tpu.dot_dimension_numbers<[1], [1], [0], [0], [0, 0, 1, 0], [], []>} : vector<8x64xf32>, vector<12x64xf32>, vector<8x12xf32> -> vector<8x12xf32>
    %c0_5 = arith.constant 0 : index
    %c0_6 = arith.constant 0 : index
    %c0_7 = arith.constant 0 : index
    %5 = vector.load %arg3[%c0_5, %c0_6, %c0_7] : memref<1x8x12xf32, #tpu.memory_space<vmem>>, vector<1x8x12xf32>
    %6 = vector.shape_cast %5 : vector<1x8x12xf32> to vector<8x12xf32>
    %7 = vector.shape_cast %4 : vector<8x12xf32> to vector<1x8x12xf32>
    tpu.vector_store %arg3[%c0_5, %c0_6, %c0_7], %7 {strides = array<i32>} : memref<1x8x12xf32, #tpu.memory_space<vmem>>, vector<1x8x12xf32>,
    return
  }
  func.func @transform_0(%arg0: i32) -> (i32, i32, i32) {
    %c0_i32 = arith.constant 0 : i32
    %c0_i32_0 = arith.constant 0 : i32
    %c0_i32_1 = arith.constant 0 : i32
    return %arg0, %c0_i32, %c0_i32_0 : i32, i32, i32
  }
  func.func @transform_1(%arg0: i32) -> (i32, i32, i32) {
    %c0_i32 = arith.constant 0 : i32
    %c0_i32_0 = arith.constant 0 : i32
    %c0_i32_1 = arith.constant 0 : i32
    return %arg0, %c0_i32, %c0_i32_0 : i32, i32, i32
  }
  func.func @transform_2(%arg0: i32) -> (i32, i32, i32) {
    %c0_i32 = arith.constant 0 : i32
    %c0_i32_0 = arith.constant 0 : i32
    %c0_i32_1 = arith.constant 0 : i32
    return %arg0, %c0_i32, %c0_i32_0 : i32, i32, i32
  }
}

</mosaic_0001>

<bundles_post_ra>
// kernel: bilstm_merge_forward.5
= control target key start
LH: loop header
LB: loop body
LE: loop exit
PB: predicated region body
PF: predicated region fallthrough
CT: control target
= control target key end

     0   :  { %vm37_vm0 = vcmask 130048   ;;  %v2455_v13 = vmov 0.0|0.0   ;;  %vm2456_vm1 = vmmov 0   ;;  %v2457_v21 = vmov 0.0   ;;  %s2875_s1 = inlined_call_operand.vmem [shape: f32[16,128], index: 1, kind: input, shape index: {}]   ;;  %s2876_s0 = inlined_call_operand.vmem [shape: f32[16,16], index: 0, kind: input, shape index: {}]   ;;  %s2877_s4 = inlined_call_operand.vmem [shape: f32[16,128], index: 4, kind: input, shape index: {}]   ;;  %s2878_s2 = inlined_call_operand.vmem [shape: f32[32,128], index: 2, kind: input, shape index: {}]   ;;  %s2879_s5 = inlined_call_operand.vmem [shape: f32[32,128], index: 5, kind: input, shape index: {}]   ;;  %s2880_s3 = inlined_call_operand.vmem [shape: f32[1,128], index: 3, kind: input, shape index: {}]   ;;  %s2881_s6 = inlined_call_operand.vmem [shape: f32[1,128], index: 6, kind: input, shape index: {}]   ;;  %s2882_s7 = inlined_call_operand.vmem [shape: f32[8,2,64], index: 7, kind: output, shape index: {}]  }
   0x1   :  { %v28_v0 = vld [vmem:[%s2875_s1] sm:$0xff]  ;;  %v29_v1 = vld [vmem:[%s2875_s1 + $0x8] sm:$0xff]  ;;  %v209_v14 = vld [vmem:[%s2878_s2 + $0x10] sm:$0xff]  ;;  %vm415_vm2 = vcmask 254976   ;;  %vm216_vm3 = vcmask 261120   ;;  %vm422_vm4 = vcmask 517376  }
   0x2   :  { %v26_v2 = vld [vmem:[%s2876_s0] sm:$0xff]  ;;  %v2218_v3 = vpack.c.bf16 %v29_v1, %v28_v0  ;;  %v122_v5 = vld [vmem:[%s2877_s4 + $0x8] sm:$0xff]  ;;  %v210_v15 = vld [vmem:[%s2878_s2 + $0x18] sm:$0xff] }
   0x3   :  { %2032 = vmatprep.mubr.msk.f32.mxu0 %vm37_vm0, %v26_v2  ;;  %v121_v4 = vld [vmem:[%s2877_s4] sm:$0xff]  ;;  %2039 = vmatprep.mubr.msk.f32.mxu1 %vm37_vm0, %v26_v2  ;;  %v208_v8 = vld [vmem:[%s2878_s2 + $0x8] sm:$0xff]  ;;  %v213_v17 = vld [vmem:[%s2879_s5 + $0x10] sm:$0xff]  ;;  %v2553_v19 = vpack.c.bf16 %v210_v15, %v209_v14 }
   0x4   :  { %v2222_v6 = vpack.c.bf16 %v122_v5, %v121_v4  ;;  %v207_v7 = vld [vmem:[%s2878_s2] sm:$0xff]  ;;  %2219 = vmatprep.subr.bf16.mxu0 %v2218_v3  ;;  %v212_v10 = vld [vmem:[%s2879_s5 + $0x8] sm:$0xff]  ;;  %v214_v18 = vld [vmem:[%s2879_s5 + $0x18] sm:$0xff] }
   0x5   :  { %v211_v9 = vld [vmem:[%s2879_s5] sm:$0xff]  ;;  %2221 = vmatpush3.bf16.msra.mxu0 %v2218_v3  ;;  %v27_v11 = vld [vmem:[%s2876_s0 + $0x8] sm:$0xff]  ;;  %v2532_v12 = vpack.c.bf16 %v208_v8, %v207_v7  ;;  %v2557_v20 = vpack.c.bf16 %v214_v18, %v213_v17 }
   0x6   :  { %2223 = vmatprep.subr.bf16.mxu1 %v2222_v6  ;;  %2226 = vmatprep.subr.bf16.mxu0 %v2455_v13  ;;  %v2541_v16 = vpack.c.bf16 %v212_v10, %v211_v9  ;;  %v1890_v22 = vld [vmem:[%s2880_s3] ss:$0 sm:$0xff]  ;;  %s2458_s3 = smov 64  }
   0x7   :  { %2225 = vmatpush3.bf16.msra.mxu1 %v2222_v6  ;;  %v1893_v23 = vld [vmem:[%s2881_s6] ss:$0 sm:$0xff]  ;;  %s2459_s6 = smov 32  }
   0x8   :  { %2232 = vmatprep.subr.bf16.mxu1 %v2455_v13  ;;  %2033 = vmatmul.mubr.msk.f32.vlgmr.msra.gmra.mrb[0].mxu0 %vm37_vm0, %v27_v11 }
   0x9   :  { %2228 = vmatpush3.bf16.msra.mxu0 %v2532_v12  ;;  %2050 = vmatprep.mubr.msk.f32.mxu0 %vm2456_vm1, %v2457_v21 }
   0xa   :  { %2040 = vmatmul.mubr.msk.f32.vlgmr.msra.gmra.mrb[0].mxu1 %vm37_vm0, %v27_v11  ;;  %2229 = vmatprep.subr.bf16.mxu0 %v2455_v13 }
   0xb   :  { %2234 = vmatpush3.bf16.msra.mxu1 %v2541_v16  ;;  %2061 = vmatprep.mubr.msk.f32.mxu1 %vm2456_vm1, %v2457_v21 }
   0xc   :  { %2235 = vmatprep.subr.bf16.mxu1 %v2455_v13 }
   0xd   :  { %2231 = vmatpush3.bf16.msra.mxu0 %v2553_v19 }
   0xe   :  { %2238 = vmatprep.subr.bf16.mxu0 %v2455_v13 }
   0xf   :  { %2237 = vmatpush3.bf16.msra.mxu1 %v2557_v20 }
  0x10   :  { %2244 = vmatprep.subr.bf16.mxu1 %v2455_v13  ;;  %2051 = vmatmul.mubr.f32.vlgmr.msra.gmra.mrb[2].mxu0 %v2457_v21 }
  0x11   :  { %2240 = vmatpush3.bf16.msra.mxu0 %v2532_v12  ;;  %2072 = vmatprep.mubr.msk.f32.mxu0 %vm2456_vm1, %v2457_v21 }
  0x12   :  { %2062 = vmatmul.mubr.f32.vlgmr.msra.gmra.mrb[2].mxu1 %v2457_v21  ;;  %2241 = vmatprep.subr.bf16.mxu0 %v2455_v13 }
  0x13   :  { %2246 = vmatpush3.bf16.msra.mxu1 %v2541_v16  ;;  %2083 = vmatprep.mubr.msk.f32.mxu1 %vm2456_vm1, %v2457_v21 }
  0x14   :  { %2247 = vmatprep.subr.bf16.mxu1 %v2455_v13 }
  0x15   :  { %2243 = vmatpush3.bf16.msra.mxu0 %v2553_v19 }
  0x16   :  { %2250 = vmatprep.subr.bf16.mxu0 %v2455_v13 }
  0x17   :  { %2249 = vmatpush3.bf16.msra.mxu1 %v2557_v20 }
  0x18   :  { %2256 = vmatprep.subr.bf16.mxu1 %v2455_v13 }
  0xdb   :  { %v2034_v24 = vpop.f32.mrb[0].mxu0 }
  0xdc   :  { %v116_v25 = vadd.f32 %v2034_v24, %v1890_v22  ;;  %v110_v26 = vpop.f32.mrb[1].mxu0 }
  0xdd   :  { %v2041_v27 = vpop.f32.mrb[0].mxu1  ;;  %v111_v28 = vadd.f32 %v1890_v22, %v110_v26 }
  0xde   :  { %v202_v29 = vadd.f32 %v2041_v27, %v1893_v23  ;;  %v196_v30 = vpop.f32.mrb[1].mxu1  ;;  %120 = vst [vmem:[#allocation2 + $0x8] sm:$0xff] %v116_v25 }
  0xdf   :  { %v197_v31 = vadd.f32 %v1893_v23, %v196_v30  ;;  %119 = vst [vmem:[#allocation2] sm:$0xff] %v111_v28 }
  0xe0   :  { %206 = vst [vmem:[#allocation3 + $0x8] sm:$0xff] %v202_v29 }
  0xe1   :  { %205 = vst [vmem:[#allocation3] sm:$0xff] %v197_v31 }
  0xe3   :  { %v286_v32 = vpop.f32.mrb[2].mxu0 }
  0xe4   :  { %v2052_v33 = vpop.f32.mrb[3].mxu0 }
  0xe5   :  { %v358_v34 = vpop.f32.mrb[2].mxu1 }
  0xe6   :  { %v2063_v35 = vpop.f32.mrb[3].mxu1  ;;  %v215_v36 = vld [vmem:[#allocation2] sm:$0x3]  ;;  %v424_v4 = vld [vmem:[#allocation2 + $0x2] sm:$0x3] }
  0xe7   :  { %v291_v37 = vld [vmem:[#allocation3 + $0xe] sm:$0x3]  ;;  %v290_v38 = vadd.f32 %v286_v32, %v215_v36  ;;  %v498_v8 = vld [vmem:[#allocation3 + $0xc] sm:$0x3] }
  0xe8   :  { %v362_v39 = vadd.f32 %v358_v34, %v291_v37 }
  0xe9   :  { %2327 = vtanh.f32 %v290_v38  ;;  %v1896_v42 = vmul.f32 -1.442695, %v290_v38 }
  0xea   :  { %2329 = vtanh.f32 %v362_v39  ;;  %v1897_v43 = vmul.f32 -1.442695, %v362_v39 }
  0xeb   :  { %2331 = vpow2.f32 %v1896_v42 }
  0xec   :  { %2333 = vpow2.f32 %v1897_v43 }
  0xf3   :  { %v2328_v40 = vpop.eup %2327 }
  0xf4   :  { %372 = vrot.lane.b32.xlu0 %v2328_v40, %s2458_s3  ;;  %v2330_v41 = vpop.eup %2329 }
  0xf5   :  { %v2332_v44 = vpop.eup %2331 }
  0xf6   :  { %v366_v45 = vadd.f32 1.0, %v2332_v44  ;;  %v2334_v46 = vpop.eup %2333 }
  0xf7   :  { %v390_v47 = vadd.f32 1.0, %v2334_v46  ;;  %v634_v46 = vld [vmem:[#allocation2 + $0x4] sm:$0x3] }
  0xf8   :  { %396 = vrot.lane.b32.xlu0 %v2330_v41, %s2458_s3  ;;  %2335 = vrcp.f32 %v366_v45 }
  0xf9   :  { %2337 = vrcp.f32 %v390_v47 }
 0x102   :  { %v2336_v48 = vpop.eup %2335 }
 0x103   :  { %v2338_v51 = vpop.eup %2337  ;;  %v370_v54 = vmul.f32 0.0, %v2336_v48 }
 0x104   :  { %v394_v57 = vmul.f32 0.0, %v2338_v51 }
 0x166   :  { %v373_v49 = vpop.permute.xlu0 %372 }
 0x167   :  { %v375_v50 = vmul.f32 %v2336_v48, %v373_v49 }
 0x169   :  { %377 = vrot.lane.b32.xlu1 %v375_v50, %s2459_s6  ;;  %v708_v50 = vld [vmem:[#allocation3 + $0xa] sm:$0x3] }
 0x16a   :  { %v397_v52 = vpop.permute.xlu0 %396 }
 0x16b   :  { %v399_v53 = vmul.f32 %v2338_v51, %v397_v52 }
 0x16d   :  { %401 = vrot.lane.b32.xlu1 %v399_v53, %s2459_s6 }
 0x1db   :  { %v378_v55 = vpop.permute.xlu1 %377 }
 0x1dc   :  { %v2592_v56 = vadd.f32 %v378_v55, %v370_v54 }
 0x1de   :  { %2339 = vtanh.f32 %v2592_v56 }
 0x1df   :  { %v402_v58 = vpop.permute.xlu1 %401 }
 0x1e0   :  { %v2595_v59 = vadd.f32 %v402_v58, %v394_v57 }
 0x1e2   :  { %2341 = vtanh.f32 %v2595_v59 }
 0x1e8   :  { %v2340_v60 = vpop.eup %2339 }
 0x1e9   :  { %383 = vrot.lane.b32.xlu0 %v2340_v60, %s2458_s3 }
 0x1ec   :  { %v2342_v61 = vpop.eup %2341 }
 0x1ed   :  { %407 = vrot.lane.b32.xlu1 %v2342_v61, %s2458_s3 }
 0x25b   :  { %v384_v62 = vpop.permute.xlu0 %383 }
 0x25c   :  { %v386_v63 = vmul.f32 %v2336_v48, %v384_v62 }
 0x25e   :  { %412 = vrot.lane.b32.xlu0 %v386_v63, %s2459_s6 }
 0x25f   :  { %v408_v0 = vpop.permute.xlu1 %407 }
 0x260   :  { %v2601_v1 = vmul.f32 %v2338_v51, %v408_v0 }
 0x262   :  { %499 = vrot.lane.b32.xlu1 %v2601_v1, %s2459_s6 }
 0x2d0   :  { %v413_v2 = vpop.permute.xlu0 %412 }
 0x2d1   :  { %416 = vst.msk [vmem:[%s2882_s7] sm:$0x3] %vm415_vm2, %v413_v2  ;;  %2073 = vmatmul.mubr.msk.f32.vlgmr.msra.gmra.mrb[4].mxu0 %vm216_vm3, %v413_v2 }
 0x2d2   :  { %2252 = vmatpush3.bf16.msra.mxu0 %v2532_v12  ;;  %2094 = vmatprep.mubr.msk.f32.mxu0 %vm2456_vm1, %v2457_v21 }
 0x2d3   :  { %2253 = vmatprep.subr.bf16.mxu0 %v2455_v13 }
 0x2d4   :  { %v500_v3 = vpop.permute.xlu1 %499 }
 0x2d5   :  { %2084 = vmatmul.mubr.msk.f32.vlgmr.msra.gmra.mrb[4].mxu1 %vm216_vm3, %v500_v3 }
 0x2d6   :  { %2255 = vmatpush3.bf16.msra.mxu0 %v2553_v19  ;;  %2258 = vmatpush3.bf16.msra.mxu1 %v2541_v16 }
 0x2d7   :  { %2259 = vmatprep.subr.bf16.mxu1 %v2455_v13  ;;  %2105 = vmatprep.mubr.msk.f32.mxu1 %vm2456_vm1, %v2457_v21 }
 0x2d8   :  { %2262 = vmatprep.subr.bf16.mxu0 %v2455_v13 }
 0x2da   :  { %2261 = vmatpush3.bf16.msra.mxu1 %v2557_v20 }
 0x2db   :  { %2268 = vmatprep.subr.bf16.mxu1 %v2455_v13 }
 0x3a4   :  { %v493_v5 = vpop.f32.mrb[4].mxu0 }
 0x3a5   :  { %v497_v6 = vadd.f32 %v493_v5, %v424_v4  ;;  %v2074_v7 = vpop.f32.mrb[5].mxu0 }
 0x3a7   :  { %2343 = vtanh.f32 %v497_v6  ;;  %v1901_v17 = vmul.f32 -1.442695, %v497_v6 }
 0x3a8   :  { %v569_v9 = vpop.f32.mrb[4].mxu1 }
 0x3a9   :  { %v573_v10 = vadd.f32 %v569_v9, %v498_v8  ;;  %v2085_v11 = vpop.f32.mrb[5].mxu1 }
 0x3ab   :  { %2345 = vtanh.f32 %v573_v10  ;;  %v1902_v18 = vmul.f32 -1.442695, %v573_v10 }
 0x3ac   :  { %2347 = vpow2.f32 %v1901_v17 }
 0x3ad   :  { %2349 = vpow2.f32 %v1902_v18 }
 0x3b1   :  { %v2344_v14 = vpop.eup %2343 }
 0x3b2   :  { %583 = vrot.lane.b32.xlu0 %v2344_v14, %s2458_s3 }
 0x3b5   :  { %v2346_v15 = vpop.eup %2345 }
 0x3b6   :  { %607 = vrot.lane.b32.xlu1 %v2346_v15, %s2458_s3  ;;  %v2348_v22 = vpop.eup %2347 }
 0x3b7   :  { %v577_v23 = vadd.f32 1.0, %v2348_v22  ;;  %v2350_v24 = vpop.eup %2349 }
 0x3b8   :  { %v601_v25 = vadd.f32 1.0, %v2350_v24 }
 0x3b9   :  { %2351 = vrcp.f32 %v577_v23 }
 0x3ba   :  { %2353 = vrcp.f32 %v601_v25  ;;  %v844_v25 = vld [vmem:[#allocation2 + $0x6] sm:$0x3] }
 0x3c3   :  { %v2352_v26 = vpop.eup %2351 }
 0x3c4   :  { %v2354_v29 = vpop.eup %2353  ;;  %v581_v32 = vmul.f32 %v2352_v26, %v2592_v56 }
 0x3c5   :  { %v605_v35 = vmul.f32 %v2354_v29, %v2595_v59 }
 0x424   :  { %v584_v27 = vpop.permute.xlu0 %583 }
 0x425   :  { %v586_v28 = vmul.f32 %v2352_v26, %v584_v27 }
 0x427   :  { %588 = vrot.lane.b32.xlu0 %v586_v28, %s2459_s6 }
 0x428   :  { %v608_v30 = vpop.permute.xlu1 %607 }
 0x429   :  { %v610_v31 = vmul.f32 %v2354_v29, %v608_v30 }
 0x42b   :  { %612 = vrot.lane.b32.xlu1 %v610_v31, %s2459_s6 }
 0x499   :  { %v589_v33 = vpop.permute.xlu0 %588 }
 0x49a   :  { %v2628_v34 = vadd.f32 %v589_v33, %v581_v32 }
 0x49c   :  { %2355 = vtanh.f32 %v2628_v34 }
 0x49d   :  { %v613_v36 = vpop.permute.xlu1 %612 }
 0x49e   :  { %v2632_v37 = vadd.f32 %v613_v36, %v605_v35 }
 0x4a0   :  { %2357 = vtanh.f32 %v2632_v37 }
 0x4a6   :  { %v2356_v38 = vpop.eup %2355 }
 0x4a7   :  { %594 = vrot.lane.b32.xlu0 %v2356_v38, %s2458_s3 }
 0x4aa   :  { %v2358_v39 = vpop.eup %2357 }
 0x4ab   :  { %618 = vrot.lane.b32.xlu1 %v2358_v39, %s2458_s3 }
 0x519   :  { %v595_v40 = vpop.permute.xlu0 %594 }
 0x51a   :  { %v597_v41 = vmul.f32 %v2352_v26, %v595_v40 }
 0x51c   :  { %623 = vrot.lane.b32.xlu0 %v597_v41, %s2459_s6 }
 0x51d   :  { %v619_v42 = vpop.permute.xlu1 %618 }
 0x51e   :  { %v2638_v43 = vmul.f32 %v2354_v29, %v619_v42  ;;  %v918_v29 = vld [vmem:[#allocation3 + $0x8] sm:$0x3] }
 0x520   :  { %709 = vrot.lane.b32.xlu1 %v2638_v43, %s2459_s6 }
 0x58e   :  { %v624_v44 = vpop.permute.xlu0 %623 }
 0x58f   :  { %1903 = vst.msk [vmem:[%s2882_s7 + $0x2] sm:$0x3] %vm415_vm2, %v624_v44  ;;  %2095 = vmatmul.mubr.msk.f32.vlgmr.msra.gmra.mrb[6].mxu0 %vm216_vm3, %v624_v44 }
 0x590   :  { %2264 = vmatpush3.bf16.msra.mxu0 %v2532_v12  ;;  %2116 = vmatprep.mubr.msk.f32.mxu0 %vm2456_vm1, %v2457_v21 }
 0x591   :  { %2265 = vmatprep.subr.bf16.mxu0 %v2455_v13 }
 0x592   :  { %v710_v45 = vpop.permute.xlu1 %709 }
 0x593   :  { %2106 = vmatmul.mubr.msk.f32.vlgmr.msra.gmra.mrb[6].mxu1 %vm216_vm3, %v710_v45 }
 0x594   :  { %2267 = vmatpush3.bf16.msra.mxu0 %v2553_v19  ;;  %2270 = vmatpush3.bf16.msra.mxu1 %v2541_v16 }
 0x595   :  { %2271 = vmatprep.subr.bf16.mxu1 %v2455_v13  ;;  %2127 = vmatprep.mubr.msk.f32.mxu1 %vm2456_vm1, %v2457_v21 }
 0x596   :  { %2274 = vmatprep.subr.bf16.mxu0 %v2455_v13 }
 0x598   :  { %2273 = vmatpush3.bf16.msra.mxu1 %v2557_v20 }
 0x599   :  { %2280 = vmatprep.subr.bf16.mxu1 %v2455_v13 }
 0x662   :  { %v703_v47 = vpop.f32.mrb[6].mxu0 }
 0x663   :  { %v707_v48 = vadd.f32 %v703_v47, %v634_v46  ;;  %v2096_v49 = vpop.f32.mrb[7].mxu0 }
 0x665   :  { %2359 = vtanh.f32 %v707_v48  ;;  %v1907_v56 = vmul.f32 -1.442695, %v707_v48 }
 0x666   :  { %v779_v51 = vpop.f32.mrb[6].mxu1 }
 0x667   :  { %v783_v52 = vadd.f32 %v779_v51, %v708_v50  ;;  %v2107_v53 = vpop.f32.mrb[7].mxu1 }
 0x669   :  { %2361 = vtanh.f32 %v783_v52  ;;  %v1908_v57 = vmul.f32 -1.442695, %v783_v52 }
 0x66a   :  { %2363 = vpow2.f32 %v1907_v56 }
 0x66b   :  { %2365 = vpow2.f32 %v1908_v57 }
 0x66f   :  { %v2360_v54 = vpop.eup %2359 }
 0x670   :  { %793 = vrot.lane.b32.xlu0 %v2360_v54, %s2458_s3 }
 0x673   :  { %v2362_v55 = vpop.eup %2361 }
 0x674   :  { %817 = vrot.lane.b32.xlu1 %v2362_v55, %s2458_s3  ;;  %v2364_v58 = vpop.eup %2363 }
 0x675   :  { %v787_v59 = vadd.f32 1.0, %v2364_v58  ;;  %v2366_v60 = vpop.eup %2365 }
 0x676   :  { %v811_v61 = vadd.f32 1.0, %v2366_v60 }
 0x677   :  { %2367 = vrcp.f32 %v787_v59 }
 0x678   :  { %2369 = vrcp.f32 %v811_v61 }
 0x681   :  { %v2368_v62 = vpop.eup %2367 }
 0x682   :  { %v2370_v2 = vpop.eup %2369  ;;  %v791_v5 = vmul.f32 %v2368_v62, %v2628_v34 }
 0x683   :  { %v815_v8 = vmul.f32 %v2370_v2, %v2632_v37 }
 0x6e2   :  { %v794_v63 = vpop.permute.xlu0 %793 }
 0x6e3   :  { %v796_v0 = vmul.f32 %v2368_v62, %v794_v63 }
 0x6e5   :  { %798 = vrot.lane.b32.xlu0 %v796_v0, %s2459_s6 }
 0x6e6   :  { %v818_v3 = vpop.permute.xlu1 %817 }
 0x6e7   :  { %v820_v4 = vmul.f32 %v2370_v2, %v818_v3  ;;  %v1128_v3 = vld [vmem:[#allocation3 + $0x6] sm:$0x3] }
 0x6e9   :  { %822 = vrot.lane.b32.xlu1 %v820_v4, %s2459_s6 }
 0x757   :  { %v799_v6 = vpop.permute.xlu0 %798 }
 0x758   :  { %v2665_v7 = vadd.f32 %v799_v6, %v791_v5 }
 0x75a   :  { %2371 = vtanh.f32 %v2665_v7 }
 0x75b   :  { %v823_v9 = vpop.permute.xlu1 %822 }
 0x75c   :  { %v2669_v10 = vadd.f32 %v823_v9, %v815_v8 }
 0x75e   :  { %2373 = vtanh.f32 %v2669_v10 }
 0x764   :  { %v2372_v11 = vpop.eup %2371 }
 0x765   :  { %804 = vrot.lane.b32.xlu0 %v2372_v11, %s2458_s3 }
 0x768   :  { %v2374_v14 = vpop.eup %2373 }
 0x769   :  { %828 = vrot.lane.b32.xlu1 %v2374_v14, %s2458_s3 }
 0x7d7   :  { %v805_v15 = vpop.permute.xlu0 %804 }
 0x7d8   :  { %v807_v17 = vmul.f32 %v2368_v62, %v805_v15  ;;  %v1054_v62 = vld [vmem:[#allocation2 + $0x8] sm:$0x3] }
 0x7da   :  { %833 = vrot.lane.b32.xlu0 %v807_v17, %s2459_s6 }
 0x7db   :  { %v829_v18 = vpop.permute.xlu1 %828 }
 0x7dc   :  { %v2675_v22 = vmul.f32 %v2370_v2, %v829_v18 }
 0x7de   :  { %919 = vrot.lane.b32.xlu1 %v2675_v22, %s2459_s6 }
 0x84c   :  { %v834_v23 = vpop.permute.xlu0 %833 }
 0x84d   :  { %1909 = vst.msk [vmem:[%s2882_s7 + $0x4] sm:$0x3] %vm415_vm2, %v834_v23  ;;  %2117 = vmatmul.mubr.msk.f32.vlgmr.msra.gmra.mrb[8].mxu0 %vm216_vm3, %v834_v23 }
 0x84e   :  { %2276 = vmatpush3.bf16.msra.mxu0 %v2532_v12  ;;  %2138 = vmatprep.mubr.msk.f32.mxu0 %vm2456_vm1, %v2457_v21 }
 0x84f   :  { %2277 = vmatprep.subr.bf16.mxu0 %v2455_v13 }
 0x850   :  { %v920_v24 = vpop.permute.xlu1 %919 }
 0x851   :  { %2128 = vmatmul.mubr.msk.f32.vlgmr.msra.gmra.mrb[8].mxu1 %vm216_vm3, %v920_v24 }
 0x852   :  { %2279 = vmatpush3.bf16.msra.mxu0 %v2553_v19  ;;  %2282 = vmatpush3.bf16.msra.mxu1 %v2541_v16 }
 0x853   :  { %2283 = vmatprep.subr.bf16.mxu1 %v2455_v13  ;;  %2149 = vmatprep.mubr.msk.f32.mxu1 %vm2456_vm1, %v2457_v21 }
 0x854   :  { %2286 = vmatprep.subr.bf16.mxu0 %v2455_v13 }
 0x856   :  { %2285 = vmatpush3.bf16.msra.mxu1 %v2557_v20 }
 0x857   :  { %2292 = vmatprep.subr.bf16.mxu1 %v2455_v13 }
 0x920   :  { %v913_v26 = vpop.f32.mrb[8].mxu0 }
 0x921   :  { %v917_v27 = vadd.f32 %v913_v26, %v844_v25  ;;  %v2118_v28 = vpop.f32.mrb[9].mxu0 }
 0x923   :  { %2375 = vtanh.f32 %v917_v27  ;;  %v1913_v35 = vmul.f32 -1.442695, %v917_v27 }
 0x924   :  { %v989_v30 = vpop.f32.mrb[8].mxu1 }
 0x925   :  { %v993_v31 = vadd.f32 %v989_v30, %v918_v29  ;;  %v2129_v32 = vpop.f32.mrb[9].mxu1 }
 0x927   :  { %2377 = vtanh.f32 %v993_v31  ;;  %v1914_v36 = vmul.f32 -1.442695, %v993_v31 }
 0x928   :  { %2379 = vpow2.f32 %v1913_v35 }
 0x929   :  { %2381 = vpow2.f32 %v1914_v36 }
 0x92d   :  { %v2376_v33 = vpop.eup %2375 }
 0x92e   :  { %1003 = vrot.lane.b32.xlu0 %v2376_v33, %s2458_s3 }
 0x931   :  { %v2378_v34 = vpop.eup %2377 }
 0x932   :  { %1027 = vrot.lane.b32.xlu1 %v2378_v34, %s2458_s3  ;;  %v2380_v37 = vpop.eup %2379 }
 0x933   :  { %v997_v38 = vadd.f32 1.0, %v2380_v37  ;;  %v2382_v39 = vpop.eup %2381 }
 0x934   :  { %v1021_v40 = vadd.f32 1.0, %v2382_v39 }
 0x935   :  { %2383 = vrcp.f32 %v997_v38 }
 0x936   :  { %2385 = vrcp.f32 %v1021_v40 }
 0x93f   :  { %v2384_v41 = vpop.eup %2383 }
 0x940   :  { %v2386_v45 = vpop.eup %2385  ;;  %v1001_v48 = vmul.f32 %v2384_v41, %v2665_v7 }
 0x941   :  { %v1025_v51 = vmul.f32 %v2386_v45, %v2669_v10 }
 0x9a0   :  { %v1004_v42 = vpop.permute.xlu0 %1003 }
 0x9a1   :  { %v1006_v44 = vmul.f32 %v2384_v41, %v1004_v42  ;;  %v1262_v42 = vld [vmem:[#allocation2 + $0xa] sm:$0x3] }
 0x9a3   :  { %1008 = vrot.lane.b32.xlu0 %v1006_v44, %s2459_s6 }
 0x9a4   :  { %v1028_v46 = vpop.permute.xlu1 %1027 }
 0x9a5   :  { %v1030_v47 = vmul.f32 %v2386_v45, %v1028_v46 }
 0x9a7   :  { %1032 = vrot.lane.b32.xlu1 %v1030_v47, %s2459_s6  ;;  %v1336_v47 = vld [vmem:[#allocation3 + $0x4] sm:$0x3] }
 0xa15   :  { %v1009_v49 = vpop.permute.xlu0 %1008 }
 0xa16   :  { %v2702_v50 = vadd.f32 %v1009_v49, %v1001_v48 }
 0xa18   :  { %2387 = vtanh.f32 %v2702_v50 }
 0xa19   :  { %v1033_v52 = vpop.permute.xlu1 %1032 }
 0xa1a   :  { %v2706_v53 = vadd.f32 %v1033_v52, %v1025_v51 }
 0xa1c   :  { %2389 = vtanh.f32 %v2706_v53 }
 0xa22   :  { %v2388_v54 = vpop.eup %2387 }
 0xa23   :  { %1014 = vrot.lane.b32.xlu0 %v2388_v54, %s2458_s3 }
 0xa26   :  { %v2390_v55 = vpop.eup %2389 }
 0xa27   :  { %1038 = vrot.lane.b32.xlu1 %v2390_v55, %s2458_s3 }
 0xa95   :  { %v1015_v56 = vpop.permute.xlu0 %1014 }
 0xa96   :  { %v1017_v57 = vmul.f32 %v2384_v41, %v1015_v56 }
 0xa98   :  { %1043 = vrot.lane.b32.xlu0 %v1017_v57, %s2459_s6 }
 0xa99   :  { %v1039_v58 = vpop.permute.xlu1 %1038 }
 0xa9a   :  { %v2712_v59 = vmul.f32 %v2386_v45, %v1039_v58 }
 0xa9c   :  { %1129 = vrot.lane.b32.xlu1 %v2712_v59, %s2459_s6 }
 0xb0a   :  { %v1044_v60 = vpop.permute.xlu0 %1043 }
 0xb0b   :  { %1915 = vst.msk [vmem:[%s2882_s7 + $0x6] sm:$0x3] %vm415_vm2, %v1044_v60  ;;  %2139 = vmatmul.mubr.msk.f32.vlgmr.msra.gmra.mrb[10].mxu0 %vm216_vm3, %v1044_v60 }
 0xb0c   :  { %2288 = vmatpush3.bf16.msra.mxu0 %v2532_v12  ;;  %2160 = vmatprep.mubr.msk.f32.mxu0 %vm2456_vm1, %v2457_v21 }
 0xb0d   :  { %2289 = vmatprep.subr.bf16.mxu0 %v2455_v13 }
 0xb0e   :  { %v1130_v61 = vpop.permute.xlu1 %1129 }
 0xb0f   :  { %2150 = vmatmul.mubr.msk.f32.vlgmr.msra.gmra.mrb[10].mxu1 %vm216_vm3, %v1130_v61 }
 0xb10   :  { %2291 = vmatpush3.bf16.msra.mxu0 %v2553_v19  ;;  %2294 = vmatpush3.bf16.msra.mxu1 %v2541_v16 }
 0xb11   :  { %2295 = vmatprep.subr.bf16.mxu1 %v2455_v13  ;;  %2171 = vmatprep.mubr.msk.f32.mxu1 %vm2456_vm1, %v2457_v21 }
 0xb12   :  { %2298 = vmatprep.subr.bf16.mxu0 %v2455_v13 }
 0xb14   :  { %2297 = vmatpush3.bf16.msra.mxu1 %v2557_v20 }
 0xb15   :  { %2304 = vmatprep.subr.bf16.mxu1 %v2455_v13 }
 0xbde   :  { %v1123_v63 = vpop.f32.mrb[10].mxu0 }
 0xbdf   :  { %v1127_v0 = vadd.f32 %v1123_v63, %v1054_v62  ;;  %v2140_v2 = vpop.f32.mrb[11].mxu0 }
 0xbe1   :  { %2391 = vtanh.f32 %v1127_v0  ;;  %v1919_v9 = vmul.f32 -1.442695, %v1127_v0 }
 0xbe2   :  { %v1199_v4 = vpop.f32.mrb[10].mxu1 }
 0xbe3   :  { %v1203_v5 = vadd.f32 %v1199_v4, %v1128_v3  ;;  %v2151_v6 = vpop.f32.mrb[11].mxu1 }
 0xbe5   :  { %2393 = vtanh.f32 %v1203_v5  ;;  %v1920_v10 = vmul.f32 -1.442695, %v1203_v5 }
 0xbe6   :  { %2395 = vpow2.f32 %v1919_v9 }
 0xbe7   :  { %2397 = vpow2.f32 %v1920_v10 }
 0xbeb   :  { %v2392_v7 = vpop.eup %2391 }
 0xbec   :  { %1213 = vrot.lane.b32.xlu0 %v2392_v7, %s2458_s3 }
 0xbef   :  { %v2394_v8 = vpop.eup %2393 }
 0xbf0   :  { %1237 = vrot.lane.b32.xlu1 %v2394_v8, %s2458_s3  ;;  %v2396_v11 = vpop.eup %2395 }
 0xbf1   :  { %v1207_v14 = vadd.f32 1.0, %v2396_v11  ;;  %v2398_v15 = vpop.eup %2397 }
 0xbf2   :  { %v1231_v17 = vadd.f32 1.0, %v2398_v15 }
 0xbf3   :  { %2399 = vrcp.f32 %v1207_v14 }
 0xbf4   :  { %2401 = vrcp.f32 %v1231_v17 }
 0xbfd   :  { %v2400_v18 = vpop.eup %2399 }
 0xbfe   :  { %v2402_v25 = vpop.eup %2401  ;;  %v1211_v28 = vmul.f32 %v2400_v18, %v2702_v50 }
 0xbff   :  { %v1235_v31 = vmul.f32 %v2402_v25, %v2706_v53 }
 0xc5e   :  { %v1214_v23 = vpop.permute.xlu0 %1213 }
 0xc5f   :  { %v1216_v24 = vmul.f32 %v2400_v18, %v1214_v23 }
 0xc61   :  { %1218 = vrot.lane.b32.xlu0 %v1216_v24, %s2459_s6 }
 0xc62   :  { %v1238_v26 = vpop.permute.xlu1 %1237 }
 0xc63   :  { %v1240_v27 = vmul.f32 %v2402_v25, %v1238_v26 }
 0xc65   :  { %1242 = vrot.lane.b32.xlu1 %v1240_v27, %s2459_s6  ;;  %v1544_v27 = vld [vmem:[#allocation3 + $0x2] sm:$0x3] }
 0xcd3   :  { %v1219_v29 = vpop.permute.xlu0 %1218 }
 0xcd4   :  { %v1221_v30 = vadd.f32 %v1219_v29, %v1211_v28 }
 0xcd6   :  { %2403 = vtanh.f32 %v1221_v30 }
 0xcd7   :  { %v1243_v32 = vpop.permute.xlu1 %1242 }
 0xcd8   :  { %v1245_v33 = vadd.f32 %v1243_v32, %v1235_v31 }
 0xcda   :  { %2405 = vtanh.f32 %v1245_v33 }
 0xce0   :  { %v2404_v34 = vpop.eup %2403 }
 0xce1   :  { %1224 = vrot.lane.b32.xlu0 %v2404_v34, %s2458_s3 }
 0xce4   :  { %v2406_v35 = vpop.eup %2405 }
 0xce5   :  { %1248 = vrot.lane.b32.xlu1 %v2406_v35, %s2458_s3 }
 0xd53   :  { %v1225_v36 = vpop.permute.xlu0 %1224 }
 0xd54   :  { %v1227_v37 = vmul.f32 %v2400_v18, %v1225_v36 }
 0xd56   :  { %1253 = vrot.lane.b32.xlu0 %v1227_v37, %s2459_s6 }
 0xd57   :  { %v1249_v38 = vpop.permute.xlu1 %1248 }
 0xd58   :  { %v2743_v39 = vmul.f32 %v2402_v25, %v1249_v38 }
 0xd5a   :  { %1337 = vrot.lane.b32.xlu1 %v2743_v39, %s2459_s6 }
 0xdc8   :  { %v2747_v40 = vpop.permute.xlu0 %1253 }
 0xdc9   :  { %2161 = vmatmul.mubr.msk.f32.vlgmr.msra.gmra.mrb[12].mxu0 %vm216_vm3, %v2747_v40 }
 0xdca   :  { %2300 = vmatpush3.bf16.msra.mxu0 %v2532_v12  ;;  %2182 = vmatprep.mubr.msk.f32.mxu0 %vm2456_vm1, %v2457_v21 }
 0xdcb   :  { %2301 = vmatprep.subr.bf16.mxu0 %v2455_v13 }
 0xdcc   :  { %v1338_v41 = vpop.permute.xlu1 %1337 }
 0xdcd   :  { %2172 = vmatmul.mubr.msk.f32.vlgmr.msra.gmra.mrb[12].mxu1 %vm216_vm3, %v1338_v41 }
 0xdce   :  { %2303 = vmatpush3.bf16.msra.mxu0 %v2553_v19  ;;  %2306 = vmatpush3.bf16.msra.mxu1 %v2541_v16 }
 0xdcf   :  { %2307 = vmatprep.subr.bf16.mxu1 %v2455_v13  ;;  %2193 = vmatprep.mubr.msk.f32.mxu1 %vm2456_vm1, %v2457_v21 }
 0xdd0   :  { %2310 = vmatprep.subr.bf16.mxu0 %v2455_v13 }
 0xdd2   :  { %2309 = vmatpush3.bf16.msra.mxu1 %v2557_v20 }
 0xdd3   :  { %2316 = vmatprep.subr.bf16.mxu1 %v2455_v13 }
 0xe9c   :  { %v1331_v44 = vpop.f32.mrb[12].mxu0 }
 0xe9d   :  { %v1335_v45 = vadd.f32 %v1331_v44, %v1262_v42  ;;  %v2162_v46 = vpop.f32.mrb[13].mxu0 }
 0xe9f   :  { %2407 = vtanh.f32 %v1335_v45  ;;  %v1925_v53 = vmul.f32 -1.442695, %v1335_v45 }
 0xea0   :  { %v1407_v48 = vpop.f32.mrb[12].mxu1 }
 0xea1   :  { %v1411_v49 = vadd.f32 %v1407_v48, %v1336_v47  ;;  %v2173_v50 = vpop.f32.mrb[13].mxu1 }
 0xea3   :  { %2409 = vtanh.f32 %v1411_v49  ;;  %v1926_v54 = vmul.f32 -1.442695, %v1411_v49 }
 0xea4   :  { %2411 = vpow2.f32 %v1925_v53 }
 0xea5   :  { %2413 = vpow2.f32 %v1926_v54 }
 0xea9   :  { %v2408_v51 = vpop.eup %2407 }
 0xeaa   :  { %1421 = vrot.lane.b32.xlu0 %v2408_v51, %s2458_s3 }
 0xead   :  { %v2410_v52 = vpop.eup %2409 }
 0xeae   :  { %1445 = vrot.lane.b32.xlu1 %v2410_v52, %s2458_s3  ;;  %v2412_v55 = vpop.eup %2411 }
 0xeaf   :  { %v1415_v56 = vadd.f32 1.0, %v2412_v55  ;;  %v2414_v57 = vpop.eup %2413 }
 0xeb0   :  { %v1439_v58 = vadd.f32 1.0, %v2414_v57  ;;  %v1678_v57 = vld [vmem:[#allocation2 + $0xe] sm:$0x3] }
 0xeb1   :  { %2415 = vrcp.f32 %v1415_v56 }
 0xeb2   :  { %2417 = vrcp.f32 %v1439_v58 }
 0xebb   :  { %v2416_v60 = vpop.eup %2415 }
 0xebc   :  { %v2418_v63 = vpop.eup %2417  ;;  %v1419_v3 = vmul.f32 %v2416_v60, %v1221_v30 }
 0xebd   :  { %v1443_v6 = vmul.f32 %v2418_v63, %v1245_v33 }
 0xf1c   :  { %v1422_v61 = vpop.permute.xlu0 %1421 }
 0xf1d   :  { %v1424_v62 = vmul.f32 %v2416_v60, %v1422_v61 }
 0xf1f   :  { %1426 = vrot.lane.b32.xlu0 %v1424_v62, %s2459_s6  ;;  %v1752_v62 = vld [vmem:[#allocation3] sm:$0x3] }
 0xf20   :  { %v1446_v0 = vpop.permute.xlu1 %1445 }
 0xf21   :  { %v1448_v2 = vmul.f32 %v2418_v63, %v1446_v0 }
 0xf23   :  { %1450 = vrot.lane.b32.xlu1 %v1448_v2, %s2459_s6 }
 0xf91   :  { %v1427_v4 = vpop.permute.xlu0 %1426 }
 0xf92   :  { %v1429_v5 = vadd.f32 %v1427_v4, %v1419_v3 }
 0xf94   :  { %2419 = vtanh.f32 %v1429_v5 }
 0xf95   :  { %v1451_v7 = vpop.permute.xlu1 %1450 }
 0xf96   :  { %v1453_v8 = vadd.f32 %v1451_v7, %v1443_v6 }
 0xf98   :  { %2421 = vtanh.f32 %v1453_v8 }
 0xf9e   :  { %v2420_v9 = vpop.eup %2419 }
 0xf9f   :  { %1432 = vrot.lane.b32.xlu0 %v2420_v9, %s2458_s3 }
 0xfa2   :  { %v2422_v10 = vpop.eup %2421 }
 0xfa3   :  { %1456 = vrot.lane.b32.xlu1 %v2422_v10, %s2458_s3 }
0x1011   :  { %v1433_v11 = vpop.permute.xlu0 %1432 }
0x1012   :  { %v1435_v14 = vmul.f32 %v2416_v60, %v1433_v11 }
0x1014   :  { %1461 = vrot.lane.b32.xlu0 %v1435_v14, %s2459_s6 }
0x1015   :  { %v1457_v15 = vpop.permute.xlu1 %1456 }
0x1016   :  { %v2771_v17 = vmul.f32 %v2418_v63, %v1457_v15 }
0x1018   :  { %1545 = vrot.lane.b32.xlu1 %v2771_v17, %s2459_s6 }
0x1086   :  { %v2775_v18 = vpop.permute.xlu0 %1461 }
0x1087   :  { %2183 = vmatmul.mubr.msk.f32.vlgmr.msra.gmra.mrb[14].mxu0 %vm216_vm3, %v2775_v18 }
0x1088   :  { %2312 = vmatpush3.bf16.msra.mxu0 %v2532_v12  ;;  %2204 = vmatprep.mubr.msk.f32.mxu0 %vm2456_vm1, %v2457_v21  ;;  %v1470_v12 = vld [vmem:[#allocation2 + $0xc] sm:$0x3] }
0x1089   :  { %2313 = vmatprep.subr.bf16.mxu0 %v2455_v13 }
0x108a   :  { %v1546_v23 = vpop.permute.xlu1 %1545 }
0x108b   :  { %2194 = vmatmul.mubr.msk.f32.vlgmr.msra.gmra.mrb[14].mxu1 %vm216_vm3, %v1546_v23 }
0x108c   :  { %2315 = vmatpush3.bf16.msra.mxu0 %v2553_v19  ;;  %2318 = vmatpush3.bf16.msra.mxu1 %v2541_v16 }
0x108d   :  { %2319 = vmatprep.subr.bf16.mxu1 %v2455_v13  ;;  %2215 = vmatprep.mubr.msk.f32.mxu1 %vm2456_vm1, %v2457_v21 }
0x1090   :  { %2321 = vmatpush3.bf16.msra.mxu1 %v2557_v20 }
0x115a   :  { %v1539_v24 = vpop.f32.mrb[14].mxu0 }
0x115b   :  { %v1543_v25 = vadd.f32 %v1539_v24, %v1470_v12  ;;  %v2184_v26 = vpop.f32.mrb[15].mxu0 }
0x115d   :  { %2423 = vtanh.f32 %v1543_v25  ;;  %v1931_v13 = vmul.f32 -1.442695, %v1543_v25 }
0x115e   :  { %v1615_v28 = vpop.f32.mrb[14].mxu1 }
0x115f   :  { %v1619_v29 = vadd.f32 %v1615_v28, %v1544_v27  ;;  %v2195_v30 = vpop.f32.mrb[15].mxu1 }
0x1161   :  { %2425 = vtanh.f32 %v1619_v29  ;;  %v1932_v21 = vmul.f32 -1.442695, %v1619_v29 }
0x1162   :  { %2427 = vpow2.f32 %v1931_v13 }
0x1163   :  { %2429 = vpow2.f32 %v1932_v21 }
0x1167   :  { %v2424_v19 = vpop.eup %2423 }
0x1168   :  { %1629 = vrot.lane.b32.xlu0 %v2424_v19, %s2458_s3 }
0x116b   :  { %v2426_v16 = vpop.eup %2425 }
0x116c   :  { %1653 = vrot.lane.b32.xlu1 %v2426_v16, %s2458_s3  ;;  %v2428_v20 = vpop.eup %2427 }
0x116d   :  { %v1623_v31 = vadd.f32 1.0, %v2428_v20  ;;  %v2430_v32 = vpop.eup %2429 }
0x116e   :  { %v1647_v33 = vadd.f32 1.0, %v2430_v32 }
0x116f   :  { %2431 = vrcp.f32 %v1623_v31 }
0x1170   :  { %2433 = vrcp.f32 %v1647_v33 }
0x1179   :  { %v2432_v34 = vpop.eup %2431 }
0x117a   :  { %v2434_v37 = vpop.eup %2433  ;;  %v1627_v42 = vmul.f32 %v2432_v34, %v1429_v5 }
0x117b   :  { %v1651_v46 = vmul.f32 %v2434_v37, %v1453_v8 }
0x11da   :  { %v1630_v35 = vpop.permute.xlu0 %1629 }
0x11db   :  { %v1632_v36 = vmul.f32 %v2432_v34, %v1630_v35 }
0x11dd   :  { %1634 = vrot.lane.b32.xlu0 %v1632_v36, %s2459_s6 }
0x11de   :  { %v1654_v38 = vpop.permute.xlu1 %1653 }
0x11df   :  { %v1656_v41 = vmul.f32 %v2434_v37, %v1654_v38 }
0x11e1   :  { %1658 = vrot.lane.b32.xlu1 %v1656_v41, %s2459_s6 }
0x124f   :  { %v1635_v44 = vpop.permute.xlu0 %1634 }
0x1250   :  { %v1637_v45 = vadd.f32 %v1635_v44, %v1627_v42 }
0x1252   :  { %2435 = vtanh.f32 %v1637_v45 }
0x1253   :  { %v1659_v47 = vpop.permute.xlu1 %1658 }
0x1254   :  { %v1661_v48 = vadd.f32 %v1659_v47, %v1651_v46 }
0x1256   :  { %2437 = vtanh.f32 %v1661_v48 }
0x125c   :  { %v2436_v49 = vpop.eup %2435 }
0x125d   :  { %1640 = vrot.lane.b32.xlu0 %v2436_v49, %s2458_s3 }
0x1260   :  { %v2438_v50 = vpop.eup %2437 }
0x1261   :  { %1664 = vrot.lane.b32.xlu1 %v2438_v50, %s2458_s3 }
0x12cf   :  { %v1641_v51 = vpop.permute.xlu0 %1640 }
0x12d0   :  { %v1643_v52 = vmul.f32 %v2432_v34, %v1641_v51 }
0x12d2   :  { %1669 = vrot.lane.b32.xlu0 %v1643_v52, %s2459_s6 }
0x12d3   :  { %v1665_v53 = vpop.permute.xlu1 %1664 }
0x12d4   :  { %v1667_v54 = vmul.f32 %v2434_v37, %v1665_v53 }
0x12d6   :  { %1753 = vrot.lane.b32.xlu1 %v1667_v54, %s2459_s6 }
0x1344   :  { %v2798_v55 = vpop.permute.xlu0 %1669 }
0x1345   :  { %2205 = vmatmul.mubr.msk.f32.vlgmr.msra.gmra.mrb[16].mxu0 %vm216_vm3, %v2798_v55 }
0x1348   :  { %v1754_v56 = vpop.permute.xlu1 %1753 }
0x1349   :  { %2216 = vmatmul.mubr.msk.f32.vlgmr.msra.gmra.mrb[16].mxu1 %vm216_vm3, %v1754_v56 }
0x1418   :  { %v1747_v58 = vpop.f32.mrb[16].mxu0 }
0x1419   :  { %v1751_v60 = vadd.f32 %v1747_v58, %v1678_v57  ;;  %v2206_v61 = vpop.f32.mrb[17].mxu0 }
0x141b   :  { %2439 = vtanh.f32 %v1751_v60  ;;  %v1937_v5 = vmul.f32 -1.442695, %v1751_v60 }
0x141c   :  { %v1823_v63 = vpop.f32.mrb[16].mxu1 }
0x141d   :  { %v1827_v0 = vadd.f32 %v1823_v63, %v1752_v62  ;;  %v2217_v2 = vpop.f32.mrb[17].mxu1 }
0x141f   :  { %2441 = vtanh.f32 %v1827_v0  ;;  %v1938_v6 = vmul.f32 -1.442695, %v1827_v0 }
0x1420   :  { %2443 = vpow2.f32 %v1937_v5 }
0x1421   :  { %2445 = vpow2.f32 %v1938_v6 }
0x1425   :  { %v2440_v3 = vpop.eup %2439 }
0x1426   :  { %1837 = vrot.lane.b32.xlu0 %v2440_v3, %s2458_s3 }
0x1429   :  { %v2442_v4 = vpop.eup %2441 }
0x142a   :  { %1861 = vrot.lane.b32.xlu1 %v2442_v4, %s2458_s3  ;;  %v2444_v7 = vpop.eup %2443 }
0x142b   :  { %v1831_v8 = vadd.f32 1.0, %v2444_v7  ;;  %v2446_v9 = vpop.eup %2445 }
0x142c   :  { %v1855_v10 = vadd.f32 1.0, %v2446_v9 }
0x142d   :  { %2447 = vrcp.f32 %v1831_v8 }
0x142e   :  { %2449 = vrcp.f32 %v1855_v10 }
0x1437   :  { %v2448_v11 = vpop.eup %2447 }
0x1438   :  { %v2450_v23 = vpop.eup %2449  ;;  %v1835_v25 = vmul.f32 %v2448_v11, %v1637_v45 }
0x1439   :  { %v1859_v28 = vmul.f32 %v2450_v23, %v1661_v48 }
0x1498   :  { %v1838_v14 = vpop.permute.xlu0 %1837 }
0x1499   :  { %v1840_v15 = vmul.f32 %v2448_v11, %v1838_v14 }
0x149b   :  { %1842 = vrot.lane.b32.xlu0 %v1840_v15, %s2459_s6 }
0x149c   :  { %v1862_v12 = vpop.permute.xlu1 %1861 }
0x149d   :  { %v1864_v24 = vmul.f32 %v2450_v23, %v1862_v12 }
0x149f   :  { %1866 = vrot.lane.b32.xlu1 %v1864_v24, %s2459_s6 }
0x150d   :  { %v1843_v26 = vpop.permute.xlu0 %1842 }
0x150e   :  { %v1845_v27 = vadd.f32 %v1843_v26, %v1835_v25 }
0x1510   :  { %2451 = vtanh.f32 %v1845_v27 }
0x1511   :  { %v1867_v29 = vpop.permute.xlu1 %1866 }
0x1512   :  { %v1869_v30 = vadd.f32 %v1867_v29, %v1859_v28 }
0x1514   :  { %2453 = vtanh.f32 %v1869_v30 }
0x151a   :  { %v2452_v19 = vpop.eup %2451 }
0x151b   :  { %1848 = vrot.lane.b32.xlu0 %v2452_v19, %s2458_s3 }
0x151e   :  { %v2454_v16 = vpop.eup %2453 }
0x151f   :  { %1872 = vrot.lane.b32.xlu1 %v2454_v16, %s2458_s3  ;;  %418 = vrot.lane.b32.xlu0 %v2601_v1, %s2458_s3 }
0x1523   :  { %629 = vrot.lane.b32.xlu1 %v2638_v43, %s2458_s3  ;;  %839 = vrot.lane.b32.xlu0 %v2675_v22, %s2458_s3 }
0x1527   :  { %1049 = vrot.lane.b32.xlu1 %v2712_v59, %s2458_s3  ;;  %1258 = vrot.lane.b32.xlu0 %v2743_v39, %s2458_s3 }
0x152b   :  { %1466 = vrot.lane.b32.xlu1 %v2771_v17, %s2458_s3  ;;  %1674 = vrot.lane.b32.xlu0 %v1667_v54, %s2458_s3 }
0x158d   :  { %v1849_v13 = vpop.permute.xlu0 %1848 }
0x158e   :  { %v1851_v21 = vmul.f32 %v2448_v11, %v1849_v13 }
0x1590   :  { %1877 = vrot.lane.b32.xlu1 %v1851_v21, %s2459_s6 }
0x1591   :  { %v1873_v1 = vpop.permute.xlu1 %1872  ;;  %v419_v43 = vpop.permute.xlu0 %418 }
0x1592   :  { %v1875_v20 = vmul.f32 %v2450_v23, %v1873_v1  ;;  %1898 = vst.msk [vmem:[%s2882_s7 + $0xe] sm:$0x3] %vm422_vm4, %v419_v43 }
0x1594   :  { %1882 = vrot.lane.b32.xlu0 %v1875_v20, %s2458_s3 }
0x1595   :  { %v630_v22 = vpop.permute.xlu1 %629  ;;  %v840_v59 = vpop.permute.xlu0 %839 }
0x1596   :  { %1904 = vst.msk [vmem:[%s2882_s7 + $0xc] sm:$0x3] %vm422_vm4, %v630_v22  ;;  %1910 = vst.msk [vmem:[%s2882_s7 + $0xa] sm:$0x3] %vm422_vm4, %v840_v59 }
0x1597   :  { %1933 = vst.msk [vmem:[%s2882_s7 + $0xc] sm:$0x3] %vm415_vm2, %v2798_v55  ;;  %1927 = vst.msk [vmem:[%s2882_s7 + $0xa] sm:$0x3] %vm415_vm2, %v2775_v18 }
0x1599   :  { %v1050_v39 = vpop.permute.xlu1 %1049  ;;  %v1259_v17 = vpop.permute.xlu0 %1258 }
0x159a   :  { %1916 = vst.msk [vmem:[%s2882_s7 + $0x8] sm:$0x3] %vm422_vm4, %v1050_v39  ;;  %1922 = vst.msk [vmem:[%s2882_s7 + $0x6] sm:$0x3] %vm422_vm4, %v1259_v17 }
0x159b   :  { %1921 = vst.msk [vmem:[%s2882_s7 + $0x8] sm:$0x3] %vm415_vm2, %v2747_v40 }
0x159d   :  { %v1467_v31 = vpop.permute.xlu1 %1466  ;;  %v1675_v18 = vpop.permute.xlu0 %1674 }
0x159e   :  { %1928 = vst.msk [vmem:[%s2882_s7 + $0x4] sm:$0x3] %vm422_vm4, %v1467_v31  ;;  %1934 = vst.msk [vmem:[%s2882_s7 + $0x2] sm:$0x3] %vm422_vm4, %v1675_v18 }
0x1602   :  { %v1878_v32 = vpop.permute.xlu1 %1877 }
0x1603   :  { %1939 = vst.msk [vmem:[%s2882_s7 + $0xe] sm:$0x3] %vm415_vm2, %v1878_v32 }
0x1606   :  { %v1883_v33 = vpop.permute.xlu0 %1882 }
0x1607   :  { %1885 = vst.msk [vmem:[%s2882_s7] sm:$0x3] %vm422_vm4, %v1883_v33 }

// kernel: bilstm_merge_forward.8
= control target key start
LH: loop header
LB: loop body
LE: loop exit
PB: predicated region body
PF: predicated region fallthrough
CT: control target
= control target key end

     0   :  { %12 = vsyncpa [#allocation5], 0  ;;  %s4392_s0 = inlined_call_operand.vmem [shape: f32[24,64], index: 0, kind: input, shape index: {}]   ;;  %s4393_s1 = inlined_call_operand.vmem [shape: f32[64,128], index: 1, kind: input, shape index: {}]   ;;  %s4394_s2 = inlined_call_operand.vmem [shape: f32[32,128], index: 2, kind: input, shape index: {}]   ;;  %s4395_s3 = inlined_call_operand.hbm [shape: f32[1,128], index: 3, kind: input, shape index: {}]   ;;  %s4396_s4 = inlined_call_operand.vmem [shape: f32[64,128], index: 4, kind: input, shape index: {}]   ;;  %s4397_s5 = inlined_call_operand.vmem [shape: f32[32,128], index: 5, kind: input, shape index: {}]   ;;  %s4398_s6 = inlined_call_operand.hbm [shape: f32[1,128], index: 6, kind: input, shape index: {}]   ;;  %s4399_s7 = inlined_call_operand.vmem [shape: f32[12,2,64], index: 7, kind: output, shape index: {}]  }
   0x1   :  { %13 = vsyncpa [#allocation7], 0  ;;  %s3727_s24 = smov [#allocation4]   ;;  %s3728_s26 = smov [#allocation6]  }
   0x2   :  { %s26_s25 = sshll.u32 %s3727_s24, 4  ;;  %s40_s27 = sshll.u32 %s3728_s26, 4  ;;  %s27_s25 = int_to_ptr.vmem [resolvable:$true] %s26_s25  ;;  %s41_s27 = int_to_ptr.vmem [resolvable:$true] %s40_s27 }
   0x3   :  { %s3679_s30 = scalar_lea.hbm %s4395_s3, 16 }
   0x4   :  { %p3680_p0 = scmp.ne.s32.totalorder %s4395_s3, %s3679_s30  ;;  %p3683_p1 = scmp.lt.u32.totalorder %s3679_s30, %s4395_s3 }
   0x6   :  { %p3685_p2 = pnand %p3683_p1, %p3680_p0 }
   0x8   :  { %3688 = shalt.err (!%p3685_p2)
}
   0x9   :  { %s3689_s12 = scalar_lea.vmem %s27_s25, 16  ;;  %s3693_s13 = scalar_lea.vmem %s27_s25, 32 }
   0xa   :  { %p3690_p3 = scmp.ne.s32.totalorder %s27_s25, %s3689_s12  ;;  %p3694_p4 = scmp.lt.s32.totalorder %s27_s25, %s27_s25 }
   0xb   :  { %p3695_p5 = scmp.lt.s32.totalorder %s3693_s13, %s3689_s12 }
   0xd   :  { %p3696_p6 = por %p3695_p5, %p3694_p4 }
   0xf   :  { %p3697_p7 = pnand %p3696_p6, %p3690_p3 }
  0x11   :  { %3700 = shalt.err (!%p3697_p7)
}
  0x12   :  { %29 = dma.hbm_to_vmem [thread:$0]  %s4395_s3, 16, %s27_s25, [#allocation5]  }
  0x13   :  { %s3701_s18 = scalar_lea.hbm %s4398_s6, 16 }
  0x14   :  { %p3702_p8 = scmp.ne.s32.totalorder %s4398_s6, %s3701_s18  ;;  %p3705_p9 = scmp.lt.u32.totalorder %s3701_s18, %s4398_s6 }
  0x16   :  { %p3707_p10 = pnand %p3705_p9, %p3702_p8 }
  0x18   :  { %3710 = shalt.err (!%p3707_p10)
}
  0x19   :  { %s3711_s23 = scalar_lea.vmem %s41_s27, 16  ;;  %s3715_s24 = scalar_lea.vmem %s41_s27, 32 }
  0x1a   :  { %p3712_p11 = scmp.ne.s32.totalorder %s41_s27, %s3711_s23  ;;  %p3716_p12 = scmp.lt.s32.totalorder %s41_s27, %s41_s27 }
  0x1b   :  { %p3717_p13 = scmp.lt.s32.totalorder %s3715_s24, %s3711_s23 }
  0x1d   :  { %p3718_p0 = por %p3717_p13, %p3716_p12 }
  0x1f   :  { %p3719_p1 = pnand %p3718_p0, %p3712_p11 }
  0x21   :  { %3722 = shalt.err (!%p3719_p1)
}
  0x22   :  { %43 = dma.hbm_to_vmem [thread:$0]  %s4398_s6, 16, %s41_s27, [#allocation7]  }
  0x23   :  { %3723 = dma.done.wait [#allocation5], 16  }
  0x24   :  { %3724 = vsyncadd [#allocation5], 4294967280 }
  0x25   :  { %3725 = dma.done.wait [#allocation7], 16  }
  0x26   :  { %3726 = vsyncadd [#allocation7], 4294967280  ;;  %v3729_v0 = vmov 0.0|0.0   ;;  %vm3730_vm0 = vmmov 0   ;;  %v3731_v1 = vmov 0.0   ;;  %v53_v2 = vld [vmem:[%s4393_s1] sm:$0xff] }
  0x27   :  { %3312 = vmatprep.subr.bf16.mxu0 %v3729_v0  ;;  %3324 = vmatprep.subr.bf16.mxu1 %v3729_v0  ;;  %v54_v3 = vld [vmem:[%s4393_s1 + $0x8] sm:$0xff]  ;;  %v161_v4 = vld [vmem:[%s4396_s4] sm:$0xff]  ;;  %v55_v7 = vld [vmem:[%s4393_s1 + $0x10] sm:$0xff]  ;;  %vm68_vm1 = vcmask 523264   ;;  %s3733_s26 = smov 32   ;;  %vm467_vm2 = vcmask 254976  }
  0x28   :  { %3014 = vmatprep.mubr.msk.f32.mxu0 %vm3730_vm0, %v3731_v1  ;;  %3039 = vmatprep.mubr.msk.f32.mxu1 %vm3730_vm0, %v3731_v1  ;;  %v3313_v5 = vpack.c.bf16 %v54_v3, %v53_v2  ;;  %v162_v6 = vld [vmem:[%s4396_s4 + $0x8] sm:$0xff]  ;;  %v56_v8 = vld [vmem:[%s4393_s1 + $0x18] sm:$0xff]  ;;  %v163_v10 = vld [vmem:[%s4396_s4 + $0x10] sm:$0xff]  ;;  %vm268_vm3 = vcmask 261120   ;;  %vm474_vm4 = vcmask 517376  }
  0x29   :  { %v3325_v9 = vpack.c.bf16 %v162_v6, %v161_v4  ;;  %v164_v11 = vld [vmem:[%s4396_s4 + $0x18] sm:$0xff]  ;;  %v3316_v12 = vpack.c.bf16 %v56_v8, %v55_v7  ;;  %v57_v14 = vld [vmem:[%s4393_s1 + $0x20] sm:$0xff]  ;;  %v58_v15 = vld [vmem:[%s4393_s1 + $0x28] sm:$0xff] }
  0x2a   :  { %3314 = vmatpush3.bf16.msra.mxu0 %v3313_v5  ;;  %v3328_v13 = vpack.c.bf16 %v164_v11, %v163_v10  ;;  %v165_v16 = vld [vmem:[%s4396_s4 + $0x20] sm:$0xff]  ;;  %v166_v17 = vld [vmem:[%s4396_s4 + $0x28] sm:$0xff]  ;;  %v3319_v18 = vpack.c.bf16 %v58_v15, %v57_v14  ;;  %v59_v20 = vld [vmem:[%s4393_s1 + $0x30] sm:$0xff] }
  0x2b   :  { %3326 = vmatpush3.bf16.msra.mxu1 %v3325_v9  ;;  %3315 = vmatprep.subr.bf16.mxu0 %v3729_v0  ;;  %v3331_v19 = vpack.c.bf16 %v166_v17, %v165_v16  ;;  %v60_v21 = vld [vmem:[%s4393_s1 + $0x38] sm:$0xff]  ;;  %v167_v22 = vld [vmem:[%s4396_s4 + $0x30] sm:$0xff]  ;;  %v259_v26 = vld [vmem:[%s4394_s2] sm:$0xff] }
  0x2c   :  { %3327 = vmatprep.subr.bf16.mxu1 %v3729_v0  ;;  %v168_v23 = vld [vmem:[%s4396_s4 + $0x38] sm:$0xff]  ;;  %v3322_v24 = vpack.c.bf16 %v60_v21, %v59_v20  ;;  %v260_v27 = vld [vmem:[%s4394_s2 + $0x8] sm:$0xff]  ;;  %v263_v28 = vld [vmem:[%s4397_s5] sm:$0xff] }
  0x2d   :  { %v3334_v25 = vpack.c.bf16 %v168_v23, %v167_v22  ;;  %v264_v29 = vld [vmem:[%s4397_s5 + $0x8] sm:$0xff]  ;;  %v50_v30 = vld [vmem:[%s4392_s0] sm:$0xff]  ;;  %v3873_v31 = vpack.c.bf16 %v260_v27, %v259_v26  ;;  %v261_v33 = vld [vmem:[%s4394_s2 + $0x10] sm:$0xff] }
  0x2e   :  { %3317 = vmatpush3.bf16.msra.mxu0 %v3316_v12  ;;  %v3877_v32 = vpack.c.bf16 %v264_v29, %v263_v28  ;;  %v262_v34 = vld [vmem:[%s4394_s2 + $0x18] sm:$0xff]  ;;  %v265_v35 = vld [vmem:[%s4397_s5 + $0x10] sm:$0xff]  ;;  %v51_v37 = vld [vmem:[%s4392_s0 + $0x8] sm:$0xff] }
  0x2f   :  { %3329 = vmatpush3.bf16.msra.mxu1 %v3328_v13  ;;  %3318 = vmatprep.subr.bf16.mxu0 %v3729_v0  ;;  %v266_v36 = vld [vmem:[%s4397_s5 + $0x18] sm:$0xff]  ;;  %v3901_v38 = vpack.c.bf16 %v262_v34, %v261_v33  ;;  %v52_v40 = vld [vmem:[%s4392_s0 + $0x10] sm:$0xff]  ;;  %s3732_s0 = smov 64  }
  0x30   :  { %3330 = vmatprep.subr.bf16.mxu1 %v3729_v0  ;;  %v3905_v39 = vpack.c.bf16 %v266_v36, %v265_v35  ;;  %v2780_v41 = vld [vmem:[#allocation4] ss:$0 sm:$0xff]  ;;  %v2784_v42 = vld [vmem:[#allocation6] ss:$0 sm:$0xff] }
  0x32   :  { %3320 = vmatpush3.bf16.msra.mxu0 %v3319_v18 }
  0x33   :  { %3332 = vmatpush3.bf16.msra.mxu1 %v3331_v19  ;;  %3321 = vmatprep.subr.bf16.mxu0 %v3729_v0 }
  0x34   :  { %3333 = vmatprep.subr.bf16.mxu1 %v3729_v0 }
  0x36   :  { %3323 = vmatpush3.bf16.msra.mxu0 %v3322_v24 }
  0x37   :  { %3335 = vmatpush3.bf16.msra.mxu1 %v3334_v25  ;;  %3336 = vmatprep.subr.bf16.mxu0 %v3729_v0 }
  0x38   :  { %3342 = vmatprep.subr.bf16.mxu1 %v3729_v0 }
  0x39   :  { %3015 = vmatmul.mubr.msk.f32.vlgmr.msra.gmra.mrb[0].mxu0 %vm68_vm1, %v50_v30 }
  0x3a   :  { %3040 = vmatmul.mubr.msk.f32.vlgmr.msra.gmra.mrb[0].mxu1 %vm68_vm1, %v50_v30  ;;  %3338 = vmatpush3.bf16.msra.mxu0 %v3873_v31 }
  0x3b   :  { %3017 = vmatprep.mubr.msk.f32.mxu0 %vm3730_vm0, %v3731_v1  ;;  %3042 = vmatprep.mubr.msk.f32.mxu1 %vm3730_vm0, %v3731_v1 }
  0x3c   :  { %3344 = vmatpush3.bf16.msra.mxu1 %v3877_v32  ;;  %3339 = vmatprep.subr.bf16.mxu0 %v3729_v0 }
  0x3d   :  { %3018 = vmatmul.mubr.msk.f32.gmra.mrb[2].mxu0 %vm68_vm1, %v51_v37  ;;  %3345 = vmatprep.subr.bf16.mxu1 %v3729_v0 }
  0x3e   :  { %3043 = vmatmul.mubr.msk.f32.gmra.mrb[2].mxu1 %vm68_vm1, %v51_v37  ;;  %3020 = vmatprep.mubr.msk.f32.mxu0 %vm3730_vm0, %v3731_v1 }
  0x3f   :  { %3045 = vmatprep.mubr.msk.f32.mxu1 %vm3730_vm0, %v3731_v1  ;;  %3341 = vmatpush3.bf16.msra.mxu0 %v3901_v38 }
  0x40   :  { %3347 = vmatpush3.bf16.msra.mxu1 %v3905_v39  ;;  %3348 = vmatprep.subr.bf16.mxu0 %v3729_v0 }
  0x41   :  { %3021 = vmatmul.mubr.msk.f32.gmra.mrb[4].mxu0 %vm68_vm1, %v52_v40  ;;  %3354 = vmatprep.subr.bf16.mxu1 %v3729_v0 }
  0x42   :  { %3046 = vmatmul.mubr.msk.f32.gmra.mrb[4].mxu1 %vm68_vm1, %v52_v40  ;;  %3056 = vmatprep.mubr.msk.f32.mxu0 %vm3730_vm0, %v3731_v1 }
  0x43   :  { %3067 = vmatprep.mubr.msk.f32.mxu1 %vm3730_vm0, %v3731_v1 }
  0x45   :  { %3057 = vmatmul.mubr.f32.vlgmr.msra.gmra.mrb[6].mxu0 %v3731_v1 }
  0x46   :  { %3068 = vmatmul.mubr.f32.vlgmr.msra.gmra.mrb[6].mxu1 %v3731_v1  ;;  %3350 = vmatpush3.bf16.msra.mxu0 %v3873_v31 }
  0x47   :  { %3351 = vmatprep.subr.bf16.mxu0 %v3729_v0  ;;  %3078 = vmatprep.mubr.msk.f32.mxu0 %vm3730_vm0, %v3731_v1 }
  0x48   :  { %3356 = vmatpush3.bf16.msra.mxu1 %v3877_v32  ;;  %3089 = vmatprep.mubr.msk.f32.mxu1 %vm3730_vm0, %v3731_v1 }
  0x49   :  { %3357 = vmatprep.subr.bf16.mxu1 %v3729_v0 }
  0x4a   :  { %3353 = vmatpush3.bf16.msra.mxu0 %v3901_v38 }
  0x4b   :  { %3360 = vmatprep.subr.bf16.mxu0 %v3729_v0 }
  0x4c   :  { %3359 = vmatpush3.bf16.msra.mxu1 %v3905_v39 }
  0x4d   :  { %3366 = vmatprep.subr.bf16.mxu1 %v3729_v0 }
 0x10c   :  { %v144_v43 = vpop.f32.mrb[0].mxu0 }
 0x10d   :  { %v242_v44 = vpop.f32.mrb[0].mxu1  ;;  %v145_v45 = vadd.f32 %v2780_v41, %v144_v43  ;;  %v3016_v46 = vpop.f32.mrb[1].mxu0 }
 0x10e   :  { %v243_v47 = vadd.f32 %v2784_v42, %v242_v44  ;;  %v3041_v48 = vpop.f32.mrb[1].mxu1 }
 0x10f   :  { %158 = vst [vmem:[#allocation2] sm:$0xff] %v145_v45 }
 0x110   :  { %256 = vst [vmem:[#allocation3] sm:$0xff] %v243_v47  ;;  %v149_v49 = vpop.f32.mrb[2].mxu0 }
 0x111   :  { %v247_v50 = vpop.f32.mrb[2].mxu1  ;;  %v150_v51 = vadd.f32 %v2780_v41, %v149_v49  ;;  %v3019_v52 = vpop.f32.mrb[3].mxu0 }
 0x112   :  { %v248_v53 = vadd.f32 %v2784_v42, %v247_v50  ;;  %v3044_v54 = vpop.f32.mrb[3].mxu1 }
 0x113   :  { %159 = vst [vmem:[#allocation2 + $0x8] sm:$0xff] %v150_v51 }
 0x114   :  { %257 = vst [vmem:[#allocation3 + $0x8] sm:$0xff] %v248_v53  ;;  %v154_v55 = vpop.f32.mrb[4].mxu0 }
 0x115   :  { %v252_v56 = vpop.f32.mrb[4].mxu1  ;;  %v155_v57 = vadd.f32 %v2780_v41, %v154_v55  ;;  %v3022_v58 = vpop.f32.mrb[5].mxu0 }
 0x116   :  { %v253_v59 = vadd.f32 %v2784_v42, %v252_v56  ;;  %v3047_v60 = vpop.f32.mrb[5].mxu1  ;;  %v267_v61 = vld [vmem:[#allocation2] sm:$0x3]  ;;  %v476_v37 = vld [vmem:[#allocation2 + $0x2] sm:$0x3] }
 0x117   :  { %160 = vst [vmem:[#allocation2 + $0x10] sm:$0xff] %v155_v57 }
 0x118   :  { %258 = vst [vmem:[#allocation3 + $0x10] sm:$0xff] %v253_v59  ;;  %v338_v62 = vpop.f32.mrb[6].mxu0 }
 0x119   :  { %v342_v63 = vadd.f32 %v338_v62, %v267_v61  ;;  %v3058_v2 = vpop.f32.mrb[7].mxu0  ;;  %v410_v3 = vpop.f32.mrb[6].mxu1 }
 0x11a   :  { %v3069_v4 = vpop.f32.mrb[7].mxu1 }
 0x11b   :  { %3487 = vtanh.f32 %v342_v63  ;;  %v2788_v9 = vmul.f32 -1.442695, %v342_v63 }
 0x11f   :  { %v343_v5 = vld [vmem:[#allocation3 + $0x16] sm:$0x3]  ;;  %v550_v43 = vld [vmem:[#allocation3 + $0x14] sm:$0x3] }
 0x120   :  { %v414_v6 = vadd.f32 %v410_v3, %v343_v5 }
 0x122   :  { %3489 = vtanh.f32 %v414_v6  ;;  %v2789_v10 = vmul.f32 -1.442695, %v414_v6 }
 0x123   :  { %3491 = vpow2.f32 %v2788_v9 }
 0x124   :  { %3493 = vpow2.f32 %v2789_v10 }
 0x125   :  { %v3488_v7 = vpop.eup %3487 }
 0x126   :  { %424 = vrot.lane.b32.xlu0 %v3488_v7, %s3732_s0 }
 0x12c   :  { %v3490_v8 = vpop.eup %3489 }
 0x12d   :  { %448 = vrot.lane.b32.xlu0 %v3490_v8, %s3732_s0  ;;  %v3492_v11 = vpop.eup %3491 }
 0x12e   :  { %v418_v12 = vadd.f32 1.0, %v3492_v11  ;;  %v3494_v13 = vpop.eup %3493 }
 0x12f   :  { %v442_v14 = vadd.f32 1.0, %v3494_v13  ;;  %v686_v13 = vld [vmem:[#allocation2 + $0x4] sm:$0x3] }
 0x130   :  { %3495 = vrcp.f32 %v418_v12 }
 0x131   :  { %3497 = vrcp.f32 %v442_v14 }
 0x13a   :  { %v3496_v15 = vpop.eup %3495 }
 0x13b   :  { %v3498_v18 = vpop.eup %3497  ;;  %v422_v21 = vmul.f32 0.0, %v3496_v15 }
 0x13c   :  { %v446_v24 = vmul.f32 0.0, %v3498_v18 }
 0x198   :  { %v425_v16 = vpop.permute.xlu0 %424 }
 0x199   :  { %v427_v17 = vmul.f32 %v3496_v15, %v425_v16 }
 0x19b   :  { %429 = vrot.lane.b32.xlu1 %v427_v17, %s3733_s26  ;;  %v760_v17 = vld [vmem:[#allocation3 + $0x12] sm:$0x3] }
 0x19f   :  { %v449_v19 = vpop.permute.xlu0 %448 }
 0x1a0   :  { %v451_v20 = vmul.f32 %v3498_v18, %v449_v19 }
 0x1a2   :  { %453 = vrot.lane.b32.xlu1 %v451_v20, %s3733_s26 }
 0x20d   :  { %v430_v22 = vpop.permute.xlu1 %429 }
 0x20e   :  { %v3945_v23 = vadd.f32 %v430_v22, %v422_v21 }
 0x210   :  { %3499 = vtanh.f32 %v3945_v23 }
 0x214   :  { %v454_v25 = vpop.permute.xlu1 %453 }
 0x215   :  { %v3948_v26 = vadd.f32 %v454_v25, %v446_v24 }
 0x217   :  { %3501 = vtanh.f32 %v3948_v26 }
 0x21a   :  { %v3500_v27 = vpop.eup %3499 }
 0x21b   :  { %435 = vrot.lane.b32.xlu0 %v3500_v27, %s3732_s0 }
 0x221   :  { %v3502_v28 = vpop.eup %3501 }
 0x222   :  { %459 = vrot.lane.b32.xlu1 %v3502_v28, %s3732_s0 }
 0x28d   :  { %v436_v29 = vpop.permute.xlu0 %435 }
 0x28e   :  { %v438_v30 = vmul.f32 %v3496_v15, %v436_v29 }
 0x290   :  { %464 = vrot.lane.b32.xlu0 %v438_v30, %s3733_s26 }
 0x294   :  { %v460_v33 = vpop.permute.xlu1 %459 }
 0x295   :  { %v3954_v34 = vmul.f32 %v3498_v18, %v460_v33 }
 0x297   :  { %551 = vrot.lane.b32.xlu1 %v3954_v34, %s3733_s26 }
 0x302   :  { %v465_v35 = vpop.permute.xlu0 %464 }
 0x303   :  { %468 = vst.msk [vmem:[%s4399_s7] sm:$0x3] %vm467_vm2, %v465_v35  ;;  %3079 = vmatmul.mubr.msk.f32.vlgmr.msra.gmra.mrb[8].mxu0 %vm268_vm3, %v465_v35 }
 0x304   :  { %3362 = vmatpush3.bf16.msra.mxu0 %v3873_v31  ;;  %3100 = vmatprep.mubr.msk.f32.mxu0 %vm3730_vm0, %v3731_v1 }
 0x305   :  { %3363 = vmatprep.subr.bf16.mxu0 %v3729_v0 }
 0x308   :  { %3365 = vmatpush3.bf16.msra.mxu0 %v3901_v38 }
 0x309   :  { %v552_v36 = vpop.permute.xlu1 %551  ;;  %3372 = vmatprep.subr.bf16.mxu0 %v3729_v0 }
 0x30a   :  { %3090 = vmatmul.mubr.msk.f32.vlgmr.msra.gmra.mrb[8].mxu1 %vm268_vm3, %v552_v36 }
 0x30b   :  { %3368 = vmatpush3.bf16.msra.mxu1 %v3877_v32  ;;  %3111 = vmatprep.mubr.msk.f32.mxu1 %vm3730_vm0, %v3731_v1 }
 0x30c   :  { %3369 = vmatprep.subr.bf16.mxu1 %v3729_v0 }
 0x30f   :  { %3371 = vmatpush3.bf16.msra.mxu1 %v3905_v39 }
 0x310   :  { %3378 = vmatprep.subr.bf16.mxu1 %v3729_v0 }
 0x3d6   :  { %v545_v40 = vpop.f32.mrb[8].mxu0 }
 0x3d7   :  { %v549_v41 = vadd.f32 %v545_v40, %v476_v37  ;;  %v3080_v42 = vpop.f32.mrb[9].mxu0 }
 0x3d9   :  { %3503 = vtanh.f32 %v549_v41  ;;  %v2793_v49 = vmul.f32 -1.442695, %v549_v41 }
 0x3dd   :  { %v621_v44 = vpop.f32.mrb[8].mxu1 }
 0x3de   :  { %v625_v45 = vadd.f32 %v621_v44, %v550_v43  ;;  %v3091_v46 = vpop.f32.mrb[9].mxu1 }
 0x3e0   :  { %3505 = vtanh.f32 %v625_v45  ;;  %v2794_v50 = vmul.f32 -1.442695, %v625_v45 }
 0x3e1   :  { %3507 = vpow2.f32 %v2793_v49 }
 0x3e2   :  { %3509 = vpow2.f32 %v2794_v50 }
 0x3e3   :  { %v3504_v47 = vpop.eup %3503 }
 0x3e4   :  { %635 = vrot.lane.b32.xlu0 %v3504_v47, %s3732_s0 }
 0x3ea   :  { %v3506_v48 = vpop.eup %3505 }
 0x3eb   :  { %659 = vrot.lane.b32.xlu1 %v3506_v48, %s3732_s0  ;;  %v3508_v51 = vpop.eup %3507 }
 0x3ec   :  { %v629_v52 = vadd.f32 1.0, %v3508_v51  ;;  %v3510_v53 = vpop.eup %3509 }
 0x3ed   :  { %v653_v54 = vadd.f32 1.0, %v3510_v53 }
 0x3ee   :  { %3511 = vrcp.f32 %v629_v52 }
 0x3ef   :  { %3513 = vrcp.f32 %v653_v54  ;;  %v896_v54 = vld [vmem:[#allocation2 + $0x6] sm:$0x3] }
 0x3f8   :  { %v3512_v55 = vpop.eup %3511 }
 0x3f9   :  { %v3514_v58 = vpop.eup %3513  ;;  %v633_v61 = vmul.f32 %v3512_v55, %v3945_v23 }
 0x3fa   :  { %v657_v2 = vmul.f32 %v3514_v58, %v3948_v26 }
 0x456   :  { %v636_v56 = vpop.permute.xlu0 %635 }
 0x457   :  { %v638_v57 = vmul.f32 %v3512_v55, %v636_v56 }
 0x459   :  { %640 = vrot.lane.b32.xlu0 %v638_v57, %s3733_s26 }
 0x45d   :  { %v660_v59 = vpop.permute.xlu1 %659 }
 0x45e   :  { %v662_v60 = vmul.f32 %v3514_v58, %v660_v59 }
 0x460   :  { %664 = vrot.lane.b32.xlu1 %v662_v60, %s3733_s26 }
 0x4cb   :  { %v641_v62 = vpop.permute.xlu0 %640 }
 0x4cc   :  { %v3981_v63 = vadd.f32 %v641_v62, %v633_v61 }
 0x4ce   :  { %3515 = vtanh.f32 %v3981_v63 }
 0x4d2   :  { %v665_v3 = vpop.permute.xlu1 %664 }
 0x4d3   :  { %v3985_v4 = vadd.f32 %v665_v3, %v657_v2 }
 0x4d5   :  { %3517 = vtanh.f32 %v3985_v4 }
 0x4d8   :  { %v3516_v5 = vpop.eup %3515 }
 0x4d9   :  { %646 = vrot.lane.b32.xlu0 %v3516_v5, %s3732_s0 }
 0x4df   :  { %v3518_v6 = vpop.eup %3517 }
 0x4e0   :  { %670 = vrot.lane.b32.xlu1 %v3518_v6, %s3732_s0 }
 0x54b   :  { %v647_v7 = vpop.permute.xlu0 %646 }
 0x54c   :  { %v649_v8 = vmul.f32 %v3512_v55, %v647_v7 }
 0x54e   :  { %675 = vrot.lane.b32.xlu0 %v649_v8, %s3733_s26 }
 0x552   :  { %v671_v9 = vpop.permute.xlu1 %670 }
 0x553   :  { %v3991_v10 = vmul.f32 %v3514_v58, %v671_v9  ;;  %v970_v58 = vld [vmem:[#allocation3 + $0x10] sm:$0x3] }
 0x555   :  { %761 = vrot.lane.b32.xlu1 %v3991_v10, %s3733_s26 }
 0x5c0   :  { %v676_v11 = vpop.permute.xlu0 %675 }
 0x5c1   :  { %2795 = vst.msk [vmem:[%s4399_s7 + $0x2] sm:$0x3] %vm467_vm2, %v676_v11  ;;  %3101 = vmatmul.mubr.msk.f32.vlgmr.msra.gmra.mrb[10].mxu0 %vm268_vm3, %v676_v11 }
 0x5c2   :  { %3374 = vmatpush3.bf16.msra.mxu0 %v3873_v31  ;;  %3122 = vmatprep.mubr.msk.f32.mxu0 %vm3730_vm0, %v3731_v1 }
 0x5c3   :  { %3375 = vmatprep.subr.bf16.mxu0 %v3729_v0 }
 0x5c6   :  { %3377 = vmatpush3.bf16.msra.mxu0 %v3901_v38 }
 0x5c7   :  { %v762_v12 = vpop.permute.xlu1 %761  ;;  %3384 = vmatprep.subr.bf16.mxu0 %v3729_v0 }
 0x5c8   :  { %3112 = vmatmul.mubr.msk.f32.vlgmr.msra.gmra.mrb[10].mxu1 %vm268_vm3, %v762_v12 }
 0x5c9   :  { %3380 = vmatpush3.bf16.msra.mxu1 %v3877_v32  ;;  %3133 = vmatprep.mubr.msk.f32.mxu1 %vm3730_vm0, %v3731_v1 }
 0x5ca   :  { %3381 = vmatprep.subr.bf16.mxu1 %v3729_v0 }
 0x5cd   :  { %3383 = vmatpush3.bf16.msra.mxu1 %v3905_v39 }
 0x5ce   :  { %3390 = vmatprep.subr.bf16.mxu1 %v3729_v0 }
 0x694   :  { %v755_v14 = vpop.f32.mrb[10].mxu0 }
 0x695   :  { %v759_v15 = vadd.f32 %v755_v14, %v686_v13  ;;  %v3102_v16 = vpop.f32.mrb[11].mxu0 }
 0x697   :  { %3519 = vtanh.f32 %v759_v15  ;;  %v2799_v23 = vmul.f32 -1.442695, %v759_v15 }
 0x69b   :  { %v831_v18 = vpop.f32.mrb[10].mxu1 }
 0x69c   :  { %v835_v19 = vadd.f32 %v831_v18, %v760_v17  ;;  %v3113_v20 = vpop.f32.mrb[11].mxu1 }
 0x69e   :  { %3521 = vtanh.f32 %v835_v19  ;;  %v2800_v24 = vmul.f32 -1.442695, %v835_v19 }
 0x69f   :  { %3523 = vpow2.f32 %v2799_v23 }
 0x6a0   :  { %3525 = vpow2.f32 %v2800_v24 }
 0x6a1   :  { %v3520_v21 = vpop.eup %3519 }
 0x6a2   :  { %845 = vrot.lane.b32.xlu0 %v3520_v21, %s3732_s0 }
 0x6a8   :  { %v3522_v22 = vpop.eup %3521 }
 0x6a9   :  { %869 = vrot.lane.b32.xlu1 %v3522_v22, %s3732_s0  ;;  %v3524_v25 = vpop.eup %3523 }
 0x6aa   :  { %v839_v26 = vadd.f32 1.0, %v3524_v25  ;;  %v3526_v27 = vpop.eup %3525 }
 0x6ab   :  { %v863_v28 = vadd.f32 1.0, %v3526_v27 }
 0x6ac   :  { %3527 = vrcp.f32 %v839_v26 }
 0x6ad   :  { %3529 = vrcp.f32 %v863_v28 }
 0x6b6   :  { %v3528_v29 = vpop.eup %3527 }
 0x6b7   :  { %v3530_v35 = vpop.eup %3529  ;;  %v843_v40 = vmul.f32 %v3528_v29, %v3981_v63 }
 0x6b8   :  { %v867_v43 = vmul.f32 %v3530_v35, %v3985_v4 }
 0x714   :  { %v846_v30 = vpop.permute.xlu0 %845 }
 0x715   :  { %v848_v33 = vmul.f32 %v3528_v29, %v846_v30 }
 0x717   :  { %850 = vrot.lane.b32.xlu0 %v848_v33, %s3733_s26 }
 0x71b   :  { %v870_v36 = vpop.permute.xlu1 %869 }
 0x71c   :  { %v872_v37 = vmul.f32 %v3530_v35, %v870_v36  ;;  %v1180_v36 = vld [vmem:[#allocation3 + $0xe] sm:$0x3] }
 0x71e   :  { %874 = vrot.lane.b32.xlu1 %v872_v37, %s3733_s26 }
 0x789   :  { %v851_v41 = vpop.permute.xlu0 %850 }
 0x78a   :  { %v4018_v42 = vadd.f32 %v851_v41, %v843_v40 }
 0x78c   :  { %3531 = vtanh.f32 %v4018_v42 }
 0x790   :  { %v875_v44 = vpop.permute.xlu1 %874 }
 0x791   :  { %v4022_v45 = vadd.f32 %v875_v44, %v867_v43 }
 0x793   :  { %3533 = vtanh.f32 %v4022_v45 }
 0x796   :  { %v3532_v46 = vpop.eup %3531 }
 0x797   :  { %856 = vrot.lane.b32.xlu0 %v3532_v46, %s3732_s0 }
 0x79d   :  { %v3534_v47 = vpop.eup %3533 }
 0x79e   :  { %880 = vrot.lane.b32.xlu1 %v3534_v47, %s3732_s0 }
 0x809   :  { %v857_v48 = vpop.permute.xlu0 %856 }
 0x80a   :  { %v859_v49 = vmul.f32 %v3528_v29, %v857_v48  ;;  %v1106_v29 = vld [vmem:[#allocation2 + $0x8] sm:$0x3] }
 0x80c   :  { %885 = vrot.lane.b32.xlu0 %v859_v49, %s3733_s26 }
 0x810   :  { %v881_v50 = vpop.permute.xlu1 %880 }
 0x811   :  { %v4028_v51 = vmul.f32 %v3530_v35, %v881_v50 }
 0x813   :  { %971 = vrot.lane.b32.xlu1 %v4028_v51, %s3733_s26 }
 0x87e   :  { %v886_v52 = vpop.permute.xlu0 %885 }
 0x87f   :  { %2801 = vst.msk [vmem:[%s4399_s7 + $0x4] sm:$0x3] %vm467_vm2, %v886_v52  ;;  %3123 = vmatmul.mubr.msk.f32.vlgmr.msra.gmra.mrb[12].mxu0 %vm268_vm3, %v886_v52 }
 0x880   :  { %3386 = vmatpush3.bf16.msra.mxu0 %v3873_v31  ;;  %3144 = vmatprep.mubr.msk.f32.mxu0 %vm3730_vm0, %v3731_v1 }
 0x881   :  { %3387 = vmatprep.subr.bf16.mxu0 %v3729_v0 }
 0x884   :  { %3389 = vmatpush3.bf16.msra.mxu0 %v3901_v38 }
 0x885   :  { %v972_v53 = vpop.permute.xlu1 %971  ;;  %3396 = vmatprep.subr.bf16.mxu0 %v3729_v0 }
 0x886   :  { %3134 = vmatmul.mubr.msk.f32.vlgmr.msra.gmra.mrb[12].mxu1 %vm268_vm3, %v972_v53 }
 0x887   :  { %3392 = vmatpush3.bf16.msra.mxu1 %v3877_v32  ;;  %3155 = vmatprep.mubr.msk.f32.mxu1 %vm3730_vm0, %v3731_v1 }
 0x888   :  { %3393 = vmatprep.subr.bf16.mxu1 %v3729_v0 }
 0x88b   :  { %3395 = vmatpush3.bf16.msra.mxu1 %v3905_v39 }
 0x88c   :  { %3402 = vmatprep.subr.bf16.mxu1 %v3729_v0 }
 0x952   :  { %v965_v55 = vpop.f32.mrb[12].mxu0 }
 0x953   :  { %v969_v56 = vadd.f32 %v965_v55, %v896_v54  ;;  %v3124_v57 = vpop.f32.mrb[13].mxu0 }
 0x955   :  { %3535 = vtanh.f32 %v969_v56  ;;  %v2805_v2 = vmul.f32 -1.442695, %v969_v56 }
 0x959   :  { %v1041_v59 = vpop.f32.mrb[12].mxu1 }
 0x95a   :  { %v1045_v60 = vadd.f32 %v1041_v59, %v970_v58  ;;  %v3135_v61 = vpop.f32.mrb[13].mxu1 }
 0x95c   :  { %3537 = vtanh.f32 %v1045_v60  ;;  %v2806_v3 = vmul.f32 -1.442695, %v1045_v60 }
 0x95d   :  { %3539 = vpow2.f32 %v2805_v2 }
 0x95e   :  { %3541 = vpow2.f32 %v2806_v3 }
 0x95f   :  { %v3536_v62 = vpop.eup %3535 }
 0x960   :  { %1055 = vrot.lane.b32.xlu0 %v3536_v62, %s3732_s0 }
 0x966   :  { %v3538_v63 = vpop.eup %3537 }
 0x967   :  { %1079 = vrot.lane.b32.xlu1 %v3538_v63, %s3732_s0  ;;  %v3540_v4 = vpop.eup %3539 }
 0x968   :  { %v1049_v5 = vadd.f32 1.0, %v3540_v4  ;;  %v3542_v6 = vpop.eup %3541 }
 0x969   :  { %v1073_v7 = vadd.f32 1.0, %v3542_v6 }
 0x96a   :  { %3543 = vrcp.f32 %v1049_v5 }
 0x96b   :  { %3545 = vrcp.f32 %v1073_v7 }
 0x974   :  { %v3544_v8 = vpop.eup %3543 }
 0x975   :  { %v3546_v12 = vpop.eup %3545  ;;  %v1053_v15 = vmul.f32 %v3544_v8, %v4018_v42 }
 0x976   :  { %v1077_v18 = vmul.f32 %v3546_v12, %v4022_v45 }
 0x9d2   :  { %v1056_v9 = vpop.permute.xlu0 %1055 }
 0x9d3   :  { %v1058_v11 = vmul.f32 %v3544_v8, %v1056_v9  ;;  %v1316_v9 = vld [vmem:[#allocation2 + $0xa] sm:$0x3] }
 0x9d5   :  { %1060 = vrot.lane.b32.xlu0 %v1058_v11, %s3733_s26 }
 0x9d9   :  { %v1080_v13 = vpop.permute.xlu1 %1079 }
 0x9da   :  { %v1082_v14 = vmul.f32 %v3546_v12, %v1080_v13 }
 0x9dc   :  { %1084 = vrot.lane.b32.xlu1 %v1082_v14, %s3733_s26  ;;  %v1390_v14 = vld [vmem:[#allocation3 + $0xc] sm:$0x3] }
 0xa47   :  { %v1061_v16 = vpop.permute.xlu0 %1060 }
 0xa48   :  { %v4055_v17 = vadd.f32 %v1061_v16, %v1053_v15 }
 0xa4a   :  { %3547 = vtanh.f32 %v4055_v17 }
 0xa4e   :  { %v1085_v19 = vpop.permute.xlu1 %1084 }
 0xa4f   :  { %v4059_v20 = vadd.f32 %v1085_v19, %v1077_v18 }
 0xa51   :  { %3549 = vtanh.f32 %v4059_v20 }
 0xa54   :  { %v3548_v21 = vpop.eup %3547 }
 0xa55   :  { %1066 = vrot.lane.b32.xlu0 %v3548_v21, %s3732_s0 }
 0xa5b   :  { %v3550_v22 = vpop.eup %3549 }
 0xa5c   :  { %1090 = vrot.lane.b32.xlu1 %v3550_v22, %s3732_s0 }
 0xac7   :  { %v1067_v23 = vpop.permute.xlu0 %1066 }
 0xac8   :  { %v1069_v24 = vmul.f32 %v3544_v8, %v1067_v23 }
 0xaca   :  { %1095 = vrot.lane.b32.xlu0 %v1069_v24, %s3733_s26 }
 0xace   :  { %v1091_v25 = vpop.permute.xlu1 %1090 }
 0xacf   :  { %v4065_v26 = vmul.f32 %v3546_v12, %v1091_v25 }
 0xad1   :  { %1181 = vrot.lane.b32.xlu1 %v4065_v26, %s3733_s26 }
 0xb3c   :  { %v1096_v27 = vpop.permute.xlu0 %1095 }
 0xb3d   :  { %2807 = vst.msk [vmem:[%s4399_s7 + $0x6] sm:$0x3] %vm467_vm2, %v1096_v27  ;;  %3145 = vmatmul.mubr.msk.f32.vlgmr.msra.gmra.mrb[14].mxu0 %vm268_vm3, %v1096_v27 }
 0xb3e   :  { %3398 = vmatpush3.bf16.msra.mxu0 %v3873_v31  ;;  %3166 = vmatprep.mubr.msk.f32.mxu0 %vm3730_vm0, %v3731_v1 }
 0xb3f   :  { %3399 = vmatprep.subr.bf16.mxu0 %v3729_v0 }
 0xb42   :  { %3401 = vmatpush3.bf16.msra.mxu0 %v3901_v38 }
 0xb43   :  { %v1182_v28 = vpop.permute.xlu1 %1181  ;;  %3408 = vmatprep.subr.bf16.mxu0 %v3729_v0 }
 0xb44   :  { %3156 = vmatmul.mubr.msk.f32.vlgmr.msra.gmra.mrb[14].mxu1 %vm268_vm3, %v1182_v28 }
 0xb45   :  { %3404 = vmatpush3.bf16.msra.mxu1 %v3877_v32  ;;  %3177 = vmatprep.mubr.msk.f32.mxu1 %vm3730_vm0, %v3731_v1 }
 0xb46   :  { %3405 = vmatprep.subr.bf16.mxu1 %v3729_v0 }
 0xb49   :  { %3407 = vmatpush3.bf16.msra.mxu1 %v3905_v39 }
 0xb4a   :  { %3414 = vmatprep.subr.bf16.mxu1 %v3729_v0 }
 0xc10   :  { %v1175_v30 = vpop.f32.mrb[14].mxu0 }
 0xc11   :  { %v1179_v33 = vadd.f32 %v1175_v30, %v1106_v29  ;;  %v3146_v35 = vpop.f32.mrb[15].mxu0 }
 0xc13   :  { %3551 = vtanh.f32 %v1179_v33  ;;  %v2811_v44 = vmul.f32 -1.442695, %v1179_v33 }
 0xc17   :  { %v1251_v37 = vpop.f32.mrb[14].mxu1 }
 0xc18   :  { %v1255_v40 = vadd.f32 %v1251_v37, %v1180_v36  ;;  %v3157_v41 = vpop.f32.mrb[15].mxu1 }
 0xc1a   :  { %3553 = vtanh.f32 %v1255_v40  ;;  %v2812_v45 = vmul.f32 -1.442695, %v1255_v40 }
 0xc1b   :  { %3555 = vpow2.f32 %v2811_v44 }
 0xc1c   :  { %3557 = vpow2.f32 %v2812_v45 }
 0xc1d   :  { %v3552_v42 = vpop.eup %3551 }
 0xc1e   :  { %1265 = vrot.lane.b32.xlu0 %v3552_v42, %s3732_s0 }
 0xc24   :  { %v3554_v43 = vpop.eup %3553 }
 0xc25   :  { %1289 = vrot.lane.b32.xlu1 %v3554_v43, %s3732_s0  ;;  %v3556_v46 = vpop.eup %3555 }
 0xc26   :  { %v1259_v47 = vadd.f32 1.0, %v3556_v46  ;;  %v3558_v48 = vpop.eup %3557 }
 0xc27   :  { %v1283_v49 = vadd.f32 1.0, %v3558_v48 }
 0xc28   :  { %3559 = vrcp.f32 %v1259_v47 }
 0xc29   :  { %3561 = vrcp.f32 %v1283_v49 }
 0xc32   :  { %v3560_v50 = vpop.eup %3559 }
 0xc33   :  { %v3562_v54 = vpop.eup %3561  ;;  %v1263_v57 = vmul.f32 %v3560_v50, %v4055_v17 }
 0xc34   :  { %v1287_v60 = vmul.f32 %v3562_v54, %v4059_v20 }
 0xc90   :  { %v1266_v52 = vpop.permute.xlu0 %1265 }
 0xc91   :  { %v1268_v53 = vmul.f32 %v3560_v50, %v1266_v52 }
 0xc93   :  { %1270 = vrot.lane.b32.xlu0 %v1268_v53, %s3733_s26  ;;  %v1526_v53 = vld [vmem:[#allocation2 + $0xc] sm:$0x3] }
 0xc97   :  { %v1290_v55 = vpop.permute.xlu1 %1289 }
 0xc98   :  { %v1292_v56 = vmul.f32 %v3562_v54, %v1290_v55 }
 0xc9a   :  { %1294 = vrot.lane.b32.xlu1 %v1292_v56, %s3733_s26 }
 0xd05   :  { %v1271_v58 = vpop.permute.xlu0 %1270 }
 0xd06   :  { %v4092_v59 = vadd.f32 %v1271_v58, %v1263_v57  ;;  %v1600_v57 = vld [vmem:[#allocation3 + $0xa] sm:$0x3] }
 0xd08   :  { %3563 = vtanh.f32 %v4092_v59 }
 0xd0c   :  { %v1295_v61 = vpop.permute.xlu1 %1294 }
 0xd0d   :  { %v4096_v62 = vadd.f32 %v1295_v61, %v1287_v60 }
 0xd0f   :  { %3565 = vtanh.f32 %v4096_v62 }
 0xd12   :  { %v3564_v63 = vpop.eup %3563 }
 0xd13   :  { %1276 = vrot.lane.b32.xlu0 %v3564_v63, %s3732_s0 }
 0xd19   :  { %v3566_v2 = vpop.eup %3565 }
 0xd1a   :  { %1300 = vrot.lane.b32.xlu1 %v3566_v2, %s3732_s0 }
 0xd85   :  { %v1277_v3 = vpop.permute.xlu0 %1276 }
 0xd86   :  { %v1279_v4 = vmul.f32 %v3560_v50, %v1277_v3 }
 0xd88   :  { %1305 = vrot.lane.b32.xlu0 %v1279_v4, %s3733_s26 }
 0xd8c   :  { %v1301_v5 = vpop.permute.xlu1 %1300 }
 0xd8d   :  { %v4102_v6 = vmul.f32 %v3562_v54, %v1301_v5 }
 0xd8f   :  { %1391 = vrot.lane.b32.xlu1 %v4102_v6, %s3733_s26 }
 0xdfa   :  { %v1306_v7 = vpop.permute.xlu0 %1305 }
 0xdfb   :  { %2813 = vst.msk [vmem:[%s4399_s7 + $0x8] sm:$0x3] %vm467_vm2, %v1306_v7  ;;  %3167 = vmatmul.mubr.msk.f32.vlgmr.msra.gmra.mrb[16].mxu0 %vm268_vm3, %v1306_v7 }
 0xdfc   :  { %3410 = vmatpush3.bf16.msra.mxu0 %v3873_v31  ;;  %3188 = vmatprep.mubr.msk.f32.mxu0 %vm3730_vm0, %v3731_v1 }
 0xdfd   :  { %3411 = vmatprep.subr.bf16.mxu0 %v3729_v0 }
 0xe00   :  { %3413 = vmatpush3.bf16.msra.mxu0 %v3901_v38 }
 0xe01   :  { %v1392_v8 = vpop.permute.xlu1 %1391  ;;  %3420 = vmatprep.subr.bf16.mxu0 %v3729_v0 }
 0xe02   :  { %3178 = vmatmul.mubr.msk.f32.vlgmr.msra.gmra.mrb[16].mxu1 %vm268_vm3, %v1392_v8 }
 0xe03   :  { %3416 = vmatpush3.bf16.msra.mxu1 %v3877_v32  ;;  %3199 = vmatprep.mubr.msk.f32.mxu1 %vm3730_vm0, %v3731_v1 }
 0xe04   :  { %3417 = vmatprep.subr.bf16.mxu1 %v3729_v0 }
 0xe07   :  { %3419 = vmatpush3.bf16.msra.mxu1 %v3905_v39 }
 0xe08   :  { %3426 = vmatprep.subr.bf16.mxu1 %v3729_v0 }
 0xece   :  { %v1385_v11 = vpop.f32.mrb[16].mxu0 }
 0xecf   :  { %v1389_v12 = vadd.f32 %v1385_v11, %v1316_v9  ;;  %v3168_v13 = vpop.f32.mrb[17].mxu0 }
 0xed1   :  { %3567 = vtanh.f32 %v1389_v12  ;;  %v2817_v20 = vmul.f32 -1.442695, %v1389_v12 }
 0xed5   :  { %v1461_v15 = vpop.f32.mrb[16].mxu1 }
 0xed6   :  { %v1465_v16 = vadd.f32 %v1461_v15, %v1390_v14  ;;  %v3179_v17 = vpop.f32.mrb[17].mxu1 }
 0xed8   :  { %3569 = vtanh.f32 %v1465_v16  ;;  %v2818_v21 = vmul.f32 -1.442695, %v1465_v16 }
 0xed9   :  { %3571 = vpow2.f32 %v2817_v20 }
 0xeda   :  { %3573 = vpow2.f32 %v2818_v21 }
 0xedb   :  { %v3568_v18 = vpop.eup %3567 }
 0xedc   :  { %1475 = vrot.lane.b32.xlu0 %v3568_v18, %s3732_s0 }
 0xee2   :  { %v3570_v19 = vpop.eup %3569 }
 0xee3   :  { %1499 = vrot.lane.b32.xlu1 %v3570_v19, %s3732_s0  ;;  %v3572_v22 = vpop.eup %3571 }
 0xee4   :  { %v1469_v23 = vadd.f32 1.0, %v3572_v22  ;;  %v3574_v24 = vpop.eup %3573 }
 0xee5   :  { %v1493_v25 = vadd.f32 1.0, %v3574_v24 }
 0xee6   :  { %3575 = vrcp.f32 %v1469_v23 }
 0xee7   :  { %3577 = vrcp.f32 %v1493_v25 }
 0xef0   :  { %v3576_v27 = vpop.eup %3575 }
 0xef1   :  { %v3578_v30 = vpop.eup %3577  ;;  %v1473_v36 = vmul.f32 %v3576_v27, %v4092_v59 }
 0xef2   :  { %v1497_v41 = vmul.f32 %v3578_v30, %v4096_v62 }
 0xf4e   :  { %v1476_v28 = vpop.permute.xlu0 %1475 }
 0xf4f   :  { %v1478_v29 = vmul.f32 %v3576_v27, %v1476_v28 }
 0xf51   :  { %1480 = vrot.lane.b32.xlu0 %v1478_v29, %s3733_s26 }
 0xf55   :  { %v1500_v33 = vpop.permute.xlu1 %1499 }
 0xf56   :  { %v1502_v35 = vmul.f32 %v3578_v30, %v1500_v33 }
 0xf58   :  { %1504 = vrot.lane.b32.xlu1 %v1502_v35, %s3733_s26 }
 0xfc3   :  { %v1481_v37 = vpop.permute.xlu0 %1480 }
 0xfc4   :  { %v4129_v40 = vadd.f32 %v1481_v37, %v1473_v36  ;;  %v1808_v37 = vld [vmem:[#allocation3 + $0x8] sm:$0x3] }
 0xfc6   :  { %3579 = vtanh.f32 %v4129_v40 }
 0xfca   :  { %v1505_v42 = vpop.permute.xlu1 %1504 }
 0xfcb   :  { %v4133_v43 = vadd.f32 %v1505_v42, %v1497_v41 }
 0xfcd   :  { %3581 = vtanh.f32 %v4133_v43 }
 0xfd0   :  { %v3580_v44 = vpop.eup %3579 }
 0xfd1   :  { %1486 = vrot.lane.b32.xlu0 %v3580_v44, %s3732_s0 }
 0xfd7   :  { %v3582_v45 = vpop.eup %3581 }
 0xfd8   :  { %1510 = vrot.lane.b32.xlu1 %v3582_v45, %s3732_s0 }
0x1043   :  { %v1487_v46 = vpop.permute.xlu0 %1486 }
0x1044   :  { %v1489_v47 = vmul.f32 %v3576_v27, %v1487_v46 }
0x1046   :  { %1515 = vrot.lane.b32.xlu0 %v1489_v47, %s3733_s26 }
0x104a   :  { %v1511_v48 = vpop.permute.xlu1 %1510 }
0x104b   :  { %v4139_v49 = vmul.f32 %v3578_v30, %v1511_v48  ;;  %v1734_v30 = vld [vmem:[#allocation2 + $0xe] sm:$0x3] }
0x104d   :  { %1601 = vrot.lane.b32.xlu1 %v4139_v49, %s3733_s26 }
0x10b8   :  { %v1516_v50 = vpop.permute.xlu0 %1515 }
0x10b9   :  { %2819 = vst.msk [vmem:[%s4399_s7 + $0xa] sm:$0x3] %vm467_vm2, %v1516_v50  ;;  %3189 = vmatmul.mubr.msk.f32.vlgmr.msra.gmra.mrb[18].mxu0 %vm268_vm3, %v1516_v50 }
0x10ba   :  { %3422 = vmatpush3.bf16.msra.mxu0 %v3873_v31  ;;  %3210 = vmatprep.mubr.msk.f32.mxu0 %vm3730_vm0, %v3731_v1 }
0x10bb   :  { %3423 = vmatprep.subr.bf16.mxu0 %v3729_v0 }
0x10be   :  { %3425 = vmatpush3.bf16.msra.mxu0 %v3901_v38 }
0x10bf   :  { %v1602_v52 = vpop.permute.xlu1 %1601  ;;  %3432 = vmatprep.subr.bf16.mxu0 %v3729_v0 }
0x10c0   :  { %3200 = vmatmul.mubr.msk.f32.vlgmr.msra.gmra.mrb[18].mxu1 %vm268_vm3, %v1602_v52 }
0x10c1   :  { %3428 = vmatpush3.bf16.msra.mxu1 %v3877_v32  ;;  %3221 = vmatprep.mubr.msk.f32.mxu1 %vm3730_vm0, %v3731_v1 }
0x10c2   :  { %3429 = vmatprep.subr.bf16.mxu1 %v3729_v0 }
0x10c5   :  { %3431 = vmatpush3.bf16.msra.mxu1 %v3905_v39 }
0x10c6   :  { %3438 = vmatprep.subr.bf16.mxu1 %v3729_v0 }
0x118c   :  { %v1595_v54 = vpop.f32.mrb[18].mxu0 }
0x118d   :  { %v1599_v55 = vadd.f32 %v1595_v54, %v1526_v53  ;;  %v3190_v56 = vpop.f32.mrb[19].mxu0 }
0x118f   :  { %3583 = vtanh.f32 %v1599_v55  ;;  %v2823_v63 = vmul.f32 -1.442695, %v1599_v55 }
0x1193   :  { %v1671_v58 = vpop.f32.mrb[18].mxu1 }
0x1194   :  { %v1675_v59 = vadd.f32 %v1671_v58, %v1600_v57  ;;  %v3201_v60 = vpop.f32.mrb[19].mxu1 }
0x1196   :  { %3585 = vtanh.f32 %v1675_v59  ;;  %v2824_v2 = vmul.f32 -1.442695, %v1675_v59 }
0x1197   :  { %3587 = vpow2.f32 %v2823_v63 }
0x1198   :  { %3589 = vpow2.f32 %v2824_v2 }
0x1199   :  { %v3584_v61 = vpop.eup %3583 }
0x119a   :  { %1685 = vrot.lane.b32.xlu0 %v3584_v61, %s3732_s0 }
0x11a0   :  { %v3586_v62 = vpop.eup %3585 }
0x11a1   :  { %1709 = vrot.lane.b32.xlu1 %v3586_v62, %s3732_s0  ;;  %v3588_v3 = vpop.eup %3587 }
0x11a2   :  { %v1679_v4 = vadd.f32 1.0, %v3588_v3  ;;  %v3590_v5 = vpop.eup %3589 }
0x11a3   :  { %v1703_v7 = vadd.f32 1.0, %v3590_v5 }
0x11a4   :  { %3591 = vrcp.f32 %v1679_v4 }
0x11a5   :  { %3593 = vrcp.f32 %v1703_v7 }
0x11ae   :  { %v3592_v8 = vpop.eup %3591 }
0x11af   :  { %v3594_v12 = vpop.eup %3593  ;;  %v1683_v15 = vmul.f32 %v3592_v8, %v4129_v40 }
0x11b0   :  { %v1707_v18 = vmul.f32 %v3594_v12, %v4133_v43 }
0x120c   :  { %v1686_v9 = vpop.permute.xlu0 %1685 }
0x120d   :  { %v1688_v11 = vmul.f32 %v3592_v8, %v1686_v9 }
0x120f   :  { %1690 = vrot.lane.b32.xlu0 %v1688_v11, %s3733_s26 }
0x1213   :  { %v1710_v13 = vpop.permute.xlu1 %1709 }
0x1214   :  { %v1712_v14 = vmul.f32 %v3594_v12, %v1710_v13  ;;  %v1942_v13 = vld [vmem:[#allocation2 + $0x10] sm:$0x3] }
0x1216   :  { %1714 = vrot.lane.b32.xlu1 %v1712_v14, %s3733_s26 }
0x1281   :  { %v1691_v16 = vpop.permute.xlu0 %1690 }
0x1282   :  { %v1693_v17 = vadd.f32 %v1691_v16, %v1683_v15 }
0x1284   :  { %3595 = vtanh.f32 %v1693_v17 }
0x1288   :  { %v1715_v19 = vpop.permute.xlu1 %1714 }
0x1289   :  { %v1717_v20 = vadd.f32 %v1715_v19, %v1707_v18 }
0x128b   :  { %3597 = vtanh.f32 %v1717_v20 }
0x128e   :  { %v3596_v21 = vpop.eup %3595 }
0x128f   :  { %1696 = vrot.lane.b32.xlu0 %v3596_v21, %s3732_s0 }
0x1295   :  { %v3598_v22 = vpop.eup %3597 }
0x1296   :  { %1720 = vrot.lane.b32.xlu1 %v3598_v22, %s3732_s0 }
0x1301   :  { %v1697_v23 = vpop.permute.xlu0 %1696 }
0x1302   :  { %v1699_v24 = vmul.f32 %v3592_v8, %v1697_v23 }
0x1304   :  { %1725 = vrot.lane.b32.xlu0 %v1699_v24, %s3733_s26 }
0x1308   :  { %v1721_v25 = vpop.permute.xlu1 %1720 }
0x1309   :  { %v4170_v27 = vmul.f32 %v3594_v12, %v1721_v25 }
0x130b   :  { %1809 = vrot.lane.b32.xlu1 %v4170_v27, %s3733_s26 }
0x1376   :  { %v4174_v28 = vpop.permute.xlu0 %1725 }
0x1377   :  { %3211 = vmatmul.mubr.msk.f32.vlgmr.msra.gmra.mrb[20].mxu0 %vm268_vm3, %v4174_v28 }
0x1378   :  { %3434 = vmatpush3.bf16.msra.mxu0 %v3873_v31  ;;  %3232 = vmatprep.mubr.msk.f32.mxu0 %vm3730_vm0, %v3731_v1 }
0x1379   :  { %3435 = vmatprep.subr.bf16.mxu0 %v3729_v0 }
0x137c   :  { %3437 = vmatpush3.bf16.msra.mxu0 %v3901_v38 }
0x137d   :  { %v1810_v29 = vpop.permute.xlu1 %1809  ;;  %3444 = vmatprep.subr.bf16.mxu0 %v3729_v0 }
0x137e   :  { %3222 = vmatmul.mubr.msk.f32.vlgmr.msra.gmra.mrb[20].mxu1 %vm268_vm3, %v1810_v29 }
0x137f   :  { %3440 = vmatpush3.bf16.msra.mxu1 %v3877_v32  ;;  %3243 = vmatprep.mubr.msk.f32.mxu1 %vm3730_vm0, %v3731_v1 }
0x1380   :  { %3441 = vmatprep.subr.bf16.mxu1 %v3729_v0 }
0x1383   :  { %3443 = vmatpush3.bf16.msra.mxu1 %v3905_v39 }
0x1384   :  { %3450 = vmatprep.subr.bf16.mxu1 %v3729_v0 }
0x144a   :  { %v1803_v33 = vpop.f32.mrb[20].mxu0 }
0x144b   :  { %v1807_v35 = vadd.f32 %v1803_v33, %v1734_v30  ;;  %v3212_v36 = vpop.f32.mrb[21].mxu0 }
0x144d   :  { %3599 = vtanh.f32 %v1807_v35  ;;  %v2829_v45 = vmul.f32 -1.442695, %v1807_v35 }
0x1451   :  { %v1879_v40 = vpop.f32.mrb[20].mxu1 }
0x1452   :  { %v1883_v41 = vadd.f32 %v1879_v40, %v1808_v37  ;;  %v3223_v42 = vpop.f32.mrb[21].mxu1 }
0x1454   :  { %3601 = vtanh.f32 %v1883_v41  ;;  %v2830_v46 = vmul.f32 -1.442695, %v1883_v41 }
0x1455   :  { %3603 = vpow2.f32 %v2829_v45 }
0x1456   :  { %3605 = vpow2.f32 %v2830_v46 }
0x1457   :  { %v3600_v43 = vpop.eup %3599 }
0x1458   :  { %1893 = vrot.lane.b32.xlu0 %v3600_v43, %s3732_s0 }
0x145e   :  { %v3602_v44 = vpop.eup %3601 }
0x145f   :  { %1917 = vrot.lane.b32.xlu1 %v3602_v44, %s3732_s0  ;;  %v3604_v47 = vpop.eup %3603 }
0x1460   :  { %v1887_v48 = vadd.f32 1.0, %v3604_v47  ;;  %v3606_v50 = vpop.eup %3605 }
0x1461   :  { %v1911_v52 = vadd.f32 1.0, %v3606_v50 }
0x1462   :  { %3607 = vrcp.f32 %v1887_v48 }
0x1463   :  { %3609 = vrcp.f32 %v1911_v52 }
0x146c   :  { %v3608_v53 = vpop.eup %3607 }
0x146d   :  { %v3610_v56 = vpop.eup %3609  ;;  %v1891_v59 = vmul.f32 %v3608_v53, %v1693_v17  ;;  %v2016_v17 = vld [vmem:[#allocation3 + $0x6] sm:$0x3] }
0x146e   :  { %v1915_v62 = vmul.f32 %v3610_v56, %v1717_v20 }
0x14ca   :  { %v1894_v54 = vpop.permute.xlu0 %1893 }
0x14cb   :  { %v1896_v55 = vmul.f32 %v3608_v53, %v1894_v54 }
0x14cd   :  { %1898 = vrot.lane.b32.xlu0 %v1896_v55, %s3733_s26 }
0x14d1   :  { %v1918_v57 = vpop.permute.xlu1 %1917 }
0x14d2   :  { %v1920_v58 = vmul.f32 %v3610_v56, %v1918_v57 }
0x14d4   :  { %1922 = vrot.lane.b32.xlu1 %v1920_v58, %s3733_s26 }
0x153f   :  { %v1899_v60 = vpop.permute.xlu0 %1898 }
0x1540   :  { %v1901_v61 = vadd.f32 %v1899_v60, %v1891_v59  ;;  %v2150_v59 = vld [vmem:[#allocation2 + $0x12] sm:$0x3] }
0x1542   :  { %3611 = vtanh.f32 %v1901_v61 }
0x1546   :  { %v1923_v63 = vpop.permute.xlu1 %1922 }
0x1547   :  { %v1925_v2 = vadd.f32 %v1923_v63, %v1915_v62  ;;  %v2224_v63 = vld [vmem:[#allocation3 + $0x4] sm:$0x3] }
0x1549   :  { %3613 = vtanh.f32 %v1925_v2 }
0x154c   :  { %v3612_v3 = vpop.eup %3611 }
0x154d   :  { %1904 = vrot.lane.b32.xlu0 %v3612_v3, %s3732_s0 }
0x1553   :  { %v3614_v4 = vpop.eup %3613 }
0x1554   :  { %1928 = vrot.lane.b32.xlu1 %v3614_v4, %s3732_s0 }
0x15bf   :  { %v1905_v5 = vpop.permute.xlu0 %1904 }
0x15c0   :  { %v1907_v7 = vmul.f32 %v3608_v53, %v1905_v5 }
0x15c2   :  { %1933 = vrot.lane.b32.xlu0 %v1907_v7, %s3733_s26 }
0x15c6   :  { %v1929_v8 = vpop.permute.xlu1 %1928 }
0x15c7   :  { %v4198_v9 = vmul.f32 %v3610_v56, %v1929_v8 }
0x15c9   :  { %2017 = vrot.lane.b32.xlu1 %v4198_v9, %s3733_s26 }
0x1634   :  { %v4202_v11 = vpop.permute.xlu0 %1933 }
0x1635   :  { %3233 = vmatmul.mubr.msk.f32.vlgmr.msra.gmra.mrb[22].mxu0 %vm268_vm3, %v4202_v11 }
0x1636   :  { %3446 = vmatpush3.bf16.msra.mxu0 %v3873_v31  ;;  %3254 = vmatprep.mubr.msk.f32.mxu0 %vm3730_vm0, %v3731_v1 }
0x1637   :  { %3447 = vmatprep.subr.bf16.mxu0 %v3729_v0 }
0x163a   :  { %3449 = vmatpush3.bf16.msra.mxu0 %v3901_v38 }
0x163b   :  { %v2018_v12 = vpop.permute.xlu1 %2017  ;;  %3456 = vmatprep.subr.bf16.mxu0 %v3729_v0 }
0x163c   :  { %3244 = vmatmul.mubr.msk.f32.vlgmr.msra.gmra.mrb[22].mxu1 %vm268_vm3, %v2018_v12 }
0x163d   :  { %3452 = vmatpush3.bf16.msra.mxu1 %v3877_v32  ;;  %3265 = vmatprep.mubr.msk.f32.mxu1 %vm3730_vm0, %v3731_v1 }
0x163e   :  { %3453 = vmatprep.subr.bf16.mxu1 %v3729_v0 }
0x1641   :  { %3455 = vmatpush3.bf16.msra.mxu1 %v3905_v39 }
0x1642   :  { %3462 = vmatprep.subr.bf16.mxu1 %v3729_v0 }
0x1708   :  { %v2011_v14 = vpop.f32.mrb[22].mxu0 }
0x1709   :  { %v2015_v15 = vadd.f32 %v2011_v14, %v1942_v13  ;;  %v3234_v16 = vpop.f32.mrb[23].mxu0 }
0x170b   :  { %3615 = vtanh.f32 %v2015_v15  ;;  %v2835_v23 = vmul.f32 -1.442695, %v2015_v15 }
0x170f   :  { %v2087_v18 = vpop.f32.mrb[22].mxu1 }
0x1710   :  { %v2091_v19 = vadd.f32 %v2087_v18, %v2016_v17  ;;  %v3245_v20 = vpop.f32.mrb[23].mxu1 }
0x1712   :  { %3617 = vtanh.f32 %v2091_v19  ;;  %v2836_v24 = vmul.f32 -1.442695, %v2091_v19 }
0x1713   :  { %3619 = vpow2.f32 %v2835_v23 }
0x1714   :  { %3621 = vpow2.f32 %v2836_v24 }
0x1715   :  { %v3616_v21 = vpop.eup %3615 }
0x1716   :  { %2101 = vrot.lane.b32.xlu0 %v3616_v21, %s3732_s0 }
0x171c   :  { %v3618_v22 = vpop.eup %3617 }
0x171d   :  { %2125 = vrot.lane.b32.xlu1 %v3618_v22, %s3732_s0  ;;  %v3620_v25 = vpop.eup %3619 }
0x171e   :  { %v2095_v29 = vadd.f32 1.0, %v3620_v25  ;;  %v3622_v30 = vpop.eup %3621 }
0x171f   :  { %v2119_v33 = vadd.f32 1.0, %v3622_v30 }
0x1720   :  { %3623 = vrcp.f32 %v2095_v29 }
0x1721   :  { %3625 = vrcp.f32 %v2119_v33 }
0x172a   :  { %v3624_v35 = vpop.eup %3623 }
0x172b   :  { %v3626_v40 = vpop.eup %3625  ;;  %v2099_v43 = vmul.f32 %v3624_v35, %v1901_v61 }
0x172c   :  { %v2123_v46 = vmul.f32 %v3626_v40, %v1925_v2 }
0x1788   :  { %v2102_v36 = vpop.permute.xlu0 %2101 }
0x1789   :  { %v2104_v37 = vmul.f32 %v3624_v35, %v2102_v36 }
0x178b   :  { %2106 = vrot.lane.b32.xlu0 %v2104_v37, %s3733_s26 }
0x178f   :  { %v2126_v41 = vpop.permute.xlu1 %2125 }
0x1790   :  { %v2128_v42 = vmul.f32 %v3626_v40, %v2126_v41 }
0x1792   :  { %2130 = vrot.lane.b32.xlu1 %v2128_v42, %s3733_s26 }
0x17fd   :  { %v2107_v44 = vpop.permute.xlu0 %2106 }
0x17fe   :  { %v2109_v45 = vadd.f32 %v2107_v44, %v2099_v43 }
0x1800   :  { %3627 = vtanh.f32 %v2109_v45 }
0x1804   :  { %v2131_v47 = vpop.permute.xlu1 %2130 }
0x1805   :  { %v2133_v48 = vadd.f32 %v2131_v47, %v2123_v46 }
0x1807   :  { %3629 = vtanh.f32 %v2133_v48 }
0x180a   :  { %v3628_v50 = vpop.eup %3627 }
0x180b   :  { %2112 = vrot.lane.b32.xlu0 %v3628_v50, %s3732_s0 }
0x1811   :  { %v3630_v52 = vpop.eup %3629 }
0x1812   :  { %2136 = vrot.lane.b32.xlu1 %v3630_v52, %s3732_s0 }
0x187d   :  { %v2113_v53 = vpop.permute.xlu0 %2112 }
0x187e   :  { %v2115_v54 = vmul.f32 %v3624_v35, %v2113_v53 }
0x1880   :  { %2141 = vrot.lane.b32.xlu0 %v2115_v54, %s3733_s26 }
0x1884   :  { %v2137_v55 = vpop.permute.xlu1 %2136 }
0x1885   :  { %v4226_v56 = vmul.f32 %v3626_v40, %v2137_v55 }
0x1887   :  { %2225 = vrot.lane.b32.xlu1 %v4226_v56, %s3733_s26 }
0x18f2   :  { %v4230_v57 = vpop.permute.xlu0 %2141 }
0x18f3   :  { %3255 = vmatmul.mubr.msk.f32.vlgmr.msra.gmra.mrb[24].mxu0 %vm268_vm3, %v4230_v57 }
0x18f4   :  { %3458 = vmatpush3.bf16.msra.mxu0 %v3873_v31  ;;  %3276 = vmatprep.mubr.msk.f32.mxu0 %vm3730_vm0, %v3731_v1 }
0x18f5   :  { %3459 = vmatprep.subr.bf16.mxu0 %v3729_v0 }
0x18f8   :  { %3461 = vmatpush3.bf16.msra.mxu0 %v3901_v38 }
0x18f9   :  { %v2226_v58 = vpop.permute.xlu1 %2225  ;;  %3468 = vmatprep.subr.bf16.mxu0 %v3729_v0 }
0x18fa   :  { %3266 = vmatmul.mubr.msk.f32.vlgmr.msra.gmra.mrb[24].mxu1 %vm268_vm3, %v2226_v58 }
0x18fb   :  { %3464 = vmatpush3.bf16.msra.mxu1 %v3877_v32  ;;  %3287 = vmatprep.mubr.msk.f32.mxu1 %vm3730_vm0, %v3731_v1 }
0x18fc   :  { %3465 = vmatprep.subr.bf16.mxu1 %v3729_v0 }
0x18ff   :  { %3467 = vmatpush3.bf16.msra.mxu1 %v3905_v39 }
0x1900   :  { %3474 = vmatprep.subr.bf16.mxu1 %v3729_v0 }
0x19c6   :  { %v2219_v60 = vpop.f32.mrb[24].mxu0 }
0x19c7   :  { %v2223_v61 = vadd.f32 %v2219_v60, %v2150_v59  ;;  %v3256_v62 = vpop.f32.mrb[25].mxu0 }
0x19c9   :  { %3631 = vtanh.f32 %v2223_v61  ;;  %v2841_v8 = vmul.f32 -1.442695, %v2223_v61 }
0x19cd   :  { %v2295_v2 = vpop.f32.mrb[24].mxu1 }
0x19ce   :  { %v2299_v3 = vadd.f32 %v2295_v2, %v2224_v63  ;;  %v3267_v4 = vpop.f32.mrb[25].mxu1 }
0x19d0   :  { %3633 = vtanh.f32 %v2299_v3  ;;  %v2842_v12 = vmul.f32 -1.442695, %v2299_v3 }
0x19d1   :  { %3635 = vpow2.f32 %v2841_v8 }
0x19d2   :  { %3637 = vpow2.f32 %v2842_v12 }
0x19d3   :  { %v3632_v5 = vpop.eup %3631 }
0x19d4   :  { %2309 = vrot.lane.b32.xlu0 %v3632_v5, %s3732_s0 }
0x19da   :  { %v3634_v7 = vpop.eup %3633 }
0x19db   :  { %2333 = vrot.lane.b32.xlu1 %v3634_v7, %s3732_s0  ;;  %v3636_v13 = vpop.eup %3635 }
0x19dc   :  { %v2303_v14 = vadd.f32 1.0, %v3636_v13  ;;  %v3638_v15 = vpop.eup %3637 }
0x19dd   :  { %v2327_v16 = vadd.f32 1.0, %v3638_v15 }
0x19de   :  { %3639 = vrcp.f32 %v2303_v14 }
0x19df   :  { %3641 = vrcp.f32 %v2327_v16 }
0x19e8   :  { %v3640_v17 = vpop.eup %3639 }
0x19e9   :  { %v3642_v20 = vpop.eup %3641  ;;  %v2307_v23 = vmul.f32 %v3640_v17, %v2109_v45 }
0x19ea   :  { %v2331_v29 = vmul.f32 %v3642_v20, %v2133_v48  ;;  %v2432_v48 = vld [vmem:[#allocation3 + $0x2] sm:$0x3] }
0x1a46   :  { %v2310_v18 = vpop.permute.xlu0 %2309 }
0x1a47   :  { %v2312_v19 = vmul.f32 %v3640_v17, %v2310_v18 }
0x1a49   :  { %2314 = vrot.lane.b32.xlu0 %v2312_v19, %s3733_s26 }
0x1a4d   :  { %v2334_v21 = vpop.permute.xlu1 %2333 }
0x1a4e   :  { %v2336_v22 = vmul.f32 %v3642_v20, %v2334_v21  ;;  %v2566_v21 = vld [vmem:[#allocation2 + $0x16] sm:$0x3] }
0x1a50   :  { %2338 = vrot.lane.b32.xlu1 %v2336_v22, %s3733_s26 }
0x1abb   :  { %v2315_v24 = vpop.permute.xlu0 %2314 }
0x1abc   :  { %v2317_v25 = vadd.f32 %v2315_v24, %v2307_v23 }
0x1abe   :  { %3643 = vtanh.f32 %v2317_v25 }
0x1ac2   :  { %v2339_v30 = vpop.permute.xlu1 %2338 }
0x1ac3   :  { %v2341_v33 = vadd.f32 %v2339_v30, %v2331_v29 }
0x1ac5   :  { %3645 = vtanh.f32 %v2341_v33 }
0x1ac8   :  { %v3644_v35 = vpop.eup %3643 }
0x1ac9   :  { %2320 = vrot.lane.b32.xlu0 %v3644_v35, %s3732_s0 }
0x1acf   :  { %v3646_v36 = vpop.eup %3645 }
0x1ad0   :  { %2344 = vrot.lane.b32.xlu1 %v3646_v36, %s3732_s0 }
0x1b3b   :  { %v2321_v37 = vpop.permute.xlu0 %2320 }
0x1b3c   :  { %v2323_v40 = vmul.f32 %v3640_v17, %v2321_v37 }
0x1b3e   :  { %2349 = vrot.lane.b32.xlu0 %v2323_v40, %s3733_s26 }
0x1b42   :  { %v2345_v41 = vpop.permute.xlu1 %2344 }
0x1b43   :  { %v4254_v42 = vmul.f32 %v3642_v20, %v2345_v41 }
0x1b45   :  { %2433 = vrot.lane.b32.xlu1 %v4254_v42, %s3733_s26 }
0x1bb0   :  { %v4258_v43 = vpop.permute.xlu0 %2349 }
0x1bb1   :  { %3277 = vmatmul.mubr.msk.f32.vlgmr.msra.gmra.mrb[26].mxu0 %vm268_vm3, %v4258_v43 }
0x1bb2   :  { %3470 = vmatpush3.bf16.msra.mxu0 %v3873_v31  ;;  %3298 = vmatprep.mubr.msk.f32.mxu0 %vm3730_vm0, %v3731_v1  ;;  %v2358_v31 = vld [vmem:[#allocation2 + $0x14] sm:$0x3] }
0x1bb3   :  { %3471 = vmatprep.subr.bf16.mxu0 %v3729_v0 }
0x1bb6   :  { %3473 = vmatpush3.bf16.msra.mxu0 %v3901_v38 }
0x1bb7   :  { %v2434_v44 = vpop.permute.xlu1 %2433 }
0x1bb8   :  { %3288 = vmatmul.mubr.msk.f32.vlgmr.msra.gmra.mrb[26].mxu1 %vm268_vm3, %v2434_v44 }
0x1bb9   :  { %3476 = vmatpush3.bf16.msra.mxu1 %v3877_v32  ;;  %3309 = vmatprep.mubr.msk.f32.mxu1 %vm3730_vm0, %v3731_v1 }
0x1bba   :  { %3477 = vmatprep.subr.bf16.mxu1 %v3729_v0 }
0x1bbd   :  { %3479 = vmatpush3.bf16.msra.mxu1 %v3905_v39 }
0x1c84   :  { %v2427_v45 = vpop.f32.mrb[26].mxu0 }
0x1c85   :  { %v2431_v46 = vadd.f32 %v2427_v45, %v2358_v31  ;;  %v3278_v47 = vpop.f32.mrb[27].mxu0 }
0x1c87   :  { %3647 = vtanh.f32 %v2431_v46  ;;  %v2847_v1 = vmul.f32 -1.442695, %v2431_v46 }
0x1c8b   :  { %v2503_v50 = vpop.f32.mrb[26].mxu1 }
0x1c8c   :  { %v2507_v38 = vadd.f32 %v2503_v50, %v2432_v48  ;;  %v3289_v52 = vpop.f32.mrb[27].mxu1 }
0x1c8e   :  { %3649 = vtanh.f32 %v2507_v38  ;;  %v2848_v0 = vmul.f32 -1.442695, %v2507_v38 }
0x1c8f   :  { %3651 = vpow2.f32 %v2847_v1 }
0x1c90   :  { %3653 = vpow2.f32 %v2848_v0 }
0x1c91   :  { %v3648_v53 = vpop.eup %3647 }
0x1c92   :  { %2517 = vrot.lane.b32.xlu0 %v3648_v53, %s3732_s0 }
0x1c98   :  { %v3650_v32 = vpop.eup %3649 }
0x1c99   :  { %2541 = vrot.lane.b32.xlu1 %v3650_v32, %s3732_s0  ;;  %v3652_v39 = vpop.eup %3651 }
0x1c9a   :  { %v2511_v54 = vadd.f32 1.0, %v3652_v39  ;;  %v3654_v55 = vpop.eup %3653 }
0x1c9b   :  { %v2535_v58 = vadd.f32 1.0, %v3654_v55 }
0x1c9c   :  { %3655 = vrcp.f32 %v2511_v54 }
0x1c9d   :  { %3657 = vrcp.f32 %v2535_v58 }
0x1ca6   :  { %v3656_v59 = vpop.eup %3655 }
0x1ca7   :  { %v3658_v62 = vpop.eup %3657  ;;  %v2515_v3 = vmul.f32 %v3656_v59, %v2317_v25  ;;  %v2640_v25 = vld [vmem:[#allocation3] sm:$0x3] }
0x1ca8   :  { %v2539_v7 = vmul.f32 %v3658_v62, %v2341_v33 }
0x1d04   :  { %v2518_v60 = vpop.permute.xlu0 %2517 }
0x1d05   :  { %v2520_v61 = vmul.f32 %v3656_v59, %v2518_v60 }
0x1d07   :  { %2522 = vrot.lane.b32.xlu0 %v2520_v61, %s3733_s26 }
0x1d0b   :  { %v2542_v63 = vpop.permute.xlu1 %2541 }
0x1d0c   :  { %v2544_v2 = vmul.f32 %v3658_v62, %v2542_v63 }
0x1d0e   :  { %2546 = vrot.lane.b32.xlu1 %v2544_v2, %s3733_s26 }
0x1d79   :  { %v2523_v4 = vpop.permute.xlu0 %2522 }
0x1d7a   :  { %v2525_v5 = vadd.f32 %v2523_v4, %v2515_v3 }
0x1d7c   :  { %3659 = vtanh.f32 %v2525_v5 }
0x1d80   :  { %v2547_v8 = vpop.permute.xlu1 %2546 }
0x1d81   :  { %v2549_v12 = vadd.f32 %v2547_v8, %v2539_v7 }
0x1d83   :  { %3661 = vtanh.f32 %v2549_v12 }
0x1d86   :  { %v3660_v13 = vpop.eup %3659 }
0x1d87   :  { %2528 = vrot.lane.b32.xlu0 %v3660_v13, %s3732_s0 }
0x1d8d   :  { %v3662_v14 = vpop.eup %3661 }
0x1d8e   :  { %2552 = vrot.lane.b32.xlu1 %v3662_v14, %s3732_s0 }
0x1df9   :  { %v2529_v15 = vpop.permute.xlu0 %2528 }
0x1dfa   :  { %v2531_v16 = vmul.f32 %v3656_v59, %v2529_v15 }
0x1dfc   :  { %2557 = vrot.lane.b32.xlu0 %v2531_v16, %s3733_s26 }
0x1e00   :  { %v2553_v17 = vpop.permute.xlu1 %2552 }
0x1e01   :  { %v2555_v18 = vmul.f32 %v3658_v62, %v2553_v17 }
0x1e03   :  { %2641 = vrot.lane.b32.xlu1 %v2555_v18, %s3733_s26 }
0x1e6e   :  { %v4281_v19 = vpop.permute.xlu0 %2557 }
0x1e6f   :  { %3299 = vmatmul.mubr.msk.f32.vlgmr.msra.gmra.mrb[28].mxu0 %vm268_vm3, %v4281_v19 }
0x1e75   :  { %v2642_v20 = vpop.permute.xlu1 %2641 }
0x1e76   :  { %3310 = vmatmul.mubr.msk.f32.vlgmr.msra.gmra.mrb[28].mxu1 %vm268_vm3, %v2642_v20 }
0x1f42   :  { %v2635_v22 = vpop.f32.mrb[28].mxu0 }
0x1f43   :  { %v2639_v23 = vadd.f32 %v2635_v22, %v2566_v21  ;;  %v3300_v24 = vpop.f32.mrb[29].mxu0 }
0x1f45   :  { %3663 = vtanh.f32 %v2639_v23  ;;  %v2853_v37 = vmul.f32 -1.442695, %v2639_v23 }
0x1f49   :  { %v2711_v29 = vpop.f32.mrb[28].mxu1 }
0x1f4a   :  { %v2715_v30 = vadd.f32 %v2711_v29, %v2640_v25  ;;  %v3311_v33 = vpop.f32.mrb[29].mxu1 }
0x1f4c   :  { %3665 = vtanh.f32 %v2715_v30  ;;  %v2854_v40 = vmul.f32 -1.442695, %v2715_v30 }
0x1f4d   :  { %3667 = vpow2.f32 %v2853_v37 }
0x1f4e   :  { %3669 = vpow2.f32 %v2854_v40 }
0x1f4f   :  { %v3664_v35 = vpop.eup %3663 }
0x1f50   :  { %2725 = vrot.lane.b32.xlu0 %v3664_v35, %s3732_s0 }
0x1f56   :  { %v3666_v36 = vpop.eup %3665 }
0x1f57   :  { %2749 = vrot.lane.b32.xlu1 %v3666_v36, %s3732_s0  ;;  %v3668_v41 = vpop.eup %3667 }
0x1f58   :  { %v2719_v44 = vadd.f32 1.0, %v3668_v41  ;;  %v3670_v31 = vpop.eup %3669 }
0x1f59   :  { %v2743_v45 = vadd.f32 1.0, %v3670_v31 }
0x1f5a   :  { %3671 = vrcp.f32 %v2719_v44 }
0x1f5b   :  { %3673 = vrcp.f32 %v2743_v45 }
0x1f64   :  { %v3672_v46 = vpop.eup %3671 }
0x1f65   :  { %v3674_v50 = vpop.eup %3673  ;;  %v2723_v53 = vmul.f32 %v3672_v46, %v2525_v5 }
0x1f66   :  { %v2747_v0 = vmul.f32 %v3674_v50, %v2549_v12 }
0x1fc2   :  { %v2726_v47 = vpop.permute.xlu0 %2725 }
0x1fc3   :  { %v2728_v48 = vmul.f32 %v3672_v46, %v2726_v47 }
0x1fc5   :  { %2730 = vrot.lane.b32.xlu0 %v2728_v48, %s3733_s26 }
0x1fc9   :  { %v2750_v38 = vpop.permute.xlu1 %2749 }
0x1fca   :  { %v2752_v52 = vmul.f32 %v3674_v50, %v2750_v38 }
0x1fcc   :  { %2754 = vrot.lane.b32.xlu1 %v2752_v52, %s3733_s26 }
0x2037   :  { %v2731_v32 = vpop.permute.xlu0 %2730 }
0x2038   :  { %v2733_v1 = vadd.f32 %v2731_v32, %v2723_v53 }
0x203a   :  { %3675 = vtanh.f32 %v2733_v1 }
0x203e   :  { %v2755_v39 = vpop.permute.xlu1 %2754 }
0x203f   :  { %v2757_v54 = vadd.f32 %v2755_v39, %v2747_v0 }
0x2041   :  { %3677 = vtanh.f32 %v2757_v54 }
0x2044   :  { %v3676_v55 = vpop.eup %3675 }
0x2045   :  { %2736 = vrot.lane.b32.xlu0 %v3676_v55, %s3732_s0 }
0x2049   :  { %470 = vrot.lane.b32.xlu0 %v3954_v34, %s3732_s0 }
0x204b   :  { %v3678_v58 = vpop.eup %3677 }
0x204c   :  { %2760 = vrot.lane.b32.xlu1 %v3678_v58, %s3732_s0 }
0x204d   :  { %891 = vrot.lane.b32.xlu0 %v4028_v51, %s3732_s0 }
0x2050   :  { %681 = vrot.lane.b32.xlu1 %v3991_v10, %s3732_s0 }
0x2051   :  { %1311 = vrot.lane.b32.xlu0 %v4102_v6, %s3732_s0 }
0x2054   :  { %1101 = vrot.lane.b32.xlu1 %v4065_v26, %s3732_s0 }
0x2055   :  { %1730 = vrot.lane.b32.xlu0 %v4170_v27, %s3732_s0 }
0x2058   :  { %1521 = vrot.lane.b32.xlu1 %v4139_v49, %s3732_s0 }
0x2059   :  { %2146 = vrot.lane.b32.xlu0 %v4226_v56, %s3732_s0 }
0x205c   :  { %1938 = vrot.lane.b32.xlu1 %v4198_v9, %s3732_s0 }
0x205d   :  { %2562 = vrot.lane.b32.xlu0 %v2555_v18, %s3732_s0 }
0x2060   :  { %2354 = vrot.lane.b32.xlu1 %v4254_v42, %s3732_s0 }
0x20b7   :  { %v2737_v34 = vpop.permute.xlu0 %2736 }
0x20b8   :  { %v2739_v10 = vmul.f32 %v3672_v46, %v2737_v34 }
0x20ba   :  { %2765 = vrot.lane.b32.xlu1 %v2739_v10, %s3733_s26 }
0x20bb   :  { %v471_v51 = vpop.permute.xlu0 %470 }
0x20bc   :  { %2790 = vst.msk [vmem:[%s4399_s7 + $0x16] sm:$0x3] %vm474_vm4, %v471_v51 }
0x20be   :  { %v2761_v26 = vpop.permute.xlu1 %2760 }
0x20bf   :  { %v2763_v6 = vmul.f32 %v3674_v50, %v2761_v26  ;;  %v892_v49 = vpop.permute.xlu0 %891 }
0x20c0   :  { %2802 = vst.msk [vmem:[%s4399_s7 + $0x12] sm:$0x3] %vm474_vm4, %v892_v49 }
0x20c1   :  { %2843 = vst.msk [vmem:[%s4399_s7 + $0x12] sm:$0x3] %vm467_vm2, %v4258_v43  ;;  %2770 = vrot.lane.b32.xlu0 %v2763_v6, %s3732_s0 }
0x20c2   :  { %v682_v27 = vpop.permute.xlu1 %681 }
0x20c3   :  { %2796 = vst.msk [vmem:[%s4399_s7 + $0x14] sm:$0x3] %vm474_vm4, %v682_v27  ;;  %v1312_v9 = vpop.permute.xlu0 %1311 }
0x20c4   :  { %2849 = vst.msk [vmem:[%s4399_s7 + $0x14] sm:$0x3] %vm467_vm2, %v4281_v19 }
0x20c5   :  { %2814 = vst.msk [vmem:[%s4399_s7 + $0xe] sm:$0x3] %vm474_vm4, %v1312_v9 }
0x20c6   :  { %2831 = vst.msk [vmem:[%s4399_s7 + $0xe] sm:$0x3] %vm467_vm2, %v4202_v11  ;;  %v1102_v56 = vpop.permute.xlu1 %1101 }
0x20c7   :  { %2808 = vst.msk [vmem:[%s4399_s7 + $0x10] sm:$0x3] %vm474_vm4, %v1102_v56  ;;  %v1731_v42 = vpop.permute.xlu0 %1730 }
0x20c8   :  { %2837 = vst.msk [vmem:[%s4399_s7 + $0x10] sm:$0x3] %vm467_vm2, %v4230_v57 }
0x20c9   :  { %2826 = vst.msk [vmem:[%s4399_s7 + $0xa] sm:$0x3] %vm474_vm4, %v1731_v42 }
0x20ca   :  { %v1522_v43 = vpop.permute.xlu1 %1521 }
0x20cb   :  { %2820 = vst.msk [vmem:[%s4399_s7 + $0xc] sm:$0x3] %vm474_vm4, %v1522_v43  ;;  %v2147_v11 = vpop.permute.xlu0 %2146 }
0x20cc   :  { %2825 = vst.msk [vmem:[%s4399_s7 + $0xc] sm:$0x3] %vm467_vm2, %v4174_v28 }
0x20cd   :  { %2838 = vst.msk [vmem:[%s4399_s7 + $0x6] sm:$0x3] %vm474_vm4, %v2147_v11 }
0x20ce   :  { %v1939_v57 = vpop.permute.xlu1 %1938 }
0x20cf   :  { %2832 = vst.msk [vmem:[%s4399_s7 + $0x8] sm:$0x3] %vm474_vm4, %v1939_v57  ;;  %v2563_v59 = vpop.permute.xlu0 %2562 }
0x20d0   :  { %2850 = vst.msk [vmem:[%s4399_s7 + $0x2] sm:$0x3] %vm474_vm4, %v2563_v59 }
0x20d2   :  { %v2355_v60 = vpop.permute.xlu1 %2354 }
0x20d3   :  { %2844 = vst.msk [vmem:[%s4399_s7 + $0x4] sm:$0x3] %vm474_vm4, %v2355_v60 }
0x212c   :  { %v2766_v28 = vpop.permute.xlu1 %2765 }
0x212d   :  { %2855 = vst.msk [vmem:[%s4399_s7 + $0x16] sm:$0x3] %vm467_vm2, %v2766_v28 }
0x2133   :  { %v2771_v61 = vpop.permute.xlu0 %2770 }
0x2134   :  { %2773 = vst.msk [vmem:[%s4399_s7] sm:$0x3] %vm474_vm4, %v2771_v61 }
0x2135   :  { %2778 = vsyncpa [#allocation5], 1 }
0x2136   :  { %2779 = vsyncpa [#allocation7], 1 }

// kernel: bilstm_merge_forward.7
= control target key start
LH: loop header
LB: loop body
LE: loop exit
PB: predicated region body
PF: predicated region fallthrough
CT: control target
= control target key end

     0   :  { %12 = vsyncpa [#allocation5], 0  ;;  %s4424_s0 = inlined_call_operand.vmem [shape: f32[24,16], index: 0, kind: input, shape index: {}]   ;;  %s4425_s1 = inlined_call_operand.hbm [shape: f32[16,128], index: 1, kind: input, shape index: {}]   ;;  %s4426_s2 = inlined_call_operand.vmem [shape: f32[32,128], index: 2, kind: input, shape index: {}]   ;;  %s4427_s3 = inlined_call_operand.hbm [shape: f32[1,128], index: 3, kind: input, shape index: {}]   ;;  %s4428_s4 = inlined_call_operand.hbm [shape: f32[16,128], index: 4, kind: input, shape index: {}]   ;;  %s4429_s5 = inlined_call_operand.hbm [shape: f32[32,128], index: 5, kind: input, shape index: {}]   ;;  %s4430_s6 = inlined_call_operand.hbm [shape: f32[1,128], index: 6, kind: input, shape index: {}]   ;;  %s4431_s7 = inlined_call_operand.vmem [shape: f32[12,2,64], index: 7, kind: output, shape index: {}]  }
   0x1   :  { %13 = vsyncpa [#allocation7], 0 }
   0x2   :  { %14 = vsyncpa [#allocation10], 0  ;;  %s3775_s24 = smov [#allocation6]   ;;  %s3659_s28 = scalar_lea.hbm %s4427_s3, 16 }
   0x3   :  { %s37_s25 = sshll.u32 %s3775_s24, 4  ;;  %p3660_p0 = scmp.ne.s32.totalorder %s4427_s3, %s3659_s28  ;;  %s38_s25 = int_to_ptr.vmem [resolvable:$true] %s37_s25 }
   0x4   :  { %p3663_p1 = scmp.lt.u32.totalorder %s3659_s28, %s4427_s3 }
   0x6   :  { %p3665_p2 = pnand %p3663_p1, %p3660_p0 }
   0x8   :  { %3668 = shalt.err (!%p3665_p2)
}
   0x9   :  { %s3669_s10 = scalar_lea.vmem %s38_s25, 16  ;;  %s3673_s11 = scalar_lea.vmem %s38_s25, 32 }
   0xa   :  { %p3670_p3 = scmp.ne.s32.totalorder %s38_s25, %s3669_s10  ;;  %p3674_p4 = scmp.lt.s32.totalorder %s38_s25, %s38_s25 }
   0xb   :  { %p3675_p5 = scmp.lt.s32.totalorder %s3673_s11, %s3669_s10 }
   0xd   :  { %p3676_p6 = por %p3675_p5, %p3674_p4 }
   0xf   :  { %p3677_p7 = pnand %p3676_p6, %p3670_p3 }
  0x11   :  { %3680 = shalt.err (!%p3677_p7)
}
  0x12   :  { %40 = dma.hbm_to_vmem [thread:$0]  %s4427_s3, 16, %s38_s25, [#allocation7]  }
  0x13   :  { %s3776_s14 = smov [#allocation9]   ;;  %s3777_s16 = smov [#allocation4]  }
  0x14   :  { %s58_s15 = sshll.u32 %s3776_s14, 4  ;;  %s22_s17 = sshll.u32 %s3777_s16, 4  ;;  %s59_s15 = int_to_ptr.vmem [resolvable:$true] %s58_s15  ;;  %s23_s17 = int_to_ptr.vmem [resolvable:$true] %s22_s17 }
  0x15   :  { %s3681_s20 = scalar_lea.hbm %s4429_s5, 512 }
  0x16   :  { %p3682_p8 = scmp.ne.s32.totalorder %s4429_s5, %s3681_s20  ;;  %p3685_p9 = scmp.lt.u32.totalorder %s3681_s20, %s4429_s5 }
  0x18   :  { %p3687_p10 = pnand %p3685_p9, %p3682_p8 }
  0x1a   :  { %3690 = shalt.err (!%p3687_p10)
}
  0x1b   :  { %s3691_s3 = scalar_lea.vmem %s59_s15, 512  ;;  %p3696_p12 = scmp.lt.s32.totalorder %s59_s15, %s59_s15 }
  0x1c   :  { %p3692_p11 = scmp.ne.s32.totalorder %s59_s15, %s3691_s3  ;;  %p3697_p13 = scmp.lt.s32.totalorder %s3691_s3, %s3691_s3 }
  0x1e   :  { %p3698_p0 = por %p3697_p13, %p3696_p12 }
  0x20   :  { %p3699_p1 = pnand %p3698_p0, %p3692_p11 }
  0x22   :  { %3702 = shalt.err (!%p3699_p1)
}
  0x23   :  { %s3778_s25 = smov 128   ;;  %s3779_s26 = smov 8  }
  0x24   :  { %64 = dma.hbm_to_vmem [thread:$0]  %s4429_s5, 512, %s59_s15, [#allocation10], %s3778_s25, %s3778_s25, %s3779_s26  }
  0x25   :  { %s3703_s8 = scalar_lea.hbm %s4425_s1, 256 }
  0x26   :  { %p3704_p2 = scmp.ne.s32.totalorder %s4425_s1, %s3703_s8  ;;  %p3707_p3 = scmp.lt.u32.totalorder %s3703_s8, %s4425_s1 }
  0x28   :  { %p3709_p4 = pnand %p3707_p3, %p3704_p2 }
  0x2a   :  { %3712 = shalt.err (!%p3709_p4)
}
  0x2b   :  { %s3713_s13 = scalar_lea.vmem %s23_s17, 256  ;;  %p3718_p6 = scmp.lt.s32.totalorder %s23_s17, %s23_s17 }
  0x2c   :  { %p3714_p5 = scmp.ne.s32.totalorder %s23_s17, %s3713_s13  ;;  %p3719_p7 = scmp.lt.s32.totalorder %s3713_s13, %s3713_s13 }
  0x2e   :  { %p3720_p8 = por %p3719_p7, %p3718_p6 }
  0x30   :  { %p3721_p9 = pnand %p3720_p8, %p3714_p5 }
  0x32   :  { %3724 = shalt.err (!%p3721_p9)
}
  0x33   :  { %28 = dma.hbm_to_vmem [thread:$0]  %s4425_s1, 256, %s23_s17, [#allocation5], %s3778_s25, %s3778_s25, %s3779_s26  }
  0x34   :  { %s3780_s15 = smov [#allocation8]   ;;  %s3781_s18 = smov [#allocation11]  }
  0x35   :  { %s46_s16 = sshll.u32 %s3780_s15, 4  ;;  %s71_s19 = sshll.u32 %s3781_s18, 4  ;;  %s47_s16 = int_to_ptr.vmem [resolvable:$true] %s46_s16  ;;  %s72_s19 = int_to_ptr.vmem [resolvable:$true] %s71_s19 }
  0x36   :  { %s3725_s22 = scalar_lea.hbm %s4428_s4, 256 }
  0x37   :  { %p3726_p10 = scmp.ne.s32.totalorder %s4428_s4, %s3725_s22  ;;  %p3729_p11 = scmp.lt.u32.totalorder %s3725_s22, %s4428_s4 }
  0x39   :  { %p3731_p12 = pnand %p3729_p11, %p3726_p10 }
  0x3b   :  { %3734 = shalt.err (!%p3731_p12)
}
  0x3c   :  { %s3735_s1 = scalar_lea.vmem %s47_s16, 256  ;;  %p3740_p0 = scmp.lt.s32.totalorder %s47_s16, %s47_s16 }
  0x3d   :  { %p3736_p13 = scmp.ne.s32.totalorder %s47_s16, %s3735_s1  ;;  %p3741_p1 = scmp.lt.s32.totalorder %s3735_s1, %s3735_s1 }
  0x3f   :  { %p3742_p2 = por %p3741_p1, %p3740_p0 }
  0x41   :  { %p3743_p3 = pnand %p3742_p2, %p3736_p13 }
  0x43   :  { %3746 = shalt.err (!%p3743_p3)
}
  0x44   :  { %52 = dma.hbm_to_vmem [thread:$0]  %s4428_s4, 256, %s47_s16, [#allocation7], %s3778_s25, %s3778_s25, %s3779_s26  }
  0x45   :  { %s3747_s8 = scalar_lea.hbm %s4430_s6, 16 }
  0x46   :  { %p3748_p4 = scmp.ne.s32.totalorder %s4430_s6, %s3747_s8  ;;  %p3751_p5 = scmp.lt.u32.totalorder %s3747_s8, %s4430_s6 }
  0x48   :  { %p3753_p6 = pnand %p3751_p5, %p3748_p4 }
  0x4a   :  { %3756 = shalt.err (!%p3753_p6)
}
  0x4b   :  { %s3757_s13 = scalar_lea.vmem %s72_s19, 16  ;;  %s3761_s5 = scalar_lea.vmem %s72_s19, 32 }
  0x4c   :  { %p3758_p7 = scmp.ne.s32.totalorder %s72_s19, %s3757_s13  ;;  %p3762_p8 = scmp.lt.s32.totalorder %s72_s19, %s72_s19 }
  0x4d   :  { %p3763_p9 = scmp.lt.s32.totalorder %s3761_s5, %s3757_s13 }
  0x4f   :  { %p3764_p10 = por %p3763_p9, %p3762_p8 }
  0x51   :  { %p3765_p11 = pnand %p3764_p10, %p3758_p7 }
  0x53   :  { %3768 = shalt.err (!%p3765_p11)
}
  0x54   :  { %74 = dma.hbm_to_vmem [thread:$0]  %s4430_s6, 16, %s72_s19, [#allocation10]  }
  0x55   :  { %3769 = dma.done.wait [#allocation5], 256  }
  0x56   :  { %3770 = vsyncadd [#allocation5], 4294967040 }
  0x57   :  { %3771 = dma.done.wait [#allocation7], 272  }
  0x58   :  { %3772 = vsyncadd [#allocation7], 4294967024 }
  0x59   :  { %3773 = dma.done.wait [#allocation10], 528  }
  0x5a   :  { %3774 = vsyncadd [#allocation10], 4294966768  ;;  %v3782_v0 = vmov 0.0|0.0   ;;  %vm3783_vm0 = vmmov 0   ;;  %v3784_v1 = vmov 0.0   ;;  %v93_v2 = vld [vmem:[#allocation4] sm:$0xff] }
  0x5b   :  { %3305 = vmatprep.subr.bf16.mxu0 %v3782_v0  ;;  %3308 = vmatprep.subr.bf16.mxu1 %v3782_v0  ;;  %v94_v3 = vld [vmem:[#allocation4 + $0x8] sm:$0xff]  ;;  %v195_v4 = vld [vmem:[#allocation8] sm:$0xff]  ;;  %v196_v6 = vld [vmem:[#allocation8 + $0x8] sm:$0xff]  ;;  %vm102_vm1 = vcmask 130048   ;;  %s3786_s27 = smov 32   ;;  %vm495_vm2 = vcmask 254976  }
  0x5c   :  { %3019 = vmatprep.mubr.msk.f32.mxu0 %vm3783_vm0, %v3784_v1  ;;  %3032 = vmatprep.mubr.msk.f32.mxu1 %vm3783_vm0, %v3784_v1  ;;  %v3306_v5 = vpack.c.bf16 %v94_v3, %v93_v2  ;;  %v287_v7 = vld [vmem:[%s4426_s2] sm:$0xff]  ;;  %v3309_v8 = vpack.c.bf16 %v196_v6, %v195_v4  ;;  %v288_v9 = vld [vmem:[%s4426_s2 + $0x8] sm:$0xff]  ;;  %v291_v10 = vld [vmem:[#allocation9] sm:$0xff]  ;;  %vm296_vm3 = vcmask 261120   ;;  %vm502_vm4 = vcmask 517376  }
  0x5d   :  { %v90_v11 = vld [vmem:[%s4424_s0] sm:$0xff]  ;;  %v3911_v12 = vpack.c.bf16 %v288_v9, %v287_v7  ;;  %v289_v15 = vld [vmem:[%s4426_s2 + $0x10] sm:$0xff]  ;;  %v290_v16 = vld [vmem:[%s4426_s2 + $0x18] sm:$0xff] }
  0x5e   :  { %3307 = vmatpush3.bf16.msra.mxu0 %v3306_v5  ;;  %v292_v13 = vld [vmem:[#allocation9 + $0x8] sm:$0xff]  ;;  %3310 = vmatpush3.bf16.msra.mxu1 %v3309_v8  ;;  %v293_v17 = vld [vmem:[#allocation9 + $0x10] sm:$0xff]  ;;  %v294_v18 = vld [vmem:[#allocation9 + $0x18] sm:$0xff]  ;;  %v3933_v20 = vpack.c.bf16 %v290_v16, %v289_v15 }
  0x5f   :  { %3311 = vmatprep.subr.bf16.mxu0 %v3782_v0  ;;  %3317 = vmatprep.subr.bf16.mxu1 %v3782_v0  ;;  %v3915_v14 = vpack.c.bf16 %v292_v13, %v291_v10  ;;  %v91_v19 = vld [vmem:[%s4424_s0 + $0x8] sm:$0xff]  ;;  %v3937_v21 = vpack.c.bf16 %v294_v18, %v293_v17  ;;  %v92_v22 = vld [vmem:[%s4424_s0 + $0x10] sm:$0xff]  ;;  %v2809_v23 = vld [vmem:[#allocation6] ss:$0 sm:$0xff]  ;;  %s3785_s0 = smov 64  }
  0x60   :  { %v2813_v24 = vld [vmem:[#allocation11] ss:$0 sm:$0xff] }
  0x61   :  { %3020 = vmatmul.mubr.msk.f32.vlgmr.msra.gmra.mrb[0].mxu0 %vm102_vm1, %v90_v11  ;;  %3033 = vmatmul.mubr.msk.f32.vlgmr.msra.gmra.mrb[0].mxu1 %vm102_vm1, %v90_v11 }
  0x62   :  { %3313 = vmatpush3.bf16.msra.mxu0 %v3911_v12  ;;  %3022 = vmatprep.mubr.msk.f32.mxu0 %vm3783_vm0, %v3784_v1 }
  0x63   :  { %3035 = vmatprep.mubr.msk.f32.mxu1 %vm3783_vm0, %v3784_v1  ;;  %3319 = vmatpush3.bf16.msra.mxu1 %v3915_v14 }
  0x64   :  { %3314 = vmatprep.subr.bf16.mxu0 %v3782_v0  ;;  %3320 = vmatprep.subr.bf16.mxu1 %v3782_v0 }
  0x65   :  { %3023 = vmatmul.mubr.msk.f32.gmra.mrb[2].mxu0 %vm102_vm1, %v91_v19  ;;  %3036 = vmatmul.mubr.msk.f32.gmra.mrb[2].mxu1 %vm102_vm1, %v91_v19 }
  0x66   :  { %3025 = vmatprep.mubr.msk.f32.mxu0 %vm3783_vm0, %v3784_v1  ;;  %3038 = vmatprep.mubr.msk.f32.mxu1 %vm3783_vm0, %v3784_v1 }
  0x67   :  { %3316 = vmatpush3.bf16.msra.mxu0 %v3933_v20  ;;  %3322 = vmatpush3.bf16.msra.mxu1 %v3937_v21 }
  0x68   :  { %3323 = vmatprep.subr.bf16.mxu0 %v3782_v0  ;;  %3329 = vmatprep.subr.bf16.mxu1 %v3782_v0 }
  0x69   :  { %3026 = vmatmul.mubr.msk.f32.gmra.mrb[4].mxu0 %vm102_vm1, %v92_v22  ;;  %3039 = vmatmul.mubr.msk.f32.gmra.mrb[4].mxu1 %vm102_vm1, %v92_v22 }
  0x6a   :  { %3049 = vmatprep.mubr.msk.f32.mxu0 %vm3783_vm0, %v3784_v1  ;;  %3060 = vmatprep.mubr.msk.f32.mxu1 %vm3783_vm0, %v3784_v1 }
  0x6d   :  { %3050 = vmatmul.mubr.f32.vlgmr.msra.gmra.mrb[6].mxu0 %v3784_v1  ;;  %3061 = vmatmul.mubr.f32.vlgmr.msra.gmra.mrb[6].mxu1 %v3784_v1 }
  0x6e   :  { %3325 = vmatpush3.bf16.msra.mxu0 %v3911_v12  ;;  %3071 = vmatprep.mubr.msk.f32.mxu0 %vm3783_vm0, %v3784_v1 }
  0x6f   :  { %3326 = vmatprep.subr.bf16.mxu0 %v3782_v0  ;;  %3331 = vmatpush3.bf16.msra.mxu1 %v3915_v14 }
  0x70   :  { %3082 = vmatprep.mubr.msk.f32.mxu1 %vm3783_vm0, %v3784_v1  ;;  %3332 = vmatprep.subr.bf16.mxu1 %v3782_v0 }
  0x72   :  { %3328 = vmatpush3.bf16.msra.mxu0 %v3933_v20 }
  0x73   :  { %3335 = vmatprep.subr.bf16.mxu0 %v3782_v0  ;;  %3334 = vmatpush3.bf16.msra.mxu1 %v3937_v21 }
  0x74   :  { %3341 = vmatprep.subr.bf16.mxu1 %v3782_v0 }
 0x134   :  { %v178_v25 = vpop.f32.mrb[0].mxu0  ;;  %v270_v26 = vpop.f32.mrb[0].mxu1 }
 0x135   :  { %v179_v27 = vadd.f32 %v2809_v23, %v178_v25  ;;  %v3021_v28 = vpop.f32.mrb[1].mxu0  ;;  %v271_v29 = vadd.f32 %v2813_v24, %v270_v26  ;;  %v3034_v30 = vpop.f32.mrb[1].mxu1 }
 0x137   :  { %192 = vst [vmem:[#allocation2] sm:$0xff] %v179_v27  ;;  %284 = vst [vmem:[#allocation3] sm:$0xff] %v271_v29 }
 0x138   :  { %v183_v31 = vpop.f32.mrb[2].mxu0  ;;  %v275_v32 = vpop.f32.mrb[2].mxu1 }
 0x139   :  { %v184_v33 = vadd.f32 %v2809_v23, %v183_v31  ;;  %v3024_v34 = vpop.f32.mrb[3].mxu0  ;;  %v276_v35 = vadd.f32 %v2813_v24, %v275_v32  ;;  %v3037_v36 = vpop.f32.mrb[3].mxu1 }
 0x13b   :  { %193 = vst [vmem:[#allocation2 + $0x8] sm:$0xff] %v184_v33  ;;  %285 = vst [vmem:[#allocation3 + $0x8] sm:$0xff] %v276_v35 }
 0x13c   :  { %v188_v37 = vpop.f32.mrb[4].mxu0  ;;  %v280_v38 = vpop.f32.mrb[4].mxu1 }
 0x13d   :  { %v189_v39 = vadd.f32 %v2809_v23, %v188_v37  ;;  %v3027_v40 = vpop.f32.mrb[5].mxu0  ;;  %v281_v41 = vadd.f32 %v2813_v24, %v280_v38  ;;  %v3040_v42 = vpop.f32.mrb[5].mxu1 }
 0x13e   :  { %v295_v43 = vld [vmem:[#allocation2] sm:$0x3]  ;;  %v504_v19 = vld [vmem:[#allocation2 + $0x2] sm:$0x3] }
 0x13f   :  { %194 = vst [vmem:[#allocation2 + $0x10] sm:$0xff] %v189_v39  ;;  %286 = vst [vmem:[#allocation3 + $0x10] sm:$0xff] %v281_v41 }
 0x140   :  { %v366_v44 = vpop.f32.mrb[6].mxu0  ;;  %v438_v47 = vpop.f32.mrb[6].mxu1 }
 0x141   :  { %v370_v45 = vadd.f32 %v366_v44, %v295_v43  ;;  %v3051_v46 = vpop.f32.mrb[7].mxu0  ;;  %v3062_v48 = vpop.f32.mrb[7].mxu1 }
 0x143   :  { %3467 = vtanh.f32 %v370_v45  ;;  %v2817_v53 = vmul.f32 -1.442695, %v370_v45 }
 0x146   :  { %v371_v49 = vld [vmem:[#allocation3 + $0x16] sm:$0x3]  ;;  %v578_v25 = vld [vmem:[#allocation3 + $0x14] sm:$0x3] }
 0x147   :  { %v442_v50 = vadd.f32 %v438_v47, %v371_v49 }
 0x149   :  { %3469 = vtanh.f32 %v442_v50  ;;  %v2818_v54 = vmul.f32 -1.442695, %v442_v50 }
 0x14a   :  { %3471 = vpow2.f32 %v2817_v53 }
 0x14b   :  { %3473 = vpow2.f32 %v2818_v54 }
 0x14d   :  { %v3468_v51 = vpop.eup %3467 }
 0x14e   :  { %452 = vrot.lane.b32.xlu0 %v3468_v51, %s3785_s0 }
 0x153   :  { %v3470_v52 = vpop.eup %3469 }
 0x154   :  { %476 = vrot.lane.b32.xlu0 %v3470_v52, %s3785_s0  ;;  %v3472_v55 = vpop.eup %3471 }
 0x155   :  { %v446_v56 = vadd.f32 1.0, %v3472_v55  ;;  %v3474_v57 = vpop.eup %3473 }
 0x156   :  { %v470_v58 = vadd.f32 1.0, %v3474_v57  ;;  %v714_v57 = vld [vmem:[#allocation2 + $0x4] sm:$0x3] }
 0x157   :  { %3475 = vrcp.f32 %v446_v56 }
 0x158   :  { %3477 = vrcp.f32 %v470_v58 }
 0x161   :  { %v3476_v59 = vpop.eup %3475 }
 0x162   :  { %v3478_v62 = vpop.eup %3477  ;;  %v450_v3 = vmul.f32 0.0, %v3476_v59 }
 0x163   :  { %v474_v6 = vmul.f32 0.0, %v3478_v62 }
 0x1c0   :  { %v453_v60 = vpop.permute.xlu0 %452 }
 0x1c1   :  { %v455_v61 = vmul.f32 %v3476_v59, %v453_v60 }
 0x1c3   :  { %457 = vrot.lane.b32.xlu1 %v455_v61, %s3786_s27  ;;  %v788_v61 = vld [vmem:[#allocation3 + $0x12] sm:$0x3] }
 0x1c6   :  { %v477_v63 = vpop.permute.xlu0 %476 }
 0x1c7   :  { %v479_v2 = vmul.f32 %v3478_v62, %v477_v63 }
 0x1c9   :  { %481 = vrot.lane.b32.xlu1 %v479_v2, %s3786_s27 }
 0x235   :  { %v458_v4 = vpop.permute.xlu1 %457 }
 0x236   :  { %v3977_v5 = vadd.f32 %v458_v4, %v450_v3 }
 0x238   :  { %3479 = vtanh.f32 %v3977_v5 }
 0x23b   :  { %v482_v7 = vpop.permute.xlu1 %481 }
 0x23c   :  { %v3980_v8 = vadd.f32 %v482_v7, %v474_v6 }
 0x23e   :  { %3481 = vtanh.f32 %v3980_v8 }
 0x242   :  { %v3480_v9 = vpop.eup %3479 }
 0x243   :  { %463 = vrot.lane.b32.xlu0 %v3480_v9, %s3785_s0 }
 0x248   :  { %v3482_v10 = vpop.eup %3481 }
 0x249   :  { %487 = vrot.lane.b32.xlu1 %v3482_v10, %s3785_s0 }
 0x2b5   :  { %v464_v11 = vpop.permute.xlu0 %463 }
 0x2b6   :  { %v466_v13 = vmul.f32 %v3476_v59, %v464_v11 }
 0x2b8   :  { %492 = vrot.lane.b32.xlu0 %v466_v13, %s3786_s27 }
 0x2bb   :  { %v488_v15 = vpop.permute.xlu1 %487 }
 0x2bc   :  { %v3986_v16 = vmul.f32 %v3478_v62, %v488_v15 }
 0x2be   :  { %579 = vrot.lane.b32.xlu1 %v3986_v16, %s3786_s27 }
 0x32a   :  { %v493_v17 = vpop.permute.xlu0 %492 }
 0x32b   :  { %496 = vst.msk [vmem:[%s4431_s7] sm:$0x3] %vm495_vm2, %v493_v17  ;;  %3072 = vmatmul.mubr.msk.f32.vlgmr.msra.gmra.mrb[8].mxu0 %vm296_vm3, %v493_v17 }
 0x32c   :  { %3337 = vmatpush3.bf16.msra.mxu0 %v3911_v12  ;;  %3093 = vmatprep.mubr.msk.f32.mxu0 %vm3783_vm0, %v3784_v1 }
 0x32d   :  { %3338 = vmatprep.subr.bf16.mxu0 %v3782_v0 }
 0x330   :  { %3340 = vmatpush3.bf16.msra.mxu0 %v3933_v20  ;;  %v580_v18 = vpop.permute.xlu1 %579 }
 0x331   :  { %3347 = vmatprep.subr.bf16.mxu0 %v3782_v0  ;;  %3083 = vmatmul.mubr.msk.f32.vlgmr.msra.gmra.mrb[8].mxu1 %vm296_vm3, %v580_v18 }
 0x332   :  { %3343 = vmatpush3.bf16.msra.mxu1 %v3915_v14  ;;  %3104 = vmatprep.mubr.msk.f32.mxu1 %vm3783_vm0, %v3784_v1 }
 0x333   :  { %3344 = vmatprep.subr.bf16.mxu1 %v3782_v0 }
 0x336   :  { %3346 = vmatpush3.bf16.msra.mxu1 %v3937_v21 }
 0x337   :  { %3353 = vmatprep.subr.bf16.mxu1 %v3782_v0 }
 0x3fe   :  { %v573_v22 = vpop.f32.mrb[8].mxu0 }
 0x3ff   :  { %v577_v23 = vadd.f32 %v573_v22, %v504_v19  ;;  %v3073_v24 = vpop.f32.mrb[9].mxu0 }
 0x401   :  { %3483 = vtanh.f32 %v577_v23  ;;  %v2822_v31 = vmul.f32 -1.442695, %v577_v23 }
 0x404   :  { %v649_v26 = vpop.f32.mrb[8].mxu1 }
 0x405   :  { %v653_v27 = vadd.f32 %v649_v26, %v578_v25  ;;  %v3084_v28 = vpop.f32.mrb[9].mxu1 }
 0x407   :  { %3485 = vtanh.f32 %v653_v27  ;;  %v2823_v32 = vmul.f32 -1.442695, %v653_v27 }
 0x408   :  { %3487 = vpow2.f32 %v2822_v31 }
 0x409   :  { %3489 = vpow2.f32 %v2823_v32 }
 0x40b   :  { %v3484_v29 = vpop.eup %3483 }
 0x40c   :  { %663 = vrot.lane.b32.xlu0 %v3484_v29, %s3785_s0 }
 0x411   :  { %v3486_v30 = vpop.eup %3485 }
 0x412   :  { %687 = vrot.lane.b32.xlu1 %v3486_v30, %s3785_s0  ;;  %v3488_v33 = vpop.eup %3487 }
 0x413   :  { %v657_v34 = vadd.f32 1.0, %v3488_v33  ;;  %v3490_v35 = vpop.eup %3489 }
 0x414   :  { %v681_v36 = vadd.f32 1.0, %v3490_v35 }
 0x415   :  { %3491 = vrcp.f32 %v657_v34 }
 0x416   :  { %3493 = vrcp.f32 %v681_v36  ;;  %v924_v36 = vld [vmem:[#allocation2 + $0x6] sm:$0x3] }
 0x41f   :  { %v3492_v37 = vpop.eup %3491 }
 0x420   :  { %v3494_v40 = vpop.eup %3493  ;;  %v661_v43 = vmul.f32 %v3492_v37, %v3977_v5 }
 0x421   :  { %v685_v46 = vmul.f32 %v3494_v40, %v3980_v8 }
 0x47e   :  { %v664_v38 = vpop.permute.xlu0 %663 }
 0x47f   :  { %v666_v39 = vmul.f32 %v3492_v37, %v664_v38 }
 0x481   :  { %668 = vrot.lane.b32.xlu0 %v666_v39, %s3786_s27 }
 0x484   :  { %v688_v41 = vpop.permute.xlu1 %687 }
 0x485   :  { %v690_v42 = vmul.f32 %v3494_v40, %v688_v41 }
 0x487   :  { %692 = vrot.lane.b32.xlu1 %v690_v42, %s3786_s27 }
 0x4f3   :  { %v669_v44 = vpop.permute.xlu0 %668 }
 0x4f4   :  { %v4013_v45 = vadd.f32 %v669_v44, %v661_v43 }
 0x4f6   :  { %3495 = vtanh.f32 %v4013_v45 }
 0x4f9   :  { %v693_v47 = vpop.permute.xlu1 %692 }
 0x4fa   :  { %v4017_v48 = vadd.f32 %v693_v47, %v685_v46 }
 0x4fc   :  { %3497 = vtanh.f32 %v4017_v48 }
 0x500   :  { %v3496_v49 = vpop.eup %3495 }
 0x501   :  { %674 = vrot.lane.b32.xlu0 %v3496_v49, %s3785_s0 }
 0x506   :  { %v3498_v50 = vpop.eup %3497 }
 0x507   :  { %698 = vrot.lane.b32.xlu1 %v3498_v50, %s3785_s0 }
 0x573   :  { %v675_v51 = vpop.permute.xlu0 %674 }
 0x574   :  { %v677_v52 = vmul.f32 %v3492_v37, %v675_v51 }
 0x576   :  { %703 = vrot.lane.b32.xlu0 %v677_v52, %s3786_s27 }
 0x579   :  { %v699_v53 = vpop.permute.xlu1 %698 }
 0x57a   :  { %v4023_v54 = vmul.f32 %v3494_v40, %v699_v53  ;;  %v998_v40 = vld [vmem:[#allocation3 + $0x10] sm:$0x3] }
 0x57c   :  { %789 = vrot.lane.b32.xlu1 %v4023_v54, %s3786_s27 }
 0x5e8   :  { %v704_v55 = vpop.permute.xlu0 %703 }
 0x5e9   :  { %2824 = vst.msk [vmem:[%s4431_s7 + $0x2] sm:$0x3] %vm495_vm2, %v704_v55  ;;  %3094 = vmatmul.mubr.msk.f32.vlgmr.msra.gmra.mrb[10].mxu0 %vm296_vm3, %v704_v55 }
 0x5ea   :  { %3349 = vmatpush3.bf16.msra.mxu0 %v3911_v12  ;;  %3115 = vmatprep.mubr.msk.f32.mxu0 %vm3783_vm0, %v3784_v1 }
 0x5eb   :  { %3350 = vmatprep.subr.bf16.mxu0 %v3782_v0 }
 0x5ee   :  { %3352 = vmatpush3.bf16.msra.mxu0 %v3933_v20  ;;  %v790_v56 = vpop.permute.xlu1 %789 }
 0x5ef   :  { %3359 = vmatprep.subr.bf16.mxu0 %v3782_v0  ;;  %3105 = vmatmul.mubr.msk.f32.vlgmr.msra.gmra.mrb[10].mxu1 %vm296_vm3, %v790_v56 }
 0x5f0   :  { %3355 = vmatpush3.bf16.msra.mxu1 %v3915_v14  ;;  %3126 = vmatprep.mubr.msk.f32.mxu1 %vm3783_vm0, %v3784_v1 }
 0x5f1   :  { %3356 = vmatprep.subr.bf16.mxu1 %v3782_v0 }
 0x5f4   :  { %3358 = vmatpush3.bf16.msra.mxu1 %v3937_v21 }
 0x5f5   :  { %3365 = vmatprep.subr.bf16.mxu1 %v3782_v0 }
 0x6bc   :  { %v783_v58 = vpop.f32.mrb[10].mxu0 }
 0x6bd   :  { %v787_v59 = vadd.f32 %v783_v58, %v714_v57  ;;  %v3095_v60 = vpop.f32.mrb[11].mxu0 }
 0x6bf   :  { %3499 = vtanh.f32 %v787_v59  ;;  %v2828_v5 = vmul.f32 -1.442695, %v787_v59 }
 0x6c2   :  { %v859_v62 = vpop.f32.mrb[10].mxu1 }
 0x6c3   :  { %v863_v63 = vadd.f32 %v859_v62, %v788_v61  ;;  %v3106_v2 = vpop.f32.mrb[11].mxu1 }
 0x6c5   :  { %3501 = vtanh.f32 %v863_v63  ;;  %v2829_v6 = vmul.f32 -1.442695, %v863_v63 }
 0x6c6   :  { %3503 = vpow2.f32 %v2828_v5 }
 0x6c7   :  { %3505 = vpow2.f32 %v2829_v6 }
 0x6c9   :  { %v3500_v3 = vpop.eup %3499 }
 0x6ca   :  { %873 = vrot.lane.b32.xlu0 %v3500_v3, %s3785_s0 }
 0x6cf   :  { %v3502_v4 = vpop.eup %3501 }
 0x6d0   :  { %897 = vrot.lane.b32.xlu1 %v3502_v4, %s3785_s0  ;;  %v3504_v7 = vpop.eup %3503 }
 0x6d1   :  { %v867_v8 = vadd.f32 1.0, %v3504_v7  ;;  %v3506_v9 = vpop.eup %3505 }
 0x6d2   :  { %v891_v10 = vadd.f32 1.0, %v3506_v9 }
 0x6d3   :  { %3507 = vrcp.f32 %v867_v8 }
 0x6d4   :  { %3509 = vrcp.f32 %v891_v10 }
 0x6dd   :  { %v3508_v11 = vpop.eup %3507 }
 0x6de   :  { %v3510_v17 = vpop.eup %3509  ;;  %v871_v22 = vmul.f32 %v3508_v11, %v4013_v45 }
 0x6df   :  { %v895_v25 = vmul.f32 %v3510_v17, %v4017_v48 }
 0x73c   :  { %v874_v13 = vpop.permute.xlu0 %873 }
 0x73d   :  { %v876_v15 = vmul.f32 %v3508_v11, %v874_v13 }
 0x73f   :  { %878 = vrot.lane.b32.xlu0 %v876_v15, %s3786_s27 }
 0x742   :  { %v898_v18 = vpop.permute.xlu1 %897 }
 0x743   :  { %v900_v19 = vmul.f32 %v3510_v17, %v898_v18  ;;  %v1208_v18 = vld [vmem:[#allocation3 + $0xe] sm:$0x3] }
 0x745   :  { %902 = vrot.lane.b32.xlu1 %v900_v19, %s3786_s27 }
 0x7b1   :  { %v879_v23 = vpop.permute.xlu0 %878 }
 0x7b2   :  { %v4050_v24 = vadd.f32 %v879_v23, %v871_v22 }
 0x7b4   :  { %3511 = vtanh.f32 %v4050_v24 }
 0x7b7   :  { %v903_v26 = vpop.permute.xlu1 %902 }
 0x7b8   :  { %v4054_v27 = vadd.f32 %v903_v26, %v895_v25 }
 0x7ba   :  { %3513 = vtanh.f32 %v4054_v27 }
 0x7be   :  { %v3512_v28 = vpop.eup %3511 }
 0x7bf   :  { %884 = vrot.lane.b32.xlu0 %v3512_v28, %s3785_s0 }
 0x7c4   :  { %v3514_v29 = vpop.eup %3513 }
 0x7c5   :  { %908 = vrot.lane.b32.xlu1 %v3514_v29, %s3785_s0 }
 0x831   :  { %v885_v30 = vpop.permute.xlu0 %884 }
 0x832   :  { %v887_v31 = vmul.f32 %v3508_v11, %v885_v30  ;;  %v1134_v11 = vld [vmem:[#allocation2 + $0x8] sm:$0x3] }
 0x834   :  { %913 = vrot.lane.b32.xlu0 %v887_v31, %s3786_s27 }
 0x837   :  { %v909_v32 = vpop.permute.xlu1 %908 }
 0x838   :  { %v4060_v33 = vmul.f32 %v3510_v17, %v909_v32 }
 0x83a   :  { %999 = vrot.lane.b32.xlu1 %v4060_v33, %s3786_s27 }
 0x8a6   :  { %v914_v34 = vpop.permute.xlu0 %913 }
 0x8a7   :  { %2830 = vst.msk [vmem:[%s4431_s7 + $0x4] sm:$0x3] %vm495_vm2, %v914_v34  ;;  %3116 = vmatmul.mubr.msk.f32.vlgmr.msra.gmra.mrb[12].mxu0 %vm296_vm3, %v914_v34 }
 0x8a8   :  { %3361 = vmatpush3.bf16.msra.mxu0 %v3911_v12  ;;  %3137 = vmatprep.mubr.msk.f32.mxu0 %vm3783_vm0, %v3784_v1 }
 0x8a9   :  { %3362 = vmatprep.subr.bf16.mxu0 %v3782_v0 }
 0x8ac   :  { %3364 = vmatpush3.bf16.msra.mxu0 %v3933_v20  ;;  %v1000_v35 = vpop.permute.xlu1 %999 }
 0x8ad   :  { %3371 = vmatprep.subr.bf16.mxu0 %v3782_v0  ;;  %3127 = vmatmul.mubr.msk.f32.vlgmr.msra.gmra.mrb[12].mxu1 %vm296_vm3, %v1000_v35 }
 0x8ae   :  { %3367 = vmatpush3.bf16.msra.mxu1 %v3915_v14  ;;  %3148 = vmatprep.mubr.msk.f32.mxu1 %vm3783_vm0, %v3784_v1 }
 0x8af   :  { %3368 = vmatprep.subr.bf16.mxu1 %v3782_v0 }
 0x8b2   :  { %3370 = vmatpush3.bf16.msra.mxu1 %v3937_v21 }
 0x8b3   :  { %3377 = vmatprep.subr.bf16.mxu1 %v3782_v0 }
 0x97a   :  { %v993_v37 = vpop.f32.mrb[12].mxu0 }
 0x97b   :  { %v997_v38 = vadd.f32 %v993_v37, %v924_v36  ;;  %v3117_v39 = vpop.f32.mrb[13].mxu0 }
 0x97d   :  { %3515 = vtanh.f32 %v997_v38  ;;  %v2834_v46 = vmul.f32 -1.442695, %v997_v38 }
 0x980   :  { %v1069_v41 = vpop.f32.mrb[12].mxu1 }
 0x981   :  { %v1073_v42 = vadd.f32 %v1069_v41, %v998_v40  ;;  %v3128_v43 = vpop.f32.mrb[13].mxu1 }
 0x983   :  { %3517 = vtanh.f32 %v1073_v42  ;;  %v2835_v47 = vmul.f32 -1.442695, %v1073_v42 }
 0x984   :  { %3519 = vpow2.f32 %v2834_v46 }
 0x985   :  { %3521 = vpow2.f32 %v2835_v47 }
 0x987   :  { %v3516_v44 = vpop.eup %3515 }
 0x988   :  { %1083 = vrot.lane.b32.xlu0 %v3516_v44, %s3785_s0 }
 0x98d   :  { %v3518_v45 = vpop.eup %3517 }
 0x98e   :  { %1107 = vrot.lane.b32.xlu1 %v3518_v45, %s3785_s0  ;;  %v3520_v48 = vpop.eup %3519 }
 0x98f   :  { %v1077_v49 = vadd.f32 1.0, %v3520_v48  ;;  %v3522_v50 = vpop.eup %3521 }
 0x990   :  { %v1101_v51 = vadd.f32 1.0, %v3522_v50 }
 0x991   :  { %3523 = vrcp.f32 %v1077_v49 }
 0x992   :  { %3525 = vrcp.f32 %v1101_v51 }
 0x99b   :  { %v3524_v52 = vpop.eup %3523 }
 0x99c   :  { %v3526_v56 = vpop.eup %3525  ;;  %v1081_v59 = vmul.f32 %v3524_v52, %v4050_v24 }
 0x99d   :  { %v1105_v62 = vmul.f32 %v3526_v56, %v4054_v27 }
 0x9fa   :  { %v1084_v53 = vpop.permute.xlu0 %1083 }
 0x9fb   :  { %v1086_v55 = vmul.f32 %v3524_v52, %v1084_v53  ;;  %v1344_v53 = vld [vmem:[#allocation2 + $0xa] sm:$0x3] }
 0x9fd   :  { %1088 = vrot.lane.b32.xlu0 %v1086_v55, %s3786_s27 }
 0xa00   :  { %v1108_v57 = vpop.permute.xlu1 %1107 }
 0xa01   :  { %v1110_v58 = vmul.f32 %v3526_v56, %v1108_v57 }
 0xa03   :  { %1112 = vrot.lane.b32.xlu1 %v1110_v58, %s3786_s27  ;;  %v1418_v58 = vld [vmem:[#allocation3 + $0xc] sm:$0x3] }
 0xa6f   :  { %v1089_v60 = vpop.permute.xlu0 %1088 }
 0xa70   :  { %v4087_v61 = vadd.f32 %v1089_v60, %v1081_v59 }
 0xa72   :  { %3527 = vtanh.f32 %v4087_v61 }
 0xa75   :  { %v1113_v63 = vpop.permute.xlu1 %1112 }
 0xa76   :  { %v4091_v2 = vadd.f32 %v1113_v63, %v1105_v62 }
 0xa78   :  { %3529 = vtanh.f32 %v4091_v2 }
 0xa7c   :  { %v3528_v3 = vpop.eup %3527 }
 0xa7d   :  { %1094 = vrot.lane.b32.xlu0 %v3528_v3, %s3785_s0 }
 0xa82   :  { %v3530_v4 = vpop.eup %3529 }
 0xa83   :  { %1118 = vrot.lane.b32.xlu1 %v3530_v4, %s3785_s0 }
 0xaef   :  { %v1095_v5 = vpop.permute.xlu0 %1094 }
 0xaf0   :  { %v1097_v6 = vmul.f32 %v3524_v52, %v1095_v5 }
 0xaf2   :  { %1123 = vrot.lane.b32.xlu0 %v1097_v6, %s3786_s27 }
 0xaf5   :  { %v1119_v7 = vpop.permute.xlu1 %1118 }
 0xaf6   :  { %v4097_v8 = vmul.f32 %v3526_v56, %v1119_v7 }
 0xaf8   :  { %1209 = vrot.lane.b32.xlu1 %v4097_v8, %s3786_s27 }
 0xb64   :  { %v1124_v9 = vpop.permute.xlu0 %1123 }
 0xb65   :  { %2836 = vst.msk [vmem:[%s4431_s7 + $0x6] sm:$0x3] %vm495_vm2, %v1124_v9  ;;  %3138 = vmatmul.mubr.msk.f32.vlgmr.msra.gmra.mrb[14].mxu0 %vm296_vm3, %v1124_v9 }
 0xb66   :  { %3373 = vmatpush3.bf16.msra.mxu0 %v3911_v12  ;;  %3159 = vmatprep.mubr.msk.f32.mxu0 %vm3783_vm0, %v3784_v1 }
 0xb67   :  { %3374 = vmatprep.subr.bf16.mxu0 %v3782_v0 }
 0xb6a   :  { %3376 = vmatpush3.bf16.msra.mxu0 %v3933_v20  ;;  %v1210_v10 = vpop.permute.xlu1 %1209 }
 0xb6b   :  { %3383 = vmatprep.subr.bf16.mxu0 %v3782_v0  ;;  %3149 = vmatmul.mubr.msk.f32.vlgmr.msra.gmra.mrb[14].mxu1 %vm296_vm3, %v1210_v10 }
 0xb6c   :  { %3379 = vmatpush3.bf16.msra.mxu1 %v3915_v14  ;;  %3170 = vmatprep.mubr.msk.f32.mxu1 %vm3783_vm0, %v3784_v1 }
 0xb6d   :  { %3380 = vmatprep.subr.bf16.mxu1 %v3782_v0 }
 0xb70   :  { %3382 = vmatpush3.bf16.msra.mxu1 %v3937_v21 }
 0xb71   :  { %3389 = vmatprep.subr.bf16.mxu1 %v3782_v0 }
 0xc38   :  { %v1203_v13 = vpop.f32.mrb[14].mxu0 }
 0xc39   :  { %v1207_v15 = vadd.f32 %v1203_v13, %v1134_v11  ;;  %v3139_v17 = vpop.f32.mrb[15].mxu0 }
 0xc3b   :  { %3531 = vtanh.f32 %v1207_v15  ;;  %v2840_v26 = vmul.f32 -1.442695, %v1207_v15 }
 0xc3e   :  { %v1279_v19 = vpop.f32.mrb[14].mxu1 }
 0xc3f   :  { %v1283_v22 = vadd.f32 %v1279_v19, %v1208_v18  ;;  %v3150_v23 = vpop.f32.mrb[15].mxu1 }
 0xc41   :  { %3533 = vtanh.f32 %v1283_v22  ;;  %v2841_v27 = vmul.f32 -1.442695, %v1283_v22 }
 0xc42   :  { %3535 = vpow2.f32 %v2840_v26 }
 0xc43   :  { %3537 = vpow2.f32 %v2841_v27 }
 0xc45   :  { %v3532_v24 = vpop.eup %3531 }
 0xc46   :  { %1293 = vrot.lane.b32.xlu0 %v3532_v24, %s3785_s0 }
 0xc4b   :  { %v3534_v25 = vpop.eup %3533 }
 0xc4c   :  { %1317 = vrot.lane.b32.xlu1 %v3534_v25, %s3785_s0  ;;  %v3536_v28 = vpop.eup %3535 }
 0xc4d   :  { %v1287_v29 = vadd.f32 1.0, %v3536_v28  ;;  %v3538_v30 = vpop.eup %3537 }
 0xc4e   :  { %v1311_v31 = vadd.f32 1.0, %v3538_v30 }
 0xc4f   :  { %3539 = vrcp.f32 %v1287_v29 }
 0xc50   :  { %3541 = vrcp.f32 %v1311_v31 }
 0xc59   :  { %v3540_v32 = vpop.eup %3539 }
 0xc5a   :  { %v3542_v36 = vpop.eup %3541  ;;  %v1291_v39 = vmul.f32 %v3540_v32, %v4087_v61 }
 0xc5b   :  { %v1315_v42 = vmul.f32 %v3542_v36, %v4091_v2 }
 0xcb8   :  { %v1294_v34 = vpop.permute.xlu0 %1293 }
 0xcb9   :  { %v1296_v35 = vmul.f32 %v3540_v32, %v1294_v34 }
 0xcbb   :  { %1298 = vrot.lane.b32.xlu0 %v1296_v35, %s3786_s27  ;;  %v1554_v35 = vld [vmem:[#allocation2 + $0xc] sm:$0x3] }
 0xcbe   :  { %v1318_v37 = vpop.permute.xlu1 %1317 }
 0xcbf   :  { %v1320_v38 = vmul.f32 %v3542_v36, %v1318_v37 }
 0xcc1   :  { %1322 = vrot.lane.b32.xlu1 %v1320_v38, %s3786_s27 }
 0xd2d   :  { %v1299_v40 = vpop.permute.xlu0 %1298 }
 0xd2e   :  { %v4124_v41 = vadd.f32 %v1299_v40, %v1291_v39  ;;  %v1628_v39 = vld [vmem:[#allocation3 + $0xa] sm:$0x3] }
 0xd30   :  { %3543 = vtanh.f32 %v4124_v41 }
 0xd33   :  { %v1323_v43 = vpop.permute.xlu1 %1322 }
 0xd34   :  { %v4128_v44 = vadd.f32 %v1323_v43, %v1315_v42 }
 0xd36   :  { %3545 = vtanh.f32 %v4128_v44 }
 0xd3a   :  { %v3544_v45 = vpop.eup %3543 }
 0xd3b   :  { %1304 = vrot.lane.b32.xlu0 %v3544_v45, %s3785_s0 }
 0xd40   :  { %v3546_v46 = vpop.eup %3545 }
 0xd41   :  { %1328 = vrot.lane.b32.xlu1 %v3546_v46, %s3785_s0 }
 0xdad   :  { %v1305_v47 = vpop.permute.xlu0 %1304 }
 0xdae   :  { %v1307_v48 = vmul.f32 %v3540_v32, %v1305_v47 }
 0xdb0   :  { %1333 = vrot.lane.b32.xlu0 %v1307_v48, %s3786_s27 }
 0xdb3   :  { %v1329_v49 = vpop.permute.xlu1 %1328 }
 0xdb4   :  { %v4134_v50 = vmul.f32 %v3542_v36, %v1329_v49 }
 0xdb6   :  { %1419 = vrot.lane.b32.xlu1 %v4134_v50, %s3786_s27 }
 0xe22   :  { %v1334_v51 = vpop.permute.xlu0 %1333 }
 0xe23   :  { %2842 = vst.msk [vmem:[%s4431_s7 + $0x8] sm:$0x3] %vm495_vm2, %v1334_v51  ;;  %3160 = vmatmul.mubr.msk.f32.vlgmr.msra.gmra.mrb[16].mxu0 %vm296_vm3, %v1334_v51 }
 0xe24   :  { %3385 = vmatpush3.bf16.msra.mxu0 %v3911_v12  ;;  %3181 = vmatprep.mubr.msk.f32.mxu0 %vm3783_vm0, %v3784_v1 }
 0xe25   :  { %3386 = vmatprep.subr.bf16.mxu0 %v3782_v0 }
 0xe28   :  { %3388 = vmatpush3.bf16.msra.mxu0 %v3933_v20  ;;  %v1420_v52 = vpop.permute.xlu1 %1419 }
 0xe29   :  { %3395 = vmatprep.subr.bf16.mxu0 %v3782_v0  ;;  %3171 = vmatmul.mubr.msk.f32.vlgmr.msra.gmra.mrb[16].mxu1 %vm296_vm3, %v1420_v52 }
 0xe2a   :  { %3391 = vmatpush3.bf16.msra.mxu1 %v3915_v14  ;;  %3192 = vmatprep.mubr.msk.f32.mxu1 %vm3783_vm0, %v3784_v1 }
 0xe2b   :  { %3392 = vmatprep.subr.bf16.mxu1 %v3782_v0 }
 0xe2e   :  { %3394 = vmatpush3.bf16.msra.mxu1 %v3937_v21 }
 0xe2f   :  { %3401 = vmatprep.subr.bf16.mxu1 %v3782_v0 }
 0xef6   :  { %v1413_v55 = vpop.f32.mrb[16].mxu0 }
 0xef7   :  { %v1417_v56 = vadd.f32 %v1413_v55, %v1344_v53  ;;  %v3161_v57 = vpop.f32.mrb[17].mxu0 }
 0xef9   :  { %3547 = vtanh.f32 %v1417_v56  ;;  %v2846_v2 = vmul.f32 -1.442695, %v1417_v56 }
 0xefc   :  { %v1489_v59 = vpop.f32.mrb[16].mxu1 }
 0xefd   :  { %v1493_v60 = vadd.f32 %v1489_v59, %v1418_v58  ;;  %v3172_v61 = vpop.f32.mrb[17].mxu1 }
 0xeff   :  { %3549 = vtanh.f32 %v1493_v60  ;;  %v2847_v3 = vmul.f32 -1.442695, %v1493_v60 }
 0xf00   :  { %3551 = vpow2.f32 %v2846_v2 }
 0xf01   :  { %3553 = vpow2.f32 %v2847_v3 }
 0xf03   :  { %v3548_v62 = vpop.eup %3547 }
 0xf04   :  { %1503 = vrot.lane.b32.xlu0 %v3548_v62, %s3785_s0 }
 0xf09   :  { %v3550_v63 = vpop.eup %3549 }
 0xf0a   :  { %1527 = vrot.lane.b32.xlu1 %v3550_v63, %s3785_s0  ;;  %v3552_v4 = vpop.eup %3551 }
 0xf0b   :  { %v1497_v5 = vadd.f32 1.0, %v3552_v4  ;;  %v3554_v6 = vpop.eup %3553 }
 0xf0c   :  { %v1521_v7 = vadd.f32 1.0, %v3554_v6 }
 0xf0d   :  { %3555 = vrcp.f32 %v1497_v5 }
 0xf0e   :  { %3557 = vrcp.f32 %v1521_v7 }
 0xf17   :  { %v3556_v9 = vpop.eup %3555 }
 0xf18   :  { %v3558_v13 = vpop.eup %3557  ;;  %v1501_v18 = vmul.f32 %v3556_v9, %v4124_v41 }
 0xf19   :  { %v1525_v23 = vmul.f32 %v3558_v13, %v4128_v44 }
 0xf76   :  { %v1504_v10 = vpop.permute.xlu0 %1503 }
 0xf77   :  { %v1506_v11 = vmul.f32 %v3556_v9, %v1504_v10 }
 0xf79   :  { %1508 = vrot.lane.b32.xlu0 %v1506_v11, %s3786_s27 }
 0xf7c   :  { %v1528_v15 = vpop.permute.xlu1 %1527 }
 0xf7d   :  { %v1530_v17 = vmul.f32 %v3558_v13, %v1528_v15 }
 0xf7f   :  { %1532 = vrot.lane.b32.xlu1 %v1530_v17, %s3786_s27 }
 0xfeb   :  { %v1509_v19 = vpop.permute.xlu0 %1508 }
 0xfec   :  { %v4161_v22 = vadd.f32 %v1509_v19, %v1501_v18  ;;  %v1836_v19 = vld [vmem:[#allocation3 + $0x8] sm:$0x3] }
 0xfee   :  { %3559 = vtanh.f32 %v4161_v22 }
 0xff1   :  { %v1533_v24 = vpop.permute.xlu1 %1532 }
 0xff2   :  { %v4165_v25 = vadd.f32 %v1533_v24, %v1525_v23 }
 0xff4   :  { %3561 = vtanh.f32 %v4165_v25 }
 0xff8   :  { %v3560_v26 = vpop.eup %3559 }
 0xff9   :  { %1514 = vrot.lane.b32.xlu0 %v3560_v26, %s3785_s0 }
 0xffe   :  { %v3562_v27 = vpop.eup %3561 }
 0xfff   :  { %1538 = vrot.lane.b32.xlu1 %v3562_v27, %s3785_s0 }
0x106b   :  { %v1515_v28 = vpop.permute.xlu0 %1514 }
0x106c   :  { %v1517_v29 = vmul.f32 %v3556_v9, %v1515_v28 }
0x106e   :  { %1543 = vrot.lane.b32.xlu0 %v1517_v29, %s3786_s27 }
0x1071   :  { %v1539_v30 = vpop.permute.xlu1 %1538 }
0x1072   :  { %v4171_v31 = vmul.f32 %v3558_v13, %v1539_v30  ;;  %v1762_v13 = vld [vmem:[#allocation2 + $0xe] sm:$0x3] }
0x1074   :  { %1629 = vrot.lane.b32.xlu1 %v4171_v31, %s3786_s27 }
0x10e0   :  { %v1544_v32 = vpop.permute.xlu0 %1543 }
0x10e1   :  { %2848 = vst.msk [vmem:[%s4431_s7 + $0xa] sm:$0x3] %vm495_vm2, %v1544_v32  ;;  %3182 = vmatmul.mubr.msk.f32.vlgmr.msra.gmra.mrb[18].mxu0 %vm296_vm3, %v1544_v32 }
0x10e2   :  { %3397 = vmatpush3.bf16.msra.mxu0 %v3911_v12  ;;  %3203 = vmatprep.mubr.msk.f32.mxu0 %vm3783_vm0, %v3784_v1 }
0x10e3   :  { %3398 = vmatprep.subr.bf16.mxu0 %v3782_v0 }
0x10e6   :  { %3400 = vmatpush3.bf16.msra.mxu0 %v3933_v20  ;;  %v1630_v34 = vpop.permute.xlu1 %1629 }
0x10e7   :  { %3407 = vmatprep.subr.bf16.mxu0 %v3782_v0  ;;  %3193 = vmatmul.mubr.msk.f32.vlgmr.msra.gmra.mrb[18].mxu1 %vm296_vm3, %v1630_v34 }
0x10e8   :  { %3403 = vmatpush3.bf16.msra.mxu1 %v3915_v14  ;;  %3214 = vmatprep.mubr.msk.f32.mxu1 %vm3783_vm0, %v3784_v1 }
0x10e9   :  { %3404 = vmatprep.subr.bf16.mxu1 %v3782_v0 }
0x10ec   :  { %3406 = vmatpush3.bf16.msra.mxu1 %v3937_v21 }
0x10ed   :  { %3413 = vmatprep.subr.bf16.mxu1 %v3782_v0 }
0x11b4   :  { %v1623_v36 = vpop.f32.mrb[18].mxu0 }
0x11b5   :  { %v1627_v37 = vadd.f32 %v1623_v36, %v1554_v35  ;;  %v3183_v38 = vpop.f32.mrb[19].mxu0 }
0x11b7   :  { %3563 = vtanh.f32 %v1627_v37  ;;  %v2852_v45 = vmul.f32 -1.442695, %v1627_v37 }
0x11ba   :  { %v1699_v40 = vpop.f32.mrb[18].mxu1 }
0x11bb   :  { %v1703_v41 = vadd.f32 %v1699_v40, %v1628_v39  ;;  %v3194_v42 = vpop.f32.mrb[19].mxu1 }
0x11bd   :  { %3565 = vtanh.f32 %v1703_v41  ;;  %v2853_v46 = vmul.f32 -1.442695, %v1703_v41 }
0x11be   :  { %3567 = vpow2.f32 %v2852_v45 }
0x11bf   :  { %3569 = vpow2.f32 %v2853_v46 }
0x11c1   :  { %v3564_v43 = vpop.eup %3563 }
0x11c2   :  { %1713 = vrot.lane.b32.xlu0 %v3564_v43, %s3785_s0 }
0x11c7   :  { %v3566_v44 = vpop.eup %3565 }
0x11c8   :  { %1737 = vrot.lane.b32.xlu1 %v3566_v44, %s3785_s0  ;;  %v3568_v47 = vpop.eup %3567 }
0x11c9   :  { %v1707_v48 = vadd.f32 1.0, %v3568_v47  ;;  %v3570_v49 = vpop.eup %3569 }
0x11ca   :  { %v1731_v51 = vadd.f32 1.0, %v3570_v49 }
0x11cb   :  { %3571 = vrcp.f32 %v1707_v48 }
0x11cc   :  { %3573 = vrcp.f32 %v1731_v51 }
0x11d5   :  { %v3572_v52 = vpop.eup %3571 }
0x11d6   :  { %v3574_v56 = vpop.eup %3573  ;;  %v1711_v59 = vmul.f32 %v3572_v52, %v4161_v22 }
0x11d7   :  { %v1735_v62 = vmul.f32 %v3574_v56, %v4165_v25 }
0x1234   :  { %v1714_v53 = vpop.permute.xlu0 %1713 }
0x1235   :  { %v1716_v55 = vmul.f32 %v3572_v52, %v1714_v53 }
0x1237   :  { %1718 = vrot.lane.b32.xlu0 %v1716_v55, %s3786_s27 }
0x123a   :  { %v1738_v57 = vpop.permute.xlu1 %1737 }
0x123b   :  { %v1740_v58 = vmul.f32 %v3574_v56, %v1738_v57  ;;  %v1970_v57 = vld [vmem:[#allocation2 + $0x10] sm:$0x3] }
0x123d   :  { %1742 = vrot.lane.b32.xlu1 %v1740_v58, %s3786_s27 }
0x12a9   :  { %v1719_v60 = vpop.permute.xlu0 %1718 }
0x12aa   :  { %v1721_v61 = vadd.f32 %v1719_v60, %v1711_v59 }
0x12ac   :  { %3575 = vtanh.f32 %v1721_v61 }
0x12af   :  { %v1743_v63 = vpop.permute.xlu1 %1742 }
0x12b0   :  { %v1745_v2 = vadd.f32 %v1743_v63, %v1735_v62 }
0x12b2   :  { %3577 = vtanh.f32 %v1745_v2 }
0x12b6   :  { %v3576_v3 = vpop.eup %3575 }
0x12b7   :  { %1724 = vrot.lane.b32.xlu0 %v3576_v3, %s3785_s0 }
0x12bc   :  { %v3578_v4 = vpop.eup %3577 }
0x12bd   :  { %1748 = vrot.lane.b32.xlu1 %v3578_v4, %s3785_s0 }
0x1329   :  { %v1725_v5 = vpop.permute.xlu0 %1724 }
0x132a   :  { %v1727_v6 = vmul.f32 %v3572_v52, %v1725_v5 }
0x132c   :  { %1753 = vrot.lane.b32.xlu0 %v1727_v6, %s3786_s27 }
0x132f   :  { %v1749_v7 = vpop.permute.xlu1 %1748 }
0x1330   :  { %v4202_v9 = vmul.f32 %v3574_v56, %v1749_v7 }
0x1332   :  { %1837 = vrot.lane.b32.xlu1 %v4202_v9, %s3786_s27 }
0x139e   :  { %v4206_v10 = vpop.permute.xlu0 %1753 }
0x139f   :  { %3204 = vmatmul.mubr.msk.f32.vlgmr.msra.gmra.mrb[20].mxu0 %vm296_vm3, %v4206_v10 }
0x13a0   :  { %3409 = vmatpush3.bf16.msra.mxu0 %v3911_v12  ;;  %3225 = vmatprep.mubr.msk.f32.mxu0 %vm3783_vm0, %v3784_v1 }
0x13a1   :  { %3410 = vmatprep.subr.bf16.mxu0 %v3782_v0 }
0x13a4   :  { %3412 = vmatpush3.bf16.msra.mxu0 %v3933_v20  ;;  %v1838_v11 = vpop.permute.xlu1 %1837 }
0x13a5   :  { %3419 = vmatprep.subr.bf16.mxu0 %v3782_v0  ;;  %3215 = vmatmul.mubr.msk.f32.vlgmr.msra.gmra.mrb[20].mxu1 %vm296_vm3, %v1838_v11 }
0x13a6   :  { %3415 = vmatpush3.bf16.msra.mxu1 %v3915_v14  ;;  %3236 = vmatprep.mubr.msk.f32.mxu1 %vm3783_vm0, %v3784_v1 }
0x13a7   :  { %3416 = vmatprep.subr.bf16.mxu1 %v3782_v0 }
0x13aa   :  { %3418 = vmatpush3.bf16.msra.mxu1 %v3937_v21 }
0x13ab   :  { %3425 = vmatprep.subr.bf16.mxu1 %v3782_v0 }
0x1472   :  { %v1831_v15 = vpop.f32.mrb[20].mxu0 }
0x1473   :  { %v1835_v17 = vadd.f32 %v1831_v15, %v1762_v13  ;;  %v3205_v18 = vpop.f32.mrb[21].mxu0 }
0x1475   :  { %3579 = vtanh.f32 %v1835_v17  ;;  %v2858_v27 = vmul.f32 -1.442695, %v1835_v17 }
0x1478   :  { %v1907_v22 = vpop.f32.mrb[20].mxu1 }
0x1479   :  { %v1911_v23 = vadd.f32 %v1907_v22, %v1836_v19  ;;  %v3216_v24 = vpop.f32.mrb[21].mxu1 }
0x147b   :  { %3581 = vtanh.f32 %v1911_v23  ;;  %v2859_v28 = vmul.f32 -1.442695, %v1911_v23 }
0x147c   :  { %3583 = vpow2.f32 %v2858_v27 }
0x147d   :  { %3585 = vpow2.f32 %v2859_v28 }
0x147f   :  { %v3580_v25 = vpop.eup %3579 }
0x1480   :  { %1921 = vrot.lane.b32.xlu0 %v3580_v25, %s3785_s0 }
0x1485   :  { %v3582_v26 = vpop.eup %3581 }
0x1486   :  { %1945 = vrot.lane.b32.xlu1 %v3582_v26, %s3785_s0  ;;  %v3584_v29 = vpop.eup %3583 }
0x1487   :  { %v1915_v30 = vadd.f32 1.0, %v3584_v29  ;;  %v3586_v32 = vpop.eup %3585 }
0x1488   :  { %v1939_v34 = vadd.f32 1.0, %v3586_v32 }
0x1489   :  { %3587 = vrcp.f32 %v1915_v30 }
0x148a   :  { %3589 = vrcp.f32 %v1939_v34 }
0x1493   :  { %v3588_v35 = vpop.eup %3587 }
0x1494   :  { %v3590_v38 = vpop.eup %3589  ;;  %v1919_v41 = vmul.f32 %v3588_v35, %v1721_v61  ;;  %v2044_v61 = vld [vmem:[#allocation3 + $0x6] sm:$0x3] }
0x1495   :  { %v1943_v44 = vmul.f32 %v3590_v38, %v1745_v2 }
0x14f2   :  { %v1922_v36 = vpop.permute.xlu0 %1921 }
0x14f3   :  { %v1924_v37 = vmul.f32 %v3588_v35, %v1922_v36 }
0x14f5   :  { %1926 = vrot.lane.b32.xlu0 %v1924_v37, %s3786_s27 }
0x14f8   :  { %v1946_v39 = vpop.permute.xlu1 %1945 }
0x14f9   :  { %v1948_v40 = vmul.f32 %v3590_v38, %v1946_v39 }
0x14fb   :  { %1950 = vrot.lane.b32.xlu1 %v1948_v40, %s3786_s27 }
0x1567   :  { %v1927_v42 = vpop.permute.xlu0 %1926 }
0x1568   :  { %v1929_v43 = vadd.f32 %v1927_v42, %v1919_v41  ;;  %v2178_v41 = vld [vmem:[#allocation2 + $0x12] sm:$0x3] }
0x156a   :  { %3591 = vtanh.f32 %v1929_v43 }
0x156d   :  { %v1951_v45 = vpop.permute.xlu1 %1950 }
0x156e   :  { %v1953_v46 = vadd.f32 %v1951_v45, %v1943_v44  ;;  %v2252_v45 = vld [vmem:[#allocation3 + $0x4] sm:$0x3] }
0x1570   :  { %3593 = vtanh.f32 %v1953_v46 }
0x1574   :  { %v3592_v47 = vpop.eup %3591 }
0x1575   :  { %1932 = vrot.lane.b32.xlu0 %v3592_v47, %s3785_s0 }
0x157a   :  { %v3594_v48 = vpop.eup %3593 }
0x157b   :  { %1956 = vrot.lane.b32.xlu1 %v3594_v48, %s3785_s0 }
0x15e7   :  { %v1933_v49 = vpop.permute.xlu0 %1932 }
0x15e8   :  { %v1935_v51 = vmul.f32 %v3588_v35, %v1933_v49 }
0x15ea   :  { %1961 = vrot.lane.b32.xlu0 %v1935_v51, %s3786_s27 }
0x15ed   :  { %v1957_v52 = vpop.permute.xlu1 %1956 }
0x15ee   :  { %v4230_v53 = vmul.f32 %v3590_v38, %v1957_v52 }
0x15f0   :  { %2045 = vrot.lane.b32.xlu1 %v4230_v53, %s3786_s27 }
0x165c   :  { %v4234_v55 = vpop.permute.xlu0 %1961 }
0x165d   :  { %3226 = vmatmul.mubr.msk.f32.vlgmr.msra.gmra.mrb[22].mxu0 %vm296_vm3, %v4234_v55 }
0x165e   :  { %3421 = vmatpush3.bf16.msra.mxu0 %v3911_v12  ;;  %3247 = vmatprep.mubr.msk.f32.mxu0 %vm3783_vm0, %v3784_v1 }
0x165f   :  { %3422 = vmatprep.subr.bf16.mxu0 %v3782_v0 }
0x1662   :  { %3424 = vmatpush3.bf16.msra.mxu0 %v3933_v20  ;;  %v2046_v56 = vpop.permute.xlu1 %2045 }
0x1663   :  { %3431 = vmatprep.subr.bf16.mxu0 %v3782_v0  ;;  %3237 = vmatmul.mubr.msk.f32.vlgmr.msra.gmra.mrb[22].mxu1 %vm296_vm3, %v2046_v56 }
0x1664   :  { %3427 = vmatpush3.bf16.msra.mxu1 %v3915_v14  ;;  %3258 = vmatprep.mubr.msk.f32.mxu1 %vm3783_vm0, %v3784_v1 }
0x1665   :  { %3428 = vmatprep.subr.bf16.mxu1 %v3782_v0 }
0x1668   :  { %3430 = vmatpush3.bf16.msra.mxu1 %v3937_v21 }
0x1669   :  { %3437 = vmatprep.subr.bf16.mxu1 %v3782_v0 }
0x1730   :  { %v2039_v58 = vpop.f32.mrb[22].mxu0 }
0x1731   :  { %v2043_v59 = vadd.f32 %v2039_v58, %v1970_v57  ;;  %v3227_v60 = vpop.f32.mrb[23].mxu0 }
0x1733   :  { %3595 = vtanh.f32 %v2043_v59  ;;  %v2864_v5 = vmul.f32 -1.442695, %v2043_v59 }
0x1736   :  { %v2115_v62 = vpop.f32.mrb[22].mxu1 }
0x1737   :  { %v2119_v63 = vadd.f32 %v2115_v62, %v2044_v61  ;;  %v3238_v2 = vpop.f32.mrb[23].mxu1 }
0x1739   :  { %3597 = vtanh.f32 %v2119_v63  ;;  %v2865_v6 = vmul.f32 -1.442695, %v2119_v63 }
0x173a   :  { %3599 = vpow2.f32 %v2864_v5 }
0x173b   :  { %3601 = vpow2.f32 %v2865_v6 }
0x173d   :  { %v3596_v3 = vpop.eup %3595 }
0x173e   :  { %2129 = vrot.lane.b32.xlu0 %v3596_v3, %s3785_s0 }
0x1743   :  { %v3598_v4 = vpop.eup %3597 }
0x1744   :  { %2153 = vrot.lane.b32.xlu1 %v3598_v4, %s3785_s0  ;;  %v3600_v7 = vpop.eup %3599 }
0x1745   :  { %v2123_v11 = vadd.f32 1.0, %v3600_v7  ;;  %v3602_v13 = vpop.eup %3601 }
0x1746   :  { %v2147_v15 = vadd.f32 1.0, %v3602_v13 }
0x1747   :  { %3603 = vrcp.f32 %v2123_v11 }
0x1748   :  { %3605 = vrcp.f32 %v2147_v15 }
0x1751   :  { %v3604_v17 = vpop.eup %3603 }
0x1752   :  { %v3606_v22 = vpop.eup %3605  ;;  %v2127_v25 = vmul.f32 %v3604_v17, %v1929_v43 }
0x1753   :  { %v2151_v28 = vmul.f32 %v3606_v22, %v1953_v46 }
0x17b0   :  { %v2130_v18 = vpop.permute.xlu0 %2129 }
0x17b1   :  { %v2132_v19 = vmul.f32 %v3604_v17, %v2130_v18 }
0x17b3   :  { %2134 = vrot.lane.b32.xlu0 %v2132_v19, %s3786_s27 }
0x17b6   :  { %v2154_v23 = vpop.permute.xlu1 %2153 }
0x17b7   :  { %v2156_v24 = vmul.f32 %v3606_v22, %v2154_v23 }
0x17b9   :  { %2158 = vrot.lane.b32.xlu1 %v2156_v24, %s3786_s27 }
0x1825   :  { %v2135_v26 = vpop.permute.xlu0 %2134 }
0x1826   :  { %v2137_v27 = vadd.f32 %v2135_v26, %v2127_v25 }
0x1828   :  { %3607 = vtanh.f32 %v2137_v27 }
0x182b   :  { %v2159_v29 = vpop.permute.xlu1 %2158 }
0x182c   :  { %v2161_v30 = vadd.f32 %v2159_v29, %v2151_v28 }
0x182e   :  { %3609 = vtanh.f32 %v2161_v30 }
0x1832   :  { %v3608_v32 = vpop.eup %3607 }
0x1833   :  { %2140 = vrot.lane.b32.xlu0 %v3608_v32, %s3785_s0 }
0x1838   :  { %v3610_v34 = vpop.eup %3609 }
0x1839   :  { %2164 = vrot.lane.b32.xlu1 %v3610_v34, %s3785_s0 }
0x18a5   :  { %v2141_v35 = vpop.permute.xlu0 %2140 }
0x18a6   :  { %v2143_v36 = vmul.f32 %v3604_v17, %v2141_v35 }
0x18a8   :  { %2169 = vrot.lane.b32.xlu0 %v2143_v36, %s3786_s27 }
0x18ab   :  { %v2165_v37 = vpop.permute.xlu1 %2164 }
0x18ac   :  { %v4258_v38 = vmul.f32 %v3606_v22, %v2165_v37 }
0x18ae   :  { %2253 = vrot.lane.b32.xlu1 %v4258_v38, %s3786_s27 }
0x191a   :  { %v4262_v39 = vpop.permute.xlu0 %2169 }
0x191b   :  { %3248 = vmatmul.mubr.msk.f32.vlgmr.msra.gmra.mrb[24].mxu0 %vm296_vm3, %v4262_v39 }
0x191c   :  { %3433 = vmatpush3.bf16.msra.mxu0 %v3911_v12  ;;  %3269 = vmatprep.mubr.msk.f32.mxu0 %vm3783_vm0, %v3784_v1 }
0x191d   :  { %3434 = vmatprep.subr.bf16.mxu0 %v3782_v0 }
0x1920   :  { %3436 = vmatpush3.bf16.msra.mxu0 %v3933_v20  ;;  %v2254_v40 = vpop.permute.xlu1 %2253 }
0x1921   :  { %3443 = vmatprep.subr.bf16.mxu0 %v3782_v0  ;;  %3259 = vmatmul.mubr.msk.f32.vlgmr.msra.gmra.mrb[24].mxu1 %vm296_vm3, %v2254_v40 }
0x1922   :  { %3439 = vmatpush3.bf16.msra.mxu1 %v3915_v14  ;;  %3280 = vmatprep.mubr.msk.f32.mxu1 %vm3783_vm0, %v3784_v1 }
0x1923   :  { %3440 = vmatprep.subr.bf16.mxu1 %v3782_v0 }
0x1926   :  { %3442 = vmatpush3.bf16.msra.mxu1 %v3937_v21 }
0x1927   :  { %3449 = vmatprep.subr.bf16.mxu1 %v3782_v0 }
0x19ee   :  { %v2247_v42 = vpop.f32.mrb[24].mxu0 }
0x19ef   :  { %v2251_v43 = vadd.f32 %v2247_v42, %v2178_v41  ;;  %v3249_v44 = vpop.f32.mrb[25].mxu0 }
0x19f1   :  { %3611 = vtanh.f32 %v2251_v43  ;;  %v2870_v52 = vmul.f32 -1.442695, %v2251_v43 }
0x19f4   :  { %v2323_v46 = vpop.f32.mrb[24].mxu1 }
0x19f5   :  { %v2327_v47 = vadd.f32 %v2323_v46, %v2252_v45  ;;  %v3260_v48 = vpop.f32.mrb[25].mxu1 }
0x19f7   :  { %3613 = vtanh.f32 %v2327_v47  ;;  %v2871_v56 = vmul.f32 -1.442695, %v2327_v47 }
0x19f8   :  { %3615 = vpow2.f32 %v2870_v52 }
0x19f9   :  { %3617 = vpow2.f32 %v2871_v56 }
0x19fb   :  { %v3612_v49 = vpop.eup %3611 }
0x19fc   :  { %2337 = vrot.lane.b32.xlu0 %v3612_v49, %s3785_s0 }
0x1a01   :  { %v3614_v51 = vpop.eup %3613 }
0x1a02   :  { %2361 = vrot.lane.b32.xlu1 %v3614_v51, %s3785_s0  ;;  %v3616_v57 = vpop.eup %3615 }
0x1a03   :  { %v2331_v58 = vadd.f32 1.0, %v3616_v57  ;;  %v3618_v59 = vpop.eup %3617 }
0x1a04   :  { %v2355_v60 = vadd.f32 1.0, %v3618_v59 }
0x1a05   :  { %3619 = vrcp.f32 %v2331_v58 }
0x1a06   :  { %3621 = vrcp.f32 %v2355_v60 }
0x1a0f   :  { %v3620_v61 = vpop.eup %3619 }
0x1a10   :  { %v3622_v2 = vpop.eup %3621  ;;  %v2335_v5 = vmul.f32 %v3620_v61, %v2137_v27 }
0x1a11   :  { %v2359_v11 = vmul.f32 %v3622_v2, %v2161_v30  ;;  %v2460_v30 = vld [vmem:[#allocation3 + $0x2] sm:$0x3] }
0x1a6e   :  { %v2338_v62 = vpop.permute.xlu0 %2337 }
0x1a6f   :  { %v2340_v63 = vmul.f32 %v3620_v61, %v2338_v62 }
0x1a71   :  { %2342 = vrot.lane.b32.xlu0 %v2340_v63, %s3786_s27 }
0x1a74   :  { %v2362_v3 = vpop.permute.xlu1 %2361 }
0x1a75   :  { %v2364_v4 = vmul.f32 %v3622_v2, %v2362_v3  ;;  %v2594_v3 = vld [vmem:[#allocation2 + $0x16] sm:$0x3] }
0x1a77   :  { %2366 = vrot.lane.b32.xlu1 %v2364_v4, %s3786_s27 }
0x1ae3   :  { %v2343_v6 = vpop.permute.xlu0 %2342 }
0x1ae4   :  { %v2345_v7 = vadd.f32 %v2343_v6, %v2335_v5 }
0x1ae6   :  { %3623 = vtanh.f32 %v2345_v7 }
0x1ae9   :  { %v2367_v13 = vpop.permute.xlu1 %2366 }
0x1aea   :  { %v2369_v15 = vadd.f32 %v2367_v13, %v2359_v11 }
0x1aec   :  { %3625 = vtanh.f32 %v2369_v15 }
0x1af0   :  { %v3624_v17 = vpop.eup %3623 }
0x1af1   :  { %2348 = vrot.lane.b32.xlu0 %v3624_v17, %s3785_s0 }
0x1af6   :  { %v3626_v18 = vpop.eup %3625 }
0x1af7   :  { %2372 = vrot.lane.b32.xlu1 %v3626_v18, %s3785_s0 }
0x1b63   :  { %v2349_v19 = vpop.permute.xlu0 %2348 }
0x1b64   :  { %v2351_v22 = vmul.f32 %v3620_v61, %v2349_v19 }
0x1b66   :  { %2377 = vrot.lane.b32.xlu0 %v2351_v22, %s3786_s27 }
0x1b69   :  { %v2373_v23 = vpop.permute.xlu1 %2372 }
0x1b6a   :  { %v4286_v24 = vmul.f32 %v3622_v2, %v2373_v23 }
0x1b6c   :  { %2461 = vrot.lane.b32.xlu1 %v4286_v24, %s3786_s27 }
0x1bd8   :  { %v4290_v25 = vpop.permute.xlu0 %2377 }
0x1bd9   :  { %3270 = vmatmul.mubr.msk.f32.vlgmr.msra.gmra.mrb[26].mxu0 %vm296_vm3, %v4290_v25 }
0x1bda   :  { %3445 = vmatpush3.bf16.msra.mxu0 %v3911_v12  ;;  %3291 = vmatprep.mubr.msk.f32.mxu0 %vm3783_vm0, %v3784_v1  ;;  %v2386_v12 = vld [vmem:[#allocation2 + $0x14] sm:$0x3] }
0x1bdb   :  { %3446 = vmatprep.subr.bf16.mxu0 %v3782_v0 }
0x1bde   :  { %3448 = vmatpush3.bf16.msra.mxu0 %v3933_v20  ;;  %v2462_v26 = vpop.permute.xlu1 %2461 }
0x1bdf   :  { %3281 = vmatmul.mubr.msk.f32.vlgmr.msra.gmra.mrb[26].mxu1 %vm296_vm3, %v2462_v26 }
0x1be0   :  { %3451 = vmatpush3.bf16.msra.mxu1 %v3915_v14  ;;  %3302 = vmatprep.mubr.msk.f32.mxu1 %vm3783_vm0, %v3784_v1 }
0x1be1   :  { %3452 = vmatprep.subr.bf16.mxu1 %v3782_v0 }
0x1be4   :  { %3454 = vmatpush3.bf16.msra.mxu1 %v3937_v21 }
0x1cac   :  { %v2455_v27 = vpop.f32.mrb[26].mxu0 }
0x1cad   :  { %v2459_v28 = vadd.f32 %v2455_v27, %v2386_v12  ;;  %v3271_v29 = vpop.f32.mrb[27].mxu0 }
0x1caf   :  { %3627 = vtanh.f32 %v2459_v28  ;;  %v2876_v1 = vmul.f32 -1.442695, %v2459_v28 }
0x1cb2   :  { %v2531_v32 = vpop.f32.mrb[26].mxu1 }
0x1cb3   :  { %v2535_v20 = vadd.f32 %v2531_v32, %v2460_v30  ;;  %v3282_v34 = vpop.f32.mrb[27].mxu1 }
0x1cb5   :  { %3629 = vtanh.f32 %v2535_v20  ;;  %v2877_v0 = vmul.f32 -1.442695, %v2535_v20 }
0x1cb6   :  { %3631 = vpow2.f32 %v2876_v1 }
0x1cb7   :  { %3633 = vpow2.f32 %v2877_v0 }
0x1cb9   :  { %v3628_v35 = vpop.eup %3627 }
0x1cba   :  { %2545 = vrot.lane.b32.xlu0 %v3628_v35, %s3785_s0 }
0x1cbf   :  { %v3630_v14 = vpop.eup %3629 }
0x1cc0   :  { %2569 = vrot.lane.b32.xlu1 %v3630_v14, %s3785_s0  ;;  %v3632_v21 = vpop.eup %3631 }
0x1cc1   :  { %v2539_v36 = vadd.f32 1.0, %v3632_v21  ;;  %v3634_v37 = vpop.eup %3633 }
0x1cc2   :  { %v2563_v40 = vadd.f32 1.0, %v3634_v37 }
0x1cc3   :  { %3635 = vrcp.f32 %v2539_v36 }
0x1cc4   :  { %3637 = vrcp.f32 %v2563_v40 }
0x1ccd   :  { %v3636_v41 = vpop.eup %3635 }
0x1cce   :  { %v3638_v44 = vpop.eup %3637  ;;  %v2543_v47 = vmul.f32 %v3636_v41, %v2345_v7  ;;  %v2668_v7 = vld [vmem:[#allocation3] sm:$0x3] }
0x1ccf   :  { %v2567_v51 = vmul.f32 %v3638_v44, %v2369_v15 }
0x1d2c   :  { %v2546_v42 = vpop.permute.xlu0 %2545 }
0x1d2d   :  { %v2548_v43 = vmul.f32 %v3636_v41, %v2546_v42 }
0x1d2f   :  { %2550 = vrot.lane.b32.xlu0 %v2548_v43, %s3786_s27 }
0x1d32   :  { %v2570_v45 = vpop.permute.xlu1 %2569 }
0x1d33   :  { %v2572_v46 = vmul.f32 %v3638_v44, %v2570_v45 }
0x1d35   :  { %2574 = vrot.lane.b32.xlu1 %v2572_v46, %s3786_s27 }
0x1da1   :  { %v2551_v48 = vpop.permute.xlu0 %2550 }
0x1da2   :  { %v2553_v49 = vadd.f32 %v2551_v48, %v2543_v47 }
0x1da4   :  { %3639 = vtanh.f32 %v2553_v49 }
0x1da7   :  { %v2575_v52 = vpop.permute.xlu1 %2574 }
0x1da8   :  { %v2577_v56 = vadd.f32 %v2575_v52, %v2567_v51 }
0x1daa   :  { %3641 = vtanh.f32 %v2577_v56 }
0x1dae   :  { %v3640_v57 = vpop.eup %3639 }
0x1daf   :  { %2556 = vrot.lane.b32.xlu0 %v3640_v57, %s3785_s0 }
0x1db4   :  { %v3642_v58 = vpop.eup %3641 }
0x1db5   :  { %2580 = vrot.lane.b32.xlu1 %v3642_v58, %s3785_s0 }
0x1e21   :  { %v2557_v59 = vpop.permute.xlu0 %2556 }
0x1e22   :  { %v2559_v60 = vmul.f32 %v3636_v41, %v2557_v59 }
0x1e24   :  { %2585 = vrot.lane.b32.xlu0 %v2559_v60, %s3786_s27 }
0x1e27   :  { %v2581_v61 = vpop.permute.xlu1 %2580 }
0x1e28   :  { %v2583_v62 = vmul.f32 %v3638_v44, %v2581_v61 }
0x1e2a   :  { %2669 = vrot.lane.b32.xlu1 %v2583_v62, %s3786_s27 }
0x1e96   :  { %v4313_v63 = vpop.permute.xlu0 %2585 }
0x1e97   :  { %3292 = vmatmul.mubr.msk.f32.vlgmr.msra.gmra.mrb[28].mxu0 %vm296_vm3, %v4313_v63 }
0x1e9c   :  { %v2670_v2 = vpop.permute.xlu1 %2669 }
0x1e9d   :  { %3303 = vmatmul.mubr.msk.f32.vlgmr.msra.gmra.mrb[28].mxu1 %vm296_vm3, %v2670_v2 }
0x1f6a   :  { %v2663_v4 = vpop.f32.mrb[28].mxu0 }
0x1f6b   :  { %v2667_v5 = vadd.f32 %v2663_v4, %v2594_v3  ;;  %v3293_v6 = vpop.f32.mrb[29].mxu0 }
0x1f6d   :  { %3643 = vtanh.f32 %v2667_v5  ;;  %v2882_v19 = vmul.f32 -1.442695, %v2667_v5 }
0x1f70   :  { %v2739_v11 = vpop.f32.mrb[28].mxu1 }
0x1f71   :  { %v2743_v13 = vadd.f32 %v2739_v11, %v2668_v7  ;;  %v3304_v15 = vpop.f32.mrb[29].mxu1 }
0x1f73   :  { %3645 = vtanh.f32 %v2743_v13  ;;  %v2883_v22 = vmul.f32 -1.442695, %v2743_v13 }
0x1f74   :  { %3647 = vpow2.f32 %v2882_v19 }
0x1f75   :  { %3649 = vpow2.f32 %v2883_v22 }
0x1f77   :  { %v3644_v17 = vpop.eup %3643 }
0x1f78   :  { %2753 = vrot.lane.b32.xlu0 %v3644_v17, %s3785_s0 }
0x1f7d   :  { %v3646_v18 = vpop.eup %3645 }
0x1f7e   :  { %2777 = vrot.lane.b32.xlu1 %v3646_v18, %s3785_s0  ;;  %v3648_v23 = vpop.eup %3647 }
0x1f7f   :  { %v2747_v26 = vadd.f32 1.0, %v3648_v23  ;;  %v3650_v12 = vpop.eup %3649 }
0x1f80   :  { %v2771_v27 = vadd.f32 1.0, %v3650_v12 }
0x1f81   :  { %3651 = vrcp.f32 %v2747_v26 }
0x1f82   :  { %3653 = vrcp.f32 %v2771_v27 }
0x1f8b   :  { %v3652_v28 = vpop.eup %3651 }
0x1f8c   :  { %v3654_v32 = vpop.eup %3653  ;;  %v2751_v35 = vmul.f32 %v3652_v28, %v2553_v49 }
0x1f8d   :  { %v2775_v0 = vmul.f32 %v3654_v32, %v2577_v56 }
0x1fea   :  { %v2754_v29 = vpop.permute.xlu0 %2753 }
0x1feb   :  { %v2756_v30 = vmul.f32 %v3652_v28, %v2754_v29 }
0x1fed   :  { %2758 = vrot.lane.b32.xlu0 %v2756_v30, %s3786_s27 }
0x1ff0   :  { %v2778_v20 = vpop.permute.xlu1 %2777 }
0x1ff1   :  { %v2780_v34 = vmul.f32 %v3654_v32, %v2778_v20 }
0x1ff3   :  { %2782 = vrot.lane.b32.xlu1 %v2780_v34, %s3786_s27 }
0x205f   :  { %v2759_v14 = vpop.permute.xlu0 %2758 }
0x2060   :  { %v2761_v1 = vadd.f32 %v2759_v14, %v2751_v35 }
0x2062   :  { %3655 = vtanh.f32 %v2761_v1 }
0x2065   :  { %v2783_v21 = vpop.permute.xlu1 %2782 }
0x2066   :  { %v2785_v36 = vadd.f32 %v2783_v21, %v2775_v0 }
0x2068   :  { %3657 = vtanh.f32 %v2785_v36 }
0x206c   :  { %v3656_v37 = vpop.eup %3655 }
0x206d   :  { %2764 = vrot.lane.b32.xlu0 %v3656_v37, %s3785_s0 }
0x2071   :  { %498 = vrot.lane.b32.xlu0 %v3986_v16, %s3785_s0 }
0x2072   :  { %v3658_v40 = vpop.eup %3657 }
0x2073   :  { %2788 = vrot.lane.b32.xlu1 %v3658_v40, %s3785_s0 }
0x2075   :  { %919 = vrot.lane.b32.xlu0 %v4060_v33, %s3785_s0 }
0x2077   :  { %709 = vrot.lane.b32.xlu1 %v4023_v54, %s3785_s0 }
0x2079   :  { %1339 = vrot.lane.b32.xlu0 %v4134_v50, %s3785_s0 }
0x207b   :  { %1129 = vrot.lane.b32.xlu1 %v4097_v8, %s3785_s0 }
0x207d   :  { %1758 = vrot.lane.b32.xlu0 %v4202_v9, %s3785_s0 }
0x207f   :  { %1549 = vrot.lane.b32.xlu1 %v4171_v31, %s3785_s0 }
0x2081   :  { %2174 = vrot.lane.b32.xlu0 %v4258_v38, %s3785_s0 }
0x2083   :  { %1966 = vrot.lane.b32.xlu1 %v4230_v53, %s3785_s0 }
0x2085   :  { %2590 = vrot.lane.b32.xlu0 %v2583_v62, %s3785_s0 }
0x2087   :  { %2382 = vrot.lane.b32.xlu1 %v4286_v24, %s3785_s0 }
0x20df   :  { %v2765_v16 = vpop.permute.xlu0 %2764 }
0x20e0   :  { %v2767_v54 = vmul.f32 %v3652_v28, %v2765_v16 }
0x20e2   :  { %2793 = vrot.lane.b32.xlu1 %v2767_v54, %s3786_s27 }
0x20e3   :  { %v499_v33 = vpop.permute.xlu0 %498 }
0x20e4   :  { %2819 = vst.msk [vmem:[%s4431_s7 + $0x16] sm:$0x3] %vm502_vm4, %v499_v33 }
0x20e5   :  { %v2789_v8 = vpop.permute.xlu1 %2788 }
0x20e6   :  { %v2791_v50 = vmul.f32 %v3654_v32, %v2789_v8 }
0x20e7   :  { %v920_v31 = vpop.permute.xlu0 %919 }
0x20e8   :  { %2831 = vst.msk [vmem:[%s4431_s7 + $0x12] sm:$0x3] %vm502_vm4, %v920_v31  ;;  %2798 = vrot.lane.b32.xlu0 %v2791_v50, %s3785_s0 }
0x20e9   :  { %2872 = vst.msk [vmem:[%s4431_s7 + $0x12] sm:$0x3] %vm495_vm2, %v4290_v25  ;;  %v710_v9 = vpop.permute.xlu1 %709 }
0x20ea   :  { %2825 = vst.msk [vmem:[%s4431_s7 + $0x14] sm:$0x3] %vm502_vm4, %v710_v9 }
0x20eb   :  { %v1340_v53 = vpop.permute.xlu0 %1339  ;;  %2878 = vst.msk [vmem:[%s4431_s7 + $0x14] sm:$0x3] %vm495_vm2, %v4313_v63 }
0x20ec   :  { %2843 = vst.msk [vmem:[%s4431_s7 + $0xe] sm:$0x3] %vm502_vm4, %v1340_v53 }
0x20ed   :  { %2860 = vst.msk [vmem:[%s4431_s7 + $0xe] sm:$0x3] %vm495_vm2, %v4234_v55  ;;  %v1130_v38 = vpop.permute.xlu1 %1129 }
0x20ee   :  { %2837 = vst.msk [vmem:[%s4431_s7 + $0x10] sm:$0x3] %vm502_vm4, %v1130_v38 }
0x20ef   :  { %v1759_v24 = vpop.permute.xlu0 %1758  ;;  %2866 = vst.msk [vmem:[%s4431_s7 + $0x10] sm:$0x3] %vm495_vm2, %v4262_v39 }
0x20f0   :  { %2855 = vst.msk [vmem:[%s4431_s7 + $0xa] sm:$0x3] %vm502_vm4, %v1759_v24 }
0x20f1   :  { %v1550_v25 = vpop.permute.xlu1 %1549 }
0x20f2   :  { %2849 = vst.msk [vmem:[%s4431_s7 + $0xc] sm:$0x3] %vm502_vm4, %v1550_v25 }
0x20f3   :  { %v2175_v55 = vpop.permute.xlu0 %2174  ;;  %2854 = vst.msk [vmem:[%s4431_s7 + $0xc] sm:$0x3] %vm495_vm2, %v4206_v10 }
0x20f4   :  { %2867 = vst.msk [vmem:[%s4431_s7 + $0x6] sm:$0x3] %vm502_vm4, %v2175_v55 }
0x20f5   :  { %v1967_v39 = vpop.permute.xlu1 %1966 }
0x20f6   :  { %2861 = vst.msk [vmem:[%s4431_s7 + $0x8] sm:$0x3] %vm502_vm4, %v1967_v39 }
0x20f7   :  { %v2591_v41 = vpop.permute.xlu0 %2590 }
0x20f8   :  { %2879 = vst.msk [vmem:[%s4431_s7 + $0x2] sm:$0x3] %vm502_vm4, %v2591_v41 }
0x20f9   :  { %v2383_v42 = vpop.permute.xlu1 %2382 }
0x20fa   :  { %2873 = vst.msk [vmem:[%s4431_s7 + $0x4] sm:$0x3] %vm502_vm4, %v2383_v42 }
0x2154   :  { %v2794_v10 = vpop.permute.xlu1 %2793 }
0x2155   :  { %2884 = vst.msk [vmem:[%s4431_s7 + $0x16] sm:$0x3] %vm495_vm2, %v2794_v10 }
0x215a   :  { %v2799_v43 = vpop.permute.xlu0 %2798 }
0x215b   :  { %2801 = vst.msk [vmem:[%s4431_s7] sm:$0x3] %vm502_vm4, %v2799_v43 }
0x215c   :  { %2806 = vsyncpa [#allocation5], 1 }
0x215d   :  { %2807 = vsyncpa [#allocation7], 1 }
0x215e   :  { %2808 = vsyncpa [#allocation10], 1 }

// kernel: bilstm_merge_forward.6
= control target key start
LH: loop header
LB: loop body
LE: loop exit
PB: predicated region body
PF: predicated region fallthrough
CT: control target
= control target key end

     0   :  { %vm43_vm0 = vcmask 523264   ;;  %v2527_v31 = vmov 0.0|0.0   ;;  %vm2528_vm1 = vmmov 0   ;;  %v2529_v39 = vmov 0.0   ;;  %s2983_s1 = inlined_call_operand.vmem [shape: f32[64,128], index: 1, kind: input, shape index: {}]   ;;  %s2984_s4 = inlined_call_operand.vmem [shape: f32[64,128], index: 4, kind: input, shape index: {}]   ;;  %s2985_s0 = inlined_call_operand.vmem [shape: f32[16,64], index: 0, kind: input, shape index: {}]   ;;  %s2986_s2 = inlined_call_operand.vmem [shape: f32[32,128], index: 2, kind: input, shape index: {}]   ;;  %s2987_s5 = inlined_call_operand.vmem [shape: f32[32,128], index: 5, kind: input, shape index: {}]   ;;  %s2988_s3 = inlined_call_operand.vmem [shape: f32[1,128], index: 3, kind: input, shape index: {}]   ;;  %s2989_s6 = inlined_call_operand.vmem [shape: f32[1,128], index: 6, kind: input, shape index: {}]   ;;  %s2990_s7 = inlined_call_operand.vmem [shape: f32[8,2,64], index: 7, kind: output, shape index: {}]  }
   0x1   :  { %v28_v0 = vld [vmem:[%s2983_s1] sm:$0xff]  ;;  %v29_v1 = vld [vmem:[%s2983_s1 + $0x8] sm:$0xff]  ;;  %v30_v2 = vld [vmem:[%s2983_s1 + $0x10] sm:$0xff]  ;;  %vm427_vm2 = vcmask 254976   ;;  %vm228_vm3 = vcmask 261120   ;;  %vm434_vm4 = vcmask 517376  }
   0x2   :  { %v2266_v3 = vpack.c.bf16 %v29_v1, %v28_v0  ;;  %v31_v4 = vld [vmem:[%s2983_s1 + $0x18] sm:$0xff]  ;;  %v127_v5 = vld [vmem:[%s2984_s4] sm:$0xff]  ;;  %v128_v6 = vld [vmem:[%s2984_s4 + $0x8] sm:$0xff] }
   0x3   :  { %v2270_v7 = vpack.c.bf16 %v31_v4, %v30_v2  ;;  %v2282_v8 = vpack.c.bf16 %v128_v6, %v127_v5  ;;  %v32_v9 = vld [vmem:[%s2983_s1 + $0x20] sm:$0xff]  ;;  %v33_v10 = vld [vmem:[%s2983_s1 + $0x28] sm:$0xff]  ;;  %v129_v11 = vld [vmem:[%s2984_s4 + $0x10] sm:$0xff] }
   0x4   :  { %2267 = vmatprep.subr.bf16.mxu0 %v2266_v3  ;;  %v130_v12 = vld [vmem:[%s2984_s4 + $0x18] sm:$0xff]  ;;  %v131_v14 = vld [vmem:[%s2984_s4 + $0x20] sm:$0xff]  ;;  %v132_v15 = vld [vmem:[%s2984_s4 + $0x28] sm:$0xff]  ;;  %v2274_v17 = vpack.c.bf16 %v33_v10, %v32_v9 }
   0x5   :  { %2269 = vmatpush3.bf16.msra.mxu0 %v2266_v3  ;;  %2283 = vmatprep.subr.bf16.mxu1 %v2282_v8  ;;  %v2286_v13 = vpack.c.bf16 %v130_v12, %v129_v11  ;;  %v26_v16 = vld [vmem:[%s2985_s0] sm:$0xff]  ;;  %v34_v18 = vld [vmem:[%s2983_s1 + $0x30] sm:$0xff]  ;;  %v35_v19 = vld [vmem:[%s2983_s1 + $0x38] sm:$0xff]  ;;  %v2290_v20 = vpack.c.bf16 %v132_v15, %v131_v14 }
   0x6   :  { %2271 = vmatprep.subr.bf16.mxu0 %v2270_v7  ;;  %2285 = vmatpush3.bf16.msra.mxu1 %v2282_v8  ;;  %v133_v21 = vld [vmem:[%s2984_s4 + $0x30] sm:$0xff]  ;;  %v134_v22 = vld [vmem:[%s2984_s4 + $0x38] sm:$0xff]  ;;  %v2278_v23 = vpack.c.bf16 %v35_v19, %v34_v18  ;;  %v219_v25 = vld [vmem:[%s2986_s2] sm:$0xff] }
   0x7   :  { %2287 = vmatprep.subr.bf16.mxu1 %v2286_v13  ;;  %2068 = vmatprep.mubr.msk.f32.mxu0 %vm43_vm0, %v26_v16  ;;  %v2294_v24 = vpack.c.bf16 %v134_v22, %v133_v21  ;;  %v220_v26 = vld [vmem:[%s2986_s2 + $0x8] sm:$0xff]  ;;  %v223_v27 = vld [vmem:[%s2987_s5] sm:$0xff]  ;;  %v221_v32 = vld [vmem:[%s2986_s2 + $0x10] sm:$0xff] }
   0x8   :  { %2087 = vmatprep.mubr.msk.f32.mxu1 %vm43_vm0, %v26_v16  ;;  %v224_v28 = vld [vmem:[%s2987_s5 + $0x8] sm:$0xff]  ;;  %v2640_v30 = vpack.c.bf16 %v220_v26, %v219_v25  ;;  %v222_v33 = vld [vmem:[%s2986_s2 + $0x18] sm:$0xff]  ;;  %v225_v35 = vld [vmem:[%s2987_s5 + $0x10] sm:$0xff] }
   0x9   :  { %2273 = vmatpush3.bf16.msra.mxu0 %v2270_v7  ;;  %v27_v29 = vld [vmem:[%s2985_s0 + $0x8] sm:$0xff]  ;;  %v2649_v34 = vpack.c.bf16 %v224_v28, %v223_v27  ;;  %v226_v36 = vld [vmem:[%s2987_s5 + $0x18] sm:$0xff]  ;;  %v2661_v37 = vpack.c.bf16 %v222_v33, %v221_v32  ;;  %v1902_v40 = vld [vmem:[%s2988_s3] ss:$0 sm:$0xff]  ;;  %s2530_s3 = smov 64  }
   0xa   :  { %2275 = vmatprep.subr.bf16.mxu0 %v2274_v17  ;;  %2289 = vmatpush3.bf16.msra.mxu1 %v2286_v13  ;;  %v2665_v38 = vpack.c.bf16 %v226_v36, %v225_v35  ;;  %v1905_v41 = vld [vmem:[%s2989_s6] ss:$0 sm:$0xff]  ;;  %s2531_s6 = smov 32  }
   0xb   :  { %2291 = vmatprep.subr.bf16.mxu1 %v2290_v20 }
   0xd   :  { %2277 = vmatpush3.bf16.msra.mxu0 %v2274_v17 }
   0xe   :  { %2279 = vmatprep.subr.bf16.mxu0 %v2278_v23  ;;  %2293 = vmatpush3.bf16.msra.mxu1 %v2290_v20 }
   0xf   :  { %2295 = vmatprep.subr.bf16.mxu1 %v2294_v24 }
  0x11   :  { %2281 = vmatpush3.bf16.msra.mxu0 %v2278_v23 }
  0x12   :  { %2297 = vmatpush3.bf16.msra.mxu1 %v2294_v24  ;;  %2298 = vmatprep.subr.bf16.mxu0 %v2527_v31 }
  0x13   :  { %2304 = vmatprep.subr.bf16.mxu1 %v2527_v31 }
  0x14   :  { %2069 = vmatmul.mubr.msk.f32.vlgmr.msra.gmra.mrb[0].mxu0 %vm43_vm0, %v27_v29 }
  0x15   :  { %2300 = vmatpush3.bf16.msra.mxu0 %v2640_v30  ;;  %2088 = vmatmul.mubr.msk.f32.vlgmr.msra.gmra.mrb[0].mxu1 %vm43_vm0, %v27_v29 }
  0x16   :  { %2301 = vmatprep.subr.bf16.mxu0 %v2527_v31  ;;  %2306 = vmatpush3.bf16.msra.mxu1 %v2649_v34 }
  0x17   :  { %2098 = vmatprep.mubr.msk.f32.mxu0 %vm2528_vm1, %v2529_v39  ;;  %2307 = vmatprep.subr.bf16.mxu1 %v2527_v31 }
  0x18   :  { %2109 = vmatprep.mubr.msk.f32.mxu1 %vm2528_vm1, %v2529_v39 }
  0x19   :  { %2303 = vmatpush3.bf16.msra.mxu0 %v2661_v37 }
  0x1a   :  { %2309 = vmatpush3.bf16.msra.mxu1 %v2665_v38  ;;  %2310 = vmatprep.subr.bf16.mxu0 %v2527_v31 }
  0x1b   :  { %2316 = vmatprep.subr.bf16.mxu1 %v2527_v31 }
  0x1c   :  { %2099 = vmatmul.mubr.f32.vlgmr.msra.gmra.mrb[2].mxu0 %v2529_v39 }
  0x1d   :  { %2110 = vmatmul.mubr.f32.vlgmr.msra.gmra.mrb[2].mxu1 %v2529_v39  ;;  %2312 = vmatpush3.bf16.msra.mxu0 %v2640_v30 }
  0x1e   :  { %2313 = vmatprep.subr.bf16.mxu0 %v2527_v31  ;;  %2318 = vmatpush3.bf16.msra.mxu1 %v2649_v34 }
  0x1f   :  { %2120 = vmatprep.mubr.msk.f32.mxu0 %vm2528_vm1, %v2529_v39  ;;  %2319 = vmatprep.subr.bf16.mxu1 %v2527_v31 }
  0x20   :  { %2131 = vmatprep.mubr.msk.f32.mxu1 %vm2528_vm1, %v2529_v39 }
  0x21   :  { %2315 = vmatpush3.bf16.msra.mxu0 %v2661_v37 }
  0x22   :  { %2321 = vmatpush3.bf16.msra.mxu1 %v2665_v38  ;;  %2322 = vmatprep.subr.bf16.mxu0 %v2527_v31 }
  0x23   :  { %2328 = vmatprep.subr.bf16.mxu1 %v2527_v31 }
  0xe7   :  { %v2070_v42 = vpop.f32.mrb[0].mxu0 }
  0xe8   :  { %v122_v43 = vadd.f32 %v2070_v42, %v1902_v40  ;;  %v116_v44 = vpop.f32.mrb[1].mxu0  ;;  %v2089_v45 = vpop.f32.mrb[0].mxu1 }
  0xe9   :  { %v117_v46 = vadd.f32 %v1902_v40, %v116_v44  ;;  %v214_v47 = vadd.f32 %v2089_v45, %v1905_v41  ;;  %v208_v48 = vpop.f32.mrb[1].mxu1 }
  0xea   :  { %126 = vst [vmem:[#allocation2 + $0x8] sm:$0xff] %v122_v43  ;;  %v209_v49 = vadd.f32 %v1905_v41, %v208_v48 }
  0xeb   :  { %125 = vst [vmem:[#allocation2] sm:$0xff] %v117_v46  ;;  %218 = vst [vmem:[#allocation3 + $0x8] sm:$0xff] %v214_v47 }
  0xec   :  { %217 = vst [vmem:[#allocation3] sm:$0xff] %v209_v49 }
  0xef   :  { %v298_v50 = vpop.f32.mrb[2].mxu0 }
  0xf0   :  { %v2100_v51 = vpop.f32.mrb[3].mxu0  ;;  %v370_v52 = vpop.f32.mrb[2].mxu1 }
  0xf1   :  { %v2111_v53 = vpop.f32.mrb[3].mxu1 }
  0xf2   :  { %v227_v54 = vld [vmem:[#allocation2] sm:$0x3]  ;;  %v303_v55 = vld [vmem:[#allocation3 + $0xe] sm:$0x3]  ;;  %v436_v22 = vld [vmem:[#allocation2 + $0x2] sm:$0x3] }
  0xf3   :  { %v302_v56 = vadd.f32 %v298_v50, %v227_v54  ;;  %v374_v57 = vadd.f32 %v370_v52, %v303_v55  ;;  %v510_v26 = vld [vmem:[#allocation3 + $0xc] sm:$0x3] }
  0xf5   :  { %2399 = vtanh.f32 %v302_v56  ;;  %v1908_v60 = vmul.f32 -1.442695, %v302_v56  ;;  %v1909_v61 = vmul.f32 -1.442695, %v374_v57 }
  0xf6   :  { %2401 = vtanh.f32 %v374_v57 }
  0xf7   :  { %2403 = vpow2.f32 %v1908_v60 }
  0xf8   :  { %2405 = vpow2.f32 %v1909_v61 }
  0xff   :  { %v2400_v58 = vpop.eup %2399 }
 0x100   :  { %384 = vrot.lane.b32.xlu0 %v2400_v58, %s2530_s3  ;;  %v2402_v59 = vpop.eup %2401 }
 0x101   :  { %v2404_v62 = vpop.eup %2403 }
 0x102   :  { %v378_v63 = vadd.f32 1.0, %v2404_v62  ;;  %v2406_v0 = vpop.eup %2405 }
 0x103   :  { %v402_v1 = vadd.f32 1.0, %v2406_v0  ;;  %v646_v0 = vld [vmem:[#allocation2 + $0x4] sm:$0x3] }
 0x104   :  { %408 = vrot.lane.b32.xlu0 %v2402_v59, %s2530_s3  ;;  %2407 = vrcp.f32 %v378_v63 }
 0x105   :  { %2409 = vrcp.f32 %v402_v1 }
 0x10e   :  { %v2408_v2 = vpop.eup %2407 }
 0x10f   :  { %v2410_v5 = vpop.eup %2409  ;;  %v382_v8 = vmul.f32 0.0, %v2408_v2 }
 0x110   :  { %v406_v11 = vmul.f32 0.0, %v2410_v5 }
 0x172   :  { %v385_v3 = vpop.permute.xlu0 %384 }
 0x173   :  { %v387_v4 = vmul.f32 %v2408_v2, %v385_v3 }
 0x175   :  { %389 = vrot.lane.b32.xlu1 %v387_v4, %s2531_s6  ;;  %v720_v4 = vld [vmem:[#allocation3 + $0xa] sm:$0x3] }
 0x176   :  { %v409_v6 = vpop.permute.xlu0 %408 }
 0x177   :  { %v411_v7 = vmul.f32 %v2410_v5, %v409_v6 }
 0x179   :  { %413 = vrot.lane.b32.xlu1 %v411_v7, %s2531_s6 }
 0x1e7   :  { %v390_v9 = vpop.permute.xlu1 %389 }
 0x1e8   :  { %v2700_v10 = vadd.f32 %v390_v9, %v382_v8 }
 0x1ea   :  { %2411 = vtanh.f32 %v2700_v10 }
 0x1eb   :  { %v414_v12 = vpop.permute.xlu1 %413 }
 0x1ec   :  { %v2703_v13 = vadd.f32 %v414_v12, %v406_v11 }
 0x1ee   :  { %2413 = vtanh.f32 %v2703_v13 }
 0x1f4   :  { %v2412_v14 = vpop.eup %2411 }
 0x1f5   :  { %395 = vrot.lane.b32.xlu0 %v2412_v14, %s2530_s3 }
 0x1f8   :  { %v2414_v15 = vpop.eup %2413 }
 0x1f9   :  { %419 = vrot.lane.b32.xlu1 %v2414_v15, %s2530_s3 }
 0x267   :  { %v396_v16 = vpop.permute.xlu0 %395 }
 0x268   :  { %v398_v17 = vmul.f32 %v2408_v2, %v396_v16 }
 0x26a   :  { %424 = vrot.lane.b32.xlu0 %v398_v17, %s2531_s6 }
 0x26b   :  { %v420_v18 = vpop.permute.xlu1 %419 }
 0x26c   :  { %v2709_v19 = vmul.f32 %v2410_v5, %v420_v18 }
 0x26e   :  { %511 = vrot.lane.b32.xlu1 %v2709_v19, %s2531_s6 }
 0x2dc   :  { %v425_v20 = vpop.permute.xlu0 %424 }
 0x2dd   :  { %428 = vst.msk [vmem:[%s2990_s7] sm:$0x3] %vm427_vm2, %v425_v20  ;;  %2121 = vmatmul.mubr.msk.f32.vlgmr.msra.gmra.mrb[4].mxu0 %vm228_vm3, %v425_v20 }
 0x2de   :  { %2324 = vmatpush3.bf16.msra.mxu0 %v2640_v30  ;;  %2142 = vmatprep.mubr.msk.f32.mxu0 %vm2528_vm1, %v2529_v39 }
 0x2df   :  { %2325 = vmatprep.subr.bf16.mxu0 %v2527_v31 }
 0x2e0   :  { %v512_v21 = vpop.permute.xlu1 %511 }
 0x2e1   :  { %2132 = vmatmul.mubr.msk.f32.vlgmr.msra.gmra.mrb[4].mxu1 %vm228_vm3, %v512_v21 }
 0x2e2   :  { %2327 = vmatpush3.bf16.msra.mxu0 %v2661_v37  ;;  %2330 = vmatpush3.bf16.msra.mxu1 %v2649_v34 }
 0x2e3   :  { %2331 = vmatprep.subr.bf16.mxu1 %v2527_v31  ;;  %2153 = vmatprep.mubr.msk.f32.mxu1 %vm2528_vm1, %v2529_v39 }
 0x2e4   :  { %2334 = vmatprep.subr.bf16.mxu0 %v2527_v31 }
 0x2e6   :  { %2333 = vmatpush3.bf16.msra.mxu1 %v2665_v38 }
 0x2e7   :  { %2340 = vmatprep.subr.bf16.mxu1 %v2527_v31 }
 0x3b0   :  { %v505_v23 = vpop.f32.mrb[4].mxu0 }
 0x3b1   :  { %v509_v24 = vadd.f32 %v505_v23, %v436_v22  ;;  %v2122_v25 = vpop.f32.mrb[5].mxu0 }
 0x3b3   :  { %2415 = vtanh.f32 %v509_v24  ;;  %v1913_v35 = vmul.f32 -1.442695, %v509_v24 }
 0x3b4   :  { %v581_v27 = vpop.f32.mrb[4].mxu1 }
 0x3b5   :  { %v585_v28 = vadd.f32 %v581_v27, %v510_v26  ;;  %v2133_v29 = vpop.f32.mrb[5].mxu1 }
 0x3b7   :  { %2417 = vtanh.f32 %v585_v28  ;;  %v1914_v36 = vmul.f32 -1.442695, %v585_v28 }
 0x3b8   :  { %2419 = vpow2.f32 %v1913_v35 }
 0x3b9   :  { %2421 = vpow2.f32 %v1914_v36 }
 0x3bd   :  { %v2416_v32 = vpop.eup %2415 }
 0x3be   :  { %595 = vrot.lane.b32.xlu0 %v2416_v32, %s2530_s3 }
 0x3c1   :  { %v2418_v33 = vpop.eup %2417 }
 0x3c2   :  { %619 = vrot.lane.b32.xlu1 %v2418_v33, %s2530_s3  ;;  %v2420_v40 = vpop.eup %2419 }
 0x3c3   :  { %v589_v41 = vadd.f32 1.0, %v2420_v40  ;;  %v2422_v42 = vpop.eup %2421 }
 0x3c4   :  { %v613_v43 = vadd.f32 1.0, %v2422_v42 }
 0x3c5   :  { %2423 = vrcp.f32 %v589_v41 }
 0x3c6   :  { %2425 = vrcp.f32 %v613_v43  ;;  %v856_v43 = vld [vmem:[#allocation2 + $0x6] sm:$0x3] }
 0x3cf   :  { %v2424_v44 = vpop.eup %2423 }
 0x3d0   :  { %v2426_v47 = vpop.eup %2425  ;;  %v593_v50 = vmul.f32 %v2424_v44, %v2700_v10 }
 0x3d1   :  { %v617_v53 = vmul.f32 %v2426_v47, %v2703_v13 }
 0x430   :  { %v596_v45 = vpop.permute.xlu0 %595 }
 0x431   :  { %v598_v46 = vmul.f32 %v2424_v44, %v596_v45 }
 0x433   :  { %600 = vrot.lane.b32.xlu0 %v598_v46, %s2531_s6 }
 0x434   :  { %v620_v48 = vpop.permute.xlu1 %619 }
 0x435   :  { %v622_v49 = vmul.f32 %v2426_v47, %v620_v48 }
 0x437   :  { %624 = vrot.lane.b32.xlu1 %v622_v49, %s2531_s6 }
 0x4a5   :  { %v601_v51 = vpop.permute.xlu0 %600 }
 0x4a6   :  { %v2736_v52 = vadd.f32 %v601_v51, %v593_v50 }
 0x4a8   :  { %2427 = vtanh.f32 %v2736_v52 }
 0x4a9   :  { %v625_v54 = vpop.permute.xlu1 %624 }
 0x4aa   :  { %v2740_v55 = vadd.f32 %v625_v54, %v617_v53 }
 0x4ac   :  { %2429 = vtanh.f32 %v2740_v55 }
 0x4b2   :  { %v2428_v56 = vpop.eup %2427 }
 0x4b3   :  { %606 = vrot.lane.b32.xlu0 %v2428_v56, %s2530_s3 }
 0x4b6   :  { %v2430_v57 = vpop.eup %2429 }
 0x4b7   :  { %630 = vrot.lane.b32.xlu1 %v2430_v57, %s2530_s3 }
 0x525   :  { %v607_v58 = vpop.permute.xlu0 %606 }
 0x526   :  { %v609_v59 = vmul.f32 %v2424_v44, %v607_v58 }
 0x528   :  { %635 = vrot.lane.b32.xlu0 %v609_v59, %s2531_s6 }
 0x529   :  { %v631_v60 = vpop.permute.xlu1 %630 }
 0x52a   :  { %v2746_v61 = vmul.f32 %v2426_v47, %v631_v60  ;;  %v930_v47 = vld [vmem:[#allocation3 + $0x8] sm:$0x3] }
 0x52c   :  { %721 = vrot.lane.b32.xlu1 %v2746_v61, %s2531_s6 }
 0x59a   :  { %v636_v62 = vpop.permute.xlu0 %635 }
 0x59b   :  { %1915 = vst.msk [vmem:[%s2990_s7 + $0x2] sm:$0x3] %vm427_vm2, %v636_v62  ;;  %2143 = vmatmul.mubr.msk.f32.vlgmr.msra.gmra.mrb[6].mxu0 %vm228_vm3, %v636_v62 }
 0x59c   :  { %2336 = vmatpush3.bf16.msra.mxu0 %v2640_v30  ;;  %2164 = vmatprep.mubr.msk.f32.mxu0 %vm2528_vm1, %v2529_v39 }
 0x59d   :  { %2337 = vmatprep.subr.bf16.mxu0 %v2527_v31 }
 0x59e   :  { %v722_v63 = vpop.permute.xlu1 %721 }
 0x59f   :  { %2154 = vmatmul.mubr.msk.f32.vlgmr.msra.gmra.mrb[6].mxu1 %vm228_vm3, %v722_v63 }
 0x5a0   :  { %2339 = vmatpush3.bf16.msra.mxu0 %v2661_v37  ;;  %2342 = vmatpush3.bf16.msra.mxu1 %v2649_v34 }
 0x5a1   :  { %2343 = vmatprep.subr.bf16.mxu1 %v2527_v31  ;;  %2175 = vmatprep.mubr.msk.f32.mxu1 %vm2528_vm1, %v2529_v39 }
 0x5a2   :  { %2346 = vmatprep.subr.bf16.mxu0 %v2527_v31 }
 0x5a4   :  { %2345 = vmatpush3.bf16.msra.mxu1 %v2665_v38 }
 0x5a5   :  { %2352 = vmatprep.subr.bf16.mxu1 %v2527_v31 }
 0x66e   :  { %v715_v1 = vpop.f32.mrb[6].mxu0 }
 0x66f   :  { %v719_v2 = vadd.f32 %v715_v1, %v646_v0  ;;  %v2144_v3 = vpop.f32.mrb[7].mxu0 }
 0x671   :  { %2431 = vtanh.f32 %v719_v2  ;;  %v1919_v10 = vmul.f32 -1.442695, %v719_v2 }
 0x672   :  { %v791_v5 = vpop.f32.mrb[6].mxu1 }
 0x673   :  { %v795_v6 = vadd.f32 %v791_v5, %v720_v4  ;;  %v2155_v7 = vpop.f32.mrb[7].mxu1 }
 0x675   :  { %2433 = vtanh.f32 %v795_v6  ;;  %v1920_v11 = vmul.f32 -1.442695, %v795_v6 }
 0x676   :  { %2435 = vpow2.f32 %v1919_v10 }
 0x677   :  { %2437 = vpow2.f32 %v1920_v11 }
 0x67b   :  { %v2432_v8 = vpop.eup %2431 }
 0x67c   :  { %805 = vrot.lane.b32.xlu0 %v2432_v8, %s2530_s3 }
 0x67f   :  { %v2434_v9 = vpop.eup %2433 }
 0x680   :  { %829 = vrot.lane.b32.xlu1 %v2434_v9, %s2530_s3  ;;  %v2436_v12 = vpop.eup %2435 }
 0x681   :  { %v799_v13 = vadd.f32 1.0, %v2436_v12  ;;  %v2438_v14 = vpop.eup %2437 }
 0x682   :  { %v823_v15 = vadd.f32 1.0, %v2438_v14 }
 0x683   :  { %2439 = vrcp.f32 %v799_v13 }
 0x684   :  { %2441 = vrcp.f32 %v823_v15 }
 0x68d   :  { %v2440_v16 = vpop.eup %2439 }
 0x68e   :  { %v2442_v20 = vpop.eup %2441  ;;  %v803_v23 = vmul.f32 %v2440_v16, %v2736_v52 }
 0x68f   :  { %v827_v26 = vmul.f32 %v2442_v20, %v2740_v55 }
 0x6ee   :  { %v806_v17 = vpop.permute.xlu0 %805 }
 0x6ef   :  { %v808_v18 = vmul.f32 %v2440_v16, %v806_v17 }
 0x6f1   :  { %810 = vrot.lane.b32.xlu0 %v808_v18, %s2531_s6 }
 0x6f2   :  { %v830_v21 = vpop.permute.xlu1 %829 }
 0x6f3   :  { %v832_v22 = vmul.f32 %v2442_v20, %v830_v21  ;;  %v1140_v21 = vld [vmem:[#allocation3 + $0x6] sm:$0x3] }
 0x6f5   :  { %834 = vrot.lane.b32.xlu1 %v832_v22, %s2531_s6 }
 0x763   :  { %v811_v24 = vpop.permute.xlu0 %810 }
 0x764   :  { %v2773_v25 = vadd.f32 %v811_v24, %v803_v23 }
 0x766   :  { %2443 = vtanh.f32 %v2773_v25 }
 0x767   :  { %v835_v27 = vpop.permute.xlu1 %834 }
 0x768   :  { %v2777_v28 = vadd.f32 %v835_v27, %v827_v26 }
 0x76a   :  { %2445 = vtanh.f32 %v2777_v28 }
 0x770   :  { %v2444_v29 = vpop.eup %2443 }
 0x771   :  { %816 = vrot.lane.b32.xlu0 %v2444_v29, %s2530_s3 }
 0x774   :  { %v2446_v32 = vpop.eup %2445 }
 0x775   :  { %840 = vrot.lane.b32.xlu1 %v2446_v32, %s2530_s3 }
 0x7e3   :  { %v817_v33 = vpop.permute.xlu0 %816 }
 0x7e4   :  { %v819_v35 = vmul.f32 %v2440_v16, %v817_v33  ;;  %v1066_v16 = vld [vmem:[#allocation2 + $0x8] sm:$0x3] }
 0x7e6   :  { %845 = vrot.lane.b32.xlu0 %v819_v35, %s2531_s6 }
 0x7e7   :  { %v841_v36 = vpop.permute.xlu1 %840 }
 0x7e8   :  { %v2783_v40 = vmul.f32 %v2442_v20, %v841_v36 }
 0x7ea   :  { %931 = vrot.lane.b32.xlu1 %v2783_v40, %s2531_s6 }
 0x858   :  { %v846_v41 = vpop.permute.xlu0 %845 }
 0x859   :  { %1921 = vst.msk [vmem:[%s2990_s7 + $0x4] sm:$0x3] %vm427_vm2, %v846_v41  ;;  %2165 = vmatmul.mubr.msk.f32.vlgmr.msra.gmra.mrb[8].mxu0 %vm228_vm3, %v846_v41 }
 0x85a   :  { %2348 = vmatpush3.bf16.msra.mxu0 %v2640_v30  ;;  %2186 = vmatprep.mubr.msk.f32.mxu0 %vm2528_vm1, %v2529_v39 }
 0x85b   :  { %2349 = vmatprep.subr.bf16.mxu0 %v2527_v31 }
 0x85c   :  { %v932_v42 = vpop.permute.xlu1 %931 }
 0x85d   :  { %2176 = vmatmul.mubr.msk.f32.vlgmr.msra.gmra.mrb[8].mxu1 %vm228_vm3, %v932_v42 }
 0x85e   :  { %2351 = vmatpush3.bf16.msra.mxu0 %v2661_v37  ;;  %2354 = vmatpush3.bf16.msra.mxu1 %v2649_v34 }
 0x85f   :  { %2355 = vmatprep.subr.bf16.mxu1 %v2527_v31  ;;  %2197 = vmatprep.mubr.msk.f32.mxu1 %vm2528_vm1, %v2529_v39 }
 0x860   :  { %2358 = vmatprep.subr.bf16.mxu0 %v2527_v31 }
 0x862   :  { %2357 = vmatpush3.bf16.msra.mxu1 %v2665_v38 }
 0x863   :  { %2364 = vmatprep.subr.bf16.mxu1 %v2527_v31 }
 0x92c   :  { %v925_v44 = vpop.f32.mrb[8].mxu0 }
 0x92d   :  { %v929_v45 = vadd.f32 %v925_v44, %v856_v43  ;;  %v2166_v46 = vpop.f32.mrb[9].mxu0 }
 0x92f   :  { %2447 = vtanh.f32 %v929_v45  ;;  %v1925_v53 = vmul.f32 -1.442695, %v929_v45 }
 0x930   :  { %v1001_v48 = vpop.f32.mrb[8].mxu1 }
 0x931   :  { %v1005_v49 = vadd.f32 %v1001_v48, %v930_v47  ;;  %v2177_v50 = vpop.f32.mrb[9].mxu1 }
 0x933   :  { %2449 = vtanh.f32 %v1005_v49  ;;  %v1926_v54 = vmul.f32 -1.442695, %v1005_v49 }
 0x934   :  { %2451 = vpow2.f32 %v1925_v53 }
 0x935   :  { %2453 = vpow2.f32 %v1926_v54 }
 0x939   :  { %v2448_v51 = vpop.eup %2447 }
 0x93a   :  { %1015 = vrot.lane.b32.xlu0 %v2448_v51, %s2530_s3 }
 0x93d   :  { %v2450_v52 = vpop.eup %2449 }
 0x93e   :  { %1039 = vrot.lane.b32.xlu1 %v2450_v52, %s2530_s3  ;;  %v2452_v55 = vpop.eup %2451 }
 0x93f   :  { %v1009_v56 = vadd.f32 1.0, %v2452_v55  ;;  %v2454_v57 = vpop.eup %2453 }
 0x940   :  { %v1033_v58 = vadd.f32 1.0, %v2454_v57 }
 0x941   :  { %2455 = vrcp.f32 %v1009_v56 }
 0x942   :  { %2457 = vrcp.f32 %v1033_v58 }
 0x94b   :  { %v2456_v59 = vpop.eup %2455 }
 0x94c   :  { %v2458_v63 = vpop.eup %2457  ;;  %v1013_v2 = vmul.f32 %v2456_v59, %v2773_v25 }
 0x94d   :  { %v1037_v5 = vmul.f32 %v2458_v63, %v2777_v28 }
 0x9ac   :  { %v1016_v60 = vpop.permute.xlu0 %1015 }
 0x9ad   :  { %v1018_v62 = vmul.f32 %v2456_v59, %v1016_v60  ;;  %v1274_v60 = vld [vmem:[#allocation2 + $0xa] sm:$0x3] }
 0x9af   :  { %1020 = vrot.lane.b32.xlu0 %v1018_v62, %s2531_s6 }
 0x9b0   :  { %v1040_v0 = vpop.permute.xlu1 %1039 }
 0x9b1   :  { %v1042_v1 = vmul.f32 %v2458_v63, %v1040_v0 }
 0x9b3   :  { %1044 = vrot.lane.b32.xlu1 %v1042_v1, %s2531_s6  ;;  %v1348_v1 = vld [vmem:[#allocation3 + $0x4] sm:$0x3] }
 0xa21   :  { %v1021_v3 = vpop.permute.xlu0 %1020 }
 0xa22   :  { %v2810_v4 = vadd.f32 %v1021_v3, %v1013_v2 }
 0xa24   :  { %2459 = vtanh.f32 %v2810_v4 }
 0xa25   :  { %v1045_v6 = vpop.permute.xlu1 %1044 }
 0xa26   :  { %v2814_v7 = vadd.f32 %v1045_v6, %v1037_v5 }
 0xa28   :  { %2461 = vtanh.f32 %v2814_v7 }
 0xa2e   :  { %v2460_v8 = vpop.eup %2459 }
 0xa2f   :  { %1026 = vrot.lane.b32.xlu0 %v2460_v8, %s2530_s3 }
 0xa32   :  { %v2462_v9 = vpop.eup %2461 }
 0xa33   :  { %1050 = vrot.lane.b32.xlu1 %v2462_v9, %s2530_s3 }
 0xaa1   :  { %v1027_v10 = vpop.permute.xlu0 %1026 }
 0xaa2   :  { %v1029_v11 = vmul.f32 %v2456_v59, %v1027_v10 }
 0xaa4   :  { %1055 = vrot.lane.b32.xlu0 %v1029_v11, %s2531_s6 }
 0xaa5   :  { %v1051_v12 = vpop.permute.xlu1 %1050 }
 0xaa6   :  { %v2820_v13 = vmul.f32 %v2458_v63, %v1051_v12 }
 0xaa8   :  { %1141 = vrot.lane.b32.xlu1 %v2820_v13, %s2531_s6 }
 0xb16   :  { %v1056_v14 = vpop.permute.xlu0 %1055 }
 0xb17   :  { %1927 = vst.msk [vmem:[%s2990_s7 + $0x6] sm:$0x3] %vm427_vm2, %v1056_v14  ;;  %2187 = vmatmul.mubr.msk.f32.vlgmr.msra.gmra.mrb[10].mxu0 %vm228_vm3, %v1056_v14 }
 0xb18   :  { %2360 = vmatpush3.bf16.msra.mxu0 %v2640_v30  ;;  %2208 = vmatprep.mubr.msk.f32.mxu0 %vm2528_vm1, %v2529_v39 }
 0xb19   :  { %2361 = vmatprep.subr.bf16.mxu0 %v2527_v31 }
 0xb1a   :  { %v1142_v15 = vpop.permute.xlu1 %1141 }
 0xb1b   :  { %2198 = vmatmul.mubr.msk.f32.vlgmr.msra.gmra.mrb[10].mxu1 %vm228_vm3, %v1142_v15 }
 0xb1c   :  { %2363 = vmatpush3.bf16.msra.mxu0 %v2661_v37  ;;  %2366 = vmatpush3.bf16.msra.mxu1 %v2649_v34 }
 0xb1d   :  { %2367 = vmatprep.subr.bf16.mxu1 %v2527_v31  ;;  %2219 = vmatprep.mubr.msk.f32.mxu1 %vm2528_vm1, %v2529_v39 }
 0xb1e   :  { %2370 = vmatprep.subr.bf16.mxu0 %v2527_v31 }
 0xb20   :  { %2369 = vmatpush3.bf16.msra.mxu1 %v2665_v38 }
 0xb21   :  { %2376 = vmatprep.subr.bf16.mxu1 %v2527_v31 }
 0xbea   :  { %v1135_v17 = vpop.f32.mrb[10].mxu0 }
 0xbeb   :  { %v1139_v18 = vadd.f32 %v1135_v17, %v1066_v16  ;;  %v2188_v20 = vpop.f32.mrb[11].mxu0 }
 0xbed   :  { %2463 = vtanh.f32 %v1139_v18  ;;  %v1931_v27 = vmul.f32 -1.442695, %v1139_v18 }
 0xbee   :  { %v1211_v22 = vpop.f32.mrb[10].mxu1 }
 0xbef   :  { %v1215_v23 = vadd.f32 %v1211_v22, %v1140_v21  ;;  %v2199_v24 = vpop.f32.mrb[11].mxu1 }
 0xbf1   :  { %2465 = vtanh.f32 %v1215_v23  ;;  %v1932_v28 = vmul.f32 -1.442695, %v1215_v23 }
 0xbf2   :  { %2467 = vpow2.f32 %v1931_v27 }
 0xbf3   :  { %2469 = vpow2.f32 %v1932_v28 }
 0xbf7   :  { %v2464_v25 = vpop.eup %2463 }
 0xbf8   :  { %1225 = vrot.lane.b32.xlu0 %v2464_v25, %s2530_s3 }
 0xbfb   :  { %v2466_v26 = vpop.eup %2465 }
 0xbfc   :  { %1249 = vrot.lane.b32.xlu1 %v2466_v26, %s2530_s3  ;;  %v2468_v29 = vpop.eup %2467 }
 0xbfd   :  { %v1219_v32 = vadd.f32 1.0, %v2468_v29  ;;  %v2470_v33 = vpop.eup %2469 }
 0xbfe   :  { %v1243_v35 = vadd.f32 1.0, %v2470_v33 }
 0xbff   :  { %2471 = vrcp.f32 %v1219_v32 }
 0xc00   :  { %2473 = vrcp.f32 %v1243_v35 }
 0xc09   :  { %v2472_v36 = vpop.eup %2471 }
 0xc0a   :  { %v2474_v43 = vpop.eup %2473  ;;  %v1223_v46 = vmul.f32 %v2472_v36, %v2810_v4 }
 0xc0b   :  { %v1247_v49 = vmul.f32 %v2474_v43, %v2814_v7 }
 0xc6a   :  { %v1226_v41 = vpop.permute.xlu0 %1225 }
 0xc6b   :  { %v1228_v42 = vmul.f32 %v2472_v36, %v1226_v41 }
 0xc6d   :  { %1230 = vrot.lane.b32.xlu0 %v1228_v42, %s2531_s6 }
 0xc6e   :  { %v1250_v44 = vpop.permute.xlu1 %1249 }
 0xc6f   :  { %v1252_v45 = vmul.f32 %v2474_v43, %v1250_v44 }
 0xc71   :  { %1254 = vrot.lane.b32.xlu1 %v1252_v45, %s2531_s6  ;;  %v1556_v45 = vld [vmem:[#allocation3 + $0x2] sm:$0x3] }
 0xcdf   :  { %v1231_v47 = vpop.permute.xlu0 %1230 }
 0xce0   :  { %v1233_v48 = vadd.f32 %v1231_v47, %v1223_v46 }
 0xce2   :  { %2475 = vtanh.f32 %v1233_v48 }
 0xce3   :  { %v1255_v50 = vpop.permute.xlu1 %1254 }
 0xce4   :  { %v1257_v51 = vadd.f32 %v1255_v50, %v1247_v49 }
 0xce6   :  { %2477 = vtanh.f32 %v1257_v51 }
 0xcec   :  { %v2476_v52 = vpop.eup %2475 }
 0xced   :  { %1236 = vrot.lane.b32.xlu0 %v2476_v52, %s2530_s3 }
 0xcf0   :  { %v2478_v53 = vpop.eup %2477 }
 0xcf1   :  { %1260 = vrot.lane.b32.xlu1 %v2478_v53, %s2530_s3 }
 0xd5f   :  { %v1237_v54 = vpop.permute.xlu0 %1236 }
 0xd60   :  { %v1239_v55 = vmul.f32 %v2472_v36, %v1237_v54 }
 0xd62   :  { %1265 = vrot.lane.b32.xlu0 %v1239_v55, %s2531_s6 }
 0xd63   :  { %v1261_v56 = vpop.permute.xlu1 %1260 }
 0xd64   :  { %v2851_v57 = vmul.f32 %v2474_v43, %v1261_v56 }
 0xd66   :  { %1349 = vrot.lane.b32.xlu1 %v2851_v57, %s2531_s6 }
 0xdd4   :  { %v2855_v58 = vpop.permute.xlu0 %1265 }
 0xdd5   :  { %2209 = vmatmul.mubr.msk.f32.vlgmr.msra.gmra.mrb[12].mxu0 %vm228_vm3, %v2855_v58 }
 0xdd6   :  { %2372 = vmatpush3.bf16.msra.mxu0 %v2640_v30  ;;  %2230 = vmatprep.mubr.msk.f32.mxu0 %vm2528_vm1, %v2529_v39 }
 0xdd7   :  { %2373 = vmatprep.subr.bf16.mxu0 %v2527_v31 }
 0xdd8   :  { %v1350_v59 = vpop.permute.xlu1 %1349 }
 0xdd9   :  { %2220 = vmatmul.mubr.msk.f32.vlgmr.msra.gmra.mrb[12].mxu1 %vm228_vm3, %v1350_v59 }
 0xdda   :  { %2375 = vmatpush3.bf16.msra.mxu0 %v2661_v37  ;;  %2378 = vmatpush3.bf16.msra.mxu1 %v2649_v34 }
 0xddb   :  { %2379 = vmatprep.subr.bf16.mxu1 %v2527_v31  ;;  %2241 = vmatprep.mubr.msk.f32.mxu1 %vm2528_vm1, %v2529_v39 }
 0xddc   :  { %2382 = vmatprep.subr.bf16.mxu0 %v2527_v31 }
 0xdde   :  { %2381 = vmatpush3.bf16.msra.mxu1 %v2665_v38 }
 0xddf   :  { %2388 = vmatprep.subr.bf16.mxu1 %v2527_v31 }
 0xea8   :  { %v1343_v62 = vpop.f32.mrb[12].mxu0 }
 0xea9   :  { %v1347_v63 = vadd.f32 %v1343_v62, %v1274_v60  ;;  %v2210_v0 = vpop.f32.mrb[13].mxu0 }
 0xeab   :  { %2479 = vtanh.f32 %v1347_v63  ;;  %v1937_v7 = vmul.f32 -1.442695, %v1347_v63 }
 0xeac   :  { %v1419_v2 = vpop.f32.mrb[12].mxu1 }
 0xead   :  { %v1423_v3 = vadd.f32 %v1419_v2, %v1348_v1  ;;  %v2221_v4 = vpop.f32.mrb[13].mxu1 }
 0xeaf   :  { %2481 = vtanh.f32 %v1423_v3  ;;  %v1938_v8 = vmul.f32 -1.442695, %v1423_v3 }
 0xeb0   :  { %2483 = vpow2.f32 %v1937_v7 }
 0xeb1   :  { %2485 = vpow2.f32 %v1938_v8 }
 0xeb5   :  { %v2480_v5 = vpop.eup %2479 }
 0xeb6   :  { %1433 = vrot.lane.b32.xlu0 %v2480_v5, %s2530_s3 }
 0xeb9   :  { %v2482_v6 = vpop.eup %2481 }
 0xeba   :  { %1457 = vrot.lane.b32.xlu1 %v2482_v6, %s2530_s3  ;;  %v2484_v9 = vpop.eup %2483 }
 0xebb   :  { %v1427_v10 = vadd.f32 1.0, %v2484_v9  ;;  %v2486_v11 = vpop.eup %2485 }
 0xebc   :  { %v1451_v12 = vadd.f32 1.0, %v2486_v11  ;;  %v1690_v11 = vld [vmem:[#allocation2 + $0xe] sm:$0x3] }
 0xebd   :  { %2487 = vrcp.f32 %v1427_v10 }
 0xebe   :  { %2489 = vrcp.f32 %v1451_v12 }
 0xec7   :  { %v2488_v14 = vpop.eup %2487 }
 0xec8   :  { %v2490_v17 = vpop.eup %2489  ;;  %v1431_v21 = vmul.f32 %v2488_v14, %v1233_v48 }
 0xec9   :  { %v1455_v24 = vmul.f32 %v2490_v17, %v1257_v51 }
 0xf28   :  { %v1434_v15 = vpop.permute.xlu0 %1433 }
 0xf29   :  { %v1436_v16 = vmul.f32 %v2488_v14, %v1434_v15 }
 0xf2b   :  { %1438 = vrot.lane.b32.xlu0 %v1436_v16, %s2531_s6  ;;  %v1764_v16 = vld [vmem:[#allocation3] sm:$0x3] }
 0xf2c   :  { %v1458_v18 = vpop.permute.xlu1 %1457 }
 0xf2d   :  { %v1460_v20 = vmul.f32 %v2490_v17, %v1458_v18 }
 0xf2f   :  { %1462 = vrot.lane.b32.xlu1 %v1460_v20, %s2531_s6 }
 0xf9d   :  { %v1439_v22 = vpop.permute.xlu0 %1438 }
 0xf9e   :  { %v1441_v23 = vadd.f32 %v1439_v22, %v1431_v21 }
 0xfa0   :  { %2491 = vtanh.f32 %v1441_v23 }
 0xfa1   :  { %v1463_v25 = vpop.permute.xlu1 %1462 }
 0xfa2   :  { %v1465_v26 = vadd.f32 %v1463_v25, %v1455_v24 }
 0xfa4   :  { %2493 = vtanh.f32 %v1465_v26 }
 0xfaa   :  { %v2492_v27 = vpop.eup %2491 }
 0xfab   :  { %1444 = vrot.lane.b32.xlu0 %v2492_v27, %s2530_s3 }
 0xfae   :  { %v2494_v28 = vpop.eup %2493 }
 0xfaf   :  { %1468 = vrot.lane.b32.xlu1 %v2494_v28, %s2530_s3 }
0x101d   :  { %v1445_v29 = vpop.permute.xlu0 %1444 }
0x101e   :  { %v1447_v32 = vmul.f32 %v2488_v14, %v1445_v29 }
0x1020   :  { %1473 = vrot.lane.b32.xlu0 %v1447_v32, %s2531_s6 }
0x1021   :  { %v1469_v33 = vpop.permute.xlu1 %1468 }
0x1022   :  { %v2879_v35 = vmul.f32 %v2490_v17, %v1469_v33 }
0x1024   :  { %1557 = vrot.lane.b32.xlu1 %v2879_v35, %s2531_s6 }
0x1092   :  { %v2883_v36 = vpop.permute.xlu0 %1473 }
0x1093   :  { %2231 = vmatmul.mubr.msk.f32.vlgmr.msra.gmra.mrb[14].mxu0 %vm228_vm3, %v2883_v36 }
0x1094   :  { %2384 = vmatpush3.bf16.msra.mxu0 %v2640_v30  ;;  %2252 = vmatprep.mubr.msk.f32.mxu0 %vm2528_vm1, %v2529_v39  ;;  %v1482_v30 = vld [vmem:[#allocation2 + $0xc] sm:$0x3] }
0x1095   :  { %2385 = vmatprep.subr.bf16.mxu0 %v2527_v31 }
0x1096   :  { %v1558_v41 = vpop.permute.xlu1 %1557 }
0x1097   :  { %2242 = vmatmul.mubr.msk.f32.vlgmr.msra.gmra.mrb[14].mxu1 %vm228_vm3, %v1558_v41 }
0x1098   :  { %2387 = vmatpush3.bf16.msra.mxu0 %v2661_v37  ;;  %2390 = vmatpush3.bf16.msra.mxu1 %v2649_v34 }
0x1099   :  { %2391 = vmatprep.subr.bf16.mxu1 %v2527_v31  ;;  %2263 = vmatprep.mubr.msk.f32.mxu1 %vm2528_vm1, %v2529_v39 }
0x109c   :  { %2393 = vmatpush3.bf16.msra.mxu1 %v2665_v38 }
0x1166   :  { %v1551_v42 = vpop.f32.mrb[14].mxu0 }
0x1167   :  { %v1555_v43 = vadd.f32 %v1551_v42, %v1482_v30  ;;  %v2232_v44 = vpop.f32.mrb[15].mxu0 }
0x1169   :  { %2495 = vtanh.f32 %v1555_v43  ;;  %v1943_v31 = vmul.f32 -1.442695, %v1555_v43 }
0x116a   :  { %v1627_v46 = vpop.f32.mrb[14].mxu1 }
0x116b   :  { %v1631_v47 = vadd.f32 %v1627_v46, %v1556_v45  ;;  %v2243_v48 = vpop.f32.mrb[15].mxu1 }
0x116d   :  { %2497 = vtanh.f32 %v1631_v47  ;;  %v1944_v39 = vmul.f32 -1.442695, %v1631_v47 }
0x116e   :  { %2499 = vpow2.f32 %v1943_v31 }
0x116f   :  { %2501 = vpow2.f32 %v1944_v39 }
0x1173   :  { %v2496_v37 = vpop.eup %2495 }
0x1174   :  { %1641 = vrot.lane.b32.xlu0 %v2496_v37, %s2530_s3 }
0x1177   :  { %v2498_v34 = vpop.eup %2497 }
0x1178   :  { %1665 = vrot.lane.b32.xlu1 %v2498_v34, %s2530_s3  ;;  %v2500_v38 = vpop.eup %2499 }
0x1179   :  { %v1635_v49 = vadd.f32 1.0, %v2500_v38  ;;  %v2502_v50 = vpop.eup %2501 }
0x117a   :  { %v1659_v51 = vadd.f32 1.0, %v2502_v50 }
0x117b   :  { %2503 = vrcp.f32 %v1635_v49 }
0x117c   :  { %2505 = vrcp.f32 %v1659_v51 }
0x1185   :  { %v2504_v52 = vpop.eup %2503 }
0x1186   :  { %v2506_v55 = vpop.eup %2505  ;;  %v1639_v60 = vmul.f32 %v2504_v52, %v1441_v23 }
0x1187   :  { %v1663_v0 = vmul.f32 %v2506_v55, %v1465_v26 }
0x11e6   :  { %v1642_v53 = vpop.permute.xlu0 %1641 }
0x11e7   :  { %v1644_v54 = vmul.f32 %v2504_v52, %v1642_v53 }
0x11e9   :  { %1646 = vrot.lane.b32.xlu0 %v1644_v54, %s2531_s6 }
0x11ea   :  { %v1666_v56 = vpop.permute.xlu1 %1665 }
0x11eb   :  { %v1668_v59 = vmul.f32 %v2506_v55, %v1666_v56 }
0x11ed   :  { %1670 = vrot.lane.b32.xlu1 %v1668_v59, %s2531_s6 }
0x125b   :  { %v1647_v62 = vpop.permute.xlu0 %1646 }
0x125c   :  { %v1649_v63 = vadd.f32 %v1647_v62, %v1639_v60 }
0x125e   :  { %2507 = vtanh.f32 %v1649_v63 }
0x125f   :  { %v1671_v1 = vpop.permute.xlu1 %1670 }
0x1260   :  { %v1673_v2 = vadd.f32 %v1671_v1, %v1663_v0 }
0x1262   :  { %2509 = vtanh.f32 %v1673_v2 }
0x1268   :  { %v2508_v3 = vpop.eup %2507 }
0x1269   :  { %1652 = vrot.lane.b32.xlu0 %v2508_v3, %s2530_s3 }
0x126c   :  { %v2510_v4 = vpop.eup %2509 }
0x126d   :  { %1676 = vrot.lane.b32.xlu1 %v2510_v4, %s2530_s3 }
0x12db   :  { %v1653_v5 = vpop.permute.xlu0 %1652 }
0x12dc   :  { %v1655_v6 = vmul.f32 %v2504_v52, %v1653_v5 }
0x12de   :  { %1681 = vrot.lane.b32.xlu0 %v1655_v6, %s2531_s6 }
0x12df   :  { %v1677_v7 = vpop.permute.xlu1 %1676 }
0x12e0   :  { %v1679_v8 = vmul.f32 %v2506_v55, %v1677_v7 }
0x12e2   :  { %1765 = vrot.lane.b32.xlu1 %v1679_v8, %s2531_s6 }
0x1350   :  { %v2906_v9 = vpop.permute.xlu0 %1681 }
0x1351   :  { %2253 = vmatmul.mubr.msk.f32.vlgmr.msra.gmra.mrb[16].mxu0 %vm228_vm3, %v2906_v9 }
0x1354   :  { %v1766_v10 = vpop.permute.xlu1 %1765 }
0x1355   :  { %2264 = vmatmul.mubr.msk.f32.vlgmr.msra.gmra.mrb[16].mxu1 %vm228_vm3, %v1766_v10 }
0x1424   :  { %v1759_v12 = vpop.f32.mrb[16].mxu0 }
0x1425   :  { %v1763_v14 = vadd.f32 %v1759_v12, %v1690_v11  ;;  %v2254_v15 = vpop.f32.mrb[17].mxu0 }
0x1427   :  { %2511 = vtanh.f32 %v1763_v14  ;;  %v1949_v23 = vmul.f32 -1.442695, %v1763_v14 }
0x1428   :  { %v1835_v17 = vpop.f32.mrb[16].mxu1 }
0x1429   :  { %v1839_v18 = vadd.f32 %v1835_v17, %v1764_v16  ;;  %v2265_v20 = vpop.f32.mrb[17].mxu1 }
0x142b   :  { %2513 = vtanh.f32 %v1839_v18  ;;  %v1950_v24 = vmul.f32 -1.442695, %v1839_v18 }
0x142c   :  { %2515 = vpow2.f32 %v1949_v23 }
0x142d   :  { %2517 = vpow2.f32 %v1950_v24 }
0x1431   :  { %v2512_v21 = vpop.eup %2511 }
0x1432   :  { %1849 = vrot.lane.b32.xlu0 %v2512_v21, %s2530_s3 }
0x1435   :  { %v2514_v22 = vpop.eup %2513 }
0x1436   :  { %1873 = vrot.lane.b32.xlu1 %v2514_v22, %s2530_s3  ;;  %v2516_v25 = vpop.eup %2515 }
0x1437   :  { %v1843_v26 = vadd.f32 1.0, %v2516_v25  ;;  %v2518_v27 = vpop.eup %2517 }
0x1438   :  { %v1867_v28 = vadd.f32 1.0, %v2518_v27 }
0x1439   :  { %2519 = vrcp.f32 %v1843_v26 }
0x143a   :  { %2521 = vrcp.f32 %v1867_v28 }
0x1443   :  { %v2520_v29 = vpop.eup %2519 }
0x1444   :  { %v2522_v41 = vpop.eup %2521  ;;  %v1847_v43 = vmul.f32 %v2520_v29, %v1649_v63 }
0x1445   :  { %v1871_v46 = vmul.f32 %v2522_v41, %v1673_v2 }
0x14a4   :  { %v1850_v32 = vpop.permute.xlu0 %1849 }
0x14a5   :  { %v1852_v33 = vmul.f32 %v2520_v29, %v1850_v32 }
0x14a7   :  { %1854 = vrot.lane.b32.xlu0 %v1852_v33, %s2531_s6 }
0x14a8   :  { %v1874_v30 = vpop.permute.xlu1 %1873 }
0x14a9   :  { %v1876_v42 = vmul.f32 %v2522_v41, %v1874_v30 }
0x14ab   :  { %1878 = vrot.lane.b32.xlu1 %v1876_v42, %s2531_s6 }
0x1519   :  { %v1855_v44 = vpop.permute.xlu0 %1854 }
0x151a   :  { %v1857_v45 = vadd.f32 %v1855_v44, %v1847_v43 }
0x151c   :  { %2523 = vtanh.f32 %v1857_v45 }
0x151d   :  { %v1879_v47 = vpop.permute.xlu1 %1878 }
0x151e   :  { %v1881_v48 = vadd.f32 %v1879_v47, %v1871_v46 }
0x1520   :  { %2525 = vtanh.f32 %v1881_v48 }
0x1526   :  { %v2524_v37 = vpop.eup %2523 }
0x1527   :  { %1860 = vrot.lane.b32.xlu0 %v2524_v37, %s2530_s3 }
0x152a   :  { %v2526_v34 = vpop.eup %2525 }
0x152b   :  { %1884 = vrot.lane.b32.xlu1 %v2526_v34, %s2530_s3  ;;  %430 = vrot.lane.b32.xlu0 %v2709_v19, %s2530_s3 }
0x152f   :  { %641 = vrot.lane.b32.xlu1 %v2746_v61, %s2530_s3  ;;  %851 = vrot.lane.b32.xlu0 %v2783_v40, %s2530_s3 }
0x1533   :  { %1061 = vrot.lane.b32.xlu1 %v2820_v13, %s2530_s3  ;;  %1270 = vrot.lane.b32.xlu0 %v2851_v57, %s2530_s3 }
0x1537   :  { %1478 = vrot.lane.b32.xlu1 %v2879_v35, %s2530_s3  ;;  %1686 = vrot.lane.b32.xlu0 %v1679_v8, %s2530_s3 }
0x1599   :  { %v1861_v31 = vpop.permute.xlu0 %1860 }
0x159a   :  { %v1863_v39 = vmul.f32 %v2520_v29, %v1861_v31 }
0x159c   :  { %1889 = vrot.lane.b32.xlu1 %v1863_v39, %s2531_s6 }
0x159d   :  { %v1885_v19 = vpop.permute.xlu1 %1884  ;;  %v431_v61 = vpop.permute.xlu0 %430 }
0x159e   :  { %v1887_v38 = vmul.f32 %v2522_v41, %v1885_v19  ;;  %1910 = vst.msk [vmem:[%s2990_s7 + $0xe] sm:$0x3] %vm434_vm4, %v431_v61 }
0x15a0   :  { %1894 = vrot.lane.b32.xlu0 %v1887_v38, %s2530_s3 }
0x15a1   :  { %v642_v40 = vpop.permute.xlu1 %641  ;;  %v852_v13 = vpop.permute.xlu0 %851 }
0x15a2   :  { %1916 = vst.msk [vmem:[%s2990_s7 + $0xc] sm:$0x3] %vm434_vm4, %v642_v40  ;;  %1922 = vst.msk [vmem:[%s2990_s7 + $0xa] sm:$0x3] %vm434_vm4, %v852_v13 }
0x15a3   :  { %1945 = vst.msk [vmem:[%s2990_s7 + $0xc] sm:$0x3] %vm427_vm2, %v2906_v9  ;;  %1939 = vst.msk [vmem:[%s2990_s7 + $0xa] sm:$0x3] %vm427_vm2, %v2883_v36 }
0x15a5   :  { %v1062_v57 = vpop.permute.xlu1 %1061  ;;  %v1271_v35 = vpop.permute.xlu0 %1270 }
0x15a6   :  { %1928 = vst.msk [vmem:[%s2990_s7 + $0x8] sm:$0x3] %vm434_vm4, %v1062_v57  ;;  %1934 = vst.msk [vmem:[%s2990_s7 + $0x6] sm:$0x3] %vm434_vm4, %v1271_v35 }
0x15a7   :  { %1933 = vst.msk [vmem:[%s2990_s7 + $0x8] sm:$0x3] %vm427_vm2, %v2855_v58 }
0x15a9   :  { %v1479_v49 = vpop.permute.xlu1 %1478  ;;  %v1687_v36 = vpop.permute.xlu0 %1686 }
0x15aa   :  { %1940 = vst.msk [vmem:[%s2990_s7 + $0x4] sm:$0x3] %vm434_vm4, %v1479_v49  ;;  %1946 = vst.msk [vmem:[%s2990_s7 + $0x2] sm:$0x3] %vm434_vm4, %v1687_v36 }
0x160e   :  { %v1890_v50 = vpop.permute.xlu1 %1889 }
0x160f   :  { %1951 = vst.msk [vmem:[%s2990_s7 + $0xe] sm:$0x3] %vm427_vm2, %v1890_v50 }
0x1612   :  { %v1895_v51 = vpop.permute.xlu0 %1894 }
0x1613   :  { %1897 = vst.msk [vmem:[%s2990_s7] sm:$0x3] %vm434_vm4, %v1895_v51 }

// kernel: bilstm_merge_forward.9
= control target key start
LH: loop header
LB: loop body
LE: loop exit
PB: predicated region body
PF: predicated region fallthrough
CT: control target
= control target key end

     0   :  { %7 = vsyncpa [#allocation3], 0  ;;  %s587_s0 = inlined_call_operand.vmem [shape: f32[2,8,64], index: 0, kind: input, shape index: {}]   ;;  %s588_s1 = inlined_call_operand.vmem [shape: f32[2,12,64], index: 1, kind: input, shape index: {}]   ;;  %s589_s2 = inlined_call_operand.hbm [shape: f32[2,8,12], index: 2, kind: output, shape index: {}]  }
   0x1   :  { %9 = vsyncpa [#allocation3 + $0x1], 0  ;;  %s484_s9 = smov 0   ;;  %s486_s10 = smov 0  }
   0x2   :  { %s488_s11 = smov 0   ;;  %s490_s12 = smov 0  }
   0x3 LB: > { %s505_s13 = sadd.s32 4294967295, %s463_s12   ;;  %s329_s14 = sadd.s32 4294967294, %s463_s12   ;;  %s463_s12 = sphi %s490_s12, %s595_s12   ;;  %s459_s11 = sphi %s488_s11, %s594_s11   ;;  %s455_s10 = sphi %s486_s10, %s593_s10   ;;  %s451_s9 = sphi %s484_s9, %s592_s9  }
   0x4   : > { %s509_s15 = sadd.s32 1, %s463_s12   ;;  %s74_s16 = sadd.s32 1, %s459_s11 }
   0x5   : > { %s71_s17 = ssub.s32 %s463_s12, %s509_s15  ;;  %p84_p0 = scmp.ne.s32.totalorder %s459_s11, %s455_s10 }
   0x6   : > { %p72_p1 = scmp.eq.s32.totalorder %s71_s17, 0  ;;  %p85_p2 = scmp.eq.s32.totalorder %s505_s13, 1 }
   0x7   : > { %p90_p3 = scmp.ne.s32.totalorder %s455_s10, %s451_s9  ;;  %p91_p4 = scmp.eq.s32.totalorder %s329_s14, 1 }
   0x8   : > { %s520_s18 = scalar_select %p72_p1, %s459_s11, %s74_s16  }
   0x9   : > { %p522_p5 = por %p85_p2, %p84_p0  ;;  %p526_p6 = por %p91_p4, %p90_p3 }
   0xa   : > { %p332_p7 = scmp.ge.s32.totalorder %s463_s12, 1  ;;  %p124_p8 = scmp.lt.s32.totalorder %s463_s12, 3 }
   0xc   : > { %p125_p9 = pnand %p332_p7, %p124_p8 }
   0xd   : > { %p150_p10 = scmp.lt.s32.totalorder (!%p125_p9), %s505_s13, 1  ;;  %v465_v0 = vmov (!%p125_p9), 0.0|0.0   ;;  %vm466_vm0 = vmmov (!%p125_p9), 0   ;;  %v467_v1 = vmov (!%p125_p9), 0.0   ;;  %vm162_vm1 = vcmask (!%p125_p9), 523264   ;;  %s147_s30 = sand.u32 (!%p125_p9), 1, %s455_s10  }
   0xe   : > { %128 = sbr.rel (%p125_p9) target bundleno = 261 (0x105), region = 28  ;;  %355 = vmatprep.subr.bf16.mxu0 (!%p125_p9), %v465_v0  ;;  %352 = vmatprep.mubr.msk.f32.mxu0 (!%p125_p9), %vm466_vm0, %v467_v1  ;;  %vm357_vm2 = vmpackc.low (!%p125_p9), %vm162_vm1, %vm162_vm1  ;;  %s333_s3 = sshll.u32 (!%p125_p9), %s147_s30, 3  ;;  %vm242_vm3 = vcmask (!%p125_p9), 97280  }
   0xf   : > { %s341_s4 = sshll.u32 (!%p125_p9), %s505_s13, 7  ;;  %s149_s5 = scalar_lea.vmem (!%p125_p9), [#allocation2], %s333_s3 }
  0x10   : > { %s258_s6 = sshll.u32 (!%p125_p9), %s149_s5, 4  ;;  %s545_s14 = scalar_lea.hbm (!%p125_p9), %s589_s2, %s341_s4  ;;  %s547_s6 = int_to_ptr.vmem [resolvable:$true] %s258_s6 }
  0x11   : > { %s245_s16 = scalar_lea.sflag (!%p125_p9), [#allocation3], %s147_s30  ;;  %s401_s17 = scalar_lea.vmem (!%p125_p9), %s547_s6, 128 }
  0x12   : > { %p402_p11 = scmp.ne.s32.totalorder (!%p125_p9), %s547_s6, %s401_s17 }
  0x14   : > { %p403_p12 = pnand (!%p125_p9), %p402_p11, %p522_p5 }
  0x15   : > { %s151_s21 = scalar_select %p150_p10, %s505_s13, 1 }
  0x16   : > { %p404_p13 = pneg %p403_p12  ;;  %s468_s13 = smov [#allocation2]  }
  0x17   : > { %s344_s22 = sshll.u32 %s151_s21, 4  ;;  %s334_s26 = sshll.u32 %s151_s21, 3 }
  0x18   : > { %s158_s25 = scalar_lea.vmem %s588_s1, %s344_s22  ;;  %s153_s29 = scalar_lea.vmem %s587_s0, %s334_s26 }
  0x19   : > { %v160_v2 = vld [vmem:[%s158_s25] sm:$0xff]  ;;  %v161_v3 = vld [vmem:[%s158_s25 + $0x8] sm:$0xf]  ;;  %s405_s21 = sshll.u32 %s468_s13, 4  ;;  %s406_s21 = int_to_ptr.vmem [resolvable:$false] %s405_s21 }
  0x1a   : > { %v356_v4 = vpack.c.bf16 %v161_v3, %v160_v2  ;;  %v159_v5 = vld [vmem:[%s153_s29] sm:$0xff]  ;;  %s407_s22 = scalar_lea.vmem %s406_s21, 256  ;;  %p408_p0 = scmp.lt.s32.totalorder %s547_s6, %s406_s21 }
  0x1b   : > { %p409_p1 = scmp.lt.s32.totalorder %s407_s22, %s401_s17 }
  0x1c   : > { %358 = vmatpush3.bf16.xpose.msk.msra.mxu0 %vm357_vm2, %v356_v4 }
  0x1d   : > { %p410_p2 = por %p409_p1, %p408_p0 }
  0x1f   : > { %p411_p3 = pnand %p410_p2, %p404_p13 }
  0x23   : > { %353 = vmatmul.mubr.msk.f32.vlgmr.msra.gmra.mrb[0].mxu0 %vm162_vm1, %v159_v5 }
  0xf6   : > { %v238_v6 = vpop.f32.mrb[0].mxu0 }
  0xf7   : > { %243 = vst.msk [vmem:[%s149_s5] sm:$0xff] %vm242_vm3, %v238_v6  ;;  %v354_v7 = vpop.f32.mrb[1].mxu0 }
  0xf8   : > { %414 = shalt.err (!%p411_p3)
}
  0xf9   : > { %s415_s23 = scalar_lea.hbm %s545_s14, 128  ;;  %s419_s26 = scalar_lea.hbm %s589_s2, 256 }
  0xfa   : > { %p416_p4 = scmp.ne.s32.totalorder %s545_s14, %s415_s23  ;;  %p420_p9 = scmp.lt.u32.totalorder %s545_s14, %s589_s2 }
  0xfb   : > { %p421_p10 = scmp.lt.u32.totalorder %s419_s26, %s415_s23  ;;  %p423_p12 = scmp.lt.u32.totalorder %s415_s23, %s545_s14 }
  0xfc   : > { %p417_p7 = pnand %p416_p4, %p522_p5 }
  0xfd   : > { %p422_p11 = por %p421_p10, %p420_p9 }
  0xfe   : > { %p418_p8 = pneg %p417_p7 }
  0xff   : > { %p424_p13 = por %p423_p12, %p422_p11 }
 0x101   : > { %p425_p0 = pnand %p424_p13, %p418_p8 }
 0x103   : > { %428 = shalt.err (!%p425_p0)
}
 0x104   : > { %359 = dma.vmem_to_hbm [thread:$0]  (%p522_p5), %s547_s6, 128, %s545_s14, %s245_s16  }
 0x105 PF: > { %p365_p1 = scmp.ge.s32.totalorder %s463_s12, 2  ;;  %s270_s29 = sand.u32 1, %s451_s9  }
 0x106   : > { %s271_s30 = scalar_lea.sflag [#allocation3], %s270_s29 }
 0x107   : > { %p362_p2 = pnand %p365_p1, %p526_p6 }
 0x109   : > { %446 = dma.done.wait (!%p362_p2), %s271_s30, 128  }
 0x10a   : > { %448 = vsyncadd (!%p362_p2), %s271_s30, 4294967168  ;;  %p12_p3 = scmp.ge.s32.totalorder %s509_s15, 4   ;;  %s592_s9 = smov %s455_s10 }
 0x10b   : > { %s593_s10 = smov %s459_s11  ;;  %s594_s11 = smov %s520_s18 }
 0x10c   : > { %s595_s12 = smov %s509_s15  ;;  %14 = sbr.rel (!%p12_p3) target bundleno = 3 (0x3), region = 66 }
 0x113   :  { %276 = vsyncpa [#allocation3], 1 }
 0x114   :  { %278 = vsyncpa [#allocation3 + $0x1], 1 }

</bundles_post_ra>
